<compile_context>
chip_gen: v5e
topology: v5e:2x2
jax: 0.10.0
libtpu: 0.0.40
codegen_flags: <defaults>
</compile_context>

<pallas_src>
import jax
import jax.numpy as jnp
import numpy as np
from jax.experimental import pallas as pl
from jax.experimental.pallas import tpu as pltpu


# ---------------------------------------------------------------------------
# Pallas kernel: the full recurrence for one batch block, everything resident
# ---------------------------------------------------------------------------
def _decoder_recurrent_kernel(
    # inputs
    features_ref,   # (BH, N, E)    bf16  encoder features (this batch block)
    u_hs_ref,       # (BH, N, A)    bf16  U(features) + u_b   (step-invariant)
    gates_x_ref,    # (Tm1, BH, 4D) f32   embeds @ wih[:M] + b_ih + b_hh
    w_h_ref,        # (D, A + 4D)   bf16  fused [attention W | LSTM whh]
    w_b_ref,        # (1, A)        f32   attention W bias
    a_w_ref,        # (1, A)        bf16  attention score head (row vector)
    wih_ctx_ref,    # (E, 4D)       bf16  context half of LSTM input weights
    h0_ref,         # (BH, D)       f32
    c0_ref,         # (BH, D)       f32
    # outputs (VMEM-resident, written back once per batch block)
    h_out_ref,      # (Tm1, BH, D)  f32
    alphas_ref,     # (Tm1, BH, N)  f32
):
    BH, D = h0_ref.shape
    N = features_ref.shape[1]
    A = w_b_ref.shape[1]
    Tm1 = h_out_ref.shape[0]

    # Loop-invariant broadcasts materialized once (JAX does not CSE broadcast_in_dim
    # across the statically unrolled steps).
    w_b_full = jnp.broadcast_to(w_b_ref[...], (BH, A))                          # f32
    a_w_full = jnp.broadcast_to(a_w_ref[...].reshape(1, 1, A), (BH, N, A))      # bf16

    h = h0_ref[...]
    c = c0_ref[...]

    # Static trip count -> fully unrolled; no per-step grid/pipeline overhead.
    for s in range(Tm1):
        # -- fused h matmul: [w_ah | h_gates] = h @ [w_w | whh]  (one MXU launch) --
        z = jnp.dot(h.astype(jnp.bfloat16), w_h_ref[...],
                    preferred_element_type=jnp.float32)                          # (BH, A+4D)

        # -- attention (U(features) precomputed; a_b dropped: softmax shift-invariant) --
        w_ah = z[:, :A] + w_b_full                                               # (BH, A) f32
        comb = jnp.tanh(u_hs_ref[...] + w_ah[:, None, :].astype(jnp.bfloat16))   # (BH,N,A) bf16
        scores = jnp.sum((comb * a_w_full).astype(jnp.float32), axis=-1)         # (BH, N) f32
        scores = scores - jnp.max(scores, axis=1, keepdims=True)
        e = jnp.exp(scores)
        alpha = e * pl.reciprocal(jnp.sum(e, axis=1, keepdims=True), approx=True)

        # -- context: broadcast-mul + sublane reduce over the N regions (f32 accum) --
        # TODO(synk): at production N (49/196) switch scores/context to MXU einsums and
        # keep the alphas output lane-dense (pad N to 128); at N=8 the VPU path wins.
        ctx = jnp.sum(
            (alpha.astype(jnp.bfloat16)[:, :, None] * features_ref[...]).astype(jnp.float32),
            axis=1)                                                              # (BH, E) f32

        # -- LSTMCell (embedding half precomputed; hidden half comes from z) --
        gates = (gates_x_ref[s] + z[:, A:]
                 + jnp.dot(ctx.astype(jnp.bfloat16), wih_ctx_ref[...],
                           preferred_element_type=jnp.float32))                  # (BH, 4D) f32
        i_g = jax.nn.sigmoid(gates[:, 0 * D:1 * D])
        f_g = jax.nn.sigmoid(gates[:, 1 * D:2 * D])
        g_g = jnp.tanh(gates[:, 2 * D:3 * D])
        o_g = jax.nn.sigmoid(gates[:, 3 * D:4 * D])
        c = f_g * c + i_g * g_g
        h = o_g * jnp.tanh(c)

        h_out_ref[s] = h
        alphas_ref[s] = alpha


# ---------------------------------------------------------------------------
# Wrapper (step-invariant / non-recurrent work in plain XLA)
# ---------------------------------------------------------------------------
@jax.jit
def decoder_rnn_forward(features, captions, params):
    """Matches DecoderRNN.forward(features, captions) -> (preds, alphas)."""
    B, N, E = features.shape
    T = captions.shape[1]
    Tm1 = T - 1
    M = params['emb'].shape[1]
    D = params['ih_w'].shape[1]
    V = params['fcn_w'].shape[1]
    A = params['u_w'].shape[1]

    # Embedding lookup + embedding half of the LSTM gates, emitted seq-major directly
    # (both gate biases folded in) -> kernel reads a (BH, 4D) slab per step.
    embeds = jnp.take(params['emb'], captions[:, :Tm1], axis=0)                  # (B, Tm1, M)
    gates_x_sm = (jnp.einsum('btm,mg->tbg', embeds, params['wih'][:M])
                  + params['bih'] + params['bhh'])                                # (Tm1, B, 4D) f32

    # Step-invariant attention projection U(features) (once, resident bf16 in-kernel).
    u_hs = (jnp.einsum('bne,ea->bna', features, params['u_w'])
            + params['u_b']).astype(jnp.bfloat16)                                 # (B, N, A)

    # init_hidden_state hoisted out of the kernel.
    mean_f = jnp.mean(features, axis=1)                                           # (B, E)
    h0 = mean_f @ params['ih_w'] + params['ih_b']                                 # (B, D) f32
    c0 = mean_f @ params['ic_w'] + params['ic_b']                                 # (B, D) f32

    # Fused / pre-cast weights.
    w_h = jnp.concatenate([params['w_w'], params['whh']], axis=1).astype(jnp.bfloat16)  # (D, A+4D)
    wih_ctx = params['wih'][M:].astype(jnp.bfloat16)                              # (E, 4D)
    a_w_row = params['a_w'].T.astype(jnp.bfloat16)                                # (1, A)
    feats_b = features.astype(jnp.bfloat16)                                       # (B, N, E)

    # Batch split for the two v7x TensorCores (near-free sequential steps on v5e/v6e).
    num_b = 2 if (B % 2 == 0 and (B // 2) % 8 == 0) else 1
    BH = B // num_b

    h_seq, alphas_sm = pl.pallas_call(
        _decoder_recurrent_kernel,
        out_shape=(
            jax.ShapeDtypeStruct((Tm1, B, D), jnp.float32),
            jax.ShapeDtypeStruct((Tm1, B, N), jnp.float32),
        ),
        grid=(num_b,),
        in_specs=[
            pl.BlockSpec((BH, N, E), lambda b: (b, 0, 0)),        # features (bf16)
            pl.BlockSpec((BH, N, A), lambda b: (b, 0, 0)),        # u_hs (bf16)
            pl.BlockSpec((Tm1, BH, 4 * D), lambda b: (0, b, 0)),  # gates_x (f32)
            pl.BlockSpec((D, A + 4 * D), lambda b: (0, 0)),       # fused W_h
            pl.BlockSpec((1, A), lambda b: (0, 0)),               # w_b
            pl.BlockSpec((1, A), lambda b: (0, 0)),               # a_w
            pl.BlockSpec((E, 4 * D), lambda b: (0, 0)),           # wih_ctx
            pl.BlockSpec((BH, D), lambda b: (b, 0)),              # h0
            pl.BlockSpec((BH, D), lambda b: (b, 0)),              # c0
        ],
        out_specs=(
            pl.BlockSpec((Tm1, BH, D), lambda b: (0, b, 0)),
            pl.BlockSpec((Tm1, BH, N), lambda b: (0, b, 0)),
        ),
        compiler_params=pltpu.CompilerParams(
            dimension_semantics=("parallel",),
            # TODO(synk): at production shapes (B=128, N=196, A=512, E=2048) keep u_hs in
            # bf16 and stream gates_x over Tm1 via its BlockSpec so this fits v7x's 64 MiB.
            vmem_limit_bytes=32 * 1024 * 1024,
        ),
    )(feats_b, u_hs, gates_x_sm, w_h, params['w_b'], a_w_row, wih_ctx, h0, c0)

    # Output projection in seq-major (dropout == identity in eval mode); transpose once.
    preds_sm = jnp.einsum('tbd,dv->tbv', h_seq, params['fcn_w']) + params['fcn_b']
    preds = jnp.transpose(preds_sm, (1, 0, 2))                                    # (B, Tm1, V)
    alphas = jnp.transpose(alphas_sm, (1, 0, 2))                                  # (B, Tm1, N)
    return preds, alphas


# ---------------------------------------------------------------------------
# Pure-JAX reference (mirrors the PyTorch forward exactly, f32, dropout = eval mode)
# ---------------------------------------------------------------------------
def reference_forward(features, captions, p):
    B, T = captions.shape
    embeds = jnp.take(p['emb'], captions, axis=0)
    mean_f = features.mean(axis=1)
    h = mean_f @ p['ih_w'] + p['ih_b'][0]
    c = mean_f @ p['ic_w'] + p['ic_b'][0]
    D = h.shape[1]
    preds, alphas = [], []
    for s in range(T - 1):
        u_hs = jnp.einsum('bne,ea->bna', features, p['u_w']) + p['u_b'][0]
        w_ah = h @ p['w_w'] + p['w_b'][0]
        comb = jnp.tanh(u_hs + w_ah[:, None, :])
        scores = jnp.einsum('bna,ao->bno', comb, p['a_w'])[..., 0] + p['a_b'][0, 0]
        alpha = jax.nn.softmax(scores, axis=1)
        ctx = jnp.einsum('bn,bne->be', alpha, features)
        x = jnp.concatenate([embeds[:, s], ctx], axis=1)
        gates = x @ p['wih'] + p['bih'][0] + h @ p['whh'] + p['bhh'][0]
        i_g = jax.nn.sigmoid(gates[:, 0 * D:1 * D])
        f_g = jax.nn.sigmoid(gates[:, 1 * D:2 * D])
        g_g = jnp.tanh(gates[:, 2 * D:3 * D])
        o_g = jax.nn.sigmoid(gates[:, 3 * D:4 * D])
        c = f_g * c + i_g * g_g
        h = o_g * jnp.tanh(c)
        preds.append(h @ p['fcn_w'] + p['fcn_b'][0])
        alphas.append(alpha)
    return jnp.stack(preds, axis=1), jnp.stack(alphas, axis=1)


# ---------------------------------------------------------------------------
# Main
# ---------------------------------------------------------------------------
if __name__ == "__main__":
    # Small shapes consistent with the module's forward pass.
    B = 16           # batch (two 8-row blocks -> one per v7x TensorCore)
    N = 8            # num image regions (features.size(1))
    E = 128          # encoder_dim
    D = 128          # decoder_dim
    A = 128          # attention_dim
    M = 128          # embed_size
    V = 256          # vocab_size
    T = 8            # caption length -> seq_length = T - 1 = 7

    key = jax.random.PRNGKey(0)
    ks = jax.random.split(key, 20)
    sc = 0.05

    params = {
        'emb':   jax.random.normal(ks[0], (V, M), jnp.float32) * sc,
        # Attention
        'u_w':   jax.random.normal(ks[1], (E, A), jnp.float32) * sc,
        'u_b':   jax.random.normal(ks[2], (1, A), jnp.float32) * sc,
        'w_w':   jax.random.normal(ks[3], (D, A), jnp.float32) * sc,
        'w_b':   jax.random.normal(ks[4], (1, A), jnp.float32) * sc,
        'a_w':   jax.random.normal(ks[5], (A, 1), jnp.float32) * sc,
        'a_b':   jax.random.normal(ks[6], (1, 1), jnp.float32) * sc,
        # init_h / init_c
        'ih_w':  jax.random.normal(ks[7], (E, D), jnp.float32) * sc,
        'ih_b':  jax.random.normal(ks[8], (1, D), jnp.float32) * sc,
        'ic_w':  jax.random.normal(ks[9], (E, D), jnp.float32) * sc,
        'ic_b':  jax.random.normal(ks[10], (1, D), jnp.float32) * sc,
        # LSTMCell (gate order i, f, g, o like PyTorch; weights stored transposed)
        'wih':   jax.random.normal(ks[11], (M + E, 4 * D), jnp.float32) * sc,
        'bih':   jax.random.normal(ks[12], (1, 4 * D), jnp.float32) * sc,
        'whh':   jax.random.normal(ks[13], (D, 4 * D), jnp.float32) * sc,
        'bhh':   jax.random.normal(ks[14], (1, 4 * D), jnp.float32) * sc,
        # fcn
        'fcn_w': jax.random.normal(ks[15], (D, V), jnp.float32) * sc,
        'fcn_b': jax.random.normal(ks[16], (1, V), jnp.float32) * sc,
    }

    features = jax.random.normal(ks[17], (B, N, E), jnp.float32)
    captions = jax.random.randint(ks[18], (B, T), 0, V, jnp.int32)

    preds, alphas = decoder_rnn_forward(features, captions, params)
    jax.block_until_ready((preds, alphas))

    ref_preds, ref_alphas = reference_forward(features, captions, params)
    # Tolerance loosened vs the f32 reference: bf16 MXU operands + approx reciprocal
    # in the kernel (accumulation and c/h state kept f32 to bound 7-step drift).
    np.testing.assert_allclose(np.asarray(preds), np.asarray(ref_preds),
                               rtol=3e-2, atol=3e-2)
    np.testing.assert_allclose(np.asarray(alphas), np.asarray(ref_alphas),
                               rtol=3e-2, atol=3e-2)

    assert preds.shape == (B, T - 1, V) and alphas.shape == (B, T - 1, N)
    print("KERNEL_OK")
</pallas_src>

<mosaic_0001>
module attributes {stable_mosaic.version = 11 : i64} {
  func.func @_decoder_recurrent_kernel(%arg0: i32, %arg1: memref<8x8x128xbf16, #tpu.memory_space<vmem>>, %arg2: memref<8x8x128xbf16, #tpu.memory_space<vmem>>, %arg3: memref<7x8x512xf32, #tpu.memory_space<vmem>>, %arg4: memref<128x640xbf16, #tpu.memory_space<vmem>>, %arg5: memref<1x128xf32, #tpu.memory_space<vmem>>, %arg6: memref<1x128xbf16, #tpu.memory_space<vmem>>, %arg7: memref<128x512xbf16, #tpu.memory_space<vmem>>, %arg8: memref<8x128xf32, #tpu.memory_space<vmem>>, %arg9: memref<8x128xf32, #tpu.memory_space<vmem>>, %arg10: memref<7x8x128xf32, #tpu.memory_space<vmem>>, %arg11: memref<7x8x8xf32, #tpu.memory_space<vmem>>) attributes {dimension_semantics = [#tpu.dimension_semantics<parallel>], iteration_bounds = array<i64: 2>, scalar_prefetch = 0 : i64, scratch_operands = 0 : i64, tpu.core_type = #tpu.core_type<tc>, window_params = [{transform_indices = @transform_0, window_bounds = array<i64: 8, 8, 128>}, {transform_indices = @transform_1, window_bounds = array<i64: 8, 8, 128>}, {transform_indices = @transform_2, window_bounds = array<i64: 7, 8, 512>}, {pipeline_mode = #tpu.pipeline_mode<synchronous>, transform_indices = @transform_3, window_bounds = array<i64: 128, 640>}, {pipeline_mode = #tpu.pipeline_mode<synchronous>, transform_indices = @transform_4, window_bounds = array<i64: 1, 128>}, {pipeline_mode = #tpu.pipeline_mode<synchronous>, transform_indices = @transform_5, window_bounds = array<i64: 1, 128>}, {pipeline_mode = #tpu.pipeline_mode<synchronous>, transform_indices = @transform_6, window_bounds = array<i64: 128, 512>}, {transform_indices = @transform_7, window_bounds = array<i64: 8, 128>}, {transform_indices = @transform_8, window_bounds = array<i64: 8, 128>}, {transform_indices = @transform_9, window_bounds = array<i64: 7, 8, 128>}, {transform_indices = @transform_10, window_bounds = array<i64: 7, 8, 8>}]} {
    %c0 = arith.constant 0 : index
    %c0_0 = arith.constant 0 : index
    %0 = vector.load %arg5[%c0, %c0_0] : memref<1x128xf32, #tpu.memory_space<vmem>>, vector<1x128xf32>
    %1 = vector.shape_cast %0 : vector<1x128xf32> to vector<1x128xf32>
    %2 = vector.broadcast %1 : vector<1x128xf32> to vector<8x128xf32>
    %c0_1 = arith.constant 0 : index
    %c0_2 = arith.constant 0 : index
    %3 = vector.load %arg6[%c0_1, %c0_2] : memref<1x128xbf16, #tpu.memory_space<vmem>>, vector<1x128xbf16>
    %4 = vector.shape_cast %3 : vector<1x128xbf16> to vector<1x1x128xbf16>
    %5 = vector.shape_cast %4 : vector<1x1x128xbf16> to vector<1x1x128xbf16>
    %6 = vector.broadcast %5 : vector<1x1x128xbf16> to vector<8x8x128xbf16>
    %c0_3 = arith.constant 0 : index
    %c0_4 = arith.constant 0 : index
    %7 = vector.load %arg8[%c0_3, %c0_4] : memref<8x128xf32, #tpu.memory_space<vmem>>, vector<8x128xf32>
    %c0_5 = arith.constant 0 : index
    %c0_6 = arith.constant 0 : index
    %8 = vector.load %arg9[%c0_5, %c0_6] : memref<8x128xf32, #tpu.memory_space<vmem>>, vector<8x128xf32>
    %9 = arith.truncf %7 : vector<8x128xf32> to vector<8x128xbf16>
    %c0_7 = arith.constant 0 : index
    %c0_8 = arith.constant 0 : index
    %10 = vector.load %arg4[%c0_7, %c0_8] : memref<128x640xbf16, #tpu.memory_space<vmem>>, vector<128x640xbf16>
    %cst = arith.constant dense<0.000000e+00> : vector<8x640xf32>
    %11 = tpu.matmul %9, %10, %cst {dimension_numbers = #tpu.dot_dimension_numbers<[1], [0], [0], [1], [0, 0, 1, 1], [], []>} : vector<8x128xbf16>, vector<128x640xbf16>, vector<8x640xf32> -> vector<8x640xf32>
    %12 = vector.extract_strided_slice %11 {offsets = [0, 0], sizes = [8, 128], strides = [1, 1]} : vector<8x640xf32> to vector<8x128xf32>
    %13 = arith.addf %12, %2 : vector<8x128xf32>
    %c0_9 = arith.constant 0 : index
    %c0_10 = arith.constant 0 : index
    %c0_11 = arith.constant 0 : index
    %14 = vector.load %arg2[%c0_9, %c0_10, %c0_11] : memref<8x8x128xbf16, #tpu.memory_space<vmem>>, vector<8x8x128xbf16>
    %15 = vector.shape_cast %13 : vector<8x128xf32> to vector<8x1x128xf32>
    %16 = arith.truncf %15 : vector<8x1x128xf32> to vector<8x1x128xbf16>
    %17 = vector.broadcast %16 : vector<8x1x128xbf16> to vector<8x8x128xbf16>
    %18 = arith.addf %14, %17 : vector<8x8x128xbf16>
    %19 = math.tanh %18 : vector<8x8x128xbf16>
    %20 = arith.mulf %19, %6 : vector<8x8x128xbf16>
    %21 = arith.extf %20 : vector<8x8x128xbf16> to vector<8x8x128xf32>
    %cst_12 = arith.constant dense<0.000000e+00> : vector<8x8xf32>
    %22 = vector.multi_reduction <add>, %21, %cst_12 [2] : vector<8x8x128xf32> to vector<8x8xf32>
    %cst_13 = arith.constant dense<0xFF800000> : vector<8xf32>
    %23 = vector.multi_reduction <maximumf>, %22, %cst_13 [1] : vector<8x8xf32> to vector<8xf32>
    %24 = vector.shape_cast %23 : vector<8xf32> to vector<8x1xf32>
    %25 = vector.broadcast %24 : vector<8x1xf32> to vector<8x8xf32>
    %26 = arith.subf %22, %25 : vector<8x8xf32>
    %27 = math.exp %26 : vector<8x8xf32>
    %cst_14 = arith.constant dense<0.000000e+00> : vector<8xf32>
    %28 = vector.multi_reduction <add>, %27, %cst_14 [1] : vector<8x8xf32> to vector<8xf32>
    %29 = vector.shape_cast %28 : vector<8xf32> to vector<8x1xf32>
    %30 = tpu.reciprocal %29 {approx = true} : vector<8x1xf32> -> vector<8x1xf32>
    %31 = vector.broadcast %30 : vector<8x1xf32> to vector<8x8xf32>
    %32 = arith.mulf %27, %31 : vector<8x8xf32>
    %33 = arith.truncf %32 : vector<8x8xf32> to vector<8x8xbf16>
    %34 = vector.shape_cast %33 : vector<8x8xbf16> to vector<8x8x1xbf16>
    %c0_15 = arith.constant 0 : index
    %c0_16 = arith.constant 0 : index
    %c0_17 = arith.constant 0 : index
    %35 = vector.load %arg1[%c0_15, %c0_16, %c0_17] : memref<8x8x128xbf16, #tpu.memory_space<vmem>>, vector<8x8x128xbf16>
    %36 = vector.broadcast %34 : vector<8x8x1xbf16> to vector<8x8x128xbf16>
    %37 = arith.mulf %36, %35 : vector<8x8x128xbf16>
    %38 = arith.extf %37 : vector<8x8x128xbf16> to vector<8x8x128xf32>
    %cst_18 = arith.constant dense<0.000000e+00> : vector<8x128xf32>
    %39 = vector.multi_reduction <add>, %38, %cst_18 [1] : vector<8x8x128xf32> to vector<8x128xf32>
    %c0_19 = arith.constant 0 : index
    %c0_20 = arith.constant 0 : index
    %c0_21 = arith.constant 0 : index
    %40 = vector.load %arg3[%c0_19, %c0_20, %c0_21] : memref<7x8x512xf32, #tpu.memory_space<vmem>>, vector<1x8x512xf32>
    %41 = vector.shape_cast %40 : vector<1x8x512xf32> to vector<8x512xf32>
    %42 = vector.extract_strided_slice %11 {offsets = [0, 128], sizes = [8, 512], strides = [1, 1]} : vector<8x640xf32> to vector<8x512xf32>
    %43 = arith.addf %41, %42 : vector<8x512xf32>
    %44 = arith.truncf %39 : vector<8x128xf32> to vector<8x128xbf16>
    %c0_22 = arith.constant 0 : index
    %c0_23 = arith.constant 0 : index
    %45 = vector.load %arg7[%c0_22, %c0_23] : memref<128x512xbf16, #tpu.memory_space<vmem>>, vector<128x512xbf16>
    %cst_24 = arith.constant dense<0.000000e+00> : vector<8x512xf32>
    %46 = tpu.matmul %44, %45, %cst_24 {dimension_numbers = #tpu.dot_dimension_numbers<[1], [0], [0], [1], [0, 0, 1, 1], [], []>} : vector<8x128xbf16>, vector<128x512xbf16>, vector<8x512xf32> -> vector<8x512xf32>
    %47 = arith.addf %43, %46 : vector<8x512xf32>
    %48 = vector.extract_strided_slice %47 {offsets = [0, 0], sizes = [8, 128], strides = [1, 1]} : vector<8x512xf32> to vector<8x128xf32>
    %49 = arith.negf %48 : vector<8x128xf32>
    %50 = math.exp %49 : vector<8x128xf32>
    %cst_25 = arith.constant 1.000000e+00 : f32
    %51 = vector.broadcast %cst_25 : f32 to vector<8x128xf32>
    %52 = arith.addf %51, %50 : vector<8x128xf32>
    %53 = arith.divf %51, %52 : vector<8x128xf32>
    %54 = vector.extract_strided_slice %47 {offsets = [0, 128], sizes = [8, 128], strides = [1, 1]} : vector<8x512xf32> to vector<8x128xf32>
    %55 = arith.negf %54 : vector<8x128xf32>
    %56 = math.exp %55 : vector<8x128xf32>
    %cst_26 = arith.constant 1.000000e+00 : f32
    %57 = vector.broadcast %cst_26 : f32 to vector<8x128xf32>
    %58 = arith.addf %57, %56 : vector<8x128xf32>
    %59 = arith.divf %57, %58 : vector<8x128xf32>
    %60 = vector.extract_strided_slice %47 {offsets = [0, 256], sizes = [8, 128], strides = [1, 1]} : vector<8x512xf32> to vector<8x128xf32>
    %61 = math.tanh %60 : vector<8x128xf32>
    %62 = vector.extract_strided_slice %47 {offsets = [0, 384], sizes = [8, 128], strides = [1, 1]} : vector<8x512xf32> to vector<8x128xf32>
    %63 = arith.negf %62 : vector<8x128xf32>
    %64 = math.exp %63 : vector<8x128xf32>
    %cst_27 = arith.constant 1.000000e+00 : f32
    %65 = vector.broadcast %cst_27 : f32 to vector<8x128xf32>
    %66 = arith.addf %65, %64 : vector<8x128xf32>
    %67 = arith.divf %65, %66 : vector<8x128xf32>
    %68 = arith.mulf %59, %8 : vector<8x128xf32>
    %69 = arith.mulf %53, %61 : vector<8x128xf32>
    %70 = arith.addf %68, %69 : vector<8x128xf32>
    %71 = math.tanh %70 : vector<8x128xf32>
    %72 = arith.mulf %67, %71 : vector<8x128xf32>
    %c0_28 = arith.constant 0 : index
    %c0_29 = arith.constant 0 : index
    %c0_30 = arith.constant 0 : index
    %73 = vector.load %arg10[%c0_28, %c0_29, %c0_30] : memref<7x8x128xf32, #tpu.memory_space<vmem>>, vector<1x8x128xf32>
    %74 = vector.shape_cast %73 : vector<1x8x128xf32> to vector<8x128xf32>
    %75 = vector.shape_cast %72 : vector<8x128xf32> to vector<1x8x128xf32>
    tpu.vector_store %arg10[%c0_28, %c0_29, %c0_30], %75 {strides = array<i32>} : memref<7x8x128xf32, #tpu.memory_space<vmem>>, vector<1x8x128xf32>,
    %c0_31 = arith.constant 0 : index
    %c0_32 = arith.constant 0 : index
    %c0_33 = arith.constant 0 : index
    %76 = vector.load %arg11[%c0_31, %c0_32, %c0_33] : memref<7x8x8xf32, #tpu.memory_space<vmem>>, vector<1x8x8xf32>
    %77 = vector.shape_cast %76 : vector<1x8x8xf32> to vector<8x8xf32>
    %78 = vector.shape_cast %32 : vector<8x8xf32> to vector<1x8x8xf32>
    tpu.vector_store %arg11[%c0_31, %c0_32, %c0_33], %78 {strides = array<i32>} : memref<7x8x8xf32, #tpu.memory_space<vmem>>, vector<1x8x8xf32>,
    %79 = arith.truncf %72 : vector<8x128xf32> to vector<8x128xbf16>
    %c0_34 = arith.constant 0 : index
    %c0_35 = arith.constant 0 : index
    %80 = vector.load %arg4[%c0_34, %c0_35] : memref<128x640xbf16, #tpu.memory_space<vmem>>, vector<128x640xbf16>
    %cst_36 = arith.constant dense<0.000000e+00> : vector<8x640xf32>
    %81 = tpu.matmul %79, %80, %cst_36 {dimension_numbers = #tpu.dot_dimension_numbers<[1], [0], [0], [1], [0, 0, 1, 1], [], []>} : vector<8x128xbf16>, vector<128x640xbf16>, vector<8x640xf32> -> vector<8x640xf32>
    %82 = vector.extract_strided_slice %81 {offsets = [0, 0], sizes = [8, 128], strides = [1, 1]} : vector<8x640xf32> to vector<8x128xf32>
    %83 = arith.addf %82, %2 : vector<8x128xf32>
    %c0_37 = arith.constant 0 : index
    %c0_38 = arith.constant 0 : index
    %c0_39 = arith.constant 0 : index
    %84 = vector.load %arg2[%c0_37, %c0_38, %c0_39] : memref<8x8x128xbf16, #tpu.memory_space<vmem>>, vector<8x8x128xbf16>
    %85 = vector.shape_cast %83 : vector<8x128xf32> to vector<8x1x128xf32>
    %86 = arith.truncf %85 : vector<8x1x128xf32> to vector<8x1x128xbf16>
    %87 = vector.broadcast %86 : vector<8x1x128xbf16> to vector<8x8x128xbf16>
    %88 = arith.addf %84, %87 : vector<8x8x128xbf16>
    %89 = math.tanh %88 : vector<8x8x128xbf16>
    %90 = arith.mulf %89, %6 : vector<8x8x128xbf16>
    %91 = arith.extf %90 : vector<8x8x128xbf16> to vector<8x8x128xf32>
    %cst_40 = arith.constant dense<0.000000e+00> : vector<8x8xf32>
    %92 = vector.multi_reduction <add>, %91, %cst_40 [2] : vector<8x8x128xf32> to vector<8x8xf32>
    %cst_41 = arith.constant dense<0xFF800000> : vector<8xf32>
    %93 = vector.multi_reduction <maximumf>, %92, %cst_41 [1] : vector<8x8xf32> to vector<8xf32>
    %94 = vector.shape_cast %93 : vector<8xf32> to vector<8x1xf32>
    %95 = vector.broadcast %94 : vector<8x1xf32> to vector<8x8xf32>
    %96 = arith.subf %92, %95 : vector<8x8xf32>
    %97 = math.exp %96 : vector<8x8xf32>
    %cst_42 = arith.constant dense<0.000000e+00> : vector<8xf32>
    %98 = vector.multi_reduction <add>, %97, %cst_42 [1] : vector<8x8xf32> to vector<8xf32>
    %99 = vector.shape_cast %98 : vector<8xf32> to vector<8x1xf32>
    %100 = tpu.reciprocal %99 {approx = true} : vector<8x1xf32> -> vector<8x1xf32>
    %101 = vector.broadcast %100 : vector<8x1xf32> to vector<8x8xf32>
    %102 = arith.mulf %97, %101 : vector<8x8xf32>
    %103 = arith.truncf %102 : vector<8x8xf32> to vector<8x8xbf16>
    %104 = vector.shape_cast %103 : vector<8x8xbf16> to vector<8x8x1xbf16>
    %c0_43 = arith.constant 0 : index
    %c0_44 = arith.constant 0 : index
    %c0_45 = arith.constant 0 : index
    %105 = vector.load %arg1[%c0_43, %c0_44, %c0_45] : memref<8x8x128xbf16, #tpu.memory_space<vmem>>, vector<8x8x128xbf16>
    %106 = vector.broadcast %104 : vector<8x8x1xbf16> to vector<8x8x128xbf16>
    %107 = arith.mulf %106, %105 : vector<8x8x128xbf16>
    %108 = arith.extf %107 : vector<8x8x128xbf16> to vector<8x8x128xf32>
    %cst_46 = arith.constant dense<0.000000e+00> : vector<8x128xf32>
    %109 = vector.multi_reduction <add>, %108, %cst_46 [1] : vector<8x8x128xf32> to vector<8x128xf32>
    %c1 = arith.constant 1 : index
    %c0_47 = arith.constant 0 : index
    %c0_48 = arith.constant 0 : index
    %110 = vector.load %arg3[%c1, %c0_47, %c0_48] : memref<7x8x512xf32, #tpu.memory_space<vmem>>, vector<1x8x512xf32>
    %111 = vector.shape_cast %110 : vector<1x8x512xf32> to vector<8x512xf32>
    %112 = vector.extract_strided_slice %81 {offsets = [0, 128], sizes = [8, 512], strides = [1, 1]} : vector<8x640xf32> to vector<8x512xf32>
    %113 = arith.addf %111, %112 : vector<8x512xf32>
    %114 = arith.truncf %109 : vector<8x128xf32> to vector<8x128xbf16>
    %c0_49 = arith.constant 0 : index
    %c0_50 = arith.constant 0 : index
    %115 = vector.load %arg7[%c0_49, %c0_50] : memref<128x512xbf16, #tpu.memory_space<vmem>>, vector<128x512xbf16>
    %cst_51 = arith.constant dense<0.000000e+00> : vector<8x512xf32>
    %116 = tpu.matmul %114, %115, %cst_51 {dimension_numbers = #tpu.dot_dimension_numbers<[1], [0], [0], [1], [0, 0, 1, 1], [], []>} : vector<8x128xbf16>, vector<128x512xbf16>, vector<8x512xf32> -> vector<8x512xf32>
    %117 = arith.addf %113, %116 : vector<8x512xf32>
    %118 = vector.extract_strided_slice %117 {offsets = [0, 0], sizes = [8, 128], strides = [1, 1]} : vector<8x512xf32> to vector<8x128xf32>
    %119 = arith.negf %118 : vector<8x128xf32>
    %120 = math.exp %119 : vector<8x128xf32>
    %cst_52 = arith.constant 1.000000e+00 : f32
    %121 = vector.broadcast %cst_52 : f32 to vector<8x128xf32>
    %122 = arith.addf %121, %120 : vector<8x128xf32>
    %123 = arith.divf %121, %122 : vector<8x128xf32>
    %124 = vector.extract_strided_slice %117 {offsets = [0, 128], sizes = [8, 128], strides = [1, 1]} : vector<8x512xf32> to vector<8x128xf32>
    %125 = arith.negf %124 : vector<8x128xf32>
    %126 = math.exp %125 : vector<8x128xf32>
    %cst_53 = arith.constant 1.000000e+00 : f32
    %127 = vector.broadcast %cst_53 : f32 to vector<8x128xf32>
    %128 = arith.addf %127, %126 : vector<8x128xf32>
    %129 = arith.divf %127, %128 : vector<8x128xf32>
    %130 = vector.extract_strided_slice %117 {offsets = [0, 256], sizes = [8, 128], strides = [1, 1]} : vector<8x512xf32> to vector<8x128xf32>
    %131 = math.tanh %130 : vector<8x128xf32>
    %132 = vector.extract_strided_slice %117 {offsets = [0, 384], sizes = [8, 128], strides = [1, 1]} : vector<8x512xf32> to vector<8x128xf32>
    %133 = arith.negf %132 : vector<8x128xf32>
    %134 = math.exp %133 : vector<8x128xf32>
    %cst_54 = arith.constant 1.000000e+00 : f32
    %135 = vector.broadcast %cst_54 : f32 to vector<8x128xf32>
    %136 = arith.addf %135, %134 : vector<8x128xf32>
    %137 = arith.divf %135, %136 : vector<8x128xf32>
    %138 = arith.mulf %129, %70 : vector<8x128xf32>
    %139 = arith.mulf %123, %131 : vector<8x128xf32>
    %140 = arith.addf %138, %139 : vector<8x128xf32>
    %141 = math.tanh %140 : vector<8x128xf32>
    %142 = arith.mulf %137, %141 : vector<8x128xf32>
    %c1_55 = arith.constant 1 : index
    %c0_56 = arith.constant 0 : index
    %c0_57 = arith.constant 0 : index
    %143 = vector.load %arg10[%c1_55, %c0_56, %c0_57] : memref<7x8x128xf32, #tpu.memory_space<vmem>>, vector<1x8x128xf32>
    %144 = vector.shape_cast %143 : vector<1x8x128xf32> to vector<8x128xf32>
    %145 = vector.shape_cast %142 : vector<8x128xf32> to vector<1x8x128xf32>
    tpu.vector_store %arg10[%c1_55, %c0_56, %c0_57], %145 {strides = array<i32>} : memref<7x8x128xf32, #tpu.memory_space<vmem>>, vector<1x8x128xf32>,
    %c1_58 = arith.constant 1 : index
    %c0_59 = arith.constant 0 : index
    %c0_60 = arith.constant 0 : index
    %146 = vector.load %arg11[%c1_58, %c0_59, %c0_60] : memref<7x8x8xf32, #tpu.memory_space<vmem>>, vector<1x8x8xf32>
    %147 = vector.shape_cast %146 : vector<1x8x8xf32> to vector<8x8xf32>
    %148 = vector.shape_cast %102 : vector<8x8xf32> to vector<1x8x8xf32>
    tpu.vector_store %arg11[%c1_58, %c0_59, %c0_60], %148 {strides = array<i32>} : memref<7x8x8xf32, #tpu.memory_space<vmem>>, vector<1x8x8xf32>,
    %149 = arith.truncf %142 : vector<8x128xf32> to vector<8x128xbf16>
    %c0_61 = arith.constant 0 : index
    %c0_62 = arith.constant 0 : index
    %150 = vector.load %arg4[%c0_61, %c0_62] : memref<128x640xbf16, #tpu.memory_space<vmem>>, vector<128x640xbf16>
    %cst_63 = arith.constant dense<0.000000e+00> : vector<8x640xf32>
    %151 = tpu.matmul %149, %150, %cst_63 {dimension_numbers = #tpu.dot_dimension_numbers<[1], [0], [0], [1], [0, 0, 1, 1], [], []>} : vector<8x128xbf16>, vector<128x640xbf16>, vector<8x640xf32> -> vector<8x640xf32>
    %152 = vector.extract_strided_slice %151 {offsets = [0, 0], sizes = [8, 128], strides = [1, 1]} : vector<8x640xf32> to vector<8x128xf32>
    %153 = arith.addf %152, %2 : vector<8x128xf32>
    %c0_64 = arith.constant 0 : index
    %c0_65 = arith.constant 0 : index
    %c0_66 = arith.constant 0 : index
    %154 = vector.load %arg2[%c0_64, %c0_65, %c0_66] : memref<8x8x128xbf16, #tpu.memory_space<vmem>>, vector<8x8x128xbf16>
    %155 = vector.shape_cast %153 : vector<8x128xf32> to vector<8x1x128xf32>
    %156 = arith.truncf %155 : vector<8x1x128xf32> to vector<8x1x128xbf16>
    %157 = vector.broadcast %156 : vector<8x1x128xbf16> to vector<8x8x128xbf16>
    %158 = arith.addf %154, %157 : vector<8x8x128xbf16>
    %159 = math.tanh %158 : vector<8x8x128xbf16>
    %160 = arith.mulf %159, %6 : vector<8x8x128xbf16>
    %161 = arith.extf %160 : vector<8x8x128xbf16> to vector<8x8x128xf32>
    %cst_67 = arith.constant dense<0.000000e+00> : vector<8x8xf32>
    %162 = vector.multi_reduction <add>, %161, %cst_67 [2] : vector<8x8x128xf32> to vector<8x8xf32>
    %cst_68 = arith.constant dense<0xFF800000> : vector<8xf32>
    %163 = vector.multi_reduction <maximumf>, %162, %cst_68 [1] : vector<8x8xf32> to vector<8xf32>
    %164 = vector.shape_cast %163 : vector<8xf32> to vector<8x1xf32>
    %165 = vector.broadcast %164 : vector<8x1xf32> to vector<8x8xf32>
    %166 = arith.subf %162, %165 : vector<8x8xf32>
    %167 = math.exp %166 : vector<8x8xf32>
    %cst_69 = arith.constant dense<0.000000e+00> : vector<8xf32>
    %168 = vector.multi_reduction <add>, %167, %cst_69 [1] : vector<8x8xf32> to vector<8xf32>
    %169 = vector.shape_cast %168 : vector<8xf32> to vector<8x1xf32>
    %170 = tpu.reciprocal %169 {approx = true} : vector<8x1xf32> -> vector<8x1xf32>
    %171 = vector.broadcast %170 : vector<8x1xf32> to vector<8x8xf32>
    %172 = arith.mulf %167, %171 : vector<8x8xf32>
    %173 = arith.truncf %172 : vector<8x8xf32> to vector<8x8xbf16>
    %174 = vector.shape_cast %173 : vector<8x8xbf16> to vector<8x8x1xbf16>
    %c0_70 = arith.constant 0 : index
    %c0_71 = arith.constant 0 : index
    %c0_72 = arith.constant 0 : index
    %175 = vector.load %arg1[%c0_70, %c0_71, %c0_72] : memref<8x8x128xbf16, #tpu.memory_space<vmem>>, vector<8x8x128xbf16>
    %176 = vector.broadcast %174 : vector<8x8x1xbf16> to vector<8x8x128xbf16>
    %177 = arith.mulf %176, %175 : vector<8x8x128xbf16>
    %178 = arith.extf %177 : vector<8x8x128xbf16> to vector<8x8x128xf32>
    %cst_73 = arith.constant dense<0.000000e+00> : vector<8x128xf32>
    %179 = vector.multi_reduction <add>, %178, %cst_73 [1] : vector<8x8x128xf32> to vector<8x128xf32>
    %c2 = arith.constant 2 : index
    %c0_74 = arith.constant 0 : index
    %c0_75 = arith.constant 0 : index
    %180 = vector.load %arg3[%c2, %c0_74, %c0_75] : memref<7x8x512xf32, #tpu.memory_space<vmem>>, vector<1x8x512xf32>
    %181 = vector.shape_cast %180 : vector<1x8x512xf32> to vector<8x512xf32>
    %182 = vector.extract_strided_slice %151 {offsets = [0, 128], sizes = [8, 512], strides = [1, 1]} : vector<8x640xf32> to vector<8x512xf32>
    %183 = arith.addf %181, %182 : vector<8x512xf32>
    %184 = arith.truncf %179 : vector<8x128xf32> to vector<8x128xbf16>
    %c0_76 = arith.constant 0 : index
    %c0_77 = arith.constant 0 : index
    %185 = vector.load %arg7[%c0_76, %c0_77] : memref<128x512xbf16, #tpu.memory_space<vmem>>, vector<128x512xbf16>
    %cst_78 = arith.constant dense<0.000000e+00> : vector<8x512xf32>
    %186 = tpu.matmul %184, %185, %cst_78 {dimension_numbers = #tpu.dot_dimension_numbers<[1], [0], [0], [1], [0, 0, 1, 1], [], []>} : vector<8x128xbf16>, vector<128x512xbf16>, vector<8x512xf32> -> vector<8x512xf32>
    %187 = arith.addf %183, %186 : vector<8x512xf32>
    %188 = vector.extract_strided_slice %187 {offsets = [0, 0], sizes = [8, 128], strides = [1, 1]} : vector<8x512xf32> to vector<8x128xf32>
    %189 = arith.negf %188 : vector<8x128xf32>
    %190 = math.exp %189 : vector<8x128xf32>
    %cst_79 = arith.constant 1.000000e+00 : f32
    %191 = vector.broadcast %cst_79 : f32 to vector<8x128xf32>
    %192 = arith.addf %191, %190 : vector<8x128xf32>
    %193 = arith.divf %191, %192 : vector<8x128xf32>
    %194 = vector.extract_strided_slice %187 {offsets = [0, 128], sizes = [8, 128], strides = [1, 1]} : vector<8x512xf32> to vector<8x128xf32>
    %195 = arith.negf %194 : vector<8x128xf32>
    %196 = math.exp %195 : vector<8x128xf32>
    %cst_80 = arith.constant 1.000000e+00 : f32
    %197 = vector.broadcast %cst_80 : f32 to vector<8x128xf32>
    %198 = arith.addf %197, %196 : vector<8x128xf32>
    %199 = arith.divf %197, %198 : vector<8x128xf32>
    %200 = vector.extract_strided_slice %187 {offsets = [0, 256], sizes = [8, 128], strides = [1, 1]} : vector<8x512xf32> to vector<8x128xf32>
    %201 = math.tanh %200 : vector<8x128xf32>
    %202 = vector.extract_strided_slice %187 {offsets = [0, 384], sizes = [8, 128], strides = [1, 1]} : vector<8x512xf32> to vector<8x128xf32>
    %203 = arith.negf %202 : vector<8x128xf32>
    %204 = math.exp %203 : vector<8x128xf32>
    %cst_81 = arith.constant 1.000000e+00 : f32
    %205 = vector.broadcast %cst_81 : f32 to vector<8x128xf32>
    %206 = arith.addf %205, %204 : vector<8x128xf32>
    %207 = arith.divf %205, %206 : vector<8x128xf32>
    %208 = arith.mulf %199, %140 : vector<8x128xf32>
    %209 = arith.mulf %193, %201 : vector<8x128xf32>
    %210 = arith.addf %208, %209 : vector<8x128xf32>
    %211 = math.tanh %210 : vector<8x128xf32>
    %212 = arith.mulf %207, %211 : vector<8x128xf32>
    %c2_82 = arith.constant 2 : index
    %c0_83 = arith.constant 0 : index
    %c0_84 = arith.constant 0 : index
    %213 = vector.load %arg10[%c2_82, %c0_83, %c0_84] : memref<7x8x128xf32, #tpu.memory_space<vmem>>, vector<1x8x128xf32>
    %214 = vector.shape_cast %213 : vector<1x8x128xf32> to vector<8x128xf32>
    %215 = vector.shape_cast %212 : vector<8x128xf32> to vector<1x8x128xf32>
    tpu.vector_store %arg10[%c2_82, %c0_83, %c0_84], %215 {strides = array<i32>} : memref<7x8x128xf32, #tpu.memory_space<vmem>>, vector<1x8x128xf32>,
    %c2_85 = arith.constant 2 : index
    %c0_86 = arith.constant 0 : index
    %c0_87 = arith.constant 0 : index
    %216 = vector.load %arg11[%c2_85, %c0_86, %c0_87] : memref<7x8x8xf32, #tpu.memory_space<vmem>>, vector<1x8x8xf32>
    %217 = vector.shape_cast %216 : vector<1x8x8xf32> to vector<8x8xf32>
    %218 = vector.shape_cast %172 : vector<8x8xf32> to vector<1x8x8xf32>
    tpu.vector_store %arg11[%c2_85, %c0_86, %c0_87], %218 {strides = array<i32>} : memref<7x8x8xf32, #tpu.memory_space<vmem>>, vector<1x8x8xf32>,
    %219 = arith.truncf %212 : vector<8x128xf32> to vector<8x128xbf16>
    %c0_88 = arith.constant 0 : index
    %c0_89 = arith.constant 0 : index
    %220 = vector.load %arg4[%c0_88, %c0_89] : memref<128x640xbf16, #tpu.memory_space<vmem>>, vector<128x640xbf16>
    %cst_90 = arith.constant dense<0.000000e+00> : vector<8x640xf32>
    %221 = tpu.matmul %219, %220, %cst_90 {dimension_numbers = #tpu.dot_dimension_numbers<[1], [0], [0], [1], [0, 0, 1, 1], [], []>} : vector<8x128xbf16>, vector<128x640xbf16>, vector<8x640xf32> -> vector<8x640xf32>
    %222 = vector.extract_strided_slice %221 {offsets = [0, 0], sizes = [8, 128], strides = [1, 1]} : vector<8x640xf32> to vector<8x128xf32>
    %223 = arith.addf %222, %2 : vector<8x128xf32>
    %c0_91 = arith.constant 0 : index
    %c0_92 = arith.constant 0 : index
    %c0_93 = arith.constant 0 : index
    %224 = vector.load %arg2[%c0_91, %c0_92, %c0_93] : memref<8x8x128xbf16, #tpu.memory_space<vmem>>, vector<8x8x128xbf16>
    %225 = vector.shape_cast %223 : vector<8x128xf32> to vector<8x1x128xf32>
    %226 = arith.truncf %225 : vector<8x1x128xf32> to vector<8x1x128xbf16>
    %227 = vector.broadcast %226 : vector<8x1x128xbf16> to vector<8x8x128xbf16>
    %228 = arith.addf %224, %227 : vector<8x8x128xbf16>
    %229 = math.tanh %228 : vector<8x8x128xbf16>
    %230 = arith.mulf %229, %6 : vector<8x8x128xbf16>
    %231 = arith.extf %230 : vector<8x8x128xbf16> to vector<8x8x128xf32>
    %cst_94 = arith.constant dense<0.000000e+00> : vector<8x8xf32>
    %232 = vector.multi_reduction <add>, %231, %cst_94 [2] : vector<8x8x128xf32> to vector<8x8xf32>
    %cst_95 = arith.constant dense<0xFF800000> : vector<8xf32>
    %233 = vector.multi_reduction <maximumf>, %232, %cst_95 [1] : vector<8x8xf32> to vector<8xf32>
    %234 = vector.shape_cast %233 : vector<8xf32> to vector<8x1xf32>
    %235 = vector.broadcast %234 : vector<8x1xf32> to vector<8x8xf32>
    %236 = arith.subf %232, %235 : vector<8x8xf32>
    %237 = math.exp %236 : vector<8x8xf32>
    %cst_96 = arith.constant dense<0.000000e+00> : vector<8xf32>
    %238 = vector.multi_reduction <add>, %237, %cst_96 [1] : vector<8x8xf32> to vector<8xf32>
    %239 = vector.shape_cast %238 : vector<8xf32> to vector<8x1xf32>
    %240 = tpu.reciprocal %239 {approx = true} : vector<8x1xf32> -> vector<8x1xf32>
    %241 = vector.broadcast %240 : vector<8x1xf32> to vector<8x8xf32>
    %242 = arith.mulf %237, %241 : vector<8x8xf32>
    %243 = arith.truncf %242 : vector<8x8xf32> to vector<8x8xbf16>
    %244 = vector.shape_cast %243 : vector<8x8xbf16> to vector<8x8x1xbf16>
    %c0_97 = arith.constant 0 : index
    %c0_98 = arith.constant 0 : index
    %c0_99 = arith.constant 0 : index
    %245 = vector.load %arg1[%c0_97, %c0_98, %c0_99] : memref<8x8x128xbf16, #tpu.memory_space<vmem>>, vector<8x8x128xbf16>
    %246 = vector.broadcast %244 : vector<8x8x1xbf16> to vector<8x8x128xbf16>
    %247 = arith.mulf %246, %245 : vector<8x8x128xbf16>
    %248 = arith.extf %247 : vector<8x8x128xbf16> to vector<8x8x128xf32>
    %cst_100 = arith.constant dense<0.000000e+00> : vector<8x128xf32>
    %249 = vector.multi_reduction <add>, %248, %cst_100 [1] : vector<8x8x128xf32> to vector<8x128xf32>
    %c3 = arith.constant 3 : index
    %c0_101 = arith.constant 0 : index
    %c0_102 = arith.constant 0 : index
    %250 = vector.load %arg3[%c3, %c0_101, %c0_102] : memref<7x8x512xf32, #tpu.memory_space<vmem>>, vector<1x8x512xf32>
    %251 = vector.shape_cast %250 : vector<1x8x512xf32> to vector<8x512xf32>
    %252 = vector.extract_strided_slice %221 {offsets = [0, 128], sizes = [8, 512], strides = [1, 1]} : vector<8x640xf32> to vector<8x512xf32>
    %253 = arith.addf %251, %252 : vector<8x512xf32>
    %254 = arith.truncf %249 : vector<8x128xf32> to vector<8x128xbf16>
    %c0_103 = arith.constant 0 : index
    %c0_104 = arith.constant 0 : index
    %255 = vector.load %arg7[%c0_103, %c0_104] : memref<128x512xbf16, #tpu.memory_space<vmem>>, vector<128x512xbf16>
    %cst_105 = arith.constant dense<0.000000e+00> : vector<8x512xf32>
    %256 = tpu.matmul %254, %255, %cst_105 {dimension_numbers = #tpu.dot_dimension_numbers<[1], [0], [0], [1], [0, 0, 1, 1], [], []>} : vector<8x128xbf16>, vector<128x512xbf16>, vector<8x512xf32> -> vector<8x512xf32>
    %257 = arith.addf %253, %256 : vector<8x512xf32>
    %258 = vector.extract_strided_slice %257 {offsets = [0, 0], sizes = [8, 128], strides = [1, 1]} : vector<8x512xf32> to vector<8x128xf32>
    %259 = arith.negf %258 : vector<8x128xf32>
    %260 = math.exp %259 : vector<8x128xf32>
    %cst_106 = arith.constant 1.000000e+00 : f32
    %261 = vector.broadcast %cst_106 : f32 to vector<8x128xf32>
    %262 = arith.addf %261, %260 : vector<8x128xf32>
    %263 = arith.divf %261, %262 : vector<8x128xf32>
    %264 = vector.extract_strided_slice %257 {offsets = [0, 128], sizes = [8, 128], strides = [1, 1]} : vector<8x512xf32> to vector<8x128xf32>
    %265 = arith.negf %264 : vector<8x128xf32>
    %266 = math.exp %265 : vector<8x128xf32>
    %cst_107 = arith.constant 1.000000e+00 : f32
    %267 = vector.broadcast %cst_107 : f32 to vector<8x128xf32>
    %268 = arith.addf %267, %266 : vector<8x128xf32>
    %269 = arith.divf %267, %268 : vector<8x128xf32>
    %270 = vector.extract_strided_slice %257 {offsets = [0, 256], sizes = [8, 128], strides = [1, 1]} : vector<8x512xf32> to vector<8x128xf32>
    %271 = math.tanh %270 : vector<8x128xf32>
    %272 = vector.extract_strided_slice %257 {offsets = [0, 384], sizes = [8, 128], strides = [1, 1]} : vector<8x512xf32> to vector<8x128xf32>
    %273 = arith.negf %272 : vector<8x128xf32>
    %274 = math.exp %273 : vector<8x128xf32>
    %cst_108 = arith.constant 1.000000e+00 : f32
    %275 = vector.broadcast %cst_108 : f32 to vector<8x128xf32>
    %276 = arith.addf %275, %274 : vector<8x128xf32>
    %277 = arith.divf %275, %276 : vector<8x128xf32>
    %278 = arith.mulf %269, %210 : vector<8x128xf32>
    %279 = arith.mulf %263, %271 : vector<8x128xf32>
    %280 = arith.addf %278, %279 : vector<8x128xf32>
    %281 = math.tanh %280 : vector<8x128xf32>
    %282 = arith.mulf %277, %281 : vector<8x128xf32>
    %c3_109 = arith.constant 3 : index
    %c0_110 = arith.constant 0 : index
    %c0_111 = arith.constant 0 : index
    %283 = vector.load %arg10[%c3_109, %c0_110, %c0_111] : memref<7x8x128xf32, #tpu.memory_space<vmem>>, vector<1x8x128xf32>
    %284 = vector.shape_cast %283 : vector<1x8x128xf32> to vector<8x128xf32>
    %285 = vector.shape_cast %282 : vector<8x128xf32> to vector<1x8x128xf32>
    tpu.vector_store %arg10[%c3_109, %c0_110, %c0_111], %285 {strides = array<i32>} : memref<7x8x128xf32, #tpu.memory_space<vmem>>, vector<1x8x128xf32>,
    %c3_112 = arith.constant 3 : index
    %c0_113 = arith.constant 0 : index
    %c0_114 = arith.constant 0 : index
    %286 = vector.load %arg11[%c3_112, %c0_113, %c0_114] : memref<7x8x8xf32, #tpu.memory_space<vmem>>, vector<1x8x8xf32>
    %287 = vector.shape_cast %286 : vector<1x8x8xf32> to vector<8x8xf32>
    %288 = vector.shape_cast %242 : vector<8x8xf32> to vector<1x8x8xf32>
    tpu.vector_store %arg11[%c3_112, %c0_113, %c0_114], %288 {strides = array<i32>} : memref<7x8x8xf32, #tpu.memory_space<vmem>>, vector<1x8x8xf32>,
    %289 = arith.truncf %282 : vector<8x128xf32> to vector<8x128xbf16>
    %c0_115 = arith.constant 0 : index
    %c0_116 = arith.constant 0 : index
    %290 = vector.load %arg4[%c0_115, %c0_116] : memref<128x640xbf16, #tpu.memory_space<vmem>>, vector<128x640xbf16>
    %cst_117 = arith.constant dense<0.000000e+00> : vector<8x640xf32>
    %291 = tpu.matmul %289, %290, %cst_117 {dimension_numbers = #tpu.dot_dimension_numbers<[1], [0], [0], [1], [0, 0, 1, 1], [], []>} : vector<8x128xbf16>, vector<128x640xbf16>, vector<8x640xf32> -> vector<8x640xf32>
    %292 = vector.extract_strided_slice %291 {offsets = [0, 0], sizes = [8, 128], strides = [1, 1]} : vector<8x640xf32> to vector<8x128xf32>
    %293 = arith.addf %292, %2 : vector<8x128xf32>
    %c0_118 = arith.constant 0 : index
    %c0_119 = arith.constant 0 : index
    %c0_120 = arith.constant 0 : index
    %294 = vector.load %arg2[%c0_118, %c0_119, %c0_120] : memref<8x8x128xbf16, #tpu.memory_space<vmem>>, vector<8x8x128xbf16>
    %295 = vector.shape_cast %293 : vector<8x128xf32> to vector<8x1x128xf32>
    %296 = arith.truncf %295 : vector<8x1x128xf32> to vector<8x1x128xbf16>
    %297 = vector.broadcast %296 : vector<8x1x128xbf16> to vector<8x8x128xbf16>
    %298 = arith.addf %294, %297 : vector<8x8x128xbf16>
    %299 = math.tanh %298 : vector<8x8x128xbf16>
    %300 = arith.mulf %299, %6 : vector<8x8x128xbf16>
    %301 = arith.extf %300 : vector<8x8x128xbf16> to vector<8x8x128xf32>
    %cst_121 = arith.constant dense<0.000000e+00> : vector<8x8xf32>
    %302 = vector.multi_reduction <add>, %301, %cst_121 [2] : vector<8x8x128xf32> to vector<8x8xf32>
    %cst_122 = arith.constant dense<0xFF800000> : vector<8xf32>
    %303 = vector.multi_reduction <maximumf>, %302, %cst_122 [1] : vector<8x8xf32> to vector<8xf32>
    %304 = vector.shape_cast %303 : vector<8xf32> to vector<8x1xf32>
    %305 = vector.broadcast %304 : vector<8x1xf32> to vector<8x8xf32>
    %306 = arith.subf %302, %305 : vector<8x8xf32>
    %307 = math.exp %306 : vector<8x8xf32>
    %cst_123 = arith.constant dense<0.000000e+00> : vector<8xf32>
    %308 = vector.multi_reduction <add>, %307, %cst_123 [1] : vector<8x8xf32> to vector<8xf32>
    %309 = vector.shape_cast %308 : vector<8xf32> to vector<8x1xf32>
    %310 = tpu.reciprocal %309 {approx = true} : vector<8x1xf32> -> vector<8x1xf32>
    %311 = vector.broadcast %310 : vector<8x1xf32> to vector<8x8xf32>
    %312 = arith.mulf %307, %311 : vector<8x8xf32>
    %313 = arith.truncf %312 : vector<8x8xf32> to vector<8x8xbf16>
    %314 = vector.shape_cast %313 : vector<8x8xbf16> to vector<8x8x1xbf16>
    %c0_124 = arith.constant 0 : index
    %c0_125 = arith.constant 0 : index
    %c0_126 = arith.constant 0 : index
    %315 = vector.load %arg1[%c0_124, %c0_125, %c0_126] : memref<8x8x128xbf16, #tpu.memory_space<vmem>>, vector<8x8x128xbf16>
    %316 = vector.broadcast %314 : vector<8x8x1xbf16> to vector<8x8x128xbf16>
    %317 = arith.mulf %316, %315 : vector<8x8x128xbf16>
    %318 = arith.extf %317 : vector<8x8x128xbf16> to vector<8x8x128xf32>
    %cst_127 = arith.constant dense<0.000000e+00> : vector<8x128xf32>
    %319 = vector.multi_reduction <add>, %318, %cst_127 [1] : vector<8x8x128xf32> to vector<8x128xf32>
    %c4 = arith.constant 4 : index
    %c0_128 = arith.constant 0 : index
    %c0_129 = arith.constant 0 : index
    %320 = vector.load %arg3[%c4, %c0_128, %c0_129] : memref<7x8x512xf32, #tpu.memory_space<vmem>>, vector<1x8x512xf32>
    %321 = vector.shape_cast %320 : vector<1x8x512xf32> to vector<8x512xf32>
    %322 = vector.extract_strided_slice %291 {offsets = [0, 128], sizes = [8, 512], strides = [1, 1]} : vector<8x640xf32> to vector<8x512xf32>
    %323 = arith.addf %321, %322 : vector<8x512xf32>
    %324 = arith.truncf %319 : vector<8x128xf32> to vector<8x128xbf16>
    %c0_130 = arith.constant 0 : index
    %c0_131 = arith.constant 0 : index
    %325 = vector.load %arg7[%c0_130, %c0_131] : memref<128x512xbf16, #tpu.memory_space<vmem>>, vector<128x512xbf16>
    %cst_132 = arith.constant dense<0.000000e+00> : vector<8x512xf32>
    %326 = tpu.matmul %324, %325, %cst_132 {dimension_numbers = #tpu.dot_dimension_numbers<[1], [0], [0], [1], [0, 0, 1, 1], [], []>} : vector<8x128xbf16>, vector<128x512xbf16>, vector<8x512xf32> -> vector<8x512xf32>
    %327 = arith.addf %323, %326 : vector<8x512xf32>
    %328 = vector.extract_strided_slice %327 {offsets = [0, 0], sizes = [8, 128], strides = [1, 1]} : vector<8x512xf32> to vector<8x128xf32>
    %329 = arith.negf %328 : vector<8x128xf32>
    %330 = math.exp %329 : vector<8x128xf32>
    %cst_133 = arith.constant 1.000000e+00 : f32
    %331 = vector.broadcast %cst_133 : f32 to vector<8x128xf32>
    %332 = arith.addf %331, %330 : vector<8x128xf32>
    %333 = arith.divf %331, %332 : vector<8x128xf32>
    %334 = vector.extract_strided_slice %327 {offsets = [0, 128], sizes = [8, 128], strides = [1, 1]} : vector<8x512xf32> to vector<8x128xf32>
    %335 = arith.negf %334 : vector<8x128xf32>
    %336 = math.exp %335 : vector<8x128xf32>
    %cst_134 = arith.constant 1.000000e+00 : f32
    %337 = vector.broadcast %cst_134 : f32 to vector<8x128xf32>
    %338 = arith.addf %337, %336 : vector<8x128xf32>
    %339 = arith.divf %337, %338 : vector<8x128xf32>
    %340 = vector.extract_strided_slice %327 {offsets = [0, 256], sizes = [8, 128], strides = [1, 1]} : vector<8x512xf32> to vector<8x128xf32>
    %341 = math.tanh %340 : vector<8x128xf32>
    %342 = vector.extract_strided_slice %327 {offsets = [0, 384], sizes = [8, 128], strides = [1, 1]} : vector<8x512xf32> to vector<8x128xf32>
    %343 = arith.negf %342 : vector<8x128xf32>
    %344 = math.exp %343 : vector<8x128xf32>
    %cst_135 = arith.constant 1.000000e+00 : f32
    %345 = vector.broadcast %cst_135 : f32 to vector<8x128xf32>
    %346 = arith.addf %345, %344 : vector<8x128xf32>
    %347 = arith.divf %345, %346 : vector<8x128xf32>
    %348 = arith.mulf %339, %280 : vector<8x128xf32>
    %349 = arith.mulf %333, %341 : vector<8x128xf32>
    %350 = arith.addf %348, %349 : vector<8x128xf32>
    %351 = math.tanh %350 : vector<8x128xf32>
    %352 = arith.mulf %347, %351 : vector<8x128xf32>
    %c4_136 = arith.constant 4 : index
    %c0_137 = arith.constant 0 : index
    %c0_138 = arith.constant 0 : index
    %353 = vector.load %arg10[%c4_136, %c0_137, %c0_138] : memref<7x8x128xf32, #tpu.memory_space<vmem>>, vector<1x8x128xf32>
    %354 = vector.shape_cast %353 : vector<1x8x128xf32> to vector<8x128xf32>
    %355 = vector.shape_cast %352 : vector<8x128xf32> to vector<1x8x128xf32>
    tpu.vector_store %arg10[%c4_136, %c0_137, %c0_138], %355 {strides = array<i32>} : memref<7x8x128xf32, #tpu.memory_space<vmem>>, vector<1x8x128xf32>,
    %c4_139 = arith.constant 4 : index
    %c0_140 = arith.constant 0 : index
    %c0_141 = arith.constant 0 : index
    %356 = vector.load %arg11[%c4_139, %c0_140, %c0_141] : memref<7x8x8xf32, #tpu.memory_space<vmem>>, vector<1x8x8xf32>
    %357 = vector.shape_cast %356 : vector<1x8x8xf32> to vector<8x8xf32>
    %358 = vector.shape_cast %312 : vector<8x8xf32> to vector<1x8x8xf32>
    tpu.vector_store %arg11[%c4_139, %c0_140, %c0_141], %358 {strides = array<i32>} : memref<7x8x8xf32, #tpu.memory_space<vmem>>, vector<1x8x8xf32>,
    %359 = arith.truncf %352 : vector<8x128xf32> to vector<8x128xbf16>
    %c0_142 = arith.constant 0 : index
    %c0_143 = arith.constant 0 : index
    %360 = vector.load %arg4[%c0_142, %c0_143] : memref<128x640xbf16, #tpu.memory_space<vmem>>, vector<128x640xbf16>
    %cst_144 = arith.constant dense<0.000000e+00> : vector<8x640xf32>
    %361 = tpu.matmul %359, %360, %cst_144 {dimension_numbers = #tpu.dot_dimension_numbers<[1], [0], [0], [1], [0, 0, 1, 1], [], []>} : vector<8x128xbf16>, vector<128x640xbf16>, vector<8x640xf32> -> vector<8x640xf32>
    %362 = vector.extract_strided_slice %361 {offsets = [0, 0], sizes = [8, 128], strides = [1, 1]} : vector<8x640xf32> to vector<8x128xf32>
    %363 = arith.addf %362, %2 : vector<8x128xf32>
    %c0_145 = arith.constant 0 : index
    %c0_146 = arith.constant 0 : index
    %c0_147 = arith.constant 0 : index
    %364 = vector.load %arg2[%c0_145, %c0_146, %c0_147] : memref<8x8x128xbf16, #tpu.memory_space<vmem>>, vector<8x8x128xbf16>
    %365 = vector.shape_cast %363 : vector<8x128xf32> to vector<8x1x128xf32>
    %366 = arith.truncf %365 : vector<8x1x128xf32> to vector<8x1x128xbf16>
    %367 = vector.broadcast %366 : vector<8x1x128xbf16> to vector<8x8x128xbf16>
    %368 = arith.addf %364, %367 : vector<8x8x128xbf16>
    %369 = math.tanh %368 : vector<8x8x128xbf16>
    %370 = arith.mulf %369, %6 : vector<8x8x128xbf16>
    %371 = arith.extf %370 : vector<8x8x128xbf16> to vector<8x8x128xf32>
    %cst_148 = arith.constant dense<0.000000e+00> : vector<8x8xf32>
    %372 = vector.multi_reduction <add>, %371, %cst_148 [2] : vector<8x8x128xf32> to vector<8x8xf32>
    %cst_149 = arith.constant dense<0xFF800000> : vector<8xf32>
    %373 = vector.multi_reduction <maximumf>, %372, %cst_149 [1] : vector<8x8xf32> to vector<8xf32>
    %374 = vector.shape_cast %373 : vector<8xf32> to vector<8x1xf32>
    %375 = vector.broadcast %374 : vector<8x1xf32> to vector<8x8xf32>
    %376 = arith.subf %372, %375 : vector<8x8xf32>
    %377 = math.exp %376 : vector<8x8xf32>
    %cst_150 = arith.constant dense<0.000000e+00> : vector<8xf32>
    %378 = vector.multi_reduction <add>, %377, %cst_150 [1] : vector<8x8xf32> to vector<8xf32>
    %379 = vector.shape_cast %378 : vector<8xf32> to vector<8x1xf32>
    %380 = tpu.reciprocal %379 {approx = true} : vector<8x1xf32> -> vector<8x1xf32>
    %381 = vector.broadcast %380 : vector<8x1xf32> to vector<8x8xf32>
    %382 = arith.mulf %377, %381 : vector<8x8xf32>
    %383 = arith.truncf %382 : vector<8x8xf32> to vector<8x8xbf16>
    %384 = vector.shape_cast %383 : vector<8x8xbf16> to vector<8x8x1xbf16>
    %c0_151 = arith.constant 0 : index
    %c0_152 = arith.constant 0 : index
    %c0_153 = arith.constant 0 : index
    %385 = vector.load %arg1[%c0_151, %c0_152, %c0_153] : memref<8x8x128xbf16, #tpu.memory_space<vmem>>, vector<8x8x128xbf16>
    %386 = vector.broadcast %384 : vector<8x8x1xbf16> to vector<8x8x128xbf16>
    %387 = arith.mulf %386, %385 : vector<8x8x128xbf16>
    %388 = arith.extf %387 : vector<8x8x128xbf16> to vector<8x8x128xf32>
    %cst_154 = arith.constant dense<0.000000e+00> : vector<8x128xf32>
    %389 = vector.multi_reduction <add>, %388, %cst_154 [1] : vector<8x8x128xf32> to vector<8x128xf32>
    %c5 = arith.constant 5 : index
    %c0_155 = arith.constant 0 : index
    %c0_156 = arith.constant 0 : index
    %390 = vector.load %arg3[%c5, %c0_155, %c0_156] : memref<7x8x512xf32, #tpu.memory_space<vmem>>, vector<1x8x512xf32>
    %391 = vector.shape_cast %390 : vector<1x8x512xf32> to vector<8x512xf32>
    %392 = vector.extract_strided_slice %361 {offsets = [0, 128], sizes = [8, 512], strides = [1, 1]} : vector<8x640xf32> to vector<8x512xf32>
    %393 = arith.addf %391, %392 : vector<8x512xf32>
    %394 = arith.truncf %389 : vector<8x128xf32> to vector<8x128xbf16>
    %c0_157 = arith.constant 0 : index
    %c0_158 = arith.constant 0 : index
    %395 = vector.load %arg7[%c0_157, %c0_158] : memref<128x512xbf16, #tpu.memory_space<vmem>>, vector<128x512xbf16>
    %cst_159 = arith.constant dense<0.000000e+00> : vector<8x512xf32>
    %396 = tpu.matmul %394, %395, %cst_159 {dimension_numbers = #tpu.dot_dimension_numbers<[1], [0], [0], [1], [0, 0, 1, 1], [], []>} : vector<8x128xbf16>, vector<128x512xbf16>, vector<8x512xf32> -> vector<8x512xf32>
    %397 = arith.addf %393, %396 : vector<8x512xf32>
    %398 = vector.extract_strided_slice %397 {offsets = [0, 0], sizes = [8, 128], strides = [1, 1]} : vector<8x512xf32> to vector<8x128xf32>
    %399 = arith.negf %398 : vector<8x128xf32>
    %400 = math.exp %399 : vector<8x128xf32>
    %cst_160 = arith.constant 1.000000e+00 : f32
    %401 = vector.broadcast %cst_160 : f32 to vector<8x128xf32>
    %402 = arith.addf %401, %400 : vector<8x128xf32>
    %403 = arith.divf %401, %402 : vector<8x128xf32>
    %404 = vector.extract_strided_slice %397 {offsets = [0, 128], sizes = [8, 128], strides = [1, 1]} : vector<8x512xf32> to vector<8x128xf32>
    %405 = arith.negf %404 : vector<8x128xf32>
    %406 = math.exp %405 : vector<8x128xf32>
    %cst_161 = arith.constant 1.000000e+00 : f32
    %407 = vector.broadcast %cst_161 : f32 to vector<8x128xf32>
    %408 = arith.addf %407, %406 : vector<8x128xf32>
    %409 = arith.divf %407, %408 : vector<8x128xf32>
    %410 = vector.extract_strided_slice %397 {offsets = [0, 256], sizes = [8, 128], strides = [1, 1]} : vector<8x512xf32> to vector<8x128xf32>
    %411 = math.tanh %410 : vector<8x128xf32>
    %412 = vector.extract_strided_slice %397 {offsets = [0, 384], sizes = [8, 128], strides = [1, 1]} : vector<8x512xf32> to vector<8x128xf32>
    %413 = arith.negf %412 : vector<8x128xf32>
    %414 = math.exp %413 : vector<8x128xf32>
    %cst_162 = arith.constant 1.000000e+00 : f32
    %415 = vector.broadcast %cst_162 : f32 to vector<8x128xf32>
    %416 = arith.addf %415, %414 : vector<8x128xf32>
    %417 = arith.divf %415, %416 : vector<8x128xf32>
    %418 = arith.mulf %409, %350 : vector<8x128xf32>
    %419 = arith.mulf %403, %411 : vector<8x128xf32>
    %420 = arith.addf %418, %419 : vector<8x128xf32>
    %421 = math.tanh %420 : vector<8x128xf32>
    %422 = arith.mulf %417, %421 : vector<8x128xf32>
    %c5_163 = arith.constant 5 : index
    %c0_164 = arith.constant 0 : index
    %c0_165 = arith.constant 0 : index
    %423 = vector.load %arg10[%c5_163, %c0_164, %c0_165] : memref<7x8x128xf32, #tpu.memory_space<vmem>>, vector<1x8x128xf32>
    %424 = vector.shape_cast %423 : vector<1x8x128xf32> to vector<8x128xf32>
    %425 = vector.shape_cast %422 : vector<8x128xf32> to vector<1x8x128xf32>
    tpu.vector_store %arg10[%c5_163, %c0_164, %c0_165], %425 {strides = array<i32>} : memref<7x8x128xf32, #tpu.memory_space<vmem>>, vector<1x8x128xf32>,
    %c5_166 = arith.constant 5 : index
    %c0_167 = arith.constant 0 : index
    %c0_168 = arith.constant 0 : index
    %426 = vector.load %arg11[%c5_166, %c0_167, %c0_168] : memref<7x8x8xf32, #tpu.memory_space<vmem>>, vector<1x8x8xf32>
    %427 = vector.shape_cast %426 : vector<1x8x8xf32> to vector<8x8xf32>
    %428 = vector.shape_cast %382 : vector<8x8xf32> to vector<1x8x8xf32>
    tpu.vector_store %arg11[%c5_166, %c0_167, %c0_168], %428 {strides = array<i32>} : memref<7x8x8xf32, #tpu.memory_space<vmem>>, vector<1x8x8xf32>,
    %429 = arith.truncf %422 : vector<8x128xf32> to vector<8x128xbf16>
    %c0_169 = arith.constant 0 : index
    %c0_170 = arith.constant 0 : index
    %430 = vector.load %arg4[%c0_169, %c0_170] : memref<128x640xbf16, #tpu.memory_space<vmem>>, vector<128x640xbf16>
    %cst_171 = arith.constant dense<0.000000e+00> : vector<8x640xf32>
    %431 = tpu.matmul %429, %430, %cst_171 {dimension_numbers = #tpu.dot_dimension_numbers<[1], [0], [0], [1], [0, 0, 1, 1], [], []>} : vector<8x128xbf16>, vector<128x640xbf16>, vector<8x640xf32> -> vector<8x640xf32>
    %432 = vector.extract_strided_slice %431 {offsets = [0, 0], sizes = [8, 128], strides = [1, 1]} : vector<8x640xf32> to vector<8x128xf32>
    %433 = arith.addf %432, %2 : vector<8x128xf32>
    %c0_172 = arith.constant 0 : index
    %c0_173 = arith.constant 0 : index
    %c0_174 = arith.constant 0 : index
    %434 = vector.load %arg2[%c0_172, %c0_173, %c0_174] : memref<8x8x128xbf16, #tpu.memory_space<vmem>>, vector<8x8x128xbf16>
    %435 = vector.shape_cast %433 : vector<8x128xf32> to vector<8x1x128xf32>
    %436 = arith.truncf %435 : vector<8x1x128xf32> to vector<8x1x128xbf16>
    %437 = vector.broadcast %436 : vector<8x1x128xbf16> to vector<8x8x128xbf16>
    %438 = arith.addf %434, %437 : vector<8x8x128xbf16>
    %439 = math.tanh %438 : vector<8x8x128xbf16>
    %440 = arith.mulf %439, %6 : vector<8x8x128xbf16>
    %441 = arith.extf %440 : vector<8x8x128xbf16> to vector<8x8x128xf32>
    %cst_175 = arith.constant dense<0.000000e+00> : vector<8x8xf32>
    %442 = vector.multi_reduction <add>, %441, %cst_175 [2] : vector<8x8x128xf32> to vector<8x8xf32>
    %cst_176 = arith.constant dense<0xFF800000> : vector<8xf32>
    %443 = vector.multi_reduction <maximumf>, %442, %cst_176 [1] : vector<8x8xf32> to vector<8xf32>
    %444 = vector.shape_cast %443 : vector<8xf32> to vector<8x1xf32>
    %445 = vector.broadcast %444 : vector<8x1xf32> to vector<8x8xf32>
    %446 = arith.subf %442, %445 : vector<8x8xf32>
    %447 = math.exp %446 : vector<8x8xf32>
    %cst_177 = arith.constant dense<0.000000e+00> : vector<8xf32>
    %448 = vector.multi_reduction <add>, %447, %cst_177 [1] : vector<8x8xf32> to vector<8xf32>
    %449 = vector.shape_cast %448 : vector<8xf32> to vector<8x1xf32>
    %450 = tpu.reciprocal %449 {approx = true} : vector<8x1xf32> -> vector<8x1xf32>
    %451 = vector.broadcast %450 : vector<8x1xf32> to vector<8x8xf32>
    %452 = arith.mulf %447, %451 : vector<8x8xf32>
    %453 = arith.truncf %452 : vector<8x8xf32> to vector<8x8xbf16>
    %454 = vector.shape_cast %453 : vector<8x8xbf16> to vector<8x8x1xbf16>
    %c0_178 = arith.constant 0 : index
    %c0_179 = arith.constant 0 : index
    %c0_180 = arith.constant 0 : index
    %455 = vector.load %arg1[%c0_178, %c0_179, %c0_180] : memref<8x8x128xbf16, #tpu.memory_space<vmem>>, vector<8x8x128xbf16>
    %456 = vector.broadcast %454 : vector<8x8x1xbf16> to vector<8x8x128xbf16>
    %457 = arith.mulf %456, %455 : vector<8x8x128xbf16>
    %458 = arith.extf %457 : vector<8x8x128xbf16> to vector<8x8x128xf32>
    %cst_181 = arith.constant dense<0.000000e+00> : vector<8x128xf32>
    %459 = vector.multi_reduction <add>, %458, %cst_181 [1] : vector<8x8x128xf32> to vector<8x128xf32>
    %c6 = arith.constant 6 : index
    %c0_182 = arith.constant 0 : index
    %c0_183 = arith.constant 0 : index
    %460 = vector.load %arg3[%c6, %c0_182, %c0_183] : memref<7x8x512xf32, #tpu.memory_space<vmem>>, vector<1x8x512xf32>
    %461 = vector.shape_cast %460 : vector<1x8x512xf32> to vector<8x512xf32>
    %462 = vector.extract_strided_slice %431 {offsets = [0, 128], sizes = [8, 512], strides = [1, 1]} : vector<8x640xf32> to vector<8x512xf32>
    %463 = arith.addf %461, %462 : vector<8x512xf32>
    %464 = arith.truncf %459 : vector<8x128xf32> to vector<8x128xbf16>
    %c0_184 = arith.constant 0 : index
    %c0_185 = arith.constant 0 : index
    %465 = vector.load %arg7[%c0_184, %c0_185] : memref<128x512xbf16, #tpu.memory_space<vmem>>, vector<128x512xbf16>
    %cst_186 = arith.constant dense<0.000000e+00> : vector<8x512xf32>
    %466 = tpu.matmul %464, %465, %cst_186 {dimension_numbers = #tpu.dot_dimension_numbers<[1], [0], [0], [1], [0, 0, 1, 1], [], []>} : vector<8x128xbf16>, vector<128x512xbf16>, vector<8x512xf32> -> vector<8x512xf32>
    %467 = arith.addf %463, %466 : vector<8x512xf32>
    %468 = vector.extract_strided_slice %467 {offsets = [0, 0], sizes = [8, 128], strides = [1, 1]} : vector<8x512xf32> to vector<8x128xf32>
    %469 = arith.negf %468 : vector<8x128xf32>
    %470 = math.exp %469 : vector<8x128xf32>
    %cst_187 = arith.constant 1.000000e+00 : f32
    %471 = vector.broadcast %cst_187 : f32 to vector<8x128xf32>
    %472 = arith.addf %471, %470 : vector<8x128xf32>
    %473 = arith.divf %471, %472 : vector<8x128xf32>
    %474 = vector.extract_strided_slice %467 {offsets = [0, 128], sizes = [8, 128], strides = [1, 1]} : vector<8x512xf32> to vector<8x128xf32>
    %475 = arith.negf %474 : vector<8x128xf32>
    %476 = math.exp %475 : vector<8x128xf32>
    %cst_188 = arith.constant 1.000000e+00 : f32
    %477 = vector.broadcast %cst_188 : f32 to vector<8x128xf32>
    %478 = arith.addf %477, %476 : vector<8x128xf32>
    %479 = arith.divf %477, %478 : vector<8x128xf32>
    %480 = vector.extract_strided_slice %467 {offsets = [0, 256], sizes = [8, 128], strides = [1, 1]} : vector<8x512xf32> to vector<8x128xf32>
    %481 = math.tanh %480 : vector<8x128xf32>
    %482 = vector.extract_strided_slice %467 {offsets = [0, 384], sizes = [8, 128], strides = [1, 1]} : vector<8x512xf32> to vector<8x128xf32>
    %483 = arith.negf %482 : vector<8x128xf32>
    %484 = math.exp %483 : vector<8x128xf32>
    %cst_189 = arith.constant 1.000000e+00 : f32
    %485 = vector.broadcast %cst_189 : f32 to vector<8x128xf32>
    %486 = arith.addf %485, %484 : vector<8x128xf32>
    %487 = arith.divf %485, %486 : vector<8x128xf32>
    %488 = arith.mulf %479, %420 : vector<8x128xf32>
    %489 = arith.mulf %473, %481 : vector<8x128xf32>
    %490 = arith.addf %488, %489 : vector<8x128xf32>
    %491 = math.tanh %490 : vector<8x128xf32>
    %492 = arith.mulf %487, %491 : vector<8x128xf32>
    %c6_190 = arith.constant 6 : index
    %c0_191 = arith.constant 0 : index
    %c0_192 = arith.constant 0 : index
    %493 = vector.load %arg10[%c6_190, %c0_191, %c0_192] : memref<7x8x128xf32, #tpu.memory_space<vmem>>, vector<1x8x128xf32>
    %494 = vector.shape_cast %493 : vector<1x8x128xf32> to vector<8x128xf32>
    %495 = vector.shape_cast %492 : vector<8x128xf32> to vector<1x8x128xf32>
    tpu.vector_store %arg10[%c6_190, %c0_191, %c0_192], %495 {strides = array<i32>} : memref<7x8x128xf32, #tpu.memory_space<vmem>>, vector<1x8x128xf32>,
    %c6_193 = arith.constant 6 : index
    %c0_194 = arith.constant 0 : index
    %c0_195 = arith.constant 0 : index
    %496 = vector.load %arg11[%c6_193, %c0_194, %c0_195] : memref<7x8x8xf32, #tpu.memory_space<vmem>>, vector<1x8x8xf32>
    %497 = vector.shape_cast %496 : vector<1x8x8xf32> to vector<8x8xf32>
    %498 = vector.shape_cast %452 : vector<8x8xf32> to vector<1x8x8xf32>
    tpu.vector_store %arg11[%c6_193, %c0_194, %c0_195], %498 {strides = array<i32>} : memref<7x8x8xf32, #tpu.memory_space<vmem>>, vector<1x8x8xf32>,
    return
  }
  func.func @transform_0(%arg0: i32) -> (i32, i32, i32) {
    %c0_i32 = arith.constant 0 : i32
    %c0_i32_0 = arith.constant 0 : i32
    %c0_i32_1 = arith.constant 0 : i32
    return %arg0, %c0_i32, %c0_i32_0 : i32, i32, i32
  }
  func.func @transform_1(%arg0: i32) -> (i32, i32, i32) {
    %c0_i32 = arith.constant 0 : i32
    %c0_i32_0 = arith.constant 0 : i32
    %c0_i32_1 = arith.constant 0 : i32
    return %arg0, %c0_i32, %c0_i32_0 : i32, i32, i32
  }
  func.func @transform_2(%arg0: i32) -> (i32, i32, i32) {
    %c0_i32 = arith.constant 0 : i32
    %c0_i32_0 = arith.constant 0 : i32
    %c0_i32_1 = arith.constant 0 : i32
    return %c0_i32, %arg0, %c0_i32_0 : i32, i32, i32
  }
  func.func @transform_3(%arg0: i32) -> (i32, i32) {
    %c0_i32 = arith.constant 0 : i32
    %c0_i32_0 = arith.constant 0 : i32
    %c0_i32_1 = arith.constant 0 : i32
    return %c0_i32, %c0_i32_0 : i32, i32
  }
  func.func @transform_4(%arg0: i32) -> (i32, i32) {
    %c0_i32 = arith.constant 0 : i32
    %c0_i32_0 = arith.constant 0 : i32
    %c0_i32_1 = arith.constant 0 : i32
    return %c0_i32, %c0_i32_0 : i32, i32
  }
  func.func @transform_5(%arg0: i32) -> (i32, i32) {
    %c0_i32 = arith.constant 0 : i32
    %c0_i32_0 = arith.constant 0 : i32
    %c0_i32_1 = arith.constant 0 : i32
    return %c0_i32, %c0_i32_0 : i32, i32
  }
  func.func @transform_6(%arg0: i32) -> (i32, i32) {
    %c0_i32 = arith.constant 0 : i32
    %c0_i32_0 = arith.constant 0 : i32
    %c0_i32_1 = arith.constant 0 : i32
    return %c0_i32, %c0_i32_0 : i32, i32
  }
  func.func @transform_7(%arg0: i32) -> (i32, i32) {
    %c0_i32 = arith.constant 0 : i32
    %c0_i32_0 = arith.constant 0 : i32
    return %arg0, %c0_i32 : i32, i32
  }
  func.func @transform_8(%arg0: i32) -> (i32, i32) {
    %c0_i32 = arith.constant 0 : i32
    %c0_i32_0 = arith.constant 0 : i32
    return %arg0, %c0_i32 : i32, i32
  }
  func.func @transform_9(%arg0: i32) -> (i32, i32, i32) {
    %c0_i32 = arith.constant 0 : i32
    %c0_i32_0 = arith.constant 0 : i32
    %c0_i32_1 = arith.constant 0 : i32
    return %c0_i32, %arg0, %c0_i32_0 : i32, i32, i32
  }
  func.func @transform_10(%arg0: i32) -> (i32, i32, i32) {
    %c0_i32 = arith.constant 0 : i32
    %c0_i32_0 = arith.constant 0 : i32
    %c0_i32_1 = arith.constant 0 : i32
    return %c0_i32, %arg0, %c0_i32_0 : i32, i32, i32
  }
}

</mosaic_0001>

<bundles_post_ra>
// kernel: decoder_rnn_forward.1
= control target key start
LH: loop header
LB: loop body
LE: loop exit
PB: predicated region body
PF: predicated region fallthrough
CT: control target
= control target key end

     0   :  { %s17314_s0 = inlined_call_operand.vmem [shape: bf16[16,8,128], index: 0, kind: input, shape index: {}]   ;;  %s17315_s1 = inlined_call_operand.vmem [shape: bf16[16,8,128], index: 1, kind: input, shape index: {}]   ;;  %s17316_s2 = inlined_call_operand.vmem [shape: f32[7,16,512], index: 2, kind: input, shape index: {}]   ;;  %s17317_s3 = inlined_call_operand.vmem [shape: bf16[128,640], index: 3, kind: input, shape index: {}]   ;;  %s17318_s4 = inlined_call_operand.vmem [shape: f32[1,128], index: 4, kind: input, shape index: {}]   ;;  %s17319_s5 = inlined_call_operand.vmem [shape: bf16[1,128], index: 5, kind: input, shape index: {}]   ;;  %s17320_s6 = inlined_call_operand.vmem [shape: bf16[128,512], index: 6, kind: input, shape index: {}]   ;;  %s17321_s7 = inlined_call_operand.vmem [shape: f32[16,128], index: 7, kind: input, shape index: {}]   ;;  %s17322_s8 = inlined_call_operand.vmem [shape: f32[16,128], index: 8, kind: input, shape index: {}]   ;;  %s17323_s9 = inlined_call_operand.vmem [shape: f32[7,16,128], index: 9, kind: output, shape index: {0}]   ;;  %s17324_s10 = inlined_call_operand.vmem [shape: f32[7,16,8], index: 10, kind: output, shape index: {1}]  }
   0x1   :  { %17355 = sst [smem:[#allocation31_spill]] %s17315_s1 }
   0x2   :  { %s12639_s13 = smov 0   ;;  %s12641_s14 = smov 0  }
   0x3   :  { %s12643_s15 = smov 0  }
   0x4 LB: > { %s12655_s16 = sadd.s32 4294967295, %s12580_s15   ;;  %s12658_s17 = sadd.s32 1, %s12580_s15   ;;  %s12580_s15 = sphi %s12643_s15, %s17421_s15   ;;  %s12576_s14 = sphi %s12641_s14, %s17420_s14   ;;  %s12572_s13 = sphi %s12639_s13, %s17419_s13  }
   0x5   : > { %s77_s18 = ssub.s32 %s12580_s15, %s12658_s17  ;;  %s80_s19 = sadd.s32 1, %s12576_s14 }
   0x6   : > { %p78_p0 = scmp.eq.s32.totalorder %s77_s18, 0  ;;  %p87_p1 = scmp.ne.s32.totalorder %s12576_s14, %s12572_s13 }
   0x7   : > { %p88_p2 = scmp.eq.s32.totalorder %s12580_s15, 0  ;;  %p253_p3 = scmp.eq.s32.totalorder %s12655_s16, 1 }
   0x8   : > { %s12668_s20 = scalar_select %p78_p0, %s12576_s14, %s80_s19  }
   0x9   : > { %p89_p4 = por %p88_p2, %p87_p1  ;;  %p12670_p5 = por %p253_p3, %p87_p1 }
   0xa   : > { %p9311_p6 = scmp.ge.s32.totalorder %s12580_s15, 2 }
   0xc   : > { %313 = sbr.rel (%p9311_p6) target bundleno = 49 (0x31), region = 32 }
  0x11   : > { %334 = sbr.rel (!%p89_p4) target bundleno = 49 (0x31), region = 44  ;;  %s336_s22 = sand.u32 (%p89_p4), 1, %s12576_s14  }
  0x12   : > { %s11398_s23 = sshll.u32 (%p89_p4), %s12580_s15, 5  ;;  %s12169_s24 = smul.u32 (%p89_p4), 224, %s336_s22 }
  0x13   : > { %s12680_s27 = scalar_lea.vmem (%p89_p4), %s17316_s2, %s11398_s23 }
  0x14   : > { %v354_v0 = vld [vmem:[%s12680_s27] sm:$0xff] (%p89_p4)  ;;  %v356_v1 = vld [vmem:[%s12680_s27 + $0x8] sm:$0xff] (%p89_p4)  ;;  %v358_v2 = vld [vmem:[%s12680_s27 + $0x10] sm:$0xff] (%p89_p4)  ;;  %s12685_s28 = scalar_lea.vmem (%p89_p4), [#allocation2], %s12169_s24 }
  0x15   : > { %355 = vst [vmem:[%s12685_s28] sm:$0xff] (%p89_p4), %v354_v0  ;;  %v360_v3 = vld [vmem:[%s12680_s27 + $0x18] sm:$0xff] (%p89_p4)  ;;  %v362_v4 = vld [vmem:[%s12680_s27 + $0x40] sm:$0xff] (%p89_p4)  ;;  %v364_v5 = vld [vmem:[%s12680_s27 + $0x48] sm:$0xff] (%p89_p4) }
  0x16   : > { %357 = vst [vmem:[%s12685_s28 + $0x8] sm:$0xff] %v356_v1  ;;  %v366_v6 = vld [vmem:[%s12680_s27 + $0x50] sm:$0xff]  ;;  %v368_v7 = vld [vmem:[%s12680_s27 + $0x58] sm:$0xff]  ;;  %v370_v8 = vld [vmem:[%s12680_s27 + $0x80] sm:$0xff] }
  0x17   : > { %359 = vst [vmem:[%s12685_s28 + $0x10] sm:$0xff] %v358_v2  ;;  %v372_v9 = vld [vmem:[%s12680_s27 + $0x88] sm:$0xff]  ;;  %v374_v10 = vld [vmem:[%s12680_s27 + $0x90] sm:$0xff]  ;;  %v376_v11 = vld [vmem:[%s12680_s27 + $0x98] sm:$0xff] }
  0x18   : > { %361 = vst [vmem:[%s12685_s28 + $0x18] sm:$0xff] %v360_v3  ;;  %v378_v12 = vld [vmem:[%s12680_s27 + $0xc0] sm:$0xff]  ;;  %v380_v13 = vld [vmem:[%s12680_s27 + $0xc8] sm:$0xff]  ;;  %v382_v14 = vld [vmem:[%s12680_s27 + $0xd0] sm:$0xff] }
  0x19   : > { %363 = vst [vmem:[%s12685_s28 + $0x20] sm:$0xff] %v362_v4  ;;  %v384_v15 = vld [vmem:[%s12680_s27 + $0xd8] sm:$0xff]  ;;  %v386_v16 = vld [vmem:[%s12680_s27 + $0x100] sm:$0xff]  ;;  %v388_v17 = vld [vmem:[%s12680_s27 + $0x108] sm:$0xff] }
  0x1a   : > { %365 = vst [vmem:[%s12685_s28 + $0x28] sm:$0xff] %v364_v5  ;;  %v390_v18 = vld [vmem:[%s12680_s27 + $0x110] sm:$0xff]  ;;  %v392_v19 = vld [vmem:[%s12680_s27 + $0x118] sm:$0xff]  ;;  %v394_v20 = vld [vmem:[%s12680_s27 + $0x140] sm:$0xff] }
  0x1b   : > { %367 = vst [vmem:[%s12685_s28 + $0x30] sm:$0xff] %v366_v6  ;;  %v396_v21 = vld [vmem:[%s12680_s27 + $0x148] sm:$0xff]  ;;  %v398_v22 = vld [vmem:[%s12680_s27 + $0x150] sm:$0xff]  ;;  %v400_v23 = vld [vmem:[%s12680_s27 + $0x158] sm:$0xff] }
  0x1c   : > { %369 = vst [vmem:[%s12685_s28 + $0x38] sm:$0xff] %v368_v7  ;;  %v402_v24 = vld [vmem:[%s12680_s27 + $0x180] sm:$0xff]  ;;  %v404_v25 = vld [vmem:[%s12680_s27 + $0x188] sm:$0xff]  ;;  %v406_v26 = vld [vmem:[%s12680_s27 + $0x190] sm:$0xff] }
  0x1d   : > { %371 = vst [vmem:[%s12685_s28 + $0x40] sm:$0xff] %v370_v8  ;;  %v408_v27 = vld [vmem:[%s12680_s27 + $0x198] sm:$0xff] }
  0x1e   : > { %373 = vst [vmem:[%s12685_s28 + $0x48] sm:$0xff] %v372_v9 }
  0x1f   : > { %375 = vst [vmem:[%s12685_s28 + $0x50] sm:$0xff] %v374_v10 }
  0x20   : > { %377 = vst [vmem:[%s12685_s28 + $0x58] sm:$0xff] %v376_v11 }
  0x21   : > { %379 = vst [vmem:[%s12685_s28 + $0x60] sm:$0xff] %v378_v12 }
  0x22   : > { %381 = vst [vmem:[%s12685_s28 + $0x68] sm:$0xff] %v380_v13 }
  0x23   : > { %383 = vst [vmem:[%s12685_s28 + $0x70] sm:$0xff] %v382_v14 }
  0x24   : > { %385 = vst [vmem:[%s12685_s28 + $0x78] sm:$0xff] %v384_v15 }
  0x25   : > { %387 = vst [vmem:[%s12685_s28 + $0x80] sm:$0xff] %v386_v16 }
  0x26   : > { %389 = vst [vmem:[%s12685_s28 + $0x88] sm:$0xff] %v388_v17 }
  0x27   : > { %391 = vst [vmem:[%s12685_s28 + $0x90] sm:$0xff] %v390_v18 }
  0x28   : > { %393 = vst [vmem:[%s12685_s28 + $0x98] sm:$0xff] %v392_v19 }
  0x29   : > { %395 = vst [vmem:[%s12685_s28 + $0xa0] sm:$0xff] %v394_v20 }
  0x2a   : > { %397 = vst [vmem:[%s12685_s28 + $0xa8] sm:$0xff] %v396_v21 }
  0x2b   : > { %399 = vst [vmem:[%s12685_s28 + $0xb0] sm:$0xff] %v398_v22 }
  0x2c   : > { %401 = vst [vmem:[%s12685_s28 + $0xb8] sm:$0xff] %v400_v23 }
  0x2d   : > { %403 = vst [vmem:[%s12685_s28 + $0xc0] sm:$0xff] %v402_v24 }
  0x2e   : > { %405 = vst [vmem:[%s12685_s28 + $0xc8] sm:$0xff] %v404_v25 }
  0x2f   : > { %407 = vst [vmem:[%s12685_s28 + $0xd0] sm:$0xff] %v406_v26 }
  0x30   : > { %409 = vst [vmem:[%s12685_s28 + $0xd8] sm:$0xff] %v408_v27 }
  0x31 PF: > { %p9314_p7 = scmp.ge.s32.totalorder %s12580_s15, 1  ;;  %p428_p8 = scmp.lt.s32.totalorder %s12580_s15, 3 }
  0x33   : > { %p429_p9 = pnand %p9314_p7, %p428_p8 }
  0x35   : > { %432 = sbr.rel (%p429_p9) target bundleno = 7486 (0x1d3e), region = 75 }
  0x3a   : > { %v9463_v28 = vld [vmem:[%s17317_s3 + $0x118] sm:$0xf]  ;;  %v11436_v29 = vld [vmem:[%s17317_s3 + $0x128] sm:$0xf0]  ;;  %v9443_v30 = vld [vmem:[%s17317_s3 + $0xf0] sm:$0xf] }
  0x3b   : > { %v9464_v31 = vor.u32 %v11436_v29, %v9463_v28  ;;  %v11431_v32 = vld [vmem:[%s17317_s3 + $0x100] sm:$0xf0]  ;;  %v9423_v34 = vld [vmem:[%s17317_s3 + $0xc8] sm:$0xf]  ;;  %v11426_v35 = vld [vmem:[%s17317_s3 + $0xd8] sm:$0xf0] }
  0x3c   : > { %v9444_v33 = vor.u32 %v11431_v32, %v9443_v30  ;;  %v9424_v36 = vor.u32 %v11426_v35, %v9423_v34  ;;  %v9403_v37 = vld [vmem:[%s17317_s3 + $0xa0] sm:$0xf]  ;;  %v11421_v38 = vld [vmem:[%s17317_s3 + $0xb0] sm:$0xf0]  ;;  %v9383_v40 = vld [vmem:[%s17317_s3 + $0x78] sm:$0xf] }
  0x3d   : > { %781 = vmatpush.bf16.msra.mxu0 %v9464_v31  ;;  %v9404_v39 = vor.u32 %v11421_v38, %v9403_v37  ;;  %v11416_v41 = vld [vmem:[%s17317_s3 + $0x88] sm:$0xf0]  ;;  %p505_p10 = scmp.lt.s32.totalorder %s12655_s16, 1  ;;  %v9363_v43 = vld [vmem:[%s17317_s3 + $0x50] sm:$0xf]  ;;  %s12804_s24 = sshll.u32 %s12655_s16, 3 }
  0x3e   : > { %v9384_v42 = vor.u32 %v11416_v41, %v9383_v40  ;;  %v11411_v44 = vld [vmem:[%s17317_s3 + $0x60] sm:$0xf0]  ;;  %v9343_v46 = vld [vmem:[%s17317_s3 + $0x28] sm:$0xf]  ;;  %v11406_v47 = vld [vmem:[%s17317_s3 + $0x38] sm:$0xf0] }
  0x3f   : > { %s12780_s25 = scalar_select %p505_p10, %s12655_s16, 1  ;;  %v9364_v45 = vor.u32 %v11411_v44, %v9363_v43  ;;  %v9344_v48 = vor.u32 %v11406_v47, %v9343_v46  ;;  %v9323_v49 = vld [vmem:[%s17317_s3] sm:$0xf]  ;;  %v11401_v50 = vld [vmem:[%s17317_s3 + $0x10] sm:$0xf0]  ;;  %vm1033_vm0 = vcmask 1041409  }
  0x40   : > { %v9324_v51 = vor.u32 %v11401_v50, %v9323_v49  ;;  %p494_p11 = scmp.lt.s32.totalorder %s12804_s24, 15  ;;  %s17357_s1 = sld [smem:[#allocation31_spill]]  ;;  %v12201_v54 = vld [vmem:[%s17318_s4] ss:$0 sm:$0xff]  ;;  %vm1035_vm1 = vcmask 1042434   ;;  %vm1037_vm2 = vcmask 1043459  }
  0x41   : > { %782 = vmatpush.bf16.msra.mxu0 %v9444_v33  ;;  %s17325_s30 = sshll.u32 %s12780_s25, 3  ;;  %v517_v46 = vld [vmem:[%s17319_s5] sm:$0x1]  ;;  %vm1039_vm3 = vcmask 1044484   ;;  %vm1041_vm4 = vcmask 1045509   ;;  %vm1043_vm5 = vcmask 1046534  }
  0x42   : > { %s508_s15 = scalar_lea.vmem %s17321_s7, %s17325_s30  ;;  %vm1045_vm6 = vcmask 1047559   ;;  %vm1048_vm7 = vcmask 64512   ;;  %s17327_s12 = sand.u32 1, %s12572_s13  }
  0x43   : > { %v522_v52 = vld [vmem:[%s508_s15] sm:$0xff]  ;;  %s12808_s26 = scalar_select %p494_p11, %s12804_s24, 15 }
  0x44   : > { %v12800_v53 = vpack.c.bf16 %v522_v52, %v522_v52 }
  0x45   : > { %783 = vmatpush.bf16.msra.mxu0 %v9424_v36  ;;  %s17326_s27 = sshll.u32 %s12808_s26, 2  ;;  %s17358_s18 = sshll.u32 %s12808_s26, 2 }
  0x46   : > { %s12816_s11 = scalar_lea.vmem %s17357_s1, %s17326_s27  ;;  %s13101_s22 = scalar_lea.vmem %s17314_s0, %s17358_s18 }
  0x47   : > { %v11904_v55 = vld [vmem:[%s12816_s11] sm:$0xff]   ;;  %v12128_v56 = vld [vmem:[%s12816_s11 + $0x10] sm:$0xff]   ;;  %v12127_v57 = vld [vmem:[%s12816_s11 + $0x8] sm:$0xff]   ;;  %s12170_s18 = smul.u32 224, %s17327_s12  ;;  %s17360_s27 = sshll.u32 %s12780_s25, 3 }
  0x48   : > { %v12129_v58 = vld [vmem:[%s12816_s11 + $0x18] sm:$0xff]   ;;  %v11905_v60 = vunpack.c.l.bf16 %v11904_v55  ;;  %v11913_v62 = vunpack.c.l.bf16 %v12128_v56  ;;  %v11909_v63 = vunpack.c.l.bf16 %v12127_v57  ;;  %v11906_v0 = vunpack.c.h.bf16 %v11904_v55 }
  0x49   : > { %784 = vmatpush.bf16.msra.mxu0 %v9404_v39  ;;  %v11914_v1 = vunpack.c.h.bf16 %v12128_v56  ;;  %v11910_v2 = vunpack.c.h.bf16 %v12127_v57  ;;  %v11917_v3 = vunpack.c.l.bf16 %v12129_v58  ;;  %v11918_v4 = vunpack.c.h.bf16 %v12129_v58  ;;  %s13397_s29 = scalar_lea.vmem [#allocation2], %s12170_s18  ;;  %s512_s18 = scalar_lea.vmem %s17322_s8, %s17360_s27 }
  0x4a   : > { %s17363_s27 = sand.u32 1, %s12572_s13  }
  0x4b   : > { %s13649_s12 = smul.u32 56, %s17363_s27 }
  0x4d   : > { %785 = vmatpush.bf16.msra.mxu0 %v9384_v42  ;;  %s13653_s23 = scalar_lea.vmem [#allocation3], %s13649_s12 }
  0x51   : > { %786 = vmatpush.bf16.msra.mxu0 %v9364_v45 }
  0x55   : > { %787 = vmatpush.bf16.msra.mxu0 %v9344_v48 }
  0x59   : > { %788 = vmatpush.bf16.msra.mxu0 %v9324_v51 }
  0x5c   : > { %789 = vmatmul.bf16.vlgmr.msra.gmra.mxu0 %v12800_v53 }
  0xd9   : > { %v790_v59 = vpop.f32.mrf.mxu0 }
  0xda   : > { %v846_v61 = vadd.f32 %v12201_v54, %v790_v59 }
  0xdc   : > { %v870_v5 = vpack.c.bf16 %v846_v61, %v846_v61  ;;  %v859_v6 = vrot.slane %v846_v61, 4  ;;  %v857_v7 = vrot.slane %v846_v61, 2  ;;  %v856_v8 = vrot.slane %v846_v61, 1 }
  0xdd   : > { %v860_v9 = vrot.slane %v846_v61, 5  ;;  %v858_v10 = vrot.slane %v846_v61, 3  ;;  %v861_v11 = vrot.slane %v846_v61, 6  ;;  %v862_v12 = vrot.slane %v846_v61, 7 }
  0xde   : > { %v879_v13 = vpack.i.b16 %v870_v5, %v870_v5  ;;  %v874_v14 = vpack.c.bf16 %v859_v6, %v859_v6  ;;  %v872_v15 = vpack.c.bf16 %v857_v7, %v857_v7  ;;  %v871_v16 = vpack.c.bf16 %v856_v8, %v856_v8 }
  0xdf   : > { %v875_v17 = vpack.c.bf16 %v860_v9, %v860_v9  ;;  %v873_v18 = vpack.c.bf16 %v858_v10, %v858_v10  ;;  %v876_v19 = vpack.c.bf16 %v861_v11, %v861_v11  ;;  %v877_v20 = vpack.c.bf16 %v862_v12, %v862_v12 }
  0xe0   : > { %v881_v21 = vperm.slane %v879_v13, 0  ;;  %v895_v22 = vpack.i.b16 %v874_v14, %v874_v14  ;;  %v887_v23 = vpack.i.b16 %v872_v15, %v872_v15  ;;  %v883_v24 = vpack.i.b16 %v871_v16, %v871_v16 }
  0xe1   : > { %v792_v25 = vpop.f32.mrf.mxu0  ;;  %v899_v26 = vpack.i.b16 %v875_v17, %v875_v17  ;;  %v891_v27 = vpack.i.b16 %v873_v18, %v873_v18  ;;  %v903_v28 = vpack.i.b16 %v876_v19, %v876_v19  ;;  %v907_v29 = vpack.i.b16 %v877_v20, %v877_v20 }
  0xe2   : > { %v918_v30 = vunpack.c.l.bf16 %v881_v21  ;;  %v897_v31 = vperm.slane %v895_v22, 0  ;;  %v889_v32 = vperm.slane %v887_v23, 0  ;;  %v885_v33 = vperm.slane %v883_v24, 0 }
  0xe3   : > { %v901_v34 = vperm.slane %v899_v26, 0  ;;  %v893_v35 = vperm.slane %v891_v27, 0  ;;  %v905_v36 = vperm.slane %v903_v28, 0  ;;  %v909_v37 = vperm.slane %v907_v29, 0 }
  0xe4   : > { %v926_v38 = vadd.f32 %v11905_v60, %v918_v30  ;;  %v922_v39 = vunpack.c.l.bf16 %v897_v31  ;;  %v920_v40 = vunpack.c.l.bf16 %v889_v32  ;;  %v919_v41 = vunpack.c.l.bf16 %v885_v33 }
  0xe5   : > { %v923_v42 = vunpack.c.l.bf16 %v901_v34  ;;  %v921_v43 = vunpack.c.l.bf16 %v893_v35  ;;  %v924_v44 = vunpack.c.l.bf16 %v905_v36  ;;  %v925_v45 = vunpack.c.l.bf16 %v909_v37 }
  0xe6   : > { %v934_v47 = vpack.c.bf16 %v926_v38, %v926_v38  ;;  %v930_v48 = vadd.f32 %v11913_v62, %v922_v39  ;;  %v928_v49 = vadd.f32 %v11909_v63, %v920_v40  ;;  %v927_v50 = vadd.f32 %v11906_v0, %v919_v41 }
  0xe7   : > { %v931_v51 = vadd.f32 %v11914_v1, %v923_v42  ;;  %v929_v52 = vadd.f32 %v11910_v2, %v921_v43  ;;  %v932_v54 = vadd.f32 %v11917_v3, %v924_v44  ;;  %v933_v55 = vadd.f32 %v11918_v4, %v925_v45 }
  0xe8   : > { %v942_v56 = vunpack.c.l.bf16 %v934_v47  ;;  %v938_v57 = vpack.c.bf16 %v930_v48, %v930_v48  ;;  %v936_v58 = vpack.c.bf16 %v928_v49, %v928_v49  ;;  %v935_v59 = vpack.c.bf16 %v927_v50, %v927_v50 }
  0xe9   : > { %v519_v60 = vpack.i.b16 %v517_v46, %v517_v46  ;;  %v939_v61 = vpack.c.bf16 %v931_v51, %v931_v51  ;;  %v937_v5 = vpack.c.bf16 %v929_v52, %v929_v52  ;;  %v940_v6 = vpack.c.bf16 %v932_v54, %v932_v54 }
  0xea   : > { %12202 = vtanh.f32 %v942_v56  ;;  %v946_v7 = vunpack.c.l.bf16 %v938_v57  ;;  %v944_v8 = vunpack.c.l.bf16 %v936_v58  ;;  %v943_v9 = vunpack.c.l.bf16 %v935_v59 }
  0xeb   : > { %v947_v10 = vunpack.c.l.bf16 %v939_v61  ;;  %v941_v62 = vpack.c.bf16 %v933_v55, %v933_v55  ;;  %v945_v63 = vunpack.c.l.bf16 %v937_v5  ;;  %v521_v0 = vperm.slane %v519_v60, 0 }
  0xec   : > { %12204 = vtanh.f32 %v946_v7  ;;  %v948_v1 = vunpack.c.l.bf16 %v940_v6  ;;  %v1023_v60 = vlaneseq }
  0xed   : > { %12206 = vtanh.f32 %v944_v8  ;;  %v949_v2 = vunpack.c.l.bf16 %v941_v62  ;;  %v12828_v11 = vunpack.c.l.bf16 %v521_v0 }
  0xee   : > { %12208 = vtanh.f32 %v943_v9  ;;  %v12838_v6 = vand.u32 127, %v1023_v60 }
  0xef   : > { %12210 = vtanh.f32 %v947_v10 }
  0xf0   : > { %v12203_v3 = vpop.eup %12202  ;;  %12212 = vtanh.f32 %v945_v63 }
  0xf1   : > { %v958_v4 = vpack.c.bf16 %v12203_v3, %v12203_v3  ;;  %12214 = vtanh.f32 %v948_v1 }
  0xf2   : > { %v12205_v12 = vpop.eup %12204  ;;  %12216 = vtanh.f32 %v949_v2 }
  0xf3   : > { %v12207_v13 = vpop.eup %12206  ;;  %v966_v14 = vunpack.c.l.bf16 %v958_v4  ;;  %v962_v15 = vpack.c.bf16 %v12205_v12, %v12205_v12 }
  0xf4   : > { %v12209_v16 = vpop.eup %12208  ;;  %v960_v17 = vpack.c.bf16 %v12207_v13, %v12207_v13 }
  0xf5   : > { %v12211_v18 = vpop.eup %12210  ;;  %v975_v19 = vmul.f32 %v12828_v11, %v966_v14  ;;  %v970_v20 = vunpack.c.l.bf16 %v962_v15  ;;  %v959_v21 = vpack.c.bf16 %v12209_v16, %v12209_v16 }
  0xf6   : > { %v12213_v22 = vpop.eup %12212  ;;  %v968_v23 = vunpack.c.l.bf16 %v960_v17  ;;  %v963_v24 = vpack.c.bf16 %v12211_v18, %v12211_v18 }
  0xf7   : > { %v12215_v25 = vpop.eup %12214  ;;  %v983_v26 = vpack.c.bf16 %v975_v19, %v975_v19  ;;  %v979_v27 = vmul.f32 %v12828_v11, %v970_v20  ;;  %v967_v28 = vunpack.c.l.bf16 %v959_v21  ;;  %v961_v29 = vpack.c.bf16 %v12213_v22, %v12213_v22 }
  0xf8   : > { %v977_v30 = vmul.f32 %v12828_v11, %v968_v23  ;;  %v971_v31 = vunpack.c.l.bf16 %v963_v24  ;;  %v964_v32 = vpack.c.bf16 %v12215_v25, %v12215_v25  ;;  %v12217_v33 = vpop.eup %12216  ;;  %v12582_v22 = vmov 0  }
  0xf9   : > { %v991_v34 = vunpack.c.l.bf16 %v983_v26  ;;  %v987_v35 = vpack.c.bf16 %v979_v27, %v979_v27  ;;  %v976_v36 = vmul.f32 %v12828_v11, %v967_v28  ;;  %v969_v37 = vunpack.c.l.bf16 %v961_v29  ;;  %12200 = vset.pattern.permute.xlu2 %v12582_v22  ;;  %12199 = vset.pattern.permute.xlu1 %v12582_v22 }
  0xfa   : > { %v985_v38 = vpack.c.bf16 %v977_v30, %v977_v30  ;;  %v980_v40 = vmul.f32 %v12828_v11, %v971_v31  ;;  %v965_v43 = vpack.c.bf16 %v12217_v33, %v12217_v33  ;;  %v972_v45 = vunpack.c.l.bf16 %v964_v32  ;;  %12198 = vset.pattern.permute.xlu0 %v12582_v22 }
  0xfb   : > { %999 = vadd.xlane.f32.xlu0 %v991_v34  ;;  %v995_v39 = vunpack.c.l.bf16 %v987_v35  ;;  %v978_v42 = vmul.f32 %v12828_v11, %v969_v37  ;;  %v984_v44 = vpack.c.bf16 %v976_v36, %v976_v36 }
  0xfc   : > { %v993_v41 = vunpack.c.l.bf16 %v985_v38  ;;  %v988_v46 = vpack.c.bf16 %v980_v40, %v980_v40  ;;  %v973_v48 = vunpack.c.l.bf16 %v965_v43  ;;  %v981_v50 = vmul.f32 %v12828_v11, %v972_v45 }
  0xfd   : > { %1007 = vadd.xlane.f32.xlu2 %v995_v39  ;;  %v986_v47 = vpack.c.bf16 %v978_v42, %v978_v42  ;;  %v992_v49 = vunpack.c.l.bf16 %v984_v44 }
  0xfe   : > { %1003 = vadd.xlane.f32.xlu1 %v993_v41  ;;  %v996_v51 = vunpack.c.l.bf16 %v988_v46  ;;  %v982_v54 = vmul.f32 %v12828_v11, %v973_v48  ;;  %v989_v55 = vpack.c.bf16 %v981_v50, %v981_v50 }
  0xff   : > { %v994_v52 = vunpack.c.l.bf16 %v986_v47 }
 0x100   : > { %v990_v56 = vpack.c.bf16 %v982_v54, %v982_v54  ;;  %v997_v57 = vunpack.c.l.bf16 %v989_v55 }
 0x102   : > { %v998_v58 = vunpack.c.l.bf16 %v990_v56 }
 0x103   : > { %1001 = vadd.xlane.f32.xlu0 %v992_v49 }
 0x105   : > { %1009 = vadd.xlane.f32.xlu2 %v996_v51 }
 0x106   : > { %1005 = vadd.xlane.f32.xlu1 %v994_v52 }
 0x10b   : > { %1011 = vadd.xlane.f32.xlu0 %v997_v57 }
 0x10e   : > { %1013 = vadd.xlane.f32.xlu1 %v998_v58 }
 0x16e   : > { %v1000_v59 = vpop.xlane.xlu0 %999 }
 0x16f   : > { %v1025_v8 = vperm.slane %v1000_v59, %v12838_v6 }
 0x170   : > { %v1008_v61 = vpop.xlane.xlu2 %1007 }
 0x171   : > { %v1004_v5 = vpop.xlane.xlu1 %1003  ;;  %v1029_v2 = vperm.slane %v1008_v61, %v12838_v6 }
 0x172   : > { %v1027_v10 = vperm.slane %v1004_v5, %v12838_v6 }
 0x176   : > { %v1002_v7 = vpop.xlane.xlu0 %1001 }
 0x177   : > { %v1026_v9 = vperm.slane %v1002_v7, %v12838_v6 }
 0x178   : > { %v1010_v3 = vpop.xlane.xlu2 %1009 }
 0x179   : > { %v1034_v62 = vsel %vm1033_vm0, %v1026_v9, %v1025_v8  ;;  %v1006_v63 = vpop.xlane.xlu1 %1005  ;;  %v1030_v13 = vperm.slane %v1010_v3, %v12838_v6 }
 0x17a   : > { %v1028_v0 = vperm.slane %v1006_v63, %v12838_v6  ;;  %v1036_v1 = vsel %vm1035_vm1, %v1027_v10, %v1034_v62 }
 0x17c   : > { %v1038_v4 = vsel %vm1037_vm2, %v1028_v0, %v1036_v1 }
 0x17d   : > { %v1040_v12 = vsel %vm1039_vm3, %v1029_v2, %v1038_v4 }
 0x17e   : > { %v1012_v14 = vpop.xlane.xlu0 %1011  ;;  %v1042_v16 = vsel %vm1041_vm4, %v1030_v13, %v1040_v12 }
 0x17f   : > { %v1031_v15 = vperm.slane %v1012_v14, %v12838_v6 }
 0x181   : > { %v1014_v17 = vpop.xlane.xlu1 %1013  ;;  %v1044_v18 = vsel %vm1043_vm5, %v1031_v15, %v1042_v16 }
 0x182   : > { %v1032_v19 = vperm.slane %v1014_v17, %v12838_v6 }
 0x184   : > { %v1046_v20 = vsel %vm1045_vm6, %v1032_v19, %v1044_v18 }
 0x185   : > { %v1049_v21 = vsel %vm1048_vm7, %v1046_v20, -inf  ;;  %v11434_v20 = vld [vmem:[%s17317_s3 + $0x11c] sm:$0xf] }
 0x186   : > { %1050 = vmax.xlane.f32.xlu2 %v1049_v21  ;;  %v9465_v21 = vld [vmem:[%s17317_s3 + $0x12c] sm:$0xf0] }
 0x1f9   : > { %v1051_v23 = vpop.xlane.xlu2 %1050 }
 0x1fa   : > { %v1055_v24 = vperm.slane %v1051_v23, 2  ;;  %v1054_v25 = vperm.slane %v1051_v23, 1  ;;  %v1053_v26 = vperm.slane %v1051_v23, 0  ;;  %v1056_v30 = vperm.slane %v1051_v23, 3 }
 0x1fb   : > { %v1057_v31 = vperm.slane %v1051_v23, 4  ;;  %v1060_v32 = vperm.slane %v1051_v23, 7  ;;  %v1058_v40 = vperm.slane %v1051_v23, 5  ;;  %v1059_v42 = vperm.slane %v1051_v23, 6 }
 0x1fc   : > { %v1071_v27 = vsub.f32 %v1004_v5, %v1055_v24  ;;  %v1070_v28 = vsub.f32 %v1002_v7, %v1054_v25  ;;  %v1069_v29 = vsub.f32 %v1000_v59, %v1053_v26  ;;  %v1072_v36 = vsub.f32 %v1006_v63, %v1056_v30  ;;  %v9471_v26 = vld [vmem:[%s17317_s3 + $0x120] sm:$0xf]  ;;  %v11435_v30 = vld [vmem:[%s17317_s3 + $0x124] sm:$0xf] }
 0x1fd   : > { %v1073_v37 = vsub.f32 %v1008_v61, %v1057_v31  ;;  %v1076_v38 = vsub.f32 %v1014_v17, %v1060_v32  ;;  %v1074_v47 = vsub.f32 %v1010_v3, %v1058_v40  ;;  %v1075_v48 = vsub.f32 %v1012_v14, %v1059_v42  ;;  %v9473_v31 = vld [vmem:[%s17317_s3 + $0x134] sm:$0xf0]  ;;  %v11430_v42 = vld [vmem:[%s17317_s3 + $0xfc] sm:$0xf] }
 0x1fe   : > { %v1081_v33 = vmul.f32 1.442695, %v1071_v27  ;;  %v1079_v34 = vmul.f32 1.442695, %v1070_v28  ;;  %v1077_v35 = vmul.f32 1.442695, %v1069_v29  ;;  %v9468_v23 = vor.u32 %v11434_v20, %v9465_v21 }
 0x1ff   : > { %v1083_v39 = vmul.f32 1.442695, %v1072_v36  ;;  %v1085_v41 = vmul.f32 1.442695, %v1073_v37  ;;  %v1091_v44 = vmul.f32 1.442695, %v1076_v38 }
 0x200   : > { %12218 = vpow2.f32 %v1081_v33  ;;  %v1087_v49 = vmul.f32 1.442695, %v1074_v47  ;;  %v1089_v50 = vmul.f32 1.442695, %v1075_v48  ;;  %794 = vmatpush.bf16.msra.mxu1 %v9468_v23  ;;  %v11437_v29 = vld [vmem:[%s17317_s3 + $0x130] sm:$0xf0] }
 0x201   : > { %12220 = vpow2.f32 %v1079_v34  ;;  %v9479_v34 = vld [vmem:[%s17317_s3 + $0x128] sm:$0xf]  ;;  %v11429_v38 = vld [vmem:[%s17317_s3 + $0xf4] sm:$0xf]  ;;  %v9451_v40 = vld [vmem:[%s17317_s3 + $0xf8] sm:$0xf] }
 0x202   : > { %12222 = vpow2.f32 %v1077_v35  ;;  %v11438_v35 = vld [vmem:[%s17317_s3 + $0x138] sm:$0xf0]  ;;  %v9459_v48 = vld [vmem:[%s17317_s3 + $0x100] sm:$0xf]  ;;  %v11419_v20 = vld [vmem:[%s17317_s3 + $0xa4] sm:$0xf] }
 0x203   : > { %12224 = vpow2.f32 %v1083_v39  ;;  %v9445_v39 = vld [vmem:[%s17317_s3 + $0x104] sm:$0xf0]  ;;  %v9480_v47 = vor.u32 %v11438_v35, %v9479_v34  ;;  %v9405_v21 = vld [vmem:[%s17317_s3 + $0xb4] sm:$0xf0]  ;;  %v11414_v34 = vld [vmem:[%s17317_s3 + $0x7c] sm:$0xf] }
 0x204   : > { %12226 = vpow2.f32 %v1085_v41  ;;  %v11432_v41 = vld [vmem:[%s17317_s3 + $0x108] sm:$0xf0]  ;;  %v9408_v23 = vor.u32 %v11419_v20, %v9405_v21  ;;  %v9385_v35 = vld [vmem:[%s17317_s3 + $0x8c] sm:$0xf0]  ;;  %v11402_v21 = vld [vmem:[%s17317_s3 + $0x18] sm:$0xf0] }
 0x205   : > { %12228 = vpow2.f32 %v1091_v44  ;;  %v9453_v44 = vld [vmem:[%s17317_s3 + $0x10c] sm:$0xf0]  ;;  %833 = vmatpush.bf16.msrb.mxu0 %v9480_v47  ;;  %v11409_v47 = vld [vmem:[%s17317_s3 + $0x54] sm:$0xf] }
 0x206   : > { %v12856_v43 = vpop.eup %12218  ;;  %12230 = vpow2.f32 %v1087_v49  ;;  %v11433_v49 = vld [vmem:[%s17317_s3 + $0x110] sm:$0xf0] }
 0x207   : > { %v12221_v45 = vpop.eup %12220  ;;  %1108 = vperm.xlu2 %12200, %v12856_v43   ;;  %12232 = vpow2.f32 %v1089_v50 }
 0x208   : > { %v12223_v46 = vpop.eup %12222  ;;  %1105 = vperm.xlu1 %12199, %v12221_v45  }
 0x209   : > { %1102 = vperm.xlu0 %12198, %v12223_v46   ;;  %v12859_v51 = vpop.eup %12224 }
 0x20a   : > { %v12861_v52 = vpop.eup %12226 }
 0x20b   : > { %v12864_v54 = vpop.eup %12228 }
 0x20c   : > { %v12868_v55 = vpop.eup %12230 }
 0x20d   : > { %v12870_v56 = vpop.eup %12232 }
 0x20f   : > { %1111 = vperm.xlu2 %12200, %v12859_v51  }
 0x210   : > { %1114 = vperm.xlu1 %12199, %v12861_v52  }
 0x211   : > { %1123 = vperm.xlu0 %12198, %v12864_v54  }
 0x217   : > { %1117 = vperm.xlu2 %12200, %v12868_v55  }
 0x218   : > { %1120 = vperm.xlu1 %12199, %v12870_v56  }
 0x261   : > { %v1109_v57 = vpop.permute.xlu2 %1108 }
 0x262   : > { %v1127_v9 = vperm.slane %v1109_v57, %v12838_v6  ;;  %v9448_v57 = vor.u32 %v11429_v38, %v9445_v39  ;;  %v11417_v38 = vld [vmem:[%s17317_s3 + $0x90] sm:$0xf0]  ;;  %v11415_v39 = vld [vmem:[%s17317_s3 + $0x84] sm:$0xf] }
 0x264   : > { %795 = vmatpush.bf16.msra.mxu1 %v9448_v57 }
 0x269   : > { %v1112_v60 = vpop.permute.xlu2 %1111 }
 0x26a   : > { %v1128_v63 = vperm.slane %v1112_v60, %v12838_v6  ;;  %v9456_v60 = vor.u32 %v11430_v42, %v9453_v44  ;;  %v9399_v44 = vld [vmem:[%s17317_s3 + $0x88] sm:$0xf] }
 0x271   : > { %v1118_v0 = vpop.permute.xlu2 %1117 }
 0x272   : > { %v1130_v4 = vperm.slane %v1118_v0, %v12838_v6 }
 0x27a   : > { %v1106_v58 = vpop.permute.xlu1 %1105 }
 0x27b   : > { %v1103_v59 = vpop.permute.xlu0 %1102  ;;  %v1126_v61 = vperm.slane %v1106_v58, %v12838_v6 }
 0x27c   : > { %v1125_v5 = vperm.slane %v1103_v59, %v12838_v6  ;;  %v9452_v59 = vor.u32 %v11432_v41, %v9451_v40  ;;  %v9393_v40 = vld [vmem:[%s17317_s3 + $0x94] sm:$0xf0] }
 0x27d   : > { %v9396_v42 = vor.u32 %v11415_v39, %v9393_v40  ;;  %v9603_v39 = vld [vmem:[%s17320_s6 + $0xe8] sm:$0xf]  ;;  %v11470_v40 = vld [vmem:[%s17320_s6 + $0xf4] sm:$0xf0] }
 0x27e   : > { %v1133_v7 = vsel %vm1033_vm0, %v1126_v61, %v1125_v5  ;;  %v9460_v61 = vor.u32 %v11433_v49, %v9459_v48  ;;  %v9365_v48 = vld [vmem:[%s17317_s3 + $0x64] sm:$0xf0]  ;;  %v9371_v49 = vld [vmem:[%s17317_s3 + $0x58] sm:$0xf] }
 0x27f   : > { %v1134_v10 = vsel %vm1035_vm1, %v1127_v9, %v1133_v7  ;;  %v9368_v57 = vor.u32 %v11409_v47, %v9365_v48 }
 0x280   : > { %v1135_v1 = vsel %vm1037_vm2, %v1128_v63, %v1134_v10  ;;  %834 = vmatpush.bf16.msrb.mxu0 %v9460_v61  ;;  %v9373_v61 = vld [vmem:[%s17317_s3 + $0x6c] sm:$0xf0] }
 0x282   : > { %v1115_v8 = vpop.permute.xlu1 %1114 }
 0x283   : > { %v1129_v62 = vperm.slane %v1115_v8, %v12838_v6  ;;  %v1124_v3 = vpop.permute.xlu0 %1123 }
 0x284   : > { %v1132_v14 = vperm.slane %v1124_v3, %v12838_v6  ;;  %v11424_v3 = vld [vmem:[%s17317_s3 + $0xcc] sm:$0xf] }
 0x285   : > { %v1136_v2 = vsel %vm1039_vm3, %v1129_v62, %v1135_v1 }
 0x286   : > { %v1137_v15 = vsel %vm1041_vm4, %v1130_v4, %v1136_v2 }
 0x28a   : > { %v1121_v12 = vpop.permute.xlu1 %1120 }
 0x28b   : > { %v1131_v13 = vperm.slane %v1121_v12, %v12838_v6  ;;  %v11427_v12 = vld [vmem:[%s17317_s3 + $0xe0] sm:$0xf0] }
 0x28d   : > { %v1138_v16 = vsel %vm1043_vm5, %v1131_v13, %v1137_v15  ;;  %v11425_v13 = vld [vmem:[%s17317_s3 + $0xd4] sm:$0xf] }
 0x28e   : > { %v1139_v17 = vsel %vm1045_vm6, %v1132_v14, %v1138_v16  ;;  %v9433_v14 = vld [vmem:[%s17317_s3 + $0xe4] sm:$0xf0] }
 0x28f   : > { %v1141_v18 = vsel %vm1048_vm7, %v1139_v17, 0.0  ;;  %v9436_v16 = vor.u32 %v11425_v13, %v9433_v14  ;;  %v9439_v17 = vld [vmem:[%s17317_s3 + $0xd8] sm:$0xf]  ;;  %v11408_v13 = vld [vmem:[%s17317_s3 + $0x48] sm:$0xf0] }
 0x290   : > { %1142 = vadd.xlane.f32.xlu2 %v1141_v18  ;;  %v11428_v18 = vld [vmem:[%s17317_s3 + $0xe8] sm:$0xf0]  ;;  %v12583_v14 = vmov 839922192  }
 0x303   : > { %v1143_v19 = vpop.xlane.xlu2 %1142 }
 0x304   : > { %12234 = vrcp.f32 %v1143_v19  ;;  %v9440_v19 = vor.u32 %v11428_v18, %v9439_v17  ;;  %v11399_v17 = vld [vmem:[%s17317_s3 + $0x4] sm:$0xf]  ;;  %v9325_v18 = vld [vmem:[%s17317_s3 + $0x14] sm:$0xf0] }
 0x305   : > { %v9328_v20 = vor.u32 %v11399_v17, %v9325_v18 }
 0x306   : > { %835 = vmatpush.bf16.msrb.mxu0 %v9440_v19  ;;  %v9331_v19 = vld [vmem:[%s17317_s3 + $0x8] sm:$0xf] }
 0x30a   : > { %v12235_v22 = vpop.eup %12234 }
 0x30b   : > { %v1147_v24 = vperm.slane %v12235_v22, 1  ;;  %v1146_v25 = vperm.slane %v12235_v22, 0  ;;  %v1149_v32 = vperm.slane %v12235_v22, 3  ;;  %v1148_v33 = vperm.slane %v12235_v22, 2 }
 0x30c   : > { %v1151_v8 = vperm.slane %v12235_v22, 5  ;;  %v1153_v63 = vperm.slane %v12235_v22, 7  ;;  %v1152_v0 = vperm.slane %v12235_v22, 6 }
 0x30d   : > { %v12899_v27 = vmul.f32 %v12221_v45, %v1147_v24  ;;  %v12901_v28 = vmul.f32 %v12223_v46, %v1146_v25  ;;  %v9472_v45 = vor.u32 %v11437_v29, %v9471_v26  ;;  %v9476_v46 = vor.u32 %v11435_v30, %v9473_v31  ;;  %v11422_v24 = vld [vmem:[%s17317_s3 + $0xb8] sm:$0xf0]  ;;  %v11420_v25 = vld [vmem:[%s17317_s3 + $0xac] sm:$0xf]  ;;  %v9413_v26 = vld [vmem:[%s17317_s3 + $0xbc] sm:$0xf0] }
 0x30e   : > { %v12947_v50 = vmul.f32 %v12859_v51, %v1149_v32  ;;  %v12950_v58 = vmul.f32 %v12856_v43, %v1148_v33  ;;  %v1150_v51 = vperm.slane %v12235_v22, 4  ;;  %v12957_v43 = vmul.f32 %v12868_v55, %v1151_v8  ;;  %v9411_v22 = vld [vmem:[%s17317_s3 + $0xa8] sm:$0xf]  ;;  %v9419_v31 = vld [vmem:[%s17317_s3 + $0xb0] sm:$0xf] }
 0x30f   : > { %v1171_v36 = vpack.c.bf16 %v12899_v27, %v12899_v27  ;;  %v1170_v37 = vpack.c.bf16 %v12901_v28, %v12901_v28  ;;  %807 = vmatpush.bf16.msra.mxu2 %v9472_v45  ;;  %820 = vmatpush.bf16.msra.mxu3 %v9476_v46  ;;  %v12967_v1 = vmul.f32 %v12864_v54, %v1153_v63  ;;  %v9425_v54 = vld [vmem:[%s17317_s3 + $0xdc] sm:$0xf0]  ;;  %v11423_v32 = vld [vmem:[%s17317_s3 + $0xc0] sm:$0xf0]  ;;  %v11418_v45 = vld [vmem:[%s17317_s3 + $0x98] sm:$0xf0] }
 0x310   : > { %v1173_v5 = vpack.c.bf16 %v12947_v50, %v12947_v50  ;;  %v1172_v7 = vpack.c.bf16 %v12950_v58, %v12950_v58  ;;  %v12960_v9 = vmul.f32 %v12861_v52, %v1150_v51  ;;  %v1175_v10 = vpack.c.bf16 %v12957_v43, %v12957_v43  ;;  %v9379_v8 = vld [vmem:[%s17317_s3 + $0x60] sm:$0xf]  ;;  %v11413_v51 = vld [vmem:[%s17317_s3 + $0x70] sm:$0xf0] }
 0x311   : > { %1197 = vperm.xlu0 %12198, %v1171_v36   ;;  %1188 = vperm.xlu1 %12199, %v1170_v37   ;;  %v12970_v2 = vmul.f32 %v12870_v56, %v1152_v0  ;;  %v1177_v52 = vpack.c.bf16 %v12967_v1, %v12967_v1  ;;  %v9431_v56 = vld [vmem:[%s17317_s3 + $0xd0] sm:$0xf]  ;;  %v9428_v4 = vor.u32 %v11424_v3, %v9425_v54  ;;  %v9391_v36 = vld [vmem:[%s17317_s3 + $0x80] sm:$0xf]  ;;  %v11405_v3 = vld [vmem:[%s17317_s3 + $0x34] sm:$0xf] }
 0x312   : > { %v1174_v62 = vpack.c.bf16 %v12960_v9, %v12960_v9  ;;  %v9432_v15 = vor.u32 %v11427_v12, %v9431_v56  ;;  %v9412_v29 = vor.u32 %v11422_v24, %v9411_v22  ;;  %v9416_v30 = vor.u32 %v11420_v25, %v9413_v26  ;;  %v9345_v63 = vld [vmem:[%s17317_s3 + $0x3c] sm:$0xf0]  ;;  %v9351_v0 = vld [vmem:[%s17317_s3 + $0x30] sm:$0xf]  ;;  %v9353_v54 = vld [vmem:[%s17317_s3 + $0x44] sm:$0xf0] }
 0x313   : > { %808 = vmatpush.bf16.msra.mxu2 %v9452_v59  ;;  %821 = vmatpush.bf16.msra.mxu3 %v9456_v60  ;;  %v1176_v55 = vpack.c.bf16 %v12970_v2, %v12970_v2  ;;  %v9420_v33 = vor.u32 %v11423_v32, %v9419_v31  ;;  %v9388_v37 = vor.u32 %v11414_v34, %v9385_v35  ;;  %v11412_v59 = vld [vmem:[%s17317_s3 + $0x68] sm:$0xf0]  ;;  %v11410_v60 = vld [vmem:[%s17317_s3 + $0x5c] sm:$0xf]  ;;  %v9359_v12 = vld [vmem:[%s17317_s3 + $0x38] sm:$0xf] }
 0x314   : > { %796 = vmatpush.bf16.msra.mxu1 %v9428_v4  ;;  %v9392_v41 = vor.u32 %v11417_v38, %v9391_v36  ;;  %v9400_v46 = vor.u32 %v11418_v45, %v9399_v44  ;;  %v9356_v4 = vor.u32 %v11405_v3, %v9353_v54  ;;  %v11400_v22 = vld [vmem:[%s17317_s3 + $0xc] sm:$0xf]  ;;  %v11920_v24 = vld [vmem:[%s13101_s22] sm:$0xff]   ;;  %v9332_v25 = vor.u32 %v11402_v21, %v9331_v19  ;;  %v11469_v34 = vld [vmem:[%s17320_s6 + $0xec] sm:$0xf0] }
 0x315   : > { %836 = vmatpush.bf16.msrb.mxu0 %v9420_v33  ;;  %v9595_v31 = vld [vmem:[%s17320_s6 + $0xe0] sm:$0xf]  ;;  %v11467_v35 = vld [vmem:[%s17320_s6 + $0xe4] sm:$0xf]  ;;  %v9597_v36 = vld [vmem:[%s17320_s6 + $0xf0] sm:$0xf0] }
 0x316   : > { %v9600_v38 = vor.u32 %v11467_v35, %v9597_v36  ;;  %v9605_v44 = vld [vmem:[%s17320_s6 + $0xf8] sm:$0xf0]  ;;  %v9579_v45 = vld [vmem:[%s17320_s6 + $0xc0] sm:$0xf]  ;;  %v12130_v19 = vld [vmem:[%s13101_s22 + $0x8] sm:$0xff]  }
 0x317   : > { %809 = vmatpush.bf16.msra.mxu2 %v9432_v15  ;;  %822 = vmatpush.bf16.msra.mxu3 %v9436_v16  ;;  %v1192_v15 = vunpack.c.l.s4 %v12583_v14  ;;  %v9360_v16 = vor.u32 %v11408_v13, %v9359_v12  ;;  %v11459_v12 = vld [vmem:[%s17320_s6 + $0xa4] sm:$0xf]  ;;  %v9565_v14 = vld [vmem:[%s17320_s6 + $0xb0] sm:$0xf0]  ;;  %v11460_v21 = vld [vmem:[%s17320_s6 + $0xac] sm:$0xf]  ;;  %v11925_v35 = vunpack.c.l.bf16 %v12130_v19 }
 0x318   : > { %797 = vmatpush.bf16.msra.mxu1 %v9408_v23  ;;  %v9333_v23 = vld [vmem:[%s17317_s3 + $0x1c] sm:$0xf0] }
 0x319   : > { %1215 = vperm.xlu0 %12198, %v1173_v5   ;;  %1206 = vperm.xlu1 %12199, %v1172_v7   ;;  %v9372_v5 = vor.u32 %v11412_v59, %v9371_v49  ;;  %v9376_v7 = vor.u32 %v11410_v60, %v9373_v61  ;;  %v9336_v26 = vor.u32 %v11400_v22, %v9333_v23  ;;  %v13131_v32 = vunpack.c.0.s8 %v1192_v15  ;;  %v11463_v59 = vld [vmem:[%s17320_s6 + $0xc4] sm:$0xf]  ;;  %v9581_v60 = vld [vmem:[%s17320_s6 + $0xd0] sm:$0xf0]  ;;  %v9571_v15 = vld [vmem:[%s17320_s6 + $0xa8] sm:$0xf] }
 0x31a   : > { %837 = vmatpush.bf16.msrb.mxu0 %v9400_v46  ;;  %v11465_v46 = vld [vmem:[%s17320_s6 + $0xcc] sm:$0xf0]  ;;  %v11922_v61 = vunpack.c.h.bf16 %v11920_v24  ;;  %v9573_v22 = vld [vmem:[%s17320_s6 + $0xb8] sm:$0xf0] }
 0x31b   : > { %810 = vmatpush.bf16.msra.mxu2 %v9412_v29  ;;  %823 = vmatpush.bf16.msra.mxu3 %v9416_v30  ;;  %v9339_v29 = vld [vmem:[%s17317_s3 + $0x10] sm:$0xf]  ;;  %v11403_v30 = vld [vmem:[%s17317_s3 + $0x20] sm:$0xf0]  ;;  %17359 = vst [vmem:[#allocation5_spill] sm:$0xff] %v13131_v32  ;;  %v9576_v23 = vor.u32 %v11460_v21, %v9573_v22 }
 0x31c   : > { %798 = vmatpush.bf16.msra.mxu1 %v9388_v37  ;;  %v9340_v33 = vor.u32 %v11403_v30, %v9339_v29  ;;  %v9596_v37 = vor.u32 %v11469_v34, %v9595_v31  ;;  %v11457_v29 = vld [vmem:[%s17320_s6 + $0x8c] sm:$0xf0]  ;;  %v11455_v30 = vld [vmem:[%s17320_s6 + $0x84] sm:$0xf] }
 0x31f   : > { %811 = vmatpush.bf16.msra.mxu2 %v9392_v41  ;;  %824 = vmatpush.bf16.msra.mxu3 %v9396_v42  ;;  %v11468_v41 = vld [vmem:[%s17320_s6 + $0xec] sm:$0xf]  ;;  %v9604_v42 = vor.u32 %v11470_v40, %v9603_v39  ;;  %v11458_v39 = vld [vmem:[%s17320_s6 + $0x94] sm:$0xf0] }
 0x320   : > { %799 = vmatpush.bf16.msra.mxu1 %v9368_v57  ;;  %v9608_v49 = vor.u32 %v11468_v41, %v9605_v44  ;;  %v9580_v57 = vor.u32 %v11465_v46, %v9579_v45  ;;  %v11456_v45 = vld [vmem:[%s17320_s6 + $0x8c] sm:$0xf]  ;;  %v9557_v46 = vld [vmem:[%s17320_s6 + $0x98] sm:$0xf0] }
 0x321   : > { %1233 = vperm.xlu0 %12198, %v1175_v10   ;;  %1224 = vperm.xlu1 %12199, %v1174_v62   ;;  %v9380_v10 = vor.u32 %v11413_v51, %v9379_v8  ;;  %v11404_v62 = vld [vmem:[%s17317_s3 + $0x2c] sm:$0xf]  ;;  %v9587_v51 = vld [vmem:[%s17320_s6 + $0xc8] sm:$0xf] }
 0x323   : > { %812 = vmatpush.bf16.msra.mxu2 %v9372_v5  ;;  %825 = vmatpush.bf16.msra.mxu3 %v9376_v7  ;;  %v11921_v7 = vunpack.c.l.bf16 %v11920_v24 }
 0x324   : > { %838 = vmatpush.bf16.msrb.mxu0 %v9380_v10  ;;  %v11466_v10 = vld [vmem:[%s17320_s6 + $0xd4] sm:$0xf0] }
 0x327   : > { %826 = vmatpush.bf16.msra.mxu3 %v9356_v4  ;;  %v11461_v4 = vld [vmem:[%s17320_s6 + $0xac] sm:$0xf0] }
 0x328   : > { %839 = vmatpush.bf16.msrb.mxu0 %v9360_v16  ;;  %v11462_v16 = vld [vmem:[%s17320_s6 + $0xb4] sm:$0xf0] }
 0x329   : > { %1251 = vperm.xlu0 %12198, %v1177_v52   ;;  %1242 = vperm.xlu1 %12199, %v1176_v55   ;;  %v9348_v52 = vor.u32 %v11404_v62, %v9345_v63  ;;  %v11407_v55 = vld [vmem:[%s17317_s3 + $0x40] sm:$0xf0]  ;;  %v11464_v62 = vld [vmem:[%s17320_s6 + $0xcc] sm:$0xf]  ;;  %v9584_v63 = vor.u32 %v11463_v59, %v9581_v60 }
 0x32a   : > { %v9352_v56 = vor.u32 %v11407_v55, %v9351_v0  ;;  %v9588_v0 = vor.u32 %v11466_v10, %v9587_v51  ;;  %v11451_v51 = vld [vmem:[%s17320_s6 + $0x64] sm:$0xf]  ;;  %v9533_v10 = vld [vmem:[%s17320_s6 + $0x70] sm:$0xf0] }
 0x32b   : > { %800 = vmatpush.bf16.msra.mxu1 %v9348_v52  ;;  %827 = vmatpush.bf16.msra.mxu3 %v9336_v26  ;;  %v9589_v52 = vld [vmem:[%s17320_s6 + $0xd8] sm:$0xf0]  ;;  %v9547_v26 = vld [vmem:[%s17320_s6 + $0x80] sm:$0xf] }
 0x32c   : > { %813 = vmatpush.bf16.msra.mxu2 %v9352_v56  ;;  %840 = vmatpush.bf16.msrb.mxu0 %v9340_v33  ;;  %v9592_v54 = vor.u32 %v11464_v62, %v9589_v52  ;;  %v9563_v56 = vld [vmem:[%s17320_s6 + $0xa0] sm:$0xf]  ;;  %v11926_v33 = vunpack.c.h.bf16 %v12130_v19  ;;  %v9548_v36 = vor.u32 %v11457_v29, %v9547_v26  ;;  %v9539_v62 = vld [vmem:[%s17320_s6 + $0x68] sm:$0xf] }
 0x32d   : > { %v9564_v13 = vor.u32 %v11461_v4, %v9563_v56  ;;  %v9541_v56 = vld [vmem:[%s17320_s6 + $0x78] sm:$0xf0]  ;;  %v12131_v4 = vld [vmem:[%s13101_s22 + $0x10] sm:$0xff]   ;;  %v9515_v19 = vld [vmem:[%s17320_s6 + $0x40] sm:$0xf] }
 0x32e   : > { %828 = vmatmul.bf16.vlgmr.msra.gmra.mxu3 %v12800_v53 }
 0x32f   : > { %801 = vmatpush.bf16.msra.mxu1 %v9328_v20  ;;  %1605 = vmatpush.bf16.msrb.mxu3 %v9604_v42  ;;  %v9572_v20 = vor.u32 %v11462_v16, %v9571_v15 }
 0x330   : > { %814 = vmatpush.bf16.msra.mxu2 %v9332_v25  ;;  %1618 = vmatpush.bf16.msra.mxu0 %v9608_v49  ;;  %v9560_v49 = vor.u32 %v11456_v45, %v9557_v46  ;;  %v11443_v45 = vld [vmem:[%s17320_s6 + $0x24] sm:$0xf]  ;;  %v9501_v46 = vld [vmem:[%s17320_s6 + $0x30] sm:$0xf0] }
 0x331   : > { %841 = vmatmul.bf16.vlgmr.msrb.gmra.mxu0 %v12800_v53 }
 0x332   : > { %802 = vmatmul.bf16.vlgmr.msra.gmra.mxu1 %v12800_v53 }
 0x333   : > { %1579 = vmatpush.bf16.msrb.mxu1 %v9596_v37  ;;  %815 = vmatmul.bf16.vlgmr.msra.gmra.mxu2 %v12800_v53  ;;  %v9568_v53 = vor.u32 %v11459_v12, %v9565_v14  ;;  %v9549_v37 = vld [vmem:[%s17320_s6 + $0x90] sm:$0xf0]  ;;  %v9536_v12 = vor.u32 %v11451_v51, %v9533_v10  ;;  %v9509_v51 = vld [vmem:[%s17320_s6 + $0x38] sm:$0xf0] }
 0x334   : > { %1592 = vmatpush.bf16.msrb.mxu2 %v9600_v38  ;;  %1606 = vmatpush.bf16.msrb.mxu3 %v9588_v0  ;;  %v9555_v38 = vld [vmem:[%s17320_s6 + $0x88] sm:$0xf] }
 0x335   : > { %1619 = vmatpush.bf16.msra.mxu0 %v9592_v54  ;;  %v11452_v54 = vld [vmem:[%s17320_s6 + $0x6c] sm:$0xf] }
 0x336   : > { %v9544_v14 = vor.u32 %v11452_v54, %v9541_v56 }
 0x337   : > { %1580 = vmatpush.bf16.msrb.mxu1 %v9580_v57 }
 0x338   : > { %1593 = vmatpush.bf16.msrb.mxu2 %v9584_v63  ;;  %1607 = vmatpush.bf16.msrb.mxu3 %v9572_v20 }
 0x339   : > { %1620 = vmatpush.bf16.msra.mxu0 %v9576_v23  ;;  %v11447_v23 = vld [vmem:[%s17320_s6 + $0x44] sm:$0xf] }
 0x33b   : > { %1581 = vmatpush.bf16.msrb.mxu1 %v9564_v13 }
 0x33c   : > { %1594 = vmatpush.bf16.msrb.mxu2 %v9568_v53  ;;  %v11449_v53 = vld [vmem:[%s17320_s6 + $0x4c] sm:$0xf0] }
 0x33d   : > { %1621 = vmatpush.bf16.msra.mxu0 %v9560_v49  ;;  %v9516_v22 = vor.u32 %v11449_v53, %v9515_v19 }
 0x33f   : > { %1582 = vmatpush.bf16.msrb.mxu1 %v9548_v36 }
 0x341   : > { %1622 = vmatpush.bf16.msra.mxu0 %v9544_v14 }
 0x383   : > { %v1198_v47 = vpop.permute.xlu0 %1197  ;;  %v1189_v48 = vpop.permute.xlu1 %1188 }
 0x384   : > { %v1203_v5 = vperm.slane %v1198_v47, %v13131_v32  ;;  %v1194_v8 = vperm.slane %v1189_v48, %v13131_v32  ;;  %v9552_v47 = vor.u32 %v11455_v30, %v9549_v37  ;;  %v9556_v48 = vor.u32 %v11458_v39, %v9555_v38 }
 0x385   : > { %v11930_v30 = vunpack.c.h.bf16 %v12131_v4 }
 0x386   : > { %v1259_v55 = vunpack.c.l.bf16 %v1203_v5  ;;  %v1258_v3 = vunpack.c.l.bf16 %v1194_v8  ;;  %v9531_v5 = vld [vmem:[%s17320_s6 + $0x60] sm:$0xf]  ;;  %1595 = vmatpush.bf16.msrb.mxu2 %v9552_v47  ;;  %1608 = vmatpush.bf16.msrb.mxu3 %v9556_v48 }
 0x388   : > { %v1275_v17 = vmul.f32 %v11922_v61, %v1259_v55  ;;  %v1274_v18 = vmul.f32 %v11921_v7, %v1258_v3  ;;  %v11453_v7 = vld [vmem:[%s17320_s6 + $0x6c] sm:$0xf0]  ;;  %v11454_v3 = vld [vmem:[%s17320_s6 + $0x74] sm:$0xf0] }
 0x389   : > { %v9532_v8 = vor.u32 %v11453_v7, %v9531_v5  ;;  %v9540_v13 = vor.u32 %v11454_v3, %v9539_v62 }
 0x38a   : > { %v1283_v24 = vpack.c.bf16 %v1275_v17, %v1275_v17  ;;  %v1282_v25 = vpack.c.bf16 %v1274_v18, %v1274_v18  ;;  %1596 = vmatpush.bf16.msrb.mxu2 %v9536_v12 }
 0x38b   : > { %v1216_v31 = vpop.permute.xlu0 %1215  ;;  %v1207_v34 = vpop.permute.xlu1 %1206  ;;  %1583 = vmatpush.bf16.msrb.mxu1 %v9532_v8  ;;  %1609 = vmatpush.bf16.msrb.mxu3 %v9540_v13  ;;  %v11444_v8 = vld [vmem:[%s17320_s6 + $0x2c] sm:$0xf] }
 0x38c   : > { %v1291_v40 = vunpack.c.l.bf16 %v1283_v24  ;;  %v1290_v41 = vunpack.c.l.bf16 %v1282_v25  ;;  %v1221_v42 = vperm.slane %v1216_v31, %v13131_v32  ;;  %v1212_v44 = vperm.slane %v1207_v34, %v13131_v32  ;;  %v9517_v24 = vld [vmem:[%s17320_s6 + $0x50] sm:$0xf0]  ;;  %v9523_v25 = vld [vmem:[%s17320_s6 + $0x48] sm:$0xf]  ;;  %v11448_v34 = vld [vmem:[%s17320_s6 + $0x4c] sm:$0xf] }
 0x38d   : > { %v11929_v31 = vunpack.c.l.bf16 %v12131_v4  ;;  %v9520_v38 = vor.u32 %v11447_v23, %v9517_v24 }
 0x38e   : > { %v1304_v57 = vrot.slane %v1291_v40, 4  ;;  %v1298_v59 = vrot.slane %v1290_v41, 4  ;;  %v1261_v60 = vunpack.c.l.bf16 %v1221_v42  ;;  %v1260_v61 = vunpack.c.l.bf16 %v1212_v44 }
 0x38f   : > { %1584 = vmatpush.bf16.msrb.mxu1 %v9516_v22  ;;  %1597 = vmatpush.bf16.msrb.mxu2 %v9520_v38 }
 0x390   : > { %v1305_v63 = vadd.f32 %v1304_v57, %v1291_v40  ;;  %v13250_v0 = vadd.f32 %v1298_v59, %v1290_v41  ;;  %v1277_v52 = vmul.f32 %v11926_v33, %v1261_v60  ;;  %v1276_v55 = vmul.f32 %v11925_v35, %v1260_v61  ;;  %v11450_v33 = vld [vmem:[%s17320_s6 + $0x54] sm:$0xf0]  ;;  %v9525_v35 = vld [vmem:[%s17320_s6 + $0x58] sm:$0xf0]  ;;  %v9499_v40 = vld [vmem:[%s17320_s6 + $0x20] sm:$0xf] }
 0x391   : > { %v9524_v39 = vor.u32 %v11450_v33, %v9523_v25  ;;  %v11445_v41 = vld [vmem:[%s17320_s6 + $0x2c] sm:$0xf0]  ;;  %v9528_v49 = vor.u32 %v11448_v34, %v9525_v35  ;;  %v9507_v59 = vld [vmem:[%s17320_s6 + $0x28] sm:$0xf]  ;;  %v11446_v60 = vld [vmem:[%s17320_s6 + $0x34] sm:$0xf0] }
 0x392   : > { %v1306_v15 = vrot.slane %v1305_v63, 2  ;;  %v1300_v16 = vrot.slane %v13250_v0, 2  ;;  %v1285_v17 = vpack.c.bf16 %v1277_v52, %v1277_v52  ;;  %v1284_v18 = vpack.c.bf16 %v1276_v55, %v1276_v55  ;;  %v12132_v52 = vld [vmem:[%s13101_s22 + $0x18] sm:$0xff]   ;;  %v9485_v25 = vld [vmem:[%s17320_s6 + $0x10] sm:$0xf0] }
 0x393   : > { %v1234_v20 = vpop.permute.xlu0 %1233  ;;  %v1225_v21 = vpop.permute.xlu1 %1224  ;;  %v9500_v57 = vor.u32 %v11445_v41, %v9499_v40  ;;  %1610 = vmatpush.bf16.msrb.mxu3 %v9524_v39  ;;  %1623 = vmatpush.bf16.msra.mxu0 %v9528_v49  ;;  %v9504_v55 = vor.u32 %v11443_v45, %v9501_v46  ;;  %v9508_v3 = vor.u32 %v11446_v60, %v9507_v59  ;;  %v11440_v39 = vld [vmem:[%s17320_s6 + $0xc] sm:$0xf]  ;;  %v9493_v40 = vld [vmem:[%s17320_s6 + $0x18] sm:$0xf0] }
 0x394   : > { %v1293_v26 = vunpack.c.l.bf16 %v1285_v17  ;;  %v1292_v29 = vunpack.c.l.bf16 %v1284_v18  ;;  %v1239_v36 = vperm.slane %v1234_v20, %v13131_v32  ;;  %v1230_v37 = vperm.slane %v1225_v21, %v13131_v32  ;;  %v9483_v17 = vld [vmem:[%s17320_s6] sm:$0xf]  ;;  %v11441_v18 = vld [vmem:[%s17320_s6 + $0xc] sm:$0xf0]  ;;  %v11439_v20 = vld [vmem:[%s17320_s6 + $0x4] sm:$0xf] }
 0x395   : > { %v1307_v61 = vadd.f32 %v1306_v15, %v1305_v63  ;;  %v1301_v54 = vadd.f32 %v1300_v16, %v13250_v0  ;;  %1585 = vmatpush.bf16.msrb.mxu1 %v9500_v57  ;;  %1598 = vmatpush.bf16.msrb.mxu2 %v9504_v55  ;;  %v9512_v15 = vor.u32 %v11444_v8, %v9509_v51  ;;  %v11934_v0 = vunpack.c.h.bf16 %v12132_v52 }
 0x396   : > { %v1316_v42 = vrot.slane %v1293_v26, 4  ;;  %v1310_v44 = vrot.slane %v1292_v29, 4  ;;  %v1263_v47 = vunpack.c.l.bf16 %v1239_v36  ;;  %v1262_v48 = vunpack.c.l.bf16 %v1230_v37 }
 0x397   : > { %v1308_v19 = vrot.slane %v1307_v61, 1  ;;  %v11933_v16 = vunpack.c.l.bf16 %v12132_v52  ;;  %1611 = vmatpush.bf16.msrb.mxu3 %v9508_v3  ;;  %1624 = vmatpush.bf16.msra.mxu0 %v9512_v15  ;;  %v9484_v34 = vor.u32 %v11441_v18, %v9483_v17  ;;  %v9496_v60 = vor.u32 %v11440_v39, %v9493_v40 }
 0x398   : > { %v1317_v5 = vadd.f32 %v1316_v42, %v1293_v26  ;;  %v1311_v7 = vadd.f32 %v1310_v44, %v1292_v29  ;;  %v1279_v10 = vmul.f32 %v11930_v30, %v1263_v47  ;;  %v1278_v62 = vmul.f32 %v11929_v31, %v1262_v48  ;;  %v9491_v26 = vld [vmem:[%s17320_s6 + $0x8] sm:$0xf]  ;;  %v11442_v29 = vld [vmem:[%s17320_s6 + $0x14] sm:$0xf0] }
 0x399   : > { %v1302_v30 = vrot.slane %v1301_v54, 1  ;;  %v1309_v41 = vadd.f32 %v1308_v19, %v1307_v61  ;;  %1586 = vmatpush.bf16.msrb.mxu1 %v9484_v34  ;;  %v9488_v42 = vor.u32 %v11439_v20, %v9485_v25  ;;  %v9492_v44 = vor.u32 %v11442_v29, %v9491_v26 }
 0x39a   : > { %v1318_v63 = vrot.slane %v1317_v5, 2  ;;  %v1312_v56 = vrot.slane %v1311_v7, 2  ;;  %v1287_v4 = vpack.c.bf16 %v1279_v10, %v1279_v10  ;;  %v1286_v12 = vpack.c.bf16 %v1278_v62, %v1278_v62 }
 0x39b   : > { %v1252_v13 = vpop.permute.xlu0 %1251  ;;  %v1243_v14 = vpop.permute.xlu1 %1242  ;;  %v1303_v49 = vadd.f32 %v1302_v30, %v1301_v54  ;;  %1599 = vmatpush.bf16.msrb.mxu2 %v9488_v42  ;;  %1612 = vmatpush.bf16.msrb.mxu3 %v9492_v44  ;;  %v1355_v55 = vpack.c.bf16 %v1309_v41, %v1309_v41 }
 0x39c   : > { %v1313_v53 = vadd.f32 %v1312_v56, %v1311_v7  ;;  %v1295_v21 = vunpack.c.l.bf16 %v1287_v4  ;;  %v1294_v22 = vunpack.c.l.bf16 %v1286_v12  ;;  %v1257_v23 = vperm.slane %v1252_v13, %v13131_v32  ;;  %1625 = vmatpush.bf16.msra.mxu0 %v9496_v60 }
 0x39d   : > { %v1248_v24 = vperm.slane %v1243_v14, %v13131_v32  ;;  %v1319_v31 = vadd.f32 %v1318_v63, %v1317_v5  ;;  %v1354_v3 = vpack.c.bf16 %v1303_v49, %v1303_v49  ;;  %v1403_v18 = vunpack.c.l.b16 %v1355_v55  ;;  %v11503_v55 = vld [vmem:[%s17317_s3 + $0x100] sm:$0xf0] }
 0x39e   : > { %v1314_v33 = vrot.slane %v1313_v53, 1  ;;  %v1328_v35 = vrot.slane %v1295_v21, 4  ;;  %v1322_v36 = vrot.slane %v1294_v22, 4  ;;  %v1265_v37 = vunpack.c.l.bf16 %v1257_v23 }
 0x39f   : > { %v1264_v38 = vunpack.c.l.bf16 %v1248_v24  ;;  %v1320_v57 = vrot.slane %v1319_v31, 1  ;;  %v1402_v19 = vunpack.c.l.b16 %v1354_v3 }
 0x3a0   : > { %v1329_v45 = vadd.f32 %v1328_v35, %v1295_v21  ;;  %v1323_v46 = vadd.f32 %v1322_v36, %v1294_v22  ;;  %v1281_v47 = vmul.f32 %v11934_v0, %v1265_v37  ;;  %v1315_v59 = vadd.f32 %v1314_v33, %v1313_v53 }
 0x3a1   : > { %v1280_v48 = vmul.f32 %v11933_v16, %v1264_v38  ;;  %v1321_v63 = vadd.f32 %v1320_v57, %v1319_v31  ;;  %v1410_v25 = vsel %vm1033_vm0, %v1403_v18, %v1402_v19  ;;  %v11509_v19 = vld [vmem:[%s17317_s3 + $0x130] sm:$0xf0] }
 0x3a2   : > { %v1330_v5 = vrot.slane %v1329_v45, 2  ;;  %v1324_v7 = vrot.slane %v1323_v46, 2  ;;  %v1289_v8 = vpack.c.bf16 %v1281_v47, %v1281_v47  ;;  %v1356_v56 = vpack.c.bf16 %v1315_v59, %v1315_v59 }
 0x3a3   : > { %v1288_v51 = vpack.c.bf16 %v1280_v48, %v1280_v48  ;;  %v1357_v53 = vpack.c.bf16 %v1321_v63, %v1321_v63  ;;  %v9714_v63 = vld [vmem:[%s17317_s3 + $0xc8] sm:$0xf] }
 0x3a4   : > { %v1331_v10 = vadd.f32 %v1330_v5, %v1329_v45  ;;  %v1325_v61 = vadd.f32 %v1324_v7, %v1323_v46  ;;  %v1297_v62 = vunpack.c.l.bf16 %v1289_v8  ;;  %v1404_v16 = vunpack.c.l.b16 %v1356_v56  ;;  %v11498_v56 = vld [vmem:[%s17317_s3 + $0xd8] sm:$0xf0] }
 0x3a5   : > { %v1296_v52 = vunpack.c.l.bf16 %v1288_v51  ;;  %v1405_v26 = vunpack.c.l.b16 %v1357_v53  ;;  %v11507_v53 = vld [vmem:[%s17317_s3 + $0x124] sm:$0xf] }
 0x3a6   : > { %v1332_v4 = vrot.slane %v1331_v10, 1  ;;  %v1326_v54 = vrot.slane %v1325_v61, 1  ;;  %v1340_v12 = vrot.slane %v1297_v62, 4  ;;  %v1411_v30 = vsel %vm1035_vm1, %v1404_v16, %v1410_v25 }
 0x3a7   : > { %v1334_v13 = vrot.slane %v1296_v52, 4  ;;  %v1412_v38 = vsel %vm1037_vm2, %v1405_v26, %v1411_v30  ;;  %v11501_v26 = vld [vmem:[%s17317_s3 + $0xf4] sm:$0xf]  ;;  %v9742_v30 = vld [vmem:[%s17317_s3 + $0xf8] sm:$0xf] }
 0x3a8   : > { %v1327_v14 = vadd.f32 %v1326_v54, %v1325_v61  ;;  %v1341_v15 = vadd.f32 %v1340_v12, %v1297_v62  ;;  %v1333_v0 = vadd.f32 %v1332_v4, %v1331_v10  ;;  %v9754_v10 = vld [vmem:[%s17317_s3 + $0x118] sm:$0xf]  ;;  %v11508_v61 = vld [vmem:[%s17317_s3 + $0x128] sm:$0xf0]  ;;  %v9715_v4 = vor.u32 %v11498_v56, %v9714_v63  ;;  %v9694_v54 = vld [vmem:[%s17317_s3 + $0xa0] sm:$0xf] }
 0x3a9   : > { %v1335_v17 = vadd.f32 %v1334_v13, %v1296_v52  ;;  %v9755_v62 = vor.u32 %v11508_v61, %v9754_v10  ;;  %v9734_v52 = vld [vmem:[%s17317_s3 + $0xf0] sm:$0xf]  ;;  %v11493_v12 = vld [vmem:[%s17317_s3 + $0xb0] sm:$0xf0]  ;;  %v1347_v10 = vld [vmem:[%s13397_s29 + $0x8] sm:$0xff] }
 0x3aa   : > { %v1358_v20 = vpack.c.bf16 %v1327_v14, %v1327_v14  ;;  %v1342_v21 = vrot.slane %v1341_v15, 2  ;;  %v1359_v29 = vpack.c.bf16 %v1333_v0, %v1333_v0  ;;  %v9735_v3 = vor.u32 %v11503_v55, %v9734_v52  ;;  %v11506_v14 = vld [vmem:[%s17317_s3 + $0x11c] sm:$0xf]  ;;  %v9764_v0 = vld [vmem:[%s17317_s3 + $0x134] sm:$0xf0] }
 0x3ab   : > { %v1336_v22 = vrot.slane %v1335_v17, 2  ;;  %2005 = vmatpush.bf16.msra.mxu1 %v9755_v62  ;;  %v9695_v13 = vor.u32 %v11493_v12, %v9694_v54  ;;  %v9634_v52 = vld [vmem:[%s17317_s3 + $0x28] sm:$0xf]  ;;  %v11478_v55 = vld [vmem:[%s17317_s3 + $0x38] sm:$0xf0] }
 0x3ac   : > { %v1343_v23 = vadd.f32 %v1342_v21, %v1341_v15  ;;  %v1406_v31 = vunpack.c.l.b16 %v1358_v20  ;;  %v1407_v37 = vunpack.c.l.b16 %v1359_v29  ;;  %v9756_v15 = vld [vmem:[%s17317_s3 + $0x12c] sm:$0xf0]  ;;  %v9767_v20 = vor.u32 %v11507_v53, %v9764_v0  ;;  %v1346_v21 = vld [vmem:[%s13397_s29] sm:$0xff]  ;;  %v9736_v29 = vld [vmem:[%s17317_s3 + $0x104] sm:$0xf0] }
 0x3ad   : > { %v1337_v24 = vadd.f32 %v1336_v22, %v1335_v17  ;;  %v9762_v17 = vld [vmem:[%s17317_s3 + $0x120] sm:$0xf]  ;;  %v9759_v18 = vor.u32 %v11506_v14, %v9756_v15  ;;  %v1349_v22 = vld [vmem:[%s13397_s29 + $0x18] sm:$0xff]  ;;  %v9635_v63 = vor.u32 %v11478_v55, %v9634_v52  ;;  %v11491_v56 = vld [vmem:[%s17317_s3 + $0xa4] sm:$0xf] }
 0x3ae   : > { %v1344_v33 = vrot.slane %v1343_v23, 1  ;;  %v1413_v41 = vsel %vm1039_vm3, %v1406_v31, %v1412_v38  ;;  %v842_v57 = vpop.f32.mrf.mxu0  ;;  %v9763_v16 = vor.u32 %v11509_v19, %v9762_v17  ;;  %2044 = vmatpush.bf16.msrb.mxu0 %v9767_v20  ;;  %v9739_v31 = vor.u32 %v11501_v26, %v9736_v29  ;;  %v11494_v14 = vld [vmem:[%s17317_s3 + $0xb8] sm:$0xf0]  ;;  %v9704_v19 = vld [vmem:[%s17317_s3 + $0xbc] sm:$0xf0] }
 0x3af   : > { %v1338_v34 = vrot.slane %v1337_v24, 1  ;;  %v1414_v45 = vsel %vm1041_vm4, %v1407_v37, %v1413_v41  ;;  %v803_v49 = vpop.f32.mrf.mxu1  ;;  %2006 = vmatpush.bf16.msra.mxu1 %v9735_v3  ;;  %2018 = vmatpush.bf16.msra.mxu2 %v9759_v18  ;;  %v1353_v38 = vadd.f32 %v1349_v22, %v842_v57  ;;  %v11497_v57 = vld [vmem:[%s17317_s3 + $0xd4] sm:$0xf]  ;;  %v11492_v18 = vld [vmem:[%s17317_s3 + $0xac] sm:$0xf] }
 0x3b0   : > { %v1345_v35 = vadd.f32 %v1344_v33, %v1343_v23  ;;  %v9674_v23 = vld [vmem:[%s17317_s3 + $0x78] sm:$0xf]  ;;  %2031 = vmatpush.bf16.msra.mxu3 %v9763_v16  ;;  %v11504_v33 = vld [vmem:[%s17317_s3 + $0x108] sm:$0xf0]  ;;  %v1350_v41 = vadd.f32 %v1346_v21, %v803_v49  ;;  %v11499_v49 = vld [vmem:[%s17317_s3 + $0xe0] sm:$0xf0]  ;;  %v9707_v0 = vor.u32 %v11492_v18, %v9704_v19 }
 0x3b1   : > { %v1339_v36 = vadd.f32 %v1338_v34, %v1337_v24  ;;  %v13350_v60 = vpop.f32.mrf.mxu3  ;;  %v11488_v24 = vld [vmem:[%s17317_s3 + $0x88] sm:$0xf0]  ;;  %v11502_v34 = vld [vmem:[%s17317_s3 + $0xfc] sm:$0xf]  ;;  %v9614_v16 = vld [vmem:[%s17317_s3] sm:$0xf] }
 0x3b2   : > { %v1361_v39 = vpack.c.bf16 %v1345_v35, %v1345_v35  ;;  %v9675_v25 = vor.u32 %v11488_v24, %v9674_v23  ;;  %v9744_v35 = vld [vmem:[%s17317_s3 + $0x10c] sm:$0xf0]  ;;  %v11486_v23 = vld [vmem:[%s17317_s3 + $0x7c] sm:$0xf]  ;;  %v9636_v52 = vld [vmem:[%s17317_s3 + $0x3c] sm:$0xf0] }
 0x3b3   : > { %v1360_v40 = vpack.c.bf16 %v1339_v36, %v1339_v36  ;;  %2007 = vmatpush.bf16.msra.mxu1 %v9715_v4  ;;  %v9743_v36 = vor.u32 %v11504_v33, %v9742_v30  ;;  %v9747_v37 = vor.u32 %v11502_v34, %v9744_v35  ;;  %2019 = vmatpush.bf16.msra.mxu2 %v9739_v31  ;;  %v9696_v4 = vld [vmem:[%s17317_s3 + $0xb4] sm:$0xf0]  ;;  %v9676_v24 = vld [vmem:[%s17317_s3 + $0x8c] sm:$0xf0]  ;;  %v11489_v30 = vld [vmem:[%s17317_s3 + $0x90] sm:$0xf0] }
 0x3b4   : > { %v1409_v44 = vunpack.c.l.b16 %v1361_v39  ;;  %v9654_v39 = vld [vmem:[%s17317_s3 + $0x50] sm:$0xf]  ;;  %v9699_v12 = vor.u32 %v11491_v56, %v9696_v4  ;;  %v9679_v29 = vor.u32 %v11486_v23, %v9676_v24  ;;  %v11487_v31 = vld [vmem:[%s17317_s3 + $0x84] sm:$0xf]  ;;  %v9684_v33 = vld [vmem:[%s17317_s3 + $0x94] sm:$0xf0] }
 0x3b5   : > { %v1408_v42 = vunpack.c.l.b16 %v1360_v40  ;;  %v11483_v40 = vld [vmem:[%s17317_s3 + $0x60] sm:$0xf0]  ;;  %2032 = vmatpush.bf16.msra.mxu3 %v9743_v36  ;;  %2045 = vmatpush.bf16.msrb.mxu0 %v9747_v37  ;;  %v9687_v37 = vor.u32 %v11487_v31, %v9684_v33  ;;  %v9730_v18 = vld [vmem:[%s17317_s3 + $0xd8] sm:$0xf]  ;;  %v11500_v19 = vld [vmem:[%s17317_s3 + $0xe8] sm:$0xf0] }
 0x3b6   : > { %v13348_v59 = vpop.f32.mrf.mxu2  ;;  %v844_v7 = vpop.f32.mrf.mxu0  ;;  %v11479_v4 = vld [vmem:[%s17317_s3 + $0x40] sm:$0xf0]  ;;  %v9622_v23 = vld [vmem:[%s17317_s3 + $0x8] sm:$0xf]  ;;  %v11474_v24 = vld [vmem:[%s17317_s3 + $0x18] sm:$0xf0] }
 0x3b7   : > { %v1415_v46 = vsel %vm1043_vm5, %v1408_v42, %v1414_v45  ;;  %v805_v5 = vpop.f32.mrf.mxu1  ;;  %2008 = vmatpush.bf16.msra.mxu1 %v9695_v13  ;;  %v9655_v42 = vor.u32 %v11483_v40, %v9654_v39  ;;  %v9716_v45 = vld [vmem:[%s17317_s3 + $0xdc] sm:$0xf0]  ;;  %v9702_v13 = vld [vmem:[%s17317_s3 + $0xa8] sm:$0xf]  ;;  %v1351_v15 = vadd.f32 %v1347_v10, %v13348_v59  ;;  %v11473_v59 = vld [vmem:[%s17317_s3 + $0x10] sm:$0xf0]  ;;  %v9623_v31 = vor.u32 %v11474_v24, %v9622_v23 }
 0x3b8   : > { %v1416_v47 = vsel %vm1045_vm6, %v1409_v44, %v1415_v46  ;;  %v11496_v44 = vld [vmem:[%s17317_s3 + $0xcc] sm:$0xf]  ;;  %v9703_v17 = vor.u32 %v11494_v14, %v9702_v13  ;;  %v9615_v22 = vor.u32 %v11473_v59, %v9614_v16  ;;  %v11510_v39 = vld [vmem:[%s17317_s3 + $0x138] sm:$0xf0]  ;;  %v11505_v10 = vld [vmem:[%s17317_s3 + $0x110] sm:$0xf0]  ;;  %v9731_v16 = vor.u32 %v11500_v19, %v9730_v18 }
 0x3b9   : > { %v1417_v48 = vpack.c.b16 %v1416_v47, %v1416_v47  ;;  %v831_v51 = vpop.f32.mrf.mxu3  ;;  %v9719_v47 = vor.u32 %v11496_v44, %v9716_v45  ;;  %v9662_v44 = vld [vmem:[%s17317_s3 + $0x58] sm:$0xf]  ;;  %v11477_v13 = vld [vmem:[%s17317_s3 + $0x34] sm:$0xf]  ;;  %v9644_v14 = vld [vmem:[%s17317_s3 + $0x44] sm:$0xf0] }
 0x3ba   : > { %v9724_v51 = vld [vmem:[%s17317_s3 + $0xe4] sm:$0xf0]  ;;  %v11471_v59 = vld [vmem:[%s17317_s3 + $0x4] sm:$0xf] }
 0x3bb   : > { %1587 = vmatmul.bf16.vlgmr.msrb.gmra.mxu1 %v1417_v48  ;;  %1600 = vmatmul.bf16.vlgmr.msrb.gmra.mxu2 %v1417_v48  ;;  %v9727_v62 = vor.u32 %v11497_v57, %v9724_v51  ;;  %v9750_v51 = vld [vmem:[%s17317_s3 + $0x100] sm:$0xf]  ;;  %v11475_v18 = vld [vmem:[%s17317_s3 + $0x20] sm:$0xf0] }
 0x3bc   : > { %1613 = vmatmul.bf16.vlgmr.msrb.gmra.mxu3 %v1417_v48  ;;  %1626 = vmatmul.bf16.vlgmr.msra.gmra.mxu0 %v1417_v48  ;;  %v9722_v48 = vld [vmem:[%s17317_s3 + $0xd0] sm:$0xf] }
 0x3bd   : > { %2009 = vmatpush.bf16.msra.mxu1 %v9675_v25  ;;  %2020 = vmatpush.bf16.msra.mxu2 %v9719_v47  ;;  %v9682_v25 = vld [vmem:[%s17317_s3 + $0x80] sm:$0xf]  ;;  %v11484_v47 = vld [vmem:[%s17317_s3 + $0x68] sm:$0xf0] }
 0x3be   : > { %v818_v8 = vpop.f32.mrf.mxu2  ;;  %2046 = vmatpush.bf16.msrb.mxu0 %v9727_v62  ;;  %v9683_v36 = vor.u32 %v11489_v30, %v9682_v25  ;;  %v11476_v62 = vld [vmem:[%s17317_s3 + $0x2c] sm:$0xf] }
 0x3bf   : > { %v9723_v8 = vor.u32 %v11499_v49, %v9722_v48  ;;  %v11482_v48 = vld [vmem:[%s17317_s3 + $0x5c] sm:$0xf]  ;;  %v9664_v49 = vld [vmem:[%s17317_s3 + $0x6c] sm:$0xf0]  ;;  %v11472_v25 = vld [vmem:[%s17317_s3 + $0xc] sm:$0xf] }
 0x3c1   : > { %2010 = vmatpush.bf16.msra.mxu1 %v9655_v42  ;;  %2033 = vmatpush.bf16.msra.mxu3 %v9723_v8  ;;  %v9656_v42 = vld [vmem:[%s17317_s3 + $0x64] sm:$0xf0]  ;;  %v9667_v8 = vor.u32 %v11482_v48, %v9664_v49 }
 0x3c2   : > { %2021 = vmatpush.bf16.msra.mxu2 %v9699_v12  ;;  %2047 = vmatpush.bf16.msrb.mxu0 %v9707_v0 }
 0x3c5   : > { %2011 = vmatpush.bf16.msra.mxu1 %v9635_v63  ;;  %2034 = vmatpush.bf16.msra.mxu3 %v9703_v17  ;;  %v9647_v17 = vor.u32 %v11477_v13, %v9644_v14 }
 0x3c6   : > { %2022 = vmatpush.bf16.msra.mxu2 %v9679_v29  ;;  %2048 = vmatpush.bf16.msrb.mxu0 %v9687_v37  ;;  %v9624_v29 = vld [vmem:[%s17317_s3 + $0x1c] sm:$0xf0]  ;;  %v9690_v37 = vld [vmem:[%s17317_s3 + $0x88] sm:$0xf] }
 0x3c7   : > { %v9627_v33 = vor.u32 %v11472_v25, %v9624_v29 }
 0x3c9   : > { %2012 = vmatpush.bf16.msra.mxu1 %v9615_v22  ;;  %2035 = vmatpush.bf16.msra.mxu3 %v9683_v36 }
 0x3ca   : > { %2049 = vmatpush.bf16.msrb.mxu0 %v9667_v8 }
 0x3ce   : > { %2050 = vmatpush.bf16.msrb.mxu0 %v9647_v17  ;;  %v9630_v17 = vld [vmem:[%s17317_s3 + $0x10] sm:$0xf] }
 0x3d2   : > { %2051 = vmatpush.bf16.msrb.mxu0 %v9627_v33 }
 0x438   : > { %v1588_v46 = vpop.f32.mrf.mxu1 }
 0x439   : > { %v1631_v5 = vadd.f32 %v1588_v46, %v1350_v41  ;;  %v1627_v7 = vpop.f32.mrf.mxu0  ;;  %v11481_v41 = vld [vmem:[%s17317_s3 + $0x54] sm:$0xf] }
 0x43a   : > { %v1634_v61 = vadd.f32 %v1627_v7, %v1353_v38  ;;  %v9770_v38 = vld [vmem:[%s17317_s3 + $0x128] sm:$0xf]  ;;  %v9659_v46 = vor.u32 %v11481_v41, %v9656_v42  ;;  %v9663_v7 = vor.u32 %v11484_v47, %v9662_v44  ;;  %v11485_v47 = vld [vmem:[%s17317_s3 + $0x70] sm:$0xf0] }
 0x43b   : > { %v9609_v3 = vmul.f32 -1.442695, %v1631_v5  ;;  %v9771_v40 = vor.u32 %v11510_v39, %v9770_v38  ;;  %v11490_v38 = vld [vmem:[%s17317_s3 + $0x98] sm:$0xf0] }
 0x43c   : > { %v9611_v54 = vmul.f32 -1.442695, %v1634_v61  ;;  %v9751_v61 = vor.u32 %v11505_v10, %v9750_v51  ;;  %2023 = vmatpush.bf16.msra.mxu2 %v9659_v46  ;;  %2036 = vmatpush.bf16.msra.mxu3 %v9663_v7  ;;  %v9691_v44 = vor.u32 %v11490_v38, %v9690_v37  ;;  %v9670_v46 = vld [vmem:[%s17317_s3 + $0x60] sm:$0xf] }
 0x43d   : > { %12236 = vpow2.f32 %v9609_v3  ;;  %2057 = vmatpush.bf16.msrb.mxu1 %v9771_v40  ;;  %v9642_v3 = vld [vmem:[%s17317_s3 + $0x30] sm:$0xf]  ;;  %v9671_v51 = vor.u32 %v11485_v47, %v9670_v46  ;;  %v12552_v38 = vld [vmem:[%s17318_s4] ss:$0 sm:$0xff]  ;;  %v13664_v46 = vld [vmem:[%s12816_s11 + $0x18] sm:$0xff]  }
 0x43e   : > { %12238 = vpow2.f32 %v9611_v54  ;;  %v1601_v53 = vpop.f32.mrf.mxu2  ;;  %v9639_v54 = vor.u32 %v11476_v62, %v9636_v52  ;;  %v9643_v12 = vor.u32 %v11479_v4, %v9642_v3  ;;  %v9650_v62 = vld [vmem:[%s17317_s3 + $0x38] sm:$0xf] }
 0x43f   : > { %v1632_v20 = vadd.f32 %v1601_v53, %v1351_v15  ;;  %v13481_v21 = vpop.f32.mrf.mxu3  ;;  %v1348_v53 = vld [vmem:[%s13397_s29 + $0x10] sm:$0xff] }
 0x440   : > { %v1590_v26 = vpop.f32.mrf.mxu1  ;;  %2024 = vmatpush.bf16.msra.mxu2 %v9639_v54  ;;  %2037 = vmatpush.bf16.msra.mxu3 %v9643_v12  ;;  %v1352_v36 = vadd.f32 %v1348_v53, %v13350_v60  ;;  %v523_v54 = vld [vmem:[%s512_s18] sm:$0xff] }
 0x441   : > { %v9610_v34 = vmul.f32 -1.442695, %v1632_v20  ;;  %v1629_v35 = vpop.f32.mrf.mxu0  ;;  %2058 = vmatpush.bf16.msrb.mxu1 %v9751_v61  ;;  %v9616_v20 = vld [vmem:[%s17317_s3 + $0x14] sm:$0xf0] }
 0x442   : > { %v9619_v22 = vor.u32 %v11471_v59, %v9616_v20  ;;  %v11495_v35 = vld [vmem:[%s17317_s3 + $0xc0] sm:$0xf0] }
 0x443   : > { %v12237_v45 = vpop.eup %12236  ;;  %12240 = vpow2.f32 %v9610_v34  ;;  %v9710_v34 = vld [vmem:[%s17317_s3 + $0xb0] sm:$0xf] }
 0x444   : > { %v12239_v57 = vpop.eup %12238  ;;  %v13525_v5 = vadd.f32 1.0, %v12237_v45  ;;  %2025 = vmatpush.bf16.msra.mxu2 %v9619_v22  ;;  %2038 = vmatpush.bf16.msra.mxu3 %v9623_v31  ;;  %v9711_v40 = vor.u32 %v11495_v35, %v9710_v34  ;;  %v1633_v45 = vadd.f32 %v13481_v21, %v1352_v36  ;;  %v9631_v22 = vor.u32 %v11475_v18, %v9630_v17  ;;  %v12133_v36 = vld [vmem:[%s12816_s11 + $0x8] sm:$0xff]  }
 0x445   : > { %v13543_v63 = vadd.f32 1.0, %v12239_v57  ;;  %2059 = vmatpush.bf16.msrb.mxu1 %v9731_v16  ;;  %v11942_v17 = vunpack.c.h.bf16 %v12133_v36 }
 0x446   : > { %12242 = vrcp.f32 %v13525_v5  ;;  %v1603_v55 = vpop.f32.mrf.mxu2  ;;  %v1650_v7 = vand.u32 2147483648, %v13525_v5  ;;  %vm1644_vm9 = vweird.f32 %v13525_v5  ;;  %v1648_v21 = vand.u32 2147483647, %v13525_v5 }
 0x447   : > { %v1616_v56 = vpop.f32.mrf.mxu3  ;;  %12244 = vrcp.f32 %v13543_v63  ;;  %v1689_v25 = vand.u32 2147483648, %v13543_v63 }
 0x448   : > { %v1651_v4 = vor.u32 1.1754944e-38, %v1650_v7  ;;  %vm1649_vm13 = vcmp.eq.f32.partialorder %v1648_v21, 8.507059e+37 }
 0x449   : > { %v12241_v15 = vpop.eup %12240  ;;  %2060 = vmatpush.bf16.msrb.mxu1 %v9711_v40 }
 0x44a   : > { %v13561_v0 = vadd.f32 1.0, %v12241_v15 }
 0x44c   : > { %v12243_v26 = vpop.eup %12242  ;;  %12246 = vrcp.f32 %v13561_v0  ;;  %v1669_v10 = vand.u32 2147483648, %v13561_v0  ;;  %v1667_v3 = vand.u32 2147483647, %v13561_v0  ;;  %vm1663_vm12 = vweird.f32 %v13561_v0 }
 0x44d   : > { %v1640_v30 = vmul.f32 %v12243_v26, %v13525_v5  ;;  %v13597_v41 = vpop.eup %12244  ;;  %vm1645_vm8 = vweird.f32 %v12243_v26  ;;  %2061 = vmatpush.bf16.msrb.mxu1 %v9691_v44  ;;  %12248 = vtanh.f32 %v1633_v45  ;;  %v11480_v5 = vld [vmem:[%s17317_s3 + $0x48] sm:$0xf0] }
 0x44e   : > { %v1679_v57 = vmul.f32 %v13597_v41, %v13543_v63  ;;  %vm13618_vm10 = vmor %vm1644_vm9, %vm1645_vm8  ;;  %v9651_v13 = vor.u32 %v11480_v5, %v9650_v62  ;;  %v1670_v14 = vor.u32 1.1754944e-38, %v1669_v10  ;;  %vm1668_vm15 = vcmp.eq.f32.partialorder %v1667_v3, 8.507059e+37 }
 0x44f   : > { %v1641_v39 = vsub.f32 1.0, %v1640_v30  ;;  %vm1684_vm8 = vweird.f32 %v13597_v41  ;;  %vm1683_vm9 = vweird.f32 %v13543_v63  ;;  %v1690_v30 = vor.u32 1.1754944e-38, %v1689_v25 }
 0x450   : > { %v1680_v56 = vsub.f32 1.0, %v1679_v57  ;;  %v11950_v62 = vunpack.c.h.bf16 %v13664_v46 }
 0x451   : > { %v1642_v42 = vmul.f32 %v12243_v26, %v1641_v39  ;;  %2062 = vmatpush.bf16.msrb.mxu1 %v9671_v51 }
 0x452   : > { %v12247_v60 = vpop.eup %12246 }
 0x453   : > { %v1659_v48 = vmul.f32 %v12247_v60, %v13561_v0  ;;  %v1643_v49 = vadd.f32 %v12243_v26, %v1642_v42  ;;  %vm1664_vm11 = vweird.f32 %v12247_v60  ;;  %v12249_v53 = vpop.eup %12248  ;;  %v1681_v0 = vmul.f32 %v13597_v41, %v1680_v56 }
 0x454   : > { %vm1665_vm14 = vmor %vm1663_vm12, %vm1664_vm11  ;;  %v11941_v42 = vunpack.c.l.bf16 %v12133_v36 }
 0x455   : > { %v1660_v8 = vsub.f32 1.0, %v1659_v48  ;;  %v1647_v55 = vsel %vm13618_vm10, %v12243_v26, %v1643_v49  ;;  %2063 = vmatpush.bf16.msrb.mxu1 %v9651_v13  ;;  %v1682_v24 = vadd.f32 %v13597_v41, %v1681_v0  ;;  %v1687_v26 = vand.u32 2147483647, %v13543_v63  ;;  %vm1685_vm10 = vmor %vm1683_vm9, %vm1684_vm8  ;;  %v11936_v63 = vld [vmem:[%s12816_s11] sm:$0xff]  }
 0x456   : > { %v1652_v15 = vsel %vm1649_vm13, %v1651_v4, %v1647_v55  ;;  %v11938_v48 = vunpack.c.h.bf16 %v11936_v63 }
 0x457   : > { %v1661_v52 = vmul.f32 %v12247_v60, %v1660_v8  ;;  %v1694_v20 = vmul.f32 %v12249_v53, %v1652_v15  ;;  %v1686_v29 = vsel %vm1685_vm10, %v13597_v41, %v1682_v24  ;;  %vm1688_vm11 = vcmp.eq.f32.partialorder %v1687_v26, 8.507059e+37 }
 0x458   : > { %v1691_v33 = vsel %vm1688_vm11, %v1690_v30, %v1686_v29  ;;  %v11937_v41 = vunpack.c.l.bf16 %v11936_v63 }
 0x459   : > { %v1662_v12 = vadd.f32 %v12247_v60, %v1661_v52  ;;  %2064 = vmatpush.bf16.msrb.mxu1 %v9631_v22 }
 0x45b   : > { %v1666_v19 = vsel %vm1665_vm14, %v12247_v60, %v1662_v12  ;;  %v12134_v12 = vld [vmem:[%s12816_s11 + $0x10] sm:$0xff]  }
 0x45c   : > { %v1671_v16 = vsel %vm1668_vm15, %v1670_v14, %v1666_v19  ;;  %v11945_v25 = vunpack.c.l.bf16 %v12134_v12 }
 0x45d   : > { %v1693_v59 = vmul.f32 %v1671_v16, %v523_v54 }
 0x45f   : > { %v13639_v23 = vadd.f32 %v1694_v20, %v1693_v59 }
 0x461   : > { %12250 = vtanh.f32 %v13639_v23 }
 0x467   : > { %v12251_v31 = vpop.eup %12250 }
 0x468   : > { %v1697_v34 = vmul.f32 %v12251_v31, %v1691_v33 }
 0x46a   : > { %1698 = vst [vmem:[%s13653_s23] sm:$0xff] %v1697_v34  ;;  %v1748_v35 = vpack.c.bf16 %v1697_v34, %v1697_v34 }
 0x46c   : > { %2013 = vmatmul.bf16.vlgmr.msra.gmra.mxu1 %v1748_v35  ;;  %2026 = vmatmul.bf16.vlgmr.msra.gmra.mxu2 %v1748_v35 }
 0x46d   : > { %2039 = vmatmul.bf16.vlgmr.msra.gmra.mxu3 %v1748_v35  ;;  %2052 = vmatmul.bf16.vlgmr.msrb.gmra.mxu0 %v1748_v35 }
 0x47c   : > { %2065 = vmatmul.bf16.vlgmr.msrb.gmra.mxu1 %v1748_v35 }
 0x4e9   : > { %v2014_v37 = vpop.f32.mrf.mxu1 }
 0x4ea   : > { %v2070_v39 = vadd.f32 %v12552_v38, %v2014_v37  ;;  %v13661_v40 = vpop.f32.mrf.mxu0 }
 0x4ec   : > { %v2094_v44 = vpack.c.bf16 %v2070_v39, %v2070_v39  ;;  %v2081_v60 = vrot.slane %v2070_v39, 2  ;;  %v2080_v45 = vrot.slane %v2070_v39, 1  ;;  %v2086_v47 = vrot.slane %v2070_v39, 7 }
 0x4ed   : > { %v2082_v49 = vrot.slane %v2070_v39, 3  ;;  %v2083_v57 = vrot.slane %v2070_v39, 4  ;;  %v2084_v7 = vrot.slane %v2070_v39, 5  ;;  %v2085_v13 = vrot.slane %v2070_v39, 6 }
 0x4ee   : > { %v2103_v8 = vpack.i.b16 %v2094_v44, %v2094_v44  ;;  %v2096_v21 = vpack.c.bf16 %v2081_v60, %v2081_v60  ;;  %v2095_v51 = vpack.c.bf16 %v2080_v45, %v2080_v45  ;;  %v2101_v10 = vpack.c.bf16 %v2086_v47, %v2086_v47 }
 0x4ef   : > { %v13666_v61 = vpop.f32.mrf.mxu2  ;;  %v2097_v5 = vpack.c.bf16 %v2082_v49, %v2082_v49  ;;  %v2098_v52 = vpack.c.bf16 %v2083_v57, %v2083_v57  ;;  %v2099_v55 = vpack.c.bf16 %v2084_v7, %v2084_v7  ;;  %v2100_v33 = vpack.c.bf16 %v2085_v13, %v2085_v13 }
 0x4f0   : > { %v13669_v3 = vpop.f32.mrf.mxu3  ;;  %v2105_v56 = vperm.slane %v2103_v8, 0  ;;  %v2111_v4 = vpack.i.b16 %v2096_v21, %v2096_v21  ;;  %v2107_v54 = vpack.i.b16 %v2095_v51, %v2095_v51  ;;  %v2131_v15 = vpack.i.b16 %v2101_v10, %v2101_v10 }
 0x4f1   : > { %v2016_v14 = vpop.f32.mrf.mxu1  ;;  %v2115_v18 = vpack.i.b16 %v2097_v5, %v2097_v5  ;;  %v2119_v19 = vpack.i.b16 %v2098_v52, %v2098_v52  ;;  %v2123_v20 = vpack.i.b16 %v2099_v55, %v2099_v55  ;;  %v11946_v21 = vunpack.c.h.bf16 %v12134_v12 }
 0x4f2   : > { %v2055_v53 = vpop.f32.mrf.mxu0  ;;  %v2142_v0 = vunpack.c.l.bf16 %v2105_v56  ;;  %v2113_v16 = vperm.slane %v2111_v4, 0  ;;  %v2109_v59 = vperm.slane %v2107_v54, 0  ;;  %v2133_v22 = vperm.slane %v2131_v15, 0 }
 0x4f3   : > { %v2117_v24 = vperm.slane %v2115_v18, 0  ;;  %v2121_v26 = vperm.slane %v2119_v19, 0  ;;  %v2125_v37 = vperm.slane %v2123_v20, 0  ;;  %v2127_v52 = vpack.i.b16 %v2100_v33, %v2100_v33 }
 0x4f4   : > { %v2150_v29 = vadd.f32 %v11937_v41, %v2142_v0  ;;  %v2144_v30 = vunpack.c.l.bf16 %v2113_v16  ;;  %v2143_v31 = vunpack.c.l.bf16 %v2109_v59  ;;  %v2149_v34 = vunpack.c.l.bf16 %v2133_v22 }
 0x4f5   : > { %v2145_v35 = vunpack.c.l.bf16 %v2117_v24  ;;  %v2146_v63 = vunpack.c.l.bf16 %v2121_v26  ;;  %v2147_v5 = vunpack.c.l.bf16 %v2125_v37  ;;  %v2129_v13 = vperm.slane %v2127_v52, 0 }
 0x4f6   : > { %v2158_v36 = vpack.c.bf16 %v2150_v29, %v2150_v29  ;;  %v2152_v38 = vadd.f32 %v11941_v42, %v2144_v30  ;;  %v2151_v39 = vadd.f32 %v11938_v48, %v2143_v31  ;;  %v2157_v60 = vadd.f32 %v11950_v62, %v2149_v34 }
 0x4f7   : > { %v2029_v44 = vpop.f32.mrf.mxu2  ;;  %v2153_v45 = vadd.f32 %v11942_v17, %v2145_v35  ;;  %v2154_v47 = vadd.f32 %v11945_v25, %v2146_v63  ;;  %v2155_v54 = vadd.f32 %v11946_v21, %v2147_v5  ;;  %v11949_v19 = vunpack.c.l.bf16 %v13664_v46 }
 0x4f8   : > { %v2042_v49 = vpop.f32.mrf.mxu3  ;;  %v2166_v57 = vunpack.c.l.bf16 %v2158_v36  ;;  %v2160_v7 = vpack.c.bf16 %v2152_v38, %v2152_v38  ;;  %v2159_v8 = vpack.c.bf16 %v2151_v39, %v2151_v39  ;;  %v2165_v51 = vpack.c.bf16 %v2157_v60, %v2157_v60 }
 0x4f9   : > { %v13672_v41 = vpop.f32.mrf.mxu1  ;;  %v2161_v10 = vpack.c.bf16 %v2153_v45, %v2153_v45  ;;  %v2162_v42 = vpack.c.bf16 %v2154_v47, %v2154_v47  ;;  %v2163_v18 = vpack.c.bf16 %v2155_v54, %v2155_v54  ;;  %v2148_v53 = vunpack.c.l.bf16 %v2129_v13 }
 0x4fa   : > { %12252 = vtanh.f32 %v2166_v57  ;;  %v2168_v55 = vunpack.c.l.bf16 %v2160_v7  ;;  %v2167_v56 = vunpack.c.l.bf16 %v2159_v8  ;;  %v2173_v48 = vunpack.c.l.bf16 %v2165_v51 }
 0x4fb   : > { %v2169_v4 = vunpack.c.l.bf16 %v2161_v10  ;;  %v2170_v62 = vunpack.c.l.bf16 %v2162_v42  ;;  %v2171_v33 = vunpack.c.l.bf16 %v2163_v18  ;;  %v2156_v34 = vadd.f32 %v11949_v19, %v2148_v53 }
 0x4fc   : > { %12254 = vtanh.f32 %v2168_v55 }
 0x4fd   : > { %12256 = vtanh.f32 %v2167_v56  ;;  %v2164_v47 = vpack.c.bf16 %v2156_v34, %v2156_v34 }
 0x4fe   : > { %12258 = vtanh.f32 %v2173_v48 }
 0x4ff   : > { %12260 = vtanh.f32 %v2169_v4  ;;  %v2172_v51 = vunpack.c.l.bf16 %v2164_v47 }
 0x500   : > { %v12253_v12 = vpop.eup %12252  ;;  %12262 = vtanh.f32 %v2170_v62 }
 0x501   : > { %v2068_v14 = vpop.f32.mrf.mxu1  ;;  %v2182_v15 = vpack.c.bf16 %v12253_v12, %v12253_v12  ;;  %12264 = vtanh.f32 %v2171_v33 }
 0x502   : > { %v12255_v17 = vpop.eup %12254  ;;  %12266 = vtanh.f32 %v2172_v51 }
 0x503   : > { %v12257_v0 = vpop.eup %12256  ;;  %v2190_v16 = vunpack.c.l.bf16 %v2182_v15  ;;  %v2184_v59 = vpack.c.bf16 %v12255_v17, %v12255_v17 }
 0x504   : > { %v12259_v20 = vpop.eup %12258  ;;  %v2183_v22 = vpack.c.bf16 %v12257_v0, %v12257_v0 }
 0x505   : > { %v12261_v24 = vpop.eup %12260  ;;  %v2198_v25 = vmul.f32 %v2190_v16, %v12828_v11  ;;  %v2192_v26 = vunpack.c.l.bf16 %v2184_v59  ;;  %v2189_v29 = vpack.c.bf16 %v12259_v20, %v12259_v20 }
 0x506   : > { %v2191_v30 = vunpack.c.l.bf16 %v2183_v22  ;;  %v2185_v31 = vpack.c.bf16 %v12261_v24, %v12261_v24  ;;  %v12263_v46 = vpop.eup %12262 }
 0x507   : > { %v2206_v35 = vpack.c.bf16 %v2198_v25, %v2198_v25  ;;  %v2200_v63 = vmul.f32 %v2192_v26, %v12828_v11  ;;  %v2197_v37 = vunpack.c.l.bf16 %v2189_v29  ;;  %v2186_v7 = vpack.c.bf16 %v12263_v46, %v12263_v46  ;;  %v12265_v52 = vpop.eup %12264 }
 0x508   : > { %v2199_v36 = vmul.f32 %v2191_v30, %v12828_v11  ;;  %v2193_v38 = vunpack.c.l.bf16 %v2185_v31  ;;  %v2187_v48 = vpack.c.bf16 %v12265_v52, %v12265_v52  ;;  %v12267_v54 = vpop.eup %12266 }
 0x509   : > { %v2214_v39 = vunpack.c.l.bf16 %v2206_v35  ;;  %v2208_v44 = vpack.c.bf16 %v2200_v63, %v2200_v63  ;;  %v2205_v60 = vmul.f32 %v2197_v37, %v12828_v11  ;;  %v2194_v5 = vunpack.c.l.bf16 %v2186_v7 }
 0x50a   : > { %v2207_v45 = vpack.c.bf16 %v2199_v36, %v2199_v36  ;;  %v2201_v57 = vmul.f32 %v2193_v38, %v12828_v11  ;;  %v2195_v62 = vunpack.c.l.bf16 %v2187_v48  ;;  %v2188_v14 = vpack.c.bf16 %v12267_v54, %v12267_v54 }
 0x50b   : > { %2222 = vadd.xlane.f32.xlu1 %v2214_v39  ;;  %v2216_v49 = vunpack.c.l.bf16 %v2208_v44  ;;  %v2213_v21 = vpack.c.bf16 %v2205_v60, %v2205_v60  ;;  %v2202_v42 = vmul.f32 %v2194_v5, %v12828_v11 }
 0x50c   : > { %v2215_v8 = vunpack.c.l.bf16 %v2207_v45  ;;  %v2209_v10 = vpack.c.bf16 %v2201_v57, %v2201_v57  ;;  %v2203_v12 = vmul.f32 %v2195_v62, %v12828_v11  ;;  %v2196_v17 = vunpack.c.l.bf16 %v2188_v14 }
 0x50d   : > { %2226 = vadd.xlane.f32.xlu2 %v2216_v49  ;;  %v2221_v55 = vunpack.c.l.bf16 %v2213_v21  ;;  %v2210_v4 = vpack.c.bf16 %v2202_v42, %v2202_v42 }
 0x50e   : > { %2224 = vadd.xlane.f32.xlu0 %v2215_v8  ;;  %v2217_v56 = vunpack.c.l.bf16 %v2209_v10  ;;  %v2211_v15 = vpack.c.bf16 %v2203_v12, %v2203_v12  ;;  %v2204_v19 = vmul.f32 %v2196_v17, %v12828_v11 }
 0x50f   : > { %v2218_v13 = vunpack.c.l.bf16 %v2210_v4 }
 0x510   : > { %v2219_v18 = vunpack.c.l.bf16 %v2211_v15  ;;  %v2212_v53 = vpack.c.bf16 %v2204_v19, %v2204_v19 }
 0x512   : > { %v2220_v0 = vunpack.c.l.bf16 %v2212_v53 }
 0x513   : > { %2236 = vadd.xlane.f32.xlu1 %v2221_v55 }
 0x515   : > { %2228 = vadd.xlane.f32.xlu2 %v2217_v56 }
 0x51d   : > { %2230 = vadd.xlane.f32.xlu2 %v2218_v13 }
 0x525   : > { %2232 = vadd.xlane.f32.xlu2 %v2219_v18 }
 0x52d   : > { %2234 = vadd.xlane.f32.xlu2 %v2220_v0 }
 0x57e   : > { %v2223_v22 = vpop.xlane.xlu1 %2222 }
 0x57f   : > { %v2246_v29 = vperm.slane %v2223_v22, %v12838_v6 }
 0x580   : > { %v2227_v16 = vpop.xlane.xlu2 %2226 }
 0x581   : > { %v2225_v24 = vpop.xlane.xlu0 %2224  ;;  %v2248_v30 = vperm.slane %v2227_v16, %v12838_v6 }
 0x582   : > { %v2247_v25 = vperm.slane %v2225_v24, %v12838_v6 }
 0x584   : > { %v2254_v31 = vsel %vm1033_vm0, %v2247_v25, %v2246_v29 }
 0x585   : > { %v2255_v37 = vsel %vm1035_vm1, %v2248_v30, %v2254_v31 }
 0x586   : > { %v2237_v63 = vpop.xlane.xlu1 %2236 }
 0x587   : > { %v2253_v44 = vperm.slane %v2237_v63, %v12838_v6 }
 0x588   : > { %v2229_v59 = vpop.xlane.xlu2 %2228 }
 0x589   : > { %v2249_v33 = vperm.slane %v2229_v59, %v12838_v6 }
 0x58b   : > { %v2256_v46 = vsel %vm1037_vm2, %v2249_v33, %v2255_v37 }
 0x590   : > { %v2231_v20 = vpop.xlane.xlu2 %2230 }
 0x591   : > { %v2250_v34 = vperm.slane %v2231_v20, %v12838_v6 }
 0x593   : > { %v2257_v38 = vsel %vm1039_vm3, %v2250_v34, %v2256_v46 }
 0x598   : > { %v2233_v26 = vpop.xlane.xlu2 %2232 }
 0x599   : > { %v2251_v35 = vperm.slane %v2233_v26, %v12838_v6 }
 0x59b   : > { %v2258_v60 = vsel %vm1041_vm4, %v2251_v35, %v2257_v38 }
 0x5a0   : > { %v2235_v36 = vpop.xlane.xlu2 %2234 }
 0x5a1   : > { %v2252_v39 = vperm.slane %v2235_v36, %v12838_v6 }
 0x5a3   : > { %v2259_v45 = vsel %vm1043_vm5, %v2252_v39, %v2258_v60 }
 0x5a4   : > { %v2260_v47 = vsel %vm1045_vm6, %v2253_v44, %v2259_v45 }
 0x5a5   : > { %v2262_v49 = vsel %vm1048_vm7, %v2260_v47, -inf }
 0x5a6   : > { %2263 = vmax.xlane.f32.xlu2 %v2262_v49 }
 0x619   : > { %v2264_v57 = vpop.xlane.xlu2 %2263 }
 0x61a   : > { %v2268_v7 = vperm.slane %v2264_v57, 2  ;;  %v2267_v8 = vperm.slane %v2264_v57, 1  ;;  %v2266_v21 = vperm.slane %v2264_v57, 0  ;;  %v2272_v52 = vperm.slane %v2264_v57, 6 }
 0x61b   : > { %v2270_v55 = vperm.slane %v2264_v57, 4  ;;  %v2269_v56 = vperm.slane %v2264_v57, 3  ;;  %v2273_v15 = vperm.slane %v2264_v57, 7  ;;  %v2271_v19 = vperm.slane %v2264_v57, 5 }
 0x61c   : > { %v2284_v51 = vsub.f32 %v2227_v16, %v2268_v7  ;;  %v2283_v10 = vsub.f32 %v2225_v24, %v2267_v8  ;;  %v2282_v5 = vsub.f32 %v2223_v22, %v2266_v21  ;;  %v2288_v62 = vsub.f32 %v2235_v36, %v2272_v52 }
 0x61d   : > { %v2286_v54 = vsub.f32 %v2231_v20, %v2270_v55  ;;  %v2285_v13 = vsub.f32 %v2229_v59, %v2269_v56  ;;  %v2289_v16 = vsub.f32 %v2237_v63, %v2273_v15  ;;  %v2287_v20 = vsub.f32 %v2233_v26, %v2271_v19 }
 0x61e   : > { %v2294_v42 = vmul.f32 1.442695, %v2284_v51  ;;  %v2292_v48 = vmul.f32 1.442695, %v2283_v10  ;;  %v2290_v4 = vmul.f32 1.442695, %v2282_v5 }
 0x61f   : > { %v2302_v12 = vmul.f32 1.442695, %v2288_v62  ;;  %v2298_v14 = vmul.f32 1.442695, %v2286_v54  ;;  %v2296_v18 = vmul.f32 1.442695, %v2285_v13 }
 0x620   : > { %12268 = vpow2.f32 %v2294_v42  ;;  %v2304_v22 = vmul.f32 1.442695, %v2289_v16  ;;  %v2300_v24 = vmul.f32 1.442695, %v2287_v20 }
 0x621   : > { %12270 = vpow2.f32 %v2292_v48 }
 0x622   : > { %12272 = vpow2.f32 %v2290_v4 }
 0x623   : > { %12274 = vpow2.f32 %v2302_v12 }
 0x624   : > { %12276 = vpow2.f32 %v2298_v14 }
 0x625   : > { %12278 = vpow2.f32 %v2296_v18 }
 0x626   : > { %v13699_v17 = vpop.eup %12268  ;;  %12280 = vpow2.f32 %v2304_v22 }
 0x627   : > { %v12271_v53 = vpop.eup %12270  ;;  %2321 = vperm.xlu2 %12200, %v13699_v17   ;;  %12282 = vpow2.f32 %v2300_v24 }
 0x628   : > { %v12273_v0 = vpop.eup %12272  ;;  %2318 = vperm.xlu1 %12199, %v12271_v53  }
 0x629   : > { %2315 = vperm.xlu0 %12198, %v12273_v0   ;;  %v13702_v59 = vpop.eup %12274 }
 0x62a   : > { %v12277_v25 = vpop.eup %12276 }
 0x62b   : > { %v12279_v29 = vpop.eup %12278 }
 0x62c   : > { %v12281_v30 = vpop.eup %12280 }
 0x62d   : > { %v12283_v31 = vpop.eup %12282 }
 0x62f   : > { %2333 = vperm.xlu2 %12200, %v13702_v59  }
 0x630   : > { %2327 = vperm.xlu1 %12199, %v12277_v25  }
 0x631   : > { %2324 = vperm.xlu0 %12198, %v12279_v29  }
 0x638   : > { %2336 = vperm.xlu1 %12199, %v12281_v30  }
 0x639   : > { %2330 = vperm.xlu0 %12198, %v12283_v31  }
 0x681   : > { %v2322_v35 = vpop.permute.xlu2 %2321 }
 0x682   : > { %v2340_v39 = vperm.slane %v2322_v35, %v12838_v6 }
 0x689   : > { %v2334_v45 = vpop.permute.xlu2 %2333 }
 0x68a   : > { %v2344_v8 = vperm.slane %v2334_v45, %v12838_v6 }
 0x69a   : > { %v2319_v33 = vpop.permute.xlu1 %2318 }
 0x69b   : > { %v2316_v34 = vpop.permute.xlu0 %2315  ;;  %v2339_v26 = vperm.slane %v2319_v33, %v12838_v6 }
 0x69c   : > { %v2338_v63 = vperm.slane %v2316_v34, %v12838_v6 }
 0x69e   : > { %v2346_v36 = vsel %vm1033_vm0, %v2339_v26, %v2338_v63 }
 0x69f   : > { %v2347_v60 = vsel %vm1035_vm1, %v2340_v39, %v2346_v36 }
 0x6a2   : > { %v2328_v37 = vpop.permute.xlu1 %2327 }
 0x6a3   : > { %v2325_v46 = vpop.permute.xlu0 %2324  ;;  %v2342_v44 = vperm.slane %v2328_v37, %v12838_v6 }
 0x6a4   : > { %v2341_v38 = vperm.slane %v2325_v46, %v12838_v6  ;;  %v13757_v46 = vld [vmem:[%s13101_s22] sm:$0xff]  }
 0x6a5   : > { %v11953_v36 = vunpack.c.l.bf16 %v13757_v46 }
 0x6a6   : > { %v2348_v47 = vsel %vm1037_vm2, %v2341_v38, %v2347_v60 }
 0x6a7   : > { %v2349_v21 = vsel %vm1039_vm3, %v2342_v44, %v2348_v47  ;;  %v13762_v44 = vld [vmem:[%s13101_s22 + $0x8] sm:$0xff]  }
 0x6a8   : > { %v11957_v45 = vunpack.c.l.bf16 %v13762_v44 }
 0x6aa   : > { %v2337_v49 = vpop.permute.xlu1 %2336 }
 0x6ab   : > { %v2331_v57 = vpop.permute.xlu0 %2330  ;;  %v2345_v51 = vperm.slane %v2337_v49, %v12838_v6 }
 0x6ac   : > { %v2343_v7 = vperm.slane %v2331_v57, %v12838_v6  ;;  %v9890_v57 = vld [vmem:[%s17320_s6 + $0xe0] sm:$0xf] }
 0x6ae   : > { %v2350_v10 = vsel %vm1041_vm4, %v2343_v7, %v2349_v21  ;;  %v11541_v7 = vld [vmem:[%s17320_s6 + $0xec] sm:$0xf0] }
 0x6af   : > { %v2351_v5 = vsel %vm1043_vm5, %v2344_v8, %v2350_v10  ;;  %v11539_v8 = vld [vmem:[%s17320_s6 + $0xe4] sm:$0xf]  ;;  %v9891_v21 = vor.u32 %v11541_v7, %v9890_v57  ;;  %v9898_v10 = vld [vmem:[%s17320_s6 + $0xe8] sm:$0xf]  ;;  %v11533_v57 = vld [vmem:[%s17320_s6 + $0xac] sm:$0xf0] }
 0x6b0   : > { %v2352_v52 = vsel %vm1045_vm6, %v2345_v51, %v2351_v5  ;;  %v9892_v51 = vld [vmem:[%s17320_s6 + $0xf0] sm:$0xf0]  ;;  %v11542_v5 = vld [vmem:[%s17320_s6 + $0xf4] sm:$0xf0]  ;;  %v11531_v7 = vld [vmem:[%s17320_s6 + $0xa4] sm:$0xf] }
 0x6b1   : > { %v2354_v55 = vsel %vm1048_vm7, %v2352_v52, 0.0  ;;  %2793 = vmatpush.bf16.msrb.mxu2 %v9891_v21 }
 0x6b2   : > { %2355 = vadd.xlane.f32.xlu0 %v2354_v55 }
 0x725   : > { %v2356_v56 = vpop.xlane.xlu0 %2355 }
 0x726   : > { %12284 = vrcp.f32 %v2356_v56  ;;  %v9895_v56 = vor.u32 %v11539_v8, %v9892_v51  ;;  %v9860_v51 = vld [vmem:[%s17320_s6 + $0xb0] sm:$0xf0] }
 0x728   : > { %2806 = vmatpush.bf16.msrb.mxu3 %v9895_v56 }
 0x72c   : > { %v12285_v42 = vpop.eup %12284 }
 0x72d   : > { %v2360_v48 = vperm.slane %v12285_v42, 1  ;;  %v2359_v4 = vperm.slane %v12285_v42, 0  ;;  %v2362_v14 = vperm.slane %v12285_v42, 3  ;;  %v2361_v15 = vperm.slane %v12285_v42, 2 }
 0x72e   : > { %v2364_v16 = vperm.slane %v12285_v42, 5  ;;  %v2363_v20 = vperm.slane %v12285_v42, 4  ;;  %v2366_v33 = vperm.slane %v12285_v42, 7  ;;  %v2365_v34 = vperm.slane %v12285_v42, 6  ;;  %v11540_v42 = vld [vmem:[%s17320_s6 + $0xec] sm:$0xf] }
 0x72f   : > { %v13721_v62 = vmul.f32 %v12271_v53, %v2360_v48  ;;  %v13723_v54 = vmul.f32 %v12273_v0, %v2359_v4  ;;  %v13729_v18 = vmul.f32 %v12279_v29, %v2362_v14  ;;  %v13732_v19 = vmul.f32 %v13699_v17, %v2361_v15  ;;  %v9900_v48 = vld [vmem:[%s17320_s6 + $0xf8] sm:$0xf0]  ;;  %v13790_v4 = vld [vmem:[%s13101_s22 + $0x10] sm:$0xff]   ;;  %v9874_v15 = vld [vmem:[%s17320_s6 + $0xc0] sm:$0xf] }
 0x730   : > { %v13738_v22 = vmul.f32 %v12283_v31, %v2364_v16  ;;  %v13740_v24 = vmul.f32 %v12277_v25, %v2363_v20  ;;  %v13746_v35 = vmul.f32 %v12281_v30, %v2366_v33  ;;  %v13749_v26 = vmul.f32 %v13702_v59, %v2365_v34  ;;  %v9876_v20 = vld [vmem:[%s17320_s6 + $0xd0] sm:$0xf0] }
 0x731   : > { %v2384_v13 = vpack.c.bf16 %v13721_v62, %v13721_v62  ;;  %v2383_v12 = vpack.c.bf16 %v13723_v54, %v13723_v54  ;;  %v2386_v53 = vpack.c.bf16 %v13729_v18, %v13729_v18  ;;  %v2385_v0 = vpack.c.bf16 %v13732_v19, %v13732_v19 }
 0x732   : > { %v2388_v29 = vpack.c.bf16 %v13738_v22, %v13738_v22  ;;  %v2387_v17 = vpack.c.bf16 %v13740_v24, %v13740_v24  ;;  %v2390_v25 = vpack.c.bf16 %v13746_v35, %v13746_v35  ;;  %v2389_v31 = vpack.c.bf16 %v13749_v26, %v13749_v26 }
 0x733   : > { %2410 = vperm.xlu1 %12199, %v2384_v13   ;;  %2401 = vperm.xlu2 %12200, %v2383_v12   ;;  %v9899_v12 = vor.u32 %v11542_v5, %v9898_v10  ;;  %v9903_v14 = vor.u32 %v11540_v42, %v9900_v48  ;;  %v9866_v10 = vld [vmem:[%s17320_s6 + $0xa8] sm:$0xf]  ;;  %v11534_v5 = vld [vmem:[%s17320_s6 + $0xb4] sm:$0xf0]  ;;  %v9863_v48 = vor.u32 %v11531_v7, %v9860_v51  ;;  %v11958_v7 = vunpack.c.h.bf16 %v13762_v44  ;;  %v11525_v51 = vld [vmem:[%s17320_s6 + $0x6c] sm:$0xf0] }
 0x734   : > { %v9828_v44 = vld [vmem:[%s17320_s6 + $0x70] sm:$0xf0] }
 0x735   : > { %2819 = vmatpush.bf16.msra.mxu0 %v9899_v12  ;;  %2832 = vmatpush.bf16.msra.mxu1 %v9903_v14  ;;  %v9868_v12 = vld [vmem:[%s17320_s6 + $0xb8] sm:$0xf0] }
 0x73b   : > { %2428 = vperm.xlu1 %12199, %v2386_v53   ;;  %2419 = vperm.xlu2 %12200, %v2385_v0   ;;  %v11537_v53 = vld [vmem:[%s17320_s6 + $0xcc] sm:$0xf0]  ;;  %v11535_v0 = vld [vmem:[%s17320_s6 + $0xc4] sm:$0xf] }
 0x73c   : > { %v9875_v16 = vor.u32 %v11537_v53, %v9874_v15  ;;  %v9867_v53 = vor.u32 %v11534_v5, %v9866_v10  ;;  %v9834_v5 = vld [vmem:[%s17320_s6 + $0x68] sm:$0xf] }
 0x73e   : > { %2794 = vmatpush.bf16.msrb.mxu2 %v9875_v16 }
 0x743   : > { %2446 = vperm.xlu1 %12199, %v2388_v29   ;;  %2437 = vperm.xlu2 %12200, %v2387_v17   ;;  %v9882_v29 = vld [vmem:[%s17320_s6 + $0xc8] sm:$0xf]  ;;  %v11538_v17 = vld [vmem:[%s17320_s6 + $0xd4] sm:$0xf0] }
 0x74b   : > { %2464 = vperm.xlu1 %12199, %v2390_v25   ;;  %2455 = vperm.xlu2 %12200, %v2389_v31   ;;  %v13812_v25 = vld [vmem:[%s13101_s22 + $0x18] sm:$0xff]   ;;  %v9879_v31 = vor.u32 %v11535_v0, %v9876_v20  ;;  %v11529_v20 = vld [vmem:[%s17320_s6 + $0x8c] sm:$0xf0] }
 0x74c   : > { %v11965_v8 = vunpack.c.l.bf16 %v13812_v25 }
 0x74d   : > { %2807 = vmatpush.bf16.msrb.mxu3 %v9879_v31  ;;  %v11530_v31 = vld [vmem:[%s17320_s6 + $0x94] sm:$0xf0] }
 0x751   : > { %2808 = vmatpush.bf16.msrb.mxu3 %v9863_v48 }
 0x78d   : > { %v2402_v63 = vpop.permute.xlu2 %2401 }
 0x78e   : > { %v2407_v37 = vperm.slane %v2402_v63, %v13131_v32  ;;  %v11536_v63 = vld [vmem:[%s17320_s6 + $0xcc] sm:$0xf] }
 0x790   : > { %v2471_v30 = vunpack.c.l.bf16 %v2407_v37  ;;  %v9884_v37 = vld [vmem:[%s17320_s6 + $0xd8] sm:$0xf0] }
 0x792   : > { %v2487_v39 = vmul.f32 %v11953_v36, %v2471_v30  ;;  %v11961_v36 = vunpack.c.l.bf16 %v13790_v4 }
 0x794   : > { %v2495_v60 = vpack.c.bf16 %v2487_v39, %v2487_v39 }
 0x795   : > { %v2420_v38 = vpop.permute.xlu2 %2419 }
 0x796   : > { %v2425_v59 = vperm.slane %v2420_v38, %v13131_v32  ;;  %v2503_v52 = vunpack.c.l.bf16 %v2495_v60  ;;  %v9887_v60 = vor.u32 %v11536_v63, %v9884_v37 }
 0x798   : > { %v2473_v47 = vunpack.c.l.bf16 %v2425_v59  ;;  %v2511_v33 = vrot.slane %v2503_v52, 4  ;;  %v9883_v59 = vor.u32 %v11538_v17, %v9882_v29  ;;  %2833 = vmatpush.bf16.msra.mxu1 %v9887_v60  ;;  %v11527_v29 = vld [vmem:[%s17320_s6 + $0x84] sm:$0xf] }
 0x79a   : > { %v2489_v55 = vmul.f32 %v11957_v45, %v2473_v47  ;;  %v11954_v45 = vunpack.c.h.bf16 %v13757_v46  ;;  %2820 = vmatpush.bf16.msra.mxu0 %v9883_v59 }
 0x79c   : > { %v2497_v34 = vpack.c.bf16 %v2489_v55, %v2489_v55  ;;  %v13843_v55 = vadd.f32 %v2511_v33, %v2503_v52  ;;  %v9842_v52 = vld [vmem:[%s17320_s6 + $0x80] sm:$0xf]  ;;  %v9844_v33 = vld [vmem:[%s17320_s6 + $0x90] sm:$0xf0] }
 0x79d   : > { %v2438_v49 = vpop.permute.xlu2 %2437  ;;  %v9843_v17 = vor.u32 %v11529_v20, %v9842_v52 }
 0x79e   : > { %v2443_v13 = vperm.slane %v2438_v49, %v13131_v32  ;;  %v9858_v49 = vld [vmem:[%s17320_s6 + $0xa0] sm:$0xf]  ;;  %v2505_v56 = vunpack.c.l.bf16 %v2497_v34  ;;  %2821 = vmatpush.bf16.msra.mxu0 %v9867_v53  ;;  %v9850_v34 = vld [vmem:[%s17320_s6 + $0x88] sm:$0xf]  ;;  %v2513_v63 = vrot.slane %v13843_v55, 2 }
 0x79f   : > { %v9859_v46 = vor.u32 %v11533_v57, %v9858_v49  ;;  %v9836_v53 = vld [vmem:[%s17320_s6 + $0x78] sm:$0xf0] }
 0x7a0   : > { %v2475_v30 = vunpack.c.l.bf16 %v2443_v13  ;;  %v11532_v13 = vld [vmem:[%s17320_s6 + $0xac] sm:$0xf]  ;;  %v2523_v37 = vrot.slane %v2505_v56, 4 }
 0x7a1   : > { %2795 = vmatpush.bf16.msrb.mxu2 %v9859_v46  ;;  %v9871_v0 = vor.u32 %v11532_v13, %v9868_v12  ;;  %v9826_v46 = vld [vmem:[%s17320_s6 + $0x60] sm:$0xf] }
 0x7a2   : > { %v2491_v14 = vmul.f32 %v11961_v36, %v2475_v30  ;;  %v9847_v30 = vor.u32 %v11527_v29, %v9844_v33  ;;  %v9827_v10 = vor.u32 %v11525_v51, %v9826_v46  ;;  %v13896_v48 = vadd.f32 %v2523_v37, %v2505_v56  ;;  %v9810_v56 = vld [vmem:[%s17320_s6 + $0x40] sm:$0xf]  ;;  %v11521_v33 = vld [vmem:[%s17320_s6 + $0x4c] sm:$0xf0]  ;;  %v9812_v37 = vld [vmem:[%s17320_s6 + $0x50] sm:$0xf0] }
 0x7a3   : > { %2834 = vmatpush.bf16.msra.mxu1 %v9871_v0  ;;  %v9794_v51 = vld [vmem:[%s17320_s6 + $0x20] sm:$0xf] }
 0x7a4   : > { %v2499_v59 = vpack.c.bf16 %v2491_v14, %v2491_v14  ;;  %2809 = vmatpush.bf16.msrb.mxu3 %v9847_v30  ;;  %v11522_v30 = vld [vmem:[%s17320_s6 + $0x54] sm:$0xf0] }
 0x7a5   : > { %v2411_v38 = vpop.permute.xlu1 %2410  ;;  %v2456_v39 = vpop.permute.xlu2 %2455  ;;  %2796 = vmatpush.bf16.msrb.mxu2 %v9843_v17 }
 0x7a6   : > { %v2416_v47 = vperm.slane %v2411_v38, %v13131_v32  ;;  %v2461_v21 = vperm.slane %v2456_v39, %v13131_v32  ;;  %v11528_v38 = vld [vmem:[%s17320_s6 + $0x8c] sm:$0xf]  ;;  %v9852_v39 = vld [vmem:[%s17320_s6 + $0x98] sm:$0xf0]  ;;  %v2507_v0 = vunpack.c.l.bf16 %v2499_v59 }
 0x7a7   : > { %v9855_v49 = vor.u32 %v11528_v38, %v9852_v39  ;;  %v2525_v38 = vrot.slane %v13896_v48, 2 }
 0x7a8   : > { %v2472_v42 = vunpack.c.l.bf16 %v2416_v47  ;;  %v2477_v15 = vunpack.c.l.bf16 %v2461_v21  ;;  %v9851_v47 = vor.u32 %v11530_v31, %v9850_v34  ;;  %v11519_v34 = vld [vmem:[%s17320_s6 + $0x44] sm:$0xf]  ;;  %v9811_v31 = vor.u32 %v11521_v33, %v9810_v56  ;;  %v11513_v33 = vld [vmem:[%s17320_s6 + $0xc] sm:$0xf0] }
 0x7a9   : > { %2835 = vmatpush.bf16.msra.mxu1 %v9855_v49  ;;  %2797 = vmatpush.bf16.msrb.mxu2 %v9827_v10  ;;  %v2535_v49 = vrot.slane %v2507_v0, 4 }
 0x7aa   : > { %v2488_v16 = vmul.f32 %v11954_v45, %v2472_v42  ;;  %v2493_v60 = vmul.f32 %v11965_v8, %v2477_v15  ;;  %v11523_v8 = vld [vmem:[%s17320_s6 + $0x64] sm:$0xf]  ;;  %2822 = vmatpush.bf16.msra.mxu0 %v9851_v47  ;;  %v11526_v42 = vld [vmem:[%s17320_s6 + $0x74] sm:$0xf0]  ;;  %v11524_v15 = vld [vmem:[%s17320_s6 + $0x6c] sm:$0xf] }
 0x7ab   : > { %v9831_v14 = vor.u32 %v11523_v8, %v9828_v44  ;;  %v9835_v52 = vor.u32 %v11526_v42, %v9834_v5  ;;  %v9839_v20 = vor.u32 %v11524_v15, %v9836_v53  ;;  %v9820_v47 = vld [vmem:[%s17320_s6 + $0x58] sm:$0xf0]  ;;  %v11517_v8 = vld [vmem:[%s17320_s6 + $0x2c] sm:$0xf0]  ;;  %v11962_v44 = vunpack.c.h.bf16 %v13790_v4  ;;  %v11515_v42 = vld [vmem:[%s17320_s6 + $0x24] sm:$0xf] }
 0x7ac   : > { %v2496_v36 = vpack.c.bf16 %v2488_v16, %v2488_v16  ;;  %v2501_v16 = vpack.c.bf16 %v2493_v60, %v2493_v60  ;;  %v9815_v60 = vor.u32 %v11519_v34, %v9812_v37  ;;  %v9795_v4 = vor.u32 %v11517_v8, %v9794_v51  ;;  %v11518_v53 = vld [vmem:[%s17320_s6 + $0x34] sm:$0xf0] }
 0x7ad   : > { %v2429_v45 = vpop.permute.xlu1 %2428  ;;  %2810 = vmatpush.bf16.msrb.mxu3 %v9831_v14  ;;  %2836 = vmatpush.bf16.msra.mxu1 %v9839_v20  ;;  %v2514_v14 = vadd.f32 %v2513_v63, %v13843_v55  ;;  %v9778_v63 = vld [vmem:[%s17320_s6] sm:$0xf]  ;;  %v2536_v34 = vadd.f32 %v2535_v49, %v2507_v0  ;;  %v9786_v0 = vld [vmem:[%s17320_s6 + $0x8] sm:$0xf] }
 0x7ae   : > { %v2504_v57 = vunpack.c.l.bf16 %v2496_v36  ;;  %v2434_v21 = vperm.slane %v2429_v45, %v13131_v32  ;;  %2823 = vmatpush.bf16.msra.mxu0 %v9835_v52  ;;  %v9818_v36 = vld [vmem:[%s17320_s6 + $0x48] sm:$0xf]  ;;  %v11520_v45 = vld [vmem:[%s17320_s6 + $0x4c] sm:$0xf]  ;;  %2798 = vmatpush.bf16.msrb.mxu2 %v9811_v31  ;;  %v9804_v52 = vld [vmem:[%s17320_s6 + $0x38] sm:$0xf0] }
 0x7af   : > { %v9823_v46 = vor.u32 %v11520_v45, %v9820_v47  ;;  %v11514_v45 = vld [vmem:[%s17320_s6 + $0x14] sm:$0xf0]  ;;  %v11512_v47 = vld [vmem:[%s17320_s6 + $0xc] sm:$0xf] }
 0x7b0   : > { %v2517_v13 = vrot.slane %v2504_v57, 4  ;;  %v2474_v12 = vunpack.c.l.bf16 %v2434_v21  ;;  %v9819_v21 = vor.u32 %v11522_v30, %v9818_v36  ;;  %v9779_v36 = vor.u32 %v11513_v33, %v9778_v63  ;;  %v9780_v30 = vld [vmem:[%s17320_s6 + $0x10] sm:$0xf0] }
 0x7b1   : > { %2811 = vmatpush.bf16.msrb.mxu3 %v9815_v60  ;;  %2837 = vmatpush.bf16.msra.mxu1 %v9823_v46  ;;  %v9787_v49 = vor.u32 %v11514_v45, %v9786_v0 }
 0x7b2   : > { %v2518_v29 = vadd.f32 %v2517_v13, %v2504_v57  ;;  %v2490_v17 = vmul.f32 %v11958_v7, %v2474_v12  ;;  %v2509_v57 = vunpack.c.l.bf16 %v2501_v16  ;;  %v9796_v13 = vld [vmem:[%s17320_s6 + $0x30] sm:$0xf0]  ;;  %v9802_v12 = vld [vmem:[%s17320_s6 + $0x28] sm:$0xf]  ;;  %2824 = vmatpush.bf16.msra.mxu0 %v9819_v21  ;;  %v11516_v16 = vld [vmem:[%s17320_s6 + $0x2c] sm:$0xf]  ;;  %2799 = vmatpush.bf16.msrb.mxu2 %v9795_v4 }
 0x7b3   : > { %v9799_v15 = vor.u32 %v11515_v42, %v9796_v13  ;;  %v9803_v55 = vor.u32 %v11518_v53, %v9802_v12  ;;  %v9807_v37 = vor.u32 %v11516_v16, %v9804_v52 }
 0x7b4   : > { %v2519_v39 = vrot.slane %v2518_v29, 2  ;;  %v2498_v59 = vpack.c.bf16 %v2490_v17, %v2490_v17  ;;  %v2547_v31 = vrot.slane %v2509_v57, 4 }
 0x7b5   : > { %v2447_v7 = vpop.permute.xlu1 %2446  ;;  %2812 = vmatpush.bf16.msrb.mxu3 %v9799_v15  ;;  %2838 = vmatpush.bf16.msra.mxu1 %v9807_v37  ;;  %v11966_v15 = vunpack.c.h.bf16 %v13812_v25 }
 0x7b6   : > { %v2506_v10 = vunpack.c.l.bf16 %v2498_v59  ;;  %v2452_v5 = vperm.slane %v2447_v7, %v13131_v32  ;;  %v2520_v20 = vadd.f32 %v2519_v39, %v2518_v29  ;;  %v11511_v29 = vld [vmem:[%s17320_s6 + $0x4] sm:$0xf]  ;;  %2825 = vmatpush.bf16.msra.mxu0 %v9803_v55  ;;  %v9788_v7 = vld [vmem:[%s17320_s6 + $0x18] sm:$0xf0]  ;;  %v2548_v42 = vadd.f32 %v2547_v31, %v2509_v57  ;;  %2800 = vmatpush.bf16.msrb.mxu2 %v9779_v36 }
 0x7b7   : > { %v9783_v60 = vor.u32 %v11511_v29, %v9780_v30  ;;  %v9791_v8 = vor.u32 %v11512_v47, %v9788_v7 }
 0x7b8   : > { %v2529_v17 = vrot.slane %v2506_v10, 4  ;;  %v2476_v56 = vunpack.c.l.bf16 %v2452_v5  ;;  %v2521_v21 = vrot.slane %v2520_v20, 1  ;;  %v2537_v5 = vrot.slane %v2536_v34, 2 }
 0x7b9   : > { %2813 = vmatpush.bf16.msrb.mxu3 %v9783_v60  ;;  %2839 = vmatpush.bf16.msra.mxu1 %v9791_v8 }
 0x7ba   : > { %v2530_v39 = vadd.f32 %v2529_v17, %v2506_v10  ;;  %v2492_v59 = vmul.f32 %v11962_v44, %v2476_v56  ;;  %v2515_v10 = vrot.slane %v2514_v14, 1  ;;  %v2526_v44 = vadd.f32 %v2525_v38, %v13896_v48  ;;  %2826 = vmatpush.bf16.msra.mxu0 %v9787_v49 }
 0x7bb   : > { %v2522_v16 = vadd.f32 %v2521_v21, %v2520_v20  ;;  %v2538_v63 = vadd.f32 %v2537_v5, %v2536_v34  ;;  %v2549_v48 = vrot.slane %v2548_v42, 2 }
 0x7bc   : > { %v2531_v46 = vrot.slane %v2530_v39, 2  ;;  %v2500_v51 = vpack.c.bf16 %v2492_v59, %v2492_v59  ;;  %v2527_v55 = vrot.slane %v2526_v44, 1  ;;  %v2516_v38 = vadd.f32 %v2515_v10, %v2514_v14 }
 0x7bd   : > { %v2465_v13 = vpop.permute.xlu1 %2464  ;;  %v2569_v31 = vpack.c.bf16 %v2522_v16, %v2522_v16  ;;  %v2539_v30 = vrot.slane %v2538_v63, 1 }
 0x7be   : > { %v2532_v12 = vadd.f32 %v2531_v46, %v2530_v39  ;;  %v2508_v4 = vunpack.c.l.bf16 %v2500_v51  ;;  %v2470_v53 = vperm.slane %v2465_v13, %v13131_v32  ;;  %v2528_v25 = vadd.f32 %v2527_v55, %v2526_v44 }
 0x7bf   : > { %v2550_v39 = vadd.f32 %v2549_v48, %v2548_v42  ;;  %v2568_v59 = vpack.c.bf16 %v2516_v38, %v2516_v38  ;;  %v2617_v20 = vunpack.c.l.b16 %v2569_v31  ;;  %v2540_v34 = vadd.f32 %v2539_v30, %v2538_v63 }
 0x7c0   : > { %v2533_v52 = vrot.slane %v2532_v12, 1  ;;  %v2541_v17 = vrot.slane %v2508_v4, 4  ;;  %v2478_v56 = vunpack.c.l.bf16 %v2470_v53  ;;  %v2570_v7 = vpack.c.bf16 %v2528_v25, %v2528_v25  ;;  %v11580_v25 = vld [vmem:[%s17317_s3 + $0x128] sm:$0xf0] }
 0x7c1   : > { %v2551_v21 = vrot.slane %v2550_v39, 1  ;;  %v2616_v14 = vunpack.c.l.b16 %v2568_v59  ;;  %v2572_v42 = vpack.c.bf16 %v2540_v34, %v2540_v34  ;;  %v11575_v59 = vld [vmem:[%s17317_s3 + $0x100] sm:$0xf0]  ;;  %v11578_v34 = vld [vmem:[%s17317_s3 + $0x11c] sm:$0xf] }
 0x7c2   : > { %v2542_v57 = vadd.f32 %v2541_v17, %v2508_v4  ;;  %v2494_v33 = vmul.f32 %v11966_v15, %v2478_v56  ;;  %v2534_v37 = vadd.f32 %v2533_v52, %v2532_v12  ;;  %v2618_v13 = vunpack.c.l.b16 %v2570_v7 }
 0x7c3   : > { %v2624_v8 = vsel %vm1033_vm0, %v2617_v20, %v2616_v14  ;;  %v2552_v12 = vadd.f32 %v2551_v21, %v2550_v39  ;;  %v2620_v17 = vunpack.c.l.b16 %v2572_v42  ;;  %v10031_v39 = vld [vmem:[%s17317_s3 + $0xf0] sm:$0xf]  ;;  %v11570_v20 = vld [vmem:[%s17317_s3 + $0xd8] sm:$0xf0]  ;;  %v10059_v14 = vld [vmem:[%s17317_s3 + $0x120] sm:$0xf] }
 0x7c4   : > { %v2543_v36 = vrot.slane %v2542_v57, 2  ;;  %v2502_v29 = vpack.c.bf16 %v2494_v33, %v2494_v33  ;;  %v2571_v45 = vpack.c.bf16 %v2534_v37, %v2534_v37  ;;  %v2625_v15 = vsel %vm1035_vm1, %v2618_v13, %v2624_v8  ;;  %v10053_v21 = vld [vmem:[%s17317_s3 + $0x12c] sm:$0xf0]  ;;  %v11579_v8 = vld [vmem:[%s17317_s3 + $0x124] sm:$0xf] }
 0x7c5   : > { %v2574_v56 = vpack.c.bf16 %v2552_v12, %v2552_v12  ;;  %v9971_v13 = vld [vmem:[%s17317_s3 + $0x78] sm:$0xf]  ;;  %v11560_v42 = vld [vmem:[%s17317_s3 + $0x88] sm:$0xf0] }
 0x7c6   : > { %v2544_v60 = vadd.f32 %v2543_v36, %v2542_v57  ;;  %v2510_v0 = vunpack.c.l.bf16 %v2502_v29  ;;  %v2619_v10 = vunpack.c.l.b16 %v2571_v45  ;;  %v10051_v29 = vld [vmem:[%s17317_s3 + $0x118] sm:$0xf]  ;;  %v9972_v12 = vor.u32 %v11560_v42, %v9971_v13 }
 0x7c7   : > { %v2622_v57 = vunpack.c.l.b16 %v2574_v56  ;;  %v10052_v30 = vor.u32 %v11580_v25, %v10051_v29  ;;  %v10041_v56 = vld [vmem:[%s17317_s3 + $0x10c] sm:$0xf0] }
 0x7c8   : > { %v2545_v47 = vrot.slane %v2544_v60, 1  ;;  %v2553_v49 = vrot.slane %v2510_v0, 4  ;;  %v2626_v52 = vsel %vm1037_vm2, %v2619_v10, %v2625_v15  ;;  %v10061_v10 = vld [vmem:[%s17317_s3 + $0x134] sm:$0xf0]  ;;  %v10033_v15 = vld [vmem:[%s17317_s3 + $0x104] sm:$0xf0] }
 0x7c9   : > { %v2627_v63 = vsel %vm1039_vm3, %v2620_v17, %v2626_v52  ;;  %3221 = vmatpush.bf16.msra.mxu2 %v10052_v30  ;;  %v11576_v52 = vld [vmem:[%s17317_s3 + $0x108] sm:$0xf0]  ;;  %v11574_v17 = vld [vmem:[%s17317_s3 + $0xfc] sm:$0xf]  ;;  %v11571_v30 = vld [vmem:[%s17317_s3 + $0xe0] sm:$0xf0] }
 0x7ca   : > { %v2546_v46 = vadd.f32 %v2545_v47, %v2544_v60  ;;  %v2554_v51 = vadd.f32 %v2553_v49, %v2510_v0  ;;  %v10032_v60 = vor.u32 %v11575_v59, %v10031_v39  ;;  %v10011_v0 = vld [vmem:[%s17317_s3 + $0xc8] sm:$0xf]  ;;  %v9991_v47 = vld [vmem:[%s17317_s3 + $0xa0] sm:$0xf]  ;;  %v11565_v49 = vld [vmem:[%s17317_s3 + $0xb0] sm:$0xf0] }
 0x7cb   : > { %v10012_v45 = vor.u32 %v11570_v20, %v10011_v0  ;;  %v9992_v7 = vor.u32 %v11565_v49, %v9991_v47  ;;  %v11569_v39 = vld [vmem:[%s17317_s3 + $0xd4] sm:$0xf]  ;;  %v10021_v59 = vld [vmem:[%s17317_s3 + $0xe4] sm:$0xf0] }
 0x7cc   : > { %v2573_v5 = vpack.c.bf16 %v2546_v46, %v2546_v46  ;;  %v2555_v44 = vrot.slane %v2554_v51, 2  ;;  %v10056_v46 = vor.u32 %v11578_v34, %v10053_v21  ;;  %v9773_v47 = vld [vmem:[%s13397_s29 + $0x28] sm:$0xff]  ;;  %v11550_v34 = vld [vmem:[%s17317_s3 + $0x38] sm:$0xf0] }
 0x7cd   : > { %3222 = vmatpush.bf16.msra.mxu2 %v10032_v60  ;;  %v9772_v60 = vld [vmem:[%s13397_s29 + $0x20] sm:$0xff]  ;;  %v2565_v42 = vadd.f32 %v9773_v47, %v13669_v3 }
 0x7ce   : > { %v2556_v4 = vadd.f32 %v2555_v44, %v2554_v51  ;;  %v2621_v53 = vunpack.c.l.b16 %v2573_v5  ;;  %v11581_v51 = vld [vmem:[%s17317_s3 + $0x130] sm:$0xf0]  ;;  %v10064_v44 = vor.u32 %v11579_v8, %v10061_v10  ;;  %3234 = vmatpush.bf16.msra.mxu3 %v10056_v46  ;;  %v9993_v46 = vld [vmem:[%s17317_s3 + $0xb4] sm:$0xf0]  ;;  %v2564_v13 = vadd.f32 %v9772_v60, %v13666_v61  ;;  %v11582_v60 = vld [vmem:[%s17317_s3 + $0x138] sm:$0xf0] }
 0x7cf   : > { %v10060_v5 = vor.u32 %v11581_v51, %v10059_v14  ;;  %v11563_v14 = vld [vmem:[%s17317_s3 + $0xa4] sm:$0xf]  ;;  %v9999_v51 = vld [vmem:[%s17317_s3 + $0xa8] sm:$0xf]  ;;  %v11545_v61 = vld [vmem:[%s17317_s3 + $0x10] sm:$0xf0] }
 0x7d0   : > { %v2557_v16 = vrot.slane %v2556_v4, 1  ;;  %v2628_v38 = vsel %vm1041_vm4, %v2621_v53, %v2627_v63  ;;  %3260 = vmatpush.bf16.msrb.mxu1 %v10064_v44  ;;  %v10039_v53 = vld [vmem:[%s17317_s3 + $0xf8] sm:$0xf]  ;;  %v9996_v10 = vor.u32 %v11563_v14, %v9993_v46  ;;  %v11564_v44 = vld [vmem:[%s17317_s3 + $0xac] sm:$0xf] }
 0x7d1   : > { %v2629_v31 = vsel %vm1043_vm5, %v2622_v57, %v2628_v38  ;;  %3223 = vmatpush.bf16.msra.mxu2 %v10012_v45  ;;  %3247 = vmatpush.bf16.msrb.mxu0 %v10060_v5  ;;  %v10040_v63 = vor.u32 %v11576_v52, %v10039_v53  ;;  %v9951_v38 = vld [vmem:[%s17317_s3 + $0x50] sm:$0xf]  ;;  %v11555_v57 = vld [vmem:[%s17317_s3 + $0x60] sm:$0xf0]  ;;  %v11566_v5 = vld [vmem:[%s17317_s3 + $0xb8] sm:$0xf0] }
 0x7d2   : > { %v2558_v55 = vadd.f32 %v2557_v16, %v2556_v4  ;;  %v11573_v4 = vld [vmem:[%s17317_s3 + $0xf4] sm:$0xf]  ;;  %v9911_v52 = vld [vmem:[%s17317_s3] sm:$0xf]  ;;  %v9961_v46 = vld [vmem:[%s17317_s3 + $0x6c] sm:$0xf0] }
 0x7d3   : > { %v10036_v16 = vor.u32 %v11573_v4, %v10033_v15  ;;  %v10001_v4 = vld [vmem:[%s17317_s3 + $0xbc] sm:$0xf0] }
 0x7d4   : > { %v2575_v48 = vpack.c.bf16 %v2558_v55, %v2558_v55  ;;  %v9775_v55 = vld [vmem:[%s13397_s29 + $0x38] sm:$0xff] }
 0x7d5   : > { %3224 = vmatpush.bf16.msra.mxu2 %v9992_v7  ;;  %3235 = vmatpush.bf16.msra.mxu3 %v10036_v16  ;;  %v2567_v29 = vadd.f32 %v9775_v55, %v13672_v41  ;;  %v10024_v41 = vor.u32 %v11569_v39, %v10021_v59  ;;  %v9931_v7 = vld [vmem:[%s17317_s3 + $0x28] sm:$0xf]  ;;  %v10004_v16 = vor.u32 %v11564_v44, %v10001_v4  ;;  %v11558_v55 = vld [vmem:[%s17317_s3 + $0x7c] sm:$0xf]  ;;  %v11548_v44 = vld [vmem:[%s17317_s3 + $0x2c] sm:$0xf] }
 0x7d6   : > { %v2623_v33 = vunpack.c.l.b16 %v2575_v48  ;;  %v10044_v48 = vor.u32 %v11574_v17, %v10041_v56  ;;  %3248 = vmatpush.bf16.msrb.mxu0 %v10040_v63  ;;  %v9932_v21 = vor.u32 %v11550_v34, %v9931_v7  ;;  %v9912_v56 = vor.u32 %v11545_v61, %v9911_v52  ;;  %v9973_v63 = vld [vmem:[%s17317_s3 + $0x8c] sm:$0xf0]  ;;  %v10067_v59 = vld [vmem:[%s17317_s3 + $0x128] sm:$0xf]  ;;  %v11556_v7 = vld [vmem:[%s17317_s3 + $0x68] sm:$0xf0] }
 0x7d7   : > { %v11554_v34 = vld [vmem:[%s17317_s3 + $0x5c] sm:$0xf]  ;;  %v9941_v61 = vld [vmem:[%s17317_s3 + $0x44] sm:$0xf0] }
 0x7d8   : > { %v2630_v37 = vsel %vm1045_vm6, %v2623_v33, %v2629_v31  ;;  %3261 = vmatpush.bf16.msrb.mxu1 %v10044_v48  ;;  %v9952_v33 = vor.u32 %v11555_v57, %v9951_v38  ;;  %v11568_v31 = vld [vmem:[%s17317_s3 + $0xcc] sm:$0xf]  ;;  %v9979_v48 = vld [vmem:[%s17317_s3 + $0x80] sm:$0xf]  ;;  %v9976_v38 = vor.u32 %v11558_v55, %v9973_v63  ;;  %v11561_v57 = vld [vmem:[%s17317_s3 + $0x90] sm:$0xf0] }
 0x7d9   : > { %v2631_v36 = vpack.c.b16 %v2630_v37, %v2630_v37  ;;  %3225 = vmatpush.bf16.msra.mxu2 %v9972_v12  ;;  %v10013_v37 = vld [vmem:[%s17317_s3 + $0xdc] sm:$0xf0]  ;;  %v10000_v12 = vor.u32 %v11566_v5, %v9999_v51  ;;  %v11572_v55 = vld [vmem:[%s17317_s3 + $0xe8] sm:$0xf0]  ;;  %v11543_v63 = vld [vmem:[%s17317_s3 + $0x4] sm:$0xf] }
 0x7da   : > { %v10016_v25 = vor.u32 %v11568_v31, %v10013_v37  ;;  %v9981_v31 = vld [vmem:[%s17317_s3 + $0x94] sm:$0xf0]  ;;  %v10047_v51 = vld [vmem:[%s17317_s3 + $0x100] sm:$0xf] }
 0x7db   : > { %2801 = vmatmul.bf16.vlgmr.msrb.gmra.mxu2 %v2631_v36  ;;  %2814 = vmatmul.bf16.vlgmr.msrb.gmra.mxu3 %v2631_v36 }
 0x7dc   : > { %2827 = vmatmul.bf16.vlgmr.msra.gmra.mxu0 %v2631_v36  ;;  %2840 = vmatmul.bf16.vlgmr.msra.gmra.mxu1 %v2631_v36  ;;  %v10019_v36 = vld [vmem:[%s17317_s3 + $0xd0] sm:$0xf] }
 0x7dd   : > { %3226 = vmatpush.bf16.msra.mxu2 %v9952_v33  ;;  %v10020_v45 = vor.u32 %v11571_v30, %v10019_v36  ;;  %3236 = vmatpush.bf16.msra.mxu3 %v10016_v25  ;;  %v11559_v33 = vld [vmem:[%s17317_s3 + $0x84] sm:$0xf]  ;;  %v9980_v30 = vor.u32 %v11561_v57, %v9979_v48  ;;  %v9913_v57 = vld [vmem:[%s17317_s3 + $0x14] sm:$0xf0] }
 0x7de   : > { %3262 = vmatpush.bf16.msrb.mxu1 %v10024_v41  ;;  %v9984_v39 = vor.u32 %v11559_v33, %v9981_v31  ;;  %v10068_v41 = vor.u32 %v11582_v60, %v10067_v59  ;;  %v9919_v33 = vld [vmem:[%s17317_s3 + $0x8] sm:$0xf]  ;;  %v9921_v59 = vld [vmem:[%s17317_s3 + $0x1c] sm:$0xf0]  ;;  %v10007_v60 = vld [vmem:[%s17317_s3 + $0xb0] sm:$0xf] }
 0x7df   : > { %3249 = vmatpush.bf16.msrb.mxu0 %v10020_v45  ;;  %v9953_v45 = vld [vmem:[%s17317_s3 + $0x64] sm:$0xf0] }
 0x7e1   : > { %3227 = vmatpush.bf16.msra.mxu2 %v9932_v21  ;;  %3237 = vmatpush.bf16.msra.mxu3 %v9996_v10  ;;  %v9964_v10 = vor.u32 %v11554_v34, %v9961_v46 }
 0x7e2   : > { %3263 = vmatpush.bf16.msrb.mxu1 %v10004_v16  ;;  %v11549_v16 = vld [vmem:[%s17317_s3 + $0x34] sm:$0xf] }
 0x7e3   : > { %3250 = vmatpush.bf16.msrb.mxu0 %v10000_v12 }
 0x7e5   : > { %3228 = vmatpush.bf16.msra.mxu2 %v9912_v56  ;;  %3238 = vmatpush.bf16.msra.mxu3 %v9976_v38  ;;  %v10027_v56 = vld [vmem:[%s17317_s3 + $0xd8] sm:$0xf] }
 0x7e6   : > { %3264 = vmatpush.bf16.msrb.mxu1 %v9984_v39  ;;  %v10028_v38 = vor.u32 %v11572_v55, %v10027_v56  ;;  %v11544_v39 = vld [vmem:[%s17317_s3 + $0xc] sm:$0xf] }
 0x7e7   : > { %3251 = vmatpush.bf16.msrb.mxu0 %v9980_v30 }
 0x7e9   : > { %3273 = vmatpush.bf16.msrb.mxu2 %v10068_v41  ;;  %v9987_v41 = vld [vmem:[%s17317_s3 + $0x88] sm:$0xf] }
 0x7ea   : > { %3265 = vmatpush.bf16.msrb.mxu1 %v9964_v10  ;;  %v11557_v10 = vld [vmem:[%s17317_s3 + $0x70] sm:$0xf0] }
 0x859   : > { %v14085_v0 = vpop.f32.mrf.mxu0  ;;  %v2841_v20 = vpop.f32.mrf.mxu1 }
 0x85a   : > { %v2848_v49 = vadd.f32 %v2841_v20, %v2567_v29  ;;  %v11553_v20 = vld [vmem:[%s17317_s3 + $0x54] sm:$0xf] }
 0x85b   : > { %v9956_v47 = vor.u32 %v11553_v20, %v9953_v45  ;;  %v11567_v20 = vld [vmem:[%s17317_s3 + $0xc0] sm:$0xf0]  ;;  %v9774_v45 = vld [vmem:[%s13397_s29 + $0x30] sm:$0xff] }
 0x85c   : > { %v9906_v8 = vmul.f32 -1.442695, %v2848_v49  ;;  %v9959_v49 = vld [vmem:[%s17317_s3 + $0x58] sm:$0xf]  ;;  %v2566_v34 = vadd.f32 %v9774_v45, %v13661_v40 }
 0x85d   : > { %v9960_v14 = vor.u32 %v11556_v7, %v9959_v49  ;;  %3239 = vmatpush.bf16.msra.mxu3 %v9956_v47  ;;  %v11562_v47 = vld [vmem:[%s17317_s3 + $0x98] sm:$0xf0]  ;;  %v9924_v49 = vor.u32 %v11544_v39, %v9921_v59  ;;  %v10008_v7 = vor.u32 %v11567_v20, %v10007_v60 }
 0x85e   : > { %12286 = vpow2.f32 %v9906_v8  ;;  %v2802_v15 = vpop.f32.mrf.mxu2  ;;  %v2815_v53 = vpop.f32.mrf.mxu3  ;;  %v11577_v8 = vld [vmem:[%s17317_s3 + $0x110] sm:$0xf0] }
 0x85f   : > { %v2845_v3 = vadd.f32 %v2802_v15, %v2564_v13  ;;  %v2846_v17 = vadd.f32 %v2815_v53, %v2565_v42  ;;  %v10048_v5 = vor.u32 %v11577_v8, %v10047_v51  ;;  %v9933_v13 = vld [vmem:[%s17317_s3 + $0x3c] sm:$0xf0]  ;;  %v9939_v15 = vld [vmem:[%s17317_s3 + $0x30] sm:$0xf]  ;;  %v11551_v53 = vld [vmem:[%s17317_s3 + $0x40] sm:$0xf0]  ;;  %3252 = vmatpush.bf16.msrb.mxu0 %v9960_v14  ;;  %v9988_v14 = vor.u32 %v11562_v47, %v9987_v41 }
 0x860   : > { %v9936_v4 = vor.u32 %v11548_v44, %v9933_v13  ;;  %v2847_v51 = vadd.f32 %v14085_v0, %v2566_v34  ;;  %v9967_v8 = vld [vmem:[%s17317_s3 + $0x60] sm:$0xf] }
 0x861   : > { %v9904_v37 = vmul.f32 -1.442695, %v2845_v3  ;;  %v9905_v36 = vmul.f32 -1.442695, %v2846_v17  ;;  %v2830_v29 = vpop.f32.mrf.mxu0  ;;  %v2843_v25 = vpop.f32.mrf.mxu1  ;;  %v9940_v3 = vor.u32 %v11551_v53, %v9939_v15  ;;  %v9944_v17 = vor.u32 %v11549_v16, %v9941_v61  ;;  %3274 = vmatpush.bf16.msrb.mxu2 %v10048_v5  ;;  %v9947_v15 = vld [vmem:[%s17317_s3 + $0x38] sm:$0xf] }
 0x862   : > { %3240 = vmatpush.bf16.msra.mxu3 %v9936_v4  ;;  %v11546_v29 = vld [vmem:[%s17317_s3 + $0x18] sm:$0xf0]  ;;  %v11552_v53 = vld [vmem:[%s17317_s3 + $0x48] sm:$0xf0] }
 0x863   : > { %12288 = vpow2.f32 %v9904_v37  ;;  %3253 = vmatpush.bf16.msrb.mxu0 %v9940_v3  ;;  %v9920_v30 = vor.u32 %v11546_v29, %v9919_v33  ;;  %3266 = vmatpush.bf16.msrb.mxu1 %v9944_v17  ;;  %v9927_v33 = vld [vmem:[%s17317_s3 + $0x10] sm:$0xf] }
 0x864   : > { %v12287_v21 = vpop.eup %12286  ;;  %12290 = vpow2.f32 %v9905_v36  ;;  %v9916_v36 = vor.u32 %v11543_v63, %v9913_v57 }
 0x865   : > { %v14183_v52 = vadd.f32 1.0, %v12287_v21  ;;  %3275 = vmatpush.bf16.msrb.mxu2 %v10028_v38 }
 0x866   : > { %v2804_v42 = vpop.f32.mrf.mxu2  ;;  %v2817_v12 = vpop.f32.mrf.mxu3  ;;  %3241 = vmatpush.bf16.msra.mxu3 %v9916_v36 }
 0x867   : > { %12292 = vrcp.f32 %v14183_v52  ;;  %3254 = vmatpush.bf16.msrb.mxu0 %v9920_v30  ;;  %3267 = vmatpush.bf16.msrb.mxu1 %v9924_v49  ;;  %v9968_v12 = vor.u32 %v11557_v10, %v9967_v8  ;;  %v2903_v49 = vand.u32 2147483648, %v14183_v52 }
 0x869   : > { %v12289_v48 = vpop.eup %12288  ;;  %3276 = vmatpush.bf16.msrb.mxu2 %v10008_v7  ;;  %v2901_v7 = vand.u32 2147483647, %v14183_v52  ;;  %v2904_v34 = vor.u32 1.1754944e-38, %v2903_v49 }
 0x86a   : > { %v12291_v31 = vpop.eup %12290  ;;  %v14203_v37 = vadd.f32 1.0, %v12289_v48  ;;  %v9948_v48 = vor.u32 %v11552_v53, %v9947_v15 }
 0x86b   : > { %v14209_v25 = vadd.f32 1.0, %v12291_v31  ;;  %v11547_v31 = vld [vmem:[%s17317_s3 + $0x20] sm:$0xf0] }
 0x86c   : > { %12294 = vrcp.f32 %v14203_v37  ;;  %v2864_v0 = vand.u32 2147483648, %v14203_v37  ;;  %v2862_v61 = vand.u32 2147483647, %v14203_v37  ;;  %vm2858_vm14 = vweird.f32 %v14203_v37 }
 0x86d   : > { %12296 = vrcp.f32 %v14209_v25  ;;  %v14233_v21 = vpop.eup %12292  ;;  %3277 = vmatpush.bf16.msrb.mxu2 %v9988_v14  ;;  %v2883_v3 = vand.u32 2147483648, %v14209_v25  ;;  %v2881_v56 = vand.u32 2147483647, %v14209_v25  ;;  %vm2877_vm8 = vweird.f32 %v14209_v25 }
 0x86e   : > { %v2893_v13 = vmul.f32 %v14233_v21, %v14183_v52  ;;  %12298 = vtanh.f32 %v2847_v51  ;;  %v2865_v38 = vor.u32 1.1754944e-38, %v2864_v0  ;;  %vm2863_vm9 = vcmp.eq.f32.partialorder %v2862_v61, 8.507059e+37 }
 0x86f   : > { %vm2882_vm11 = vcmp.eq.f32.partialorder %v2881_v56, 8.507059e+37  ;;  %v9928_v20 = vor.u32 %v11547_v31, %v9927_v33 }
 0x870   : > { %v2894_v55 = vsub.f32 1.0, %v2893_v13  ;;  %v12553_v13 = vld [vmem:[%s17318_s4] ss:$0 sm:$0xff] }
 0x871   : > { %3278 = vmatpush.bf16.msrb.mxu2 %v9968_v12 }
 0x872   : > { %v12295_v46 = vpop.eup %12294  ;;  %v2895_v59 = vmul.f32 %v14233_v21, %v2894_v55 }
 0x873   : > { %v12297_v5 = vpop.eup %12296  ;;  %v2854_v44 = vmul.f32 %v12295_v46, %v14203_v37  ;;  %vm2859_vm12 = vweird.f32 %v12295_v46  ;;  %v2884_v37 = vor.u32 1.1754944e-38, %v2883_v3  ;;  %v14289_v3 = vld [vmem:[%s12816_s11 + $0x18] sm:$0xff]  }
 0x874   : > { %v2873_v40 = vmul.f32 %v12297_v5, %v14209_v25  ;;  %vm2878_vm13 = vweird.f32 %v12297_v5  ;;  %vm2860_vm15 = vmor %vm2858_vm14, %vm2859_vm12  ;;  %v12299_v29 = vpop.eup %12298  ;;  %v2896_v47 = vadd.f32 %v14233_v21, %v2895_v59  ;;  %vm2898_vm12 = vweird.f32 %v14233_v21 }
 0x875   : > { %v2855_v42 = vsub.f32 1.0, %v2854_v44  ;;  %vm2879_vm10 = vmor %vm2877_vm8, %vm2878_vm13  ;;  %3279 = vmatpush.bf16.msrb.mxu2 %v9948_v48  ;;  %vm2897_vm13 = vweird.f32 %v14183_v52 }
 0x876   : > { %v2874_v4 = vsub.f32 1.0, %v2873_v40  ;;  %vm2899_vm14 = vmor %vm2897_vm13, %vm2898_vm12 }
 0x877   : > { %v2856_v16 = vmul.f32 %v12295_v46, %v2855_v42 }
 0x878   : > { %v2875_v17 = vmul.f32 %v12297_v5, %v2874_v4 }
 0x879   : > { %v2857_v63 = vadd.f32 %v12295_v46, %v2856_v16  ;;  %3280 = vmatpush.bf16.msrb.mxu2 %v9928_v20  ;;  %v12140_v20 = vld [vmem:[%s12816_s11 + $0x10] sm:$0xff]  }
 0x87a   : > { %v2876_v57 = vadd.f32 %v12297_v5, %v2875_v17 }
 0x87b   : > { %v2861_v36 = vsel %vm2860_vm15, %v12295_v46, %v2857_v63  ;;  %vm2902_vm15 = vcmp.eq.f32.partialorder %v2901_v7, 8.507059e+37 }
 0x87c   : > { %v2866_v30 = vsel %vm2863_vm9, %v2865_v38, %v2861_v36  ;;  %v2880_v39 = vsel %vm2879_vm10, %v12297_v5, %v2876_v57  ;;  %v11968_v5 = vld [vmem:[%s12816_s11] sm:$0xff]   ;;  %v11982_v36 = vunpack.c.h.bf16 %v14289_v3 }
 0x87d   : > { %v2908_v25 = vmul.f32 %v12299_v29, %v2866_v30  ;;  %v2885_v60 = vsel %vm2882_vm11, %v2884_v37, %v2880_v39  ;;  %v11969_v12 = vunpack.c.l.bf16 %v11968_v5  ;;  %v11970_v56 = vunpack.c.h.bf16 %v11968_v5 }
 0x87e   : > { %v2907_v45 = vmul.f32 %v2885_v60, %v13639_v23  ;;  %v2900_v23 = vsel %vm2899_vm14, %v14233_v21, %v2896_v47  ;;  %v12139_v21 = vld [vmem:[%s12816_s11 + $0x8] sm:$0xff]  }
 0x87f   : > { %v2905_v46 = vsel %vm2902_vm15, %v2904_v34, %v2900_v23  ;;  %v11973_v0 = vunpack.c.l.bf16 %v12139_v21  ;;  %v11974_v5 = vunpack.c.h.bf16 %v12139_v21 }
 0x880   : > { %v14267_v41 = vadd.f32 %v2908_v25, %v2907_v45 }
 0x882   : > { %12300 = vtanh.f32 %v14267_v41 }
 0x888   : > { %v12301_v14 = vpop.eup %12300 }
 0x889   : > { %v2911_v51 = vmul.f32 %v12301_v14, %v2905_v46 }
 0x88b   : > { %9907 = vst [vmem:[%s13653_s23 + $0x8] sm:$0xff] %v2911_v51  ;;  %v2964_v8 = vpack.c.bf16 %v2911_v51, %v2911_v51 }
 0x88d   : > { %3229 = vmatmul.bf16.vlgmr.msra.gmra.mxu2 %v2964_v8  ;;  %3242 = vmatmul.bf16.vlgmr.msra.gmra.mxu3 %v2964_v8 }
 0x88e   : > { %3255 = vmatmul.bf16.vlgmr.msrb.gmra.mxu0 %v2964_v8  ;;  %3268 = vmatmul.bf16.vlgmr.msrb.gmra.mxu1 %v2964_v8 }
 0x89d   : > { %3281 = vmatmul.bf16.vlgmr.msrb.gmra.mxu2 %v2964_v8 }
 0x90b   : > { %v14277_v10 = vpop.f32.mrf.mxu0  ;;  %v14279_v52 = vpop.f32.mrf.mxu1 }
 0x910   : > { %v3230_v44 = vpop.f32.mrf.mxu2  ;;  %v14283_v40 = vpop.f32.mrf.mxu3 }
 0x911   : > { %v3286_v42 = vadd.f32 %v12553_v13, %v3230_v44  ;;  %v11977_v13 = vunpack.c.l.bf16 %v12140_v20 }
 0x913   : > { %v3258_v4 = vpop.f32.mrf.mxu0  ;;  %v3271_v15 = vpop.f32.mrf.mxu1  ;;  %v3310_v53 = vpack.c.bf16 %v3286_v42, %v3286_v42  ;;  %v3297_v16 = vrot.slane %v3286_v42, 2  ;;  %v3296_v61 = vrot.slane %v3286_v42, 1  ;;  %v3302_v17 = vrot.slane %v3286_v42, 7 }
 0x914   : > { %v3298_v55 = vrot.slane %v3286_v42, 3  ;;  %v3299_v63 = vrot.slane %v3286_v42, 4  ;;  %v3300_v48 = vrot.slane %v3286_v42, 5  ;;  %v3301_v34 = vrot.slane %v3286_v42, 6 }
 0x915   : > { %v3319_v38 = vpack.i.b16 %v3310_v53, %v3310_v53  ;;  %v3312_v57 = vpack.c.bf16 %v3297_v16, %v3297_v16  ;;  %v3311_v33 = vpack.c.bf16 %v3296_v61, %v3296_v61  ;;  %v3317_v31 = vpack.c.bf16 %v3302_v17, %v3302_v17 }
 0x916   : > { %v3313_v37 = vpack.c.bf16 %v3298_v55, %v3298_v55  ;;  %v3314_v29 = vpack.c.bf16 %v3299_v63, %v3299_v63  ;;  %v3315_v30 = vpack.c.bf16 %v3300_v48, %v3300_v48  ;;  %v3316_v48 = vpack.c.bf16 %v3301_v34, %v3301_v34 }
 0x917   : > { %v3321_v39 = vperm.slane %v3319_v38, 0  ;;  %v3327_v59 = vpack.i.b16 %v3312_v57, %v3312_v57  ;;  %v3323_v25 = vpack.i.b16 %v3311_v33, %v3311_v33  ;;  %v3347_v60 = vpack.i.b16 %v3317_v31, %v3317_v31 }
 0x918   : > { %v3232_v45 = vpop.f32.mrf.mxu2  ;;  %v3245_v47 = vpop.f32.mrf.mxu3  ;;  %v3331_v49 = vpack.i.b16 %v3313_v37, %v3313_v37  ;;  %v3335_v7 = vpack.i.b16 %v3314_v29, %v3314_v29  ;;  %v3339_v23 = vpack.i.b16 %v3315_v30, %v3315_v30 }
 0x919   : > { %v3358_v14 = vunpack.c.l.bf16 %v3321_v39  ;;  %v3329_v46 = vperm.slane %v3327_v59, 0  ;;  %v3325_v51 = vperm.slane %v3323_v25, 0  ;;  %v3349_v8 = vperm.slane %v3347_v60, 0 }
 0x91a   : > { %v3333_v44 = vperm.slane %v3331_v49, 0  ;;  %v3337_v4 = vperm.slane %v3335_v7, 0  ;;  %v3341_v63 = vperm.slane %v3339_v23, 0  ;;  %v11978_v25 = vunpack.c.h.bf16 %v12140_v20 }
 0x91b   : > { %v3366_v15 = vadd.f32 %v11969_v12, %v3358_v14  ;;  %v3360_v53 = vunpack.c.l.bf16 %v3329_v46  ;;  %v3359_v16 = vunpack.c.l.bf16 %v3325_v51  ;;  %v3365_v61 = vunpack.c.l.bf16 %v3349_v8 }
 0x91c   : > { %v3361_v17 = vunpack.c.l.bf16 %v3333_v44  ;;  %v3362_v55 = vunpack.c.l.bf16 %v3337_v4  ;;  %v3363_v60 = vunpack.c.l.bf16 %v3341_v63  ;;  %v3343_v45 = vpack.i.b16 %v3316_v48, %v3316_v48 }
 0x91d   : > { %v3374_v38 = vpack.c.bf16 %v3366_v15, %v3366_v15  ;;  %v3368_v57 = vadd.f32 %v11973_v0, %v3360_v53  ;;  %v3367_v33 = vadd.f32 %v11970_v56, %v3359_v16  ;;  %v3373_v42 = vadd.f32 %v11982_v36, %v3365_v61 }
 0x91e   : > { %v3369_v31 = vadd.f32 %v11974_v5, %v3361_v17  ;;  %v3370_v37 = vadd.f32 %v11977_v13, %v3362_v55  ;;  %v3371_v36 = vadd.f32 %v11978_v25, %v3363_v60  ;;  %v3345_v34 = vperm.slane %v3343_v45, 0 }
 0x91f   : > { %v3382_v29 = vunpack.c.l.bf16 %v3374_v38  ;;  %v3376_v30 = vpack.c.bf16 %v3368_v57, %v3368_v57  ;;  %v3375_v21 = vpack.c.bf16 %v3367_v33, %v3367_v33  ;;  %v3381_v39 = vpack.c.bf16 %v3373_v42, %v3373_v42 }
 0x920   : > { %v14293_v59 = vpop.f32.mrf.mxu2  ;;  %v3377_v12 = vpack.c.bf16 %v3369_v31, %v3369_v31  ;;  %v3378_v7 = vpack.c.bf16 %v3370_v37, %v3370_v37  ;;  %v3379_v20 = vpack.c.bf16 %v3371_v36, %v3371_v36  ;;  %v11981_v5 = vunpack.c.l.bf16 %v14289_v3 }
 0x921   : > { %12302 = vtanh.f32 %v3382_v29  ;;  %v3384_v47 = vunpack.c.l.bf16 %v3376_v30  ;;  %v3383_v49 = vunpack.c.l.bf16 %v3375_v21  ;;  %v3389_v23 = vunpack.c.l.bf16 %v3381_v39 }
 0x922   : > { %v3385_v0 = vunpack.c.l.bf16 %v3377_v12  ;;  %v3386_v56 = vunpack.c.l.bf16 %v3378_v7  ;;  %v3364_v44 = vunpack.c.l.bf16 %v3345_v34  ;;  %v3387_v57 = vunpack.c.l.bf16 %v3379_v20 }
 0x923   : > { %12304 = vtanh.f32 %v3384_v47 }
 0x924   : > { %12306 = vtanh.f32 %v3383_v49  ;;  %v3372_v33 = vadd.f32 %v11981_v5, %v3364_v44 }
 0x925   : > { %12308 = vtanh.f32 %v3389_v23 }
 0x926   : > { %12310 = vtanh.f32 %v3385_v0  ;;  %v3380_v60 = vpack.c.bf16 %v3372_v33, %v3372_v33 }
 0x927   : > { %v12303_v14 = vpop.eup %12302  ;;  %12312 = vtanh.f32 %v3386_v56 }
 0x928   : > { %v3284_v46 = vpop.f32.mrf.mxu2  ;;  %v3398_v51 = vpack.c.bf16 %v12303_v14, %v12303_v14  ;;  %12314 = vtanh.f32 %v3387_v57  ;;  %v3388_v0 = vunpack.c.l.bf16 %v3380_v60 }
 0x929   : > { %v12305_v8 = vpop.eup %12304 }
 0x92a   : > { %v12307_v13 = vpop.eup %12306  ;;  %v3406_v4 = vunpack.c.l.bf16 %v3398_v51  ;;  %v3400_v15 = vpack.c.bf16 %v12305_v8, %v12305_v8  ;;  %12316 = vtanh.f32 %v3388_v0 }
 0x92b   : > { %v12309_v53 = vpop.eup %12308  ;;  %v3399_v16 = vpack.c.bf16 %v12307_v13, %v12307_v13 }
 0x92c   : > { %v12311_v61 = vpop.eup %12310  ;;  %v3414_v17 = vmul.f32 %v3406_v4, %v12828_v11  ;;  %v3408_v55 = vunpack.c.l.bf16 %v3400_v15  ;;  %v3405_v63 = vpack.c.bf16 %v12309_v53, %v12309_v53 }
 0x92d   : > { %v3407_v48 = vunpack.c.l.bf16 %v3399_v16  ;;  %v3401_v38 = vpack.c.bf16 %v12311_v61, %v12311_v61  ;;  %v12313_v3 = vpop.eup %12312 }
 0x92e   : > { %v3422_v42 = vpack.c.bf16 %v3414_v17, %v3414_v17  ;;  %v3416_v31 = vmul.f32 %v3408_v55, %v12828_v11  ;;  %v3413_v37 = vunpack.c.l.bf16 %v3405_v63  ;;  %v3402_v49 = vpack.c.bf16 %v12313_v3, %v12313_v3  ;;  %v12315_v34 = vpop.eup %12314 }
 0x92f   : > { %v3415_v29 = vmul.f32 %v3407_v48, %v12828_v11  ;;  %v3409_v30 = vunpack.c.l.bf16 %v3401_v38  ;;  %v3403_v8 = vpack.c.bf16 %v12315_v34, %v12315_v34 }
 0x930   : > { %v3430_v21 = vunpack.c.l.bf16 %v3422_v42  ;;  %v3424_v39 = vpack.c.bf16 %v3416_v31, %v3416_v31  ;;  %v3421_v12 = vmul.f32 %v3413_v37, %v12828_v11  ;;  %v3410_v36 = vunpack.c.l.bf16 %v3402_v49  ;;  %v12317_v44 = vpop.eup %12316 }
 0x931   : > { %v3423_v25 = vpack.c.bf16 %v3415_v29, %v3415_v29  ;;  %v3417_v47 = vmul.f32 %v3409_v30, %v12828_v11  ;;  %v3411_v5 = vunpack.c.l.bf16 %v3403_v8  ;;  %v3404_v15 = vpack.c.bf16 %v12317_v44, %v12317_v44 }
 0x932   : > { %3438 = vadd.xlane.f32.xlu2 %v3430_v21  ;;  %v3432_v45 = vunpack.c.l.bf16 %v3424_v39  ;;  %v3429_v23 = vpack.c.bf16 %v3421_v12, %v3421_v12  ;;  %v3418_v51 = vmul.f32 %v3410_v36, %v12828_v11 }
 0x933   : > { %v3431_v7 = vunpack.c.l.bf16 %v3423_v25  ;;  %v3425_v56 = vpack.c.bf16 %v3417_v47, %v3417_v47  ;;  %v3419_v4 = vmul.f32 %v3411_v5, %v12828_v11  ;;  %v3412_v16 = vunpack.c.l.bf16 %v3404_v15 }
 0x934   : > { %3442 = vadd.xlane.f32.xlu0 %v3432_v45  ;;  %v3437_v14 = vunpack.c.l.bf16 %v3429_v23  ;;  %v3426_v20 = vpack.c.bf16 %v3418_v51, %v3418_v51 }
 0x935   : > { %3440 = vadd.xlane.f32.xlu1 %v3431_v7  ;;  %v3433_v46 = vunpack.c.l.bf16 %v3425_v56  ;;  %v3427_v53 = vpack.c.bf16 %v3419_v4, %v3419_v4  ;;  %v3420_v17 = vmul.f32 %v3412_v16, %v12828_v11 }
 0x936   : > { %v3434_v13 = vunpack.c.l.bf16 %v3426_v20 }
 0x937   : > { %v3435_v61 = vunpack.c.l.bf16 %v3427_v53  ;;  %v3428_v55 = vpack.c.bf16 %v3420_v17, %v3420_v17 }
 0x939   : > { %v3436_v63 = vunpack.c.l.bf16 %v3428_v55 }
 0x93a   : > { %3452 = vadd.xlane.f32.xlu2 %v3437_v14 }
 0x93c   : > { %3444 = vadd.xlane.f32.xlu0 %v3433_v46 }
 0x944   : > { %3446 = vadd.xlane.f32.xlu0 %v3434_v13 }
 0x94c   : > { %3448 = vadd.xlane.f32.xlu0 %v3435_v61 }
 0x954   : > { %3450 = vadd.xlane.f32.xlu0 %v3436_v63 }
 0x9a5   : > { %v3439_v33 = vpop.xlane.xlu2 %3438 }
 0x9a6   : > { %v3462_v3 = vperm.slane %v3439_v33, %v12838_v6 }
 0x9a7   : > { %v3443_v48 = vpop.xlane.xlu0 %3442 }
 0x9a8   : > { %v3441_v42 = vpop.xlane.xlu1 %3440  ;;  %v3464_v29 = vperm.slane %v3443_v48, %v12838_v6 }
 0x9a9   : > { %v3463_v31 = vperm.slane %v3441_v42, %v12838_v6 }
 0x9ab   : > { %v3470_v30 = vsel %vm1033_vm0, %v3463_v31, %v3462_v3 }
 0x9ac   : > { %v3471_v60 = vsel %vm1035_vm1, %v3464_v29, %v3470_v30 }
 0x9ad   : > { %v3453_v25 = vpop.xlane.xlu2 %3452 }
 0x9ae   : > { %v3469_v23 = vperm.slane %v3453_v25, %v12838_v6 }
 0x9af   : > { %v3445_v38 = vpop.xlane.xlu0 %3444 }
 0x9b0   : > { %v3465_v21 = vperm.slane %v3445_v38, %v12838_v6 }
 0x9b2   : > { %v3472_v45 = vsel %vm1037_vm2, %v3465_v21, %v3471_v60 }
 0x9b7   : > { %v3447_v57 = vpop.xlane.xlu0 %3446 }
 0x9b8   : > { %v3466_v39 = vperm.slane %v3447_v57, %v12838_v6 }
 0x9ba   : > { %v3473_v49 = vsel %vm1039_vm3, %v3466_v39, %v3472_v45 }
 0x9bf   : > { %v3449_v37 = vpop.xlane.xlu0 %3448 }
 0x9c0   : > { %v3467_v12 = vperm.slane %v3449_v37, %v12838_v6 }
 0x9c2   : > { %v3474_v0 = vsel %vm1041_vm4, %v3467_v12, %v3473_v49 }
 0x9c7   : > { %v3451_v47 = vpop.xlane.xlu0 %3450 }
 0x9c8   : > { %v3468_v7 = vperm.slane %v3451_v47, %v12838_v6 }
 0x9ca   : > { %v3475_v56 = vsel %vm1043_vm5, %v3468_v7, %v3474_v0 }
 0x9cb   : > { %v3476_v36 = vsel %vm1045_vm6, %v3469_v23, %v3475_v56 }
 0x9cc   : > { %v3478_v34 = vsel %vm1048_vm7, %v3476_v36, -inf }
 0x9cd   : > { %3479 = vmax.xlane.f32.xlu1 %v3478_v34 }
 0xa40   : > { %v3480_v14 = vpop.xlane.xlu1 %3479 }
 0xa41   : > { %v3484_v46 = vperm.slane %v3480_v14, 2  ;;  %v3483_v51 = vperm.slane %v3480_v14, 1  ;;  %v3482_v8 = vperm.slane %v3480_v14, 0  ;;  %v3488_v13 = vperm.slane %v3480_v14, 6 }
 0xa42   : > { %v3486_v4 = vperm.slane %v3480_v14, 4  ;;  %v3485_v15 = vperm.slane %v3480_v14, 3  ;;  %v3489_v29 = vperm.slane %v3480_v14, 7 }
 0xa43   : > { %v3500_v20 = vsub.f32 %v3443_v48, %v3484_v46  ;;  %v3499_v5 = vsub.f32 %v3441_v42, %v3483_v51  ;;  %v3498_v44 = vsub.f32 %v3439_v33, %v3482_v8  ;;  %v3504_v17 = vsub.f32 %v3451_v47, %v3488_v13 }
 0xa44   : > { %v3502_v55 = vsub.f32 %v3447_v57, %v3486_v4  ;;  %v3501_v63 = vsub.f32 %v3445_v38, %v3485_v15  ;;  %v3487_v42 = vperm.slane %v3480_v14, 5  ;;  %v3505_v39 = vsub.f32 %v3453_v25, %v3489_v29 }
 0xa45   : > { %v3510_v53 = vmul.f32 1.442695, %v3500_v20  ;;  %v3508_v16 = vmul.f32 1.442695, %v3499_v5  ;;  %v3506_v61 = vmul.f32 1.442695, %v3498_v44 }
 0xa46   : > { %v3518_v31 = vmul.f32 1.442695, %v3504_v17  ;;  %v3514_v3 = vmul.f32 1.442695, %v3502_v55  ;;  %v3512_v48 = vmul.f32 1.442695, %v3501_v63  ;;  %v3503_v57 = vsub.f32 %v3449_v37, %v3487_v42 }
 0xa47   : > { %12318 = vpow2.f32 %v3510_v53  ;;  %v3520_v12 = vmul.f32 1.442695, %v3505_v39 }
 0xa48   : > { %12320 = vpow2.f32 %v3508_v16  ;;  %v3516_v60 = vmul.f32 1.442695, %v3503_v57 }
 0xa49   : > { %12322 = vpow2.f32 %v3506_v61 }
 0xa4a   : > { %12324 = vpow2.f32 %v3518_v31 }
 0xa4b   : > { %12326 = vpow2.f32 %v3514_v3 }
 0xa4c   : > { %12328 = vpow2.f32 %v3512_v48 }
 0xa4d   : > { %v14320_v30 = vpop.eup %12318  ;;  %12330 = vpow2.f32 %v3520_v12 }
 0xa4e   : > { %v12321_v33 = vpop.eup %12320  ;;  %3537 = vperm.xlu1 %12199, %v14320_v30   ;;  %12332 = vpow2.f32 %v3516_v60 }
 0xa4f   : > { %v12323_v21 = vpop.eup %12322  ;;  %3534 = vperm.xlu2 %12200, %v12321_v33  }
 0xa50   : > { %3531 = vperm.xlu0 %12198, %v12323_v21   ;;  %v14323_v38 = vpop.eup %12324 }
 0xa51   : > { %v12327_v45 = vpop.eup %12326 }
 0xa52   : > { %v12329_v47 = vpop.eup %12328 }
 0xa53   : > { %v12331_v49 = vpop.eup %12330 }
 0xa54   : > { %v12333_v7 = vpop.eup %12332 }
 0xa56   : > { %3549 = vperm.xlu1 %12199, %v14323_v38  }
 0xa57   : > { %3543 = vperm.xlu2 %12200, %v12327_v45  }
 0xa58   : > { %3540 = vperm.xlu0 %12198, %v12329_v47  }
 0xa5f   : > { %3552 = vperm.xlu2 %12200, %v12331_v49  }
 0xa60   : > { %3546 = vperm.xlu0 %12198, %v12333_v7  }
 0xaa9   : > { %v3535_v23 = vpop.permute.xlu2 %3534 }
 0xaaa   : > { %v3555_v34 = vperm.slane %v3535_v23, %v12838_v6 }
 0xab1   : > { %v3544_v37 = vpop.permute.xlu2 %3543 }
 0xab2   : > { %v3558_v44 = vperm.slane %v3544_v37, %v12838_v6 }
 0xab9   : > { %v3553_v13 = vpop.permute.xlu2 %3552 }
 0xaba   : > { %v3561_v61 = vperm.slane %v3553_v13, %v12838_v6 }
 0xac0   : > { %v3538_v0 = vpop.permute.xlu1 %3537 }
 0xac1   : > { %v3556_v14 = vperm.slane %v3538_v0, %v12838_v6 }
 0xac2   : > { %v3532_v25 = vpop.permute.xlu0 %3531 }
 0xac3   : > { %v3554_v56 = vperm.slane %v3532_v25, %v12838_v6 }
 0xac5   : > { %v3562_v46 = vsel %vm1033_vm0, %v3555_v34, %v3554_v56 }
 0xac6   : > { %v3563_v8 = vsel %vm1035_vm1, %v3556_v14, %v3562_v46 }
 0xac8   : > { %v3550_v20 = vpop.permute.xlu1 %3549 }
 0xac9   : > { %v3560_v53 = vperm.slane %v3550_v20, %v12838_v6 }
 0xaca   : > { %v3541_v36 = vpop.permute.xlu0 %3540 }
 0xacb   : > { %v3557_v51 = vperm.slane %v3541_v36, %v12838_v6 }
 0xacd   : > { %v3564_v5 = vsel %vm1037_vm2, %v3557_v51, %v3563_v8 }
 0xace   : > { %v3565_v16 = vsel %vm1039_vm3, %v3558_v44, %v3564_v5 }
 0xad2   : > { %v3547_v4 = vpop.permute.xlu0 %3546 }
 0xad3   : > { %v3559_v15 = vperm.slane %v3547_v4, %v12838_v6  ;;  %v14378_v4 = vld [vmem:[%s13101_s22] sm:$0xff]  }
 0xad5   : > { %v3566_v17 = vsel %vm1041_vm4, %v3559_v15, %v3565_v16  ;;  %v11613_v15 = vld [vmem:[%s17320_s6 + $0xec] sm:$0xf0]  ;;  %v11986_v16 = vunpack.c.h.bf16 %v14378_v4 }
 0xad6   : > { %v3567_v55 = vsel %vm1043_vm5, %v3560_v53, %v3566_v17  ;;  %v11611_v53 = vld [vmem:[%s17320_s6 + $0xe4] sm:$0xf]  ;;  %v14391_v17 = vld [vmem:[%s13101_s22 + $0x8] sm:$0xff]  }
 0xad7   : > { %v3568_v63 = vsel %vm1045_vm6, %v3561_v61, %v3567_v55 }
 0xad8   : > { %v3570_v31 = vsel %vm1048_vm7, %v3568_v63, 0.0 }
 0xad9   : > { %3571 = vadd.xlane.f32.xlu0 %v3570_v31  ;;  %v10189_v31 = vld [vmem:[%s17320_s6 + $0xf0] sm:$0xf0] }
 0xb4c   : > { %v3572_v3 = vpop.xlane.xlu0 %3571 }
 0xb4d   : > { %12334 = vrcp.f32 %v3572_v3  ;;  %v10195_v3 = vld [vmem:[%s17320_s6 + $0xe8] sm:$0xf] }
 0xb53   : > { %v12335_v29 = vpop.eup %12334 }
 0xb54   : > { %v3576_v48 = vperm.slane %v12335_v29, 1  ;;  %v3575_v42 = vperm.slane %v12335_v29, 0  ;;  %v3578_v23 = vperm.slane %v12335_v29, 3  ;;  %v3577_v25 = vperm.slane %v12335_v29, 2 }
 0xb55   : > { %v3580_v56 = vperm.slane %v12335_v29, 5  ;;  %v3579_v36 = vperm.slane %v12335_v29, 4  ;;  %v3582_v46 = vperm.slane %v12335_v29, 7  ;;  %v3581_v51 = vperm.slane %v12335_v29, 6 }
 0xb56   : > { %v14342_v39 = vmul.f32 %v12321_v33, %v3576_v48  ;;  %v14344_v57 = vmul.f32 %v12323_v21, %v3575_v42  ;;  %v14350_v0 = vmul.f32 %v12329_v47, %v3578_v23  ;;  %v14353_v37 = vmul.f32 %v14320_v30, %v3577_v25  ;;  %v11614_v48 = vld [vmem:[%s17320_s6 + $0xf4] sm:$0xf0]  ;;  %v11612_v42 = vld [vmem:[%s17320_s6 + $0xec] sm:$0xf] }
 0xb57   : > { %v14359_v34 = vmul.f32 %v12333_v7, %v3580_v56  ;;  %v14361_v14 = vmul.f32 %v12327_v45, %v3579_v36  ;;  %v14367_v8 = vmul.f32 %v12331_v49, %v3582_v46  ;;  %v14370_v20 = vmul.f32 %v14323_v38, %v3581_v51  ;;  %v10187_v38 = vld [vmem:[%s17320_s6 + $0xe0] sm:$0xf]  ;;  %v11609_v56 = vld [vmem:[%s17320_s6 + $0xcc] sm:$0xf0]  ;;  %v11607_v36 = vld [vmem:[%s17320_s6 + $0xc4] sm:$0xf] }
 0xb58   : > { %v3600_v12 = vpack.c.bf16 %v14342_v39, %v14342_v39  ;;  %v3599_v60 = vpack.c.bf16 %v14344_v57, %v14344_v57  ;;  %v3602_v33 = vpack.c.bf16 %v14350_v0, %v14350_v0  ;;  %v3601_v21 = vpack.c.bf16 %v14353_v37, %v14353_v37 }
 0xb59   : > { %17364 = vst [vmem:[#allocation6_spill] sm:$0xff] %v14359_v34  ;;  %v3604_v47 = vpack.c.bf16 %v14359_v34, %v14359_v34  ;;  %v3603_v30 = vpack.c.bf16 %v14361_v14, %v14361_v14  ;;  %v3606_v45 = vpack.c.bf16 %v14367_v8, %v14367_v8  ;;  %v3605_v7 = vpack.c.bf16 %v14370_v20, %v14370_v20 }
 0xb5a   : > { %3626 = vperm.xlu2 %12200, %v3600_v12   ;;  %3617 = vperm.xlu1 %12199, %v3599_v60   ;;  %17365 = vst [vmem:[#allocation7_spill] sm:$0xff] %v14361_v14  ;;  %v10188_v63 = vor.u32 %v11613_v15, %v10187_v38  ;;  %v10192_v29 = vor.u32 %v11611_v53, %v10189_v31  ;;  %v10197_v12 = vld [vmem:[%s17320_s6 + $0xf8] sm:$0xf0]  ;;  %v14410_v60 = vld [vmem:[%s13101_s22 + $0x10] sm:$0xff]   ;;  %v11990_v25 = vunpack.c.h.bf16 %v14391_v17  ;;  %v11610_v38 = vld [vmem:[%s17320_s6 + $0xd4] sm:$0xf0] }
 0xb5b   : > { %17366 = vst [vmem:[#allocation8_spill] sm:$0xff] %v14367_v8  ;;  %v10196_v23 = vor.u32 %v11614_v48, %v10195_v3  ;;  %v10181_v15 = vld [vmem:[%s17320_s6 + $0xd8] sm:$0xf0]  ;;  %v11994_v53 = vunpack.c.h.bf16 %v14410_v60  ;;  %v11605_v48 = vld [vmem:[%s17320_s6 + $0xac] sm:$0xf0] }
 0xb5c   : > { %17367 = vst [vmem:[#allocation9_spill] sm:$0xff] %v14370_v20  ;;  %4009 = vmatpush.bf16.msrb.mxu3 %v10188_v63  ;;  %4022 = vmatpush.bf16.msra.mxu0 %v10192_v29  ;;  %v10155_v29 = vld [vmem:[%s17320_s6 + $0xa0] sm:$0xf] }
 0xb5d   : > { %4035 = vmatpush.bf16.msra.mxu1 %v10196_v23 }
 0xb62   : > { %3644 = vperm.xlu2 %12200, %v3602_v33   ;;  %3635 = vperm.xlu1 %12199, %v3601_v21   ;;  %v10200_v33 = vor.u32 %v11612_v42, %v10197_v12  ;;  %v10171_v21 = vld [vmem:[%s17320_s6 + $0xc0] sm:$0xf]  ;;  %v11603_v42 = vld [vmem:[%s17320_s6 + $0xa4] sm:$0xf] }
 0xb63   : > { %v10172_v51 = vor.u32 %v11609_v56, %v10171_v21  ;;  %v10157_v21 = vld [vmem:[%s17320_s6 + $0xb0] sm:$0xf0]  ;;  %v10163_v56 = vld [vmem:[%s17320_s6 + $0xa8] sm:$0xf] }
 0xb64   : > { %4048 = vmatpush.bf16.msra.mxu2 %v10200_v33  ;;  %v10156_v33 = vor.u32 %v11605_v48, %v10155_v29 }
 0xb65   : > { %4010 = vmatpush.bf16.msrb.mxu3 %v10172_v51 }
 0xb69   : > { %4011 = vmatpush.bf16.msrb.mxu3 %v10156_v33 }
 0xb6a   : > { %3662 = vperm.xlu2 %12200, %v3604_v47   ;;  %3653 = vperm.xlu1 %12199, %v3603_v30  }
 0xb72   : > { %3680 = vperm.xlu2 %12200, %v3606_v45   ;;  %3671 = vperm.xlu1 %12199, %v3605_v7   ;;  %v10173_v45 = vld [vmem:[%s17320_s6 + $0xd0] sm:$0xf0]  ;;  %v10179_v7 = vld [vmem:[%s17320_s6 + $0xc8] sm:$0xf] }
 0xb73   : > { %v10180_v31 = vor.u32 %v11610_v38, %v10179_v7  ;;  %v10160_v7 = vor.u32 %v11603_v42, %v10157_v21  ;;  %v11601_v38 = vld [vmem:[%s17320_s6 + $0x8c] sm:$0xf0] }
 0xb75   : > { %4036 = vmatpush.bf16.msra.mxu1 %v10180_v31 }
 0xbb4   : > { %v3627_v5 = vpop.permute.xlu2 %3626 }
 0xbb5   : > { %v3632_v13 = vperm.slane %v3627_v5, %v13131_v32 }
 0xbb7   : > { %v3688_v61 = vunpack.c.l.bf16 %v3632_v13  ;;  %v10176_v13 = vor.u32 %v11607_v36, %v10173_v45 }
 0xbb9   : > { %v3704_v47 = vmul.f32 %v11986_v16, %v3688_v61  ;;  %v14440_v16 = vld [vmem:[%s13101_s22 + $0x18] sm:$0xff]   ;;  %4023 = vmatpush.bf16.msra.mxu0 %v10176_v13  ;;  %v10139_v13 = vld [vmem:[%s17320_s6 + $0x80] sm:$0xf] }
 0xbba   : > { %v11998_v36 = vunpack.c.h.bf16 %v14440_v16  ;;  %v10140_v31 = vor.u32 %v11601_v38, %v10139_v13 }
 0xbbb   : > { %v3712_v12 = vpack.c.bf16 %v3704_v47, %v3704_v47  ;;  %v11604_v47 = vld [vmem:[%s17320_s6 + $0xac] sm:$0xf] }
 0xbbc   : > { %v3645_v44 = vpop.permute.xlu2 %3644  ;;  %4012 = vmatpush.bf16.msrb.mxu3 %v10140_v31 }
 0xbbd   : > { %v3650_v55 = vperm.slane %v3645_v44, %v13131_v32  ;;  %4024 = vmatpush.bf16.msra.mxu0 %v10160_v7  ;;  %v11597_v7 = vld [vmem:[%s17320_s6 + $0x6c] sm:$0xf0] }
 0xbbf   : > { %v3690_v30 = vunpack.c.l.bf16 %v3650_v55  ;;  %v11985_v55 = vunpack.c.l.bf16 %v14378_v4 }
 0xbc1   : > { %v3706_v23 = vmul.f32 %v11990_v25, %v3690_v30  ;;  %v11606_v25 = vld [vmem:[%s17320_s6 + $0xb4] sm:$0xf0]  ;;  %v10165_v30 = vld [vmem:[%s17320_s6 + $0xb8] sm:$0xf0] }
 0xbc4   : > { %v3663_v49 = vpop.permute.xlu2 %3662 }
 0xbc5   : > { %v3668_v46 = vperm.slane %v3663_v49, %v13131_v32  ;;  %v11608_v49 = vld [vmem:[%s17320_s6 + $0xcc] sm:$0xf] }
 0xbc6   : > { %v10184_v3 = vor.u32 %v11608_v49, %v10181_v15  ;;  %v11599_v49 = vld [vmem:[%s17320_s6 + $0x84] sm:$0xf]  ;;  %v3720_v15 = vunpack.c.l.bf16 %v3712_v12  ;;  %v11602_v12 = vld [vmem:[%s17320_s6 + $0x94] sm:$0xf0] }
 0xbc7   : > { %v3692_v4 = vunpack.c.l.bf16 %v3668_v46  ;;  %v10164_v46 = vor.u32 %v11606_v25, %v10163_v56  ;;  %v11595_v25 = vld [vmem:[%s17320_s6 + $0x64] sm:$0xf] }
 0xbc8   : > { %4049 = vmatpush.bf16.msra.mxu2 %v10184_v3  ;;  %v10147_v3 = vld [vmem:[%s17320_s6 + $0x88] sm:$0xf] }
 0xbc9   : > { %4037 = vmatpush.bf16.msra.mxu1 %v10164_v46 }
 0xbcc   : > { %v3681_v5 = vpop.permute.xlu2 %3680  ;;  %v3618_v44 = vpop.permute.xlu1 %3617 }
 0xbcd   : > { %v3686_v61 = vperm.slane %v3681_v5, %v13131_v32  ;;  %v3623_v63 = vperm.slane %v3618_v44, %v13131_v32  ;;  %v10168_v44 = vor.u32 %v11604_v47, %v10165_v30 }
 0xbcf   : > { %v3694_v51 = vunpack.c.l.bf16 %v3686_v61  ;;  %v3687_v45 = vunpack.c.l.bf16 %v3623_v63  ;;  %v3714_v61 = vpack.c.bf16 %v3706_v23, %v3706_v23  ;;  %v3708_v63 = vmul.f32 %v11994_v53, %v3692_v4  ;;  %4050 = vmatpush.bf16.msra.mxu2 %v10168_v44  ;;  %v11600_v53 = vld [vmem:[%s17320_s6 + $0x8c] sm:$0xf]  ;;  %v10149_v23 = vld [vmem:[%s17320_s6 + $0x98] sm:$0xf0]  ;;  %v10131_v44 = vld [vmem:[%s17320_s6 + $0x68] sm:$0xf] }
 0xbd0   : > { %v11989_v4 = vunpack.c.l.bf16 %v14391_v17  ;;  %v3733_v17 = vrot.slane %v3720_v15, 4 }
 0xbd1   : > { %v3703_v5 = vmul.f32 %v11985_v55, %v3687_v45  ;;  %v10141_v55 = vld [vmem:[%s17320_s6 + $0x90] sm:$0xf0]  ;;  %v3710_v29 = vmul.f32 %v11998_v36, %v3694_v51  ;;  %v10148_v36 = vor.u32 %v11602_v12, %v10147_v3  ;;  %v10152_v51 = vor.u32 %v11600_v53, %v10149_v23  ;;  %v10123_v45 = vld [vmem:[%s17320_s6 + $0x60] sm:$0xf]  ;;  %v11593_v12 = vld [vmem:[%s17320_s6 + $0x4c] sm:$0xf0] }
 0xbd2   : > { %v10144_v33 = vor.u32 %v11599_v49, %v10141_v55  ;;  %v3722_v47 = vunpack.c.l.bf16 %v3714_v61  ;;  %v10124_v46 = vor.u32 %v11597_v7, %v10123_v45  ;;  %v3716_v13 = vpack.c.bf16 %v3708_v63, %v3708_v63  ;;  %v11598_v61 = vld [vmem:[%s17320_s6 + $0x74] sm:$0xf0]  ;;  %v11596_v55 = vld [vmem:[%s17320_s6 + $0x6c] sm:$0xf]  ;;  %v10133_v63 = vld [vmem:[%s17320_s6 + $0x78] sm:$0xf0] }
 0xbd3   : > { %v3711_v48 = vpack.c.bf16 %v3703_v5, %v3703_v5  ;;  %v10125_v5 = vld [vmem:[%s17320_s6 + $0x70] sm:$0xf0]  ;;  %v3718_v38 = vpack.c.bf16 %v3710_v29, %v3710_v29  ;;  %4038 = vmatpush.bf16.msra.mxu1 %v10148_v36  ;;  %4051 = vmatpush.bf16.msra.mxu2 %v10152_v51  ;;  %v11591_v53 = vld [vmem:[%s17320_s6 + $0x44] sm:$0xf]  ;;  %v3734_v23 = vadd.f32 %v3733_v17, %v3720_v15  ;;  %v10115_v51 = vld [vmem:[%s17320_s6 + $0x48] sm:$0xf] }
 0xbd4   : > { %v3636_v42 = vpop.permute.xlu1 %3635  ;;  %4025 = vmatpush.bf16.msra.mxu0 %v10144_v33  ;;  %v10128_v31 = vor.u32 %v11595_v25, %v10125_v5  ;;  %4013 = vmatpush.bf16.msrb.mxu3 %v10124_v46  ;;  %v10107_v33 = vld [vmem:[%s17320_s6 + $0x40] sm:$0xf]  ;;  %v3724_v45 = vunpack.c.l.bf16 %v3716_v13  ;;  %v11594_v15 = vld [vmem:[%s17320_s6 + $0x54] sm:$0xf0]  ;;  %v11592_v17 = vld [vmem:[%s17320_s6 + $0x4c] sm:$0xf] }
 0xbd5   : > { %v3641_v21 = vperm.slane %v3636_v42, %v13131_v32  ;;  %v3719_v56 = vunpack.c.l.bf16 %v3711_v48  ;;  %v10132_v48 = vor.u32 %v11598_v61, %v10131_v44  ;;  %v10136_v42 = vor.u32 %v11596_v55, %v10133_v63  ;;  %v10099_v63 = vld [vmem:[%s17320_s6 + $0x28] sm:$0xf] }
 0xbd6   : > { %v10108_v36 = vor.u32 %v11593_v12, %v10107_v33  ;;  %v14535_v7 = vunpack.c.l.bf16 %v3718_v38  ;;  %v11993_v44 = vunpack.c.l.bf16 %v14410_v60  ;;  %v10117_v38 = vld [vmem:[%s17320_s6 + $0x58] sm:$0xf0]  ;;  %v10116_v61 = vor.u32 %v11594_v15, %v10115_v51  ;;  %v11587_v60 = vld [vmem:[%s17320_s6 + $0x24] sm:$0xf] }
 0xbd7   : > { %v3689_v30 = vunpack.c.l.bf16 %v3641_v21  ;;  %v3727_v49 = vrot.slane %v3719_v56, 4  ;;  %4039 = vmatpush.bf16.msra.mxu1 %v10132_v48  ;;  %4052 = vmatpush.bf16.msra.mxu2 %v10136_v42  ;;  %v10120_v55 = vor.u32 %v11592_v17, %v10117_v38  ;;  %v10093_v48 = vld [vmem:[%s17320_s6 + $0x30] sm:$0xf0]  ;;  %v3735_v42 = vrot.slane %v3734_v23, 2  ;;  %v10101_v15 = vld [vmem:[%s17320_s6 + $0x38] sm:$0xf0] }
 0xbd8   : > { %4026 = vmatpush.bf16.msra.mxu0 %v10128_v31  ;;  %4014 = vmatpush.bf16.msrb.mxu3 %v10108_v36  ;;  %v11589_v31 = vld [vmem:[%s17320_s6 + $0x2c] sm:$0xf0]  ;;  %v11588_v36 = vld [vmem:[%s17320_s6 + $0x2c] sm:$0xf]  ;;  %v3757_v51 = vrot.slane %v3724_v45, 4 }
 0xbd9   : > { %v3705_v3 = vmul.f32 %v11989_v4, %v3689_v30  ;;  %v3728_v29 = vadd.f32 %v3727_v49, %v3719_v56  ;;  %v3745_v4 = vrot.slane %v3722_v47, 4  ;;  %v10109_v56 = vld [vmem:[%s17320_s6 + $0x50] sm:$0xf0]  ;;  %v10091_v49 = vld [vmem:[%s17320_s6 + $0x20] sm:$0xf] }
 0xbda   : > { %v10112_v46 = vor.u32 %v11591_v53, %v10109_v56  ;;  %v10096_v53 = vor.u32 %v11587_v60, %v10093_v48  ;;  %v10075_v17 = vld [vmem:[%s17320_s6] sm:$0xf]  ;;  %v3736_v48 = vadd.f32 %v3735_v42, %v3734_v23 }
 0xbdb   : > { %v3713_v21 = vpack.c.bf16 %v3705_v3, %v3705_v3  ;;  %v3729_v25 = vrot.slane %v3728_v29, 2  ;;  %v10092_v3 = vor.u32 %v11589_v31, %v10091_v49  ;;  %v3746_v56 = vadd.f32 %v3745_v4, %v3722_v47  ;;  %4040 = vmatpush.bf16.msra.mxu1 %v10116_v61  ;;  %4053 = vmatpush.bf16.msra.mxu2 %v10120_v55  ;;  %v11585_v47 = vld [vmem:[%s17320_s6 + $0xc] sm:$0xf0]  ;;  %v11583_v4 = vld [vmem:[%s17320_s6 + $0x4] sm:$0xf] }
 0xbdc   : > { %v3654_v30 = vpop.permute.xlu1 %3653  ;;  %4027 = vmatpush.bf16.msra.mxu0 %v10112_v46  ;;  %v10104_v49 = vor.u32 %v11588_v36, %v10101_v15  ;;  %v10077_v31 = vld [vmem:[%s17320_s6 + $0x10] sm:$0xf0]  ;;  %v10076_v55 = vor.u32 %v11585_v47, %v10075_v17  ;;  %v11997_v47 = vunpack.c.l.bf16 %v14440_v16 }
 0xbdd   : > { %v3721_v5 = vunpack.c.l.bf16 %v3713_v21  ;;  %v3659_v13 = vperm.slane %v3654_v30, %v13131_v32  ;;  %v11590_v21 = vld [vmem:[%s17320_s6 + $0x34] sm:$0xf0]  ;;  %v3769_v30 = vrot.slane %v14535_v7, 4  ;;  %4015 = vmatpush.bf16.msrb.mxu3 %v10092_v3  ;;  %v3730_v61 = vadd.f32 %v3729_v25, %v3728_v29  ;;  %v11584_v3 = vld [vmem:[%s17320_s6 + $0xc] sm:$0xf] }
 0xbde   : > { %v10100_v46 = vor.u32 %v11590_v21, %v10099_v63  ;;  %v10080_v60 = vor.u32 %v11583_v4, %v10077_v31  ;;  %v10085_v29 = vld [vmem:[%s17320_s6 + $0x18] sm:$0xf0]  ;;  %v3747_v25 = vrot.slane %v3746_v56, 2 }
 0xbdf   : > { %v3739_v33 = vrot.slane %v3721_v5, 4  ;;  %v3691_v12 = vunpack.c.l.bf16 %v3659_v13  ;;  %4054 = vmatpush.bf16.msra.mxu2 %v10104_v49  ;;  %v10088_v36 = vor.u32 %v11584_v3, %v10085_v29  ;;  %v3770_v23 = vadd.f32 %v3769_v30, %v14535_v7 }
 0xbe0   : > { %4028 = vmatpush.bf16.msra.mxu0 %v10096_v53  ;;  %4041 = vmatpush.bf16.msra.mxu1 %v10100_v46  ;;  %v3731_v42 = vrot.slane %v3730_v61, 1 }
 0xbe1   : > { %v3740_v13 = vadd.f32 %v3739_v33, %v3721_v5  ;;  %v3707_v38 = vmul.f32 %v11993_v44, %v3691_v12  ;;  %v10083_v5 = vld [vmem:[%s17320_s6 + $0x8] sm:$0xf]  ;;  %v11586_v44 = vld [vmem:[%s17320_s6 + $0x14] sm:$0xf0]  ;;  %v3758_v12 = vadd.f32 %v3757_v51, %v3724_v45  ;;  %4016 = vmatpush.bf16.msrb.mxu3 %v10076_v55  ;;  %v3737_v45 = vrot.slane %v3736_v48, 1 }
 0xbe2   : > { %v10084_v21 = vor.u32 %v11586_v44, %v10083_v5  ;;  %v3748_v51 = vadd.f32 %v3747_v25, %v3746_v56  ;;  %v3771_v5 = vrot.slane %v3770_v23, 2  ;;  %v3732_v44 = vadd.f32 %v3731_v42, %v3730_v61 }
 0xbe3   : > { %v3741_v63 = vrot.slane %v3740_v13, 2  ;;  %v3715_v33 = vpack.c.bf16 %v3707_v38, %v3707_v38  ;;  %v3759_v46 = vrot.slane %v3758_v12, 2  ;;  %4055 = vmatpush.bf16.msra.mxu2 %v10088_v36  ;;  %v3738_v55 = vadd.f32 %v3737_v45, %v3736_v48 }
 0xbe4   : > { %v3672_v53 = vpop.permute.xlu1 %3671  ;;  %4029 = vmatpush.bf16.msra.mxu0 %v10080_v60  ;;  %4042 = vmatpush.bf16.msra.mxu1 %v10084_v21  ;;  %v3772_v29 = vadd.f32 %v3771_v5, %v3770_v23 }
 0xbe5   : > { %v3742_v15 = vadd.f32 %v3741_v63, %v3740_v13  ;;  %v3723_v17 = vunpack.c.l.bf16 %v3715_v33  ;;  %v3677_v4 = vperm.slane %v3672_v53, %v13131_v32  ;;  %v3749_v33 = vrot.slane %v3748_v51, 1 }
 0xbe6   : > { %v3760_v7 = vadd.f32 %v3759_v46, %v3758_v12  ;;  %v3784_v53 = vpack.c.bf16 %v3732_v44, %v3732_v44  ;;  %v3785_v25 = vpack.c.bf16 %v3738_v55, %v3738_v55 }
 0xbe7   : > { %v3743_v38 = vrot.slane %v3742_v15, 1  ;;  %v3751_v31 = vrot.slane %v3723_v17, 4  ;;  %v3693_v8 = vunpack.c.l.bf16 %v3677_v4  ;;  %v3750_v21 = vadd.f32 %v3749_v33, %v3748_v51 }
 0xbe8   : > { %v3761_v36 = vrot.slane %v3760_v7, 1  ;;  %v3832_v61 = vunpack.c.l.b16 %v3784_v53  ;;  %v3833_v48 = vunpack.c.l.b16 %v3785_v25  ;;  %v11652_v25 = vld [vmem:[%s17317_s3 + $0x128] sm:$0xf0] }
 0xbe9   : > { %v3752_v49 = vadd.f32 %v3751_v31, %v3723_v17  ;;  %v3709_v13 = vmul.f32 %v11997_v47, %v3693_v8  ;;  %v3744_v16 = vadd.f32 %v3743_v38, %v3742_v15  ;;  %v3773_v47 = vrot.slane %v3772_v29, 1 }
 0xbea   : > { %v3787_v31 = vpack.c.bf16 %v3750_v21, %v3750_v21  ;;  %v3762_v12 = vadd.f32 %v3761_v36, %v3760_v7  ;;  %v3840_v23 = vsel %vm1033_vm0, %v3833_v48, %v3832_v61  ;;  %v10328_v36 = vld [vmem:[%s17317_s3 + $0xf0] sm:$0xf]  ;;  %v11642_v61 = vld [vmem:[%s17317_s3 + $0xd8] sm:$0xf0] }
 0xbeb   : > { %v3753_v3 = vrot.slane %v3752_v49, 2  ;;  %v3717_v63 = vpack.c.bf16 %v3709_v13, %v3709_v13  ;;  %v3786_v4 = vpack.c.bf16 %v3744_v16, %v3744_v16  ;;  %v3774_v46 = vadd.f32 %v3773_v47, %v3772_v29  ;;  %v10308_v47 = vld [vmem:[%s17317_s3 + $0xc8] sm:$0xf] }
 0xbec   : > { %v3835_v51 = vunpack.c.l.b16 %v3787_v31  ;;  %v3789_v44 = vpack.c.bf16 %v3762_v12, %v3762_v12  ;;  %v11650_v31 = vld [vmem:[%s17317_s3 + $0x11c] sm:$0xf]  ;;  %v10350_v12 = vld [vmem:[%s17317_s3 + $0x12c] sm:$0xf0] }
 0xbed   : > { %v3754_v30 = vadd.f32 %v3753_v3, %v3752_v49  ;;  %v3725_v60 = vunpack.c.l.bf16 %v3717_v63  ;;  %v3834_v15 = vunpack.c.l.b16 %v3786_v4  ;;  %v3791_v16 = vpack.c.bf16 %v3774_v46, %v3774_v46 }
 0xbee   : > { %v3837_v33 = vunpack.c.l.b16 %v3789_v44  ;;  %v10353_v46 = vor.u32 %v11650_v31, %v10350_v12  ;;  %v10070_v44 = vld [vmem:[%s13397_s29 + $0x48] sm:$0xff] }
 0xbef   : > { %v3755_v34 = vrot.slane %v3754_v30, 1  ;;  %v3763_v56 = vrot.slane %v3725_v60, 4  ;;  %v3841_v49 = vsel %vm1035_vm1, %v3834_v15, %v3840_v23  ;;  %v3839_v7 = vunpack.c.l.b16 %v3791_v16  ;;  %v11653_v23 = vld [vmem:[%s17317_s3 + $0x130] sm:$0xf0]  ;;  %v11632_v16 = vld [vmem:[%s17317_s3 + $0x88] sm:$0xf0] }
 0xbf0   : > { %v3842_v3 = vsel %vm1037_vm2, %v3835_v51, %v3841_v49  ;;  %v10309_v15 = vor.u32 %v11642_v61, %v10308_v47  ;;  %v11651_v49 = vld [vmem:[%s17317_s3 + $0x124] sm:$0xf]  ;;  %4450 = vmatpush.bf16.msrb.mxu0 %v10353_v46  ;;  %v10316_v47 = vld [vmem:[%s17317_s3 + $0xd0] sm:$0xf] }
 0xbf1   : > { %v3756_v17 = vadd.f32 %v3755_v34, %v3754_v30  ;;  %v3764_v8 = vadd.f32 %v3763_v56, %v3725_v60  ;;  %v10348_v56 = vld [vmem:[%s17317_s3 + $0x118] sm:$0xf] }
 0xbf2   : > { %v10349_v21 = vor.u32 %v11652_v25, %v10348_v56  ;;  %v10248_v56 = vld [vmem:[%s17317_s3 + $0x50] sm:$0xf]  ;;  %v11627_v25 = vld [vmem:[%s17317_s3 + $0x60] sm:$0xf0] }
 0xbf3   : > { %v3788_v42 = vpack.c.bf16 %v3756_v17, %v3756_v17  ;;  %v3765_v38 = vrot.slane %v3764_v8, 2  ;;  %v11647_v17 = vld [vmem:[%s17317_s3 + $0x100] sm:$0xf0] }
 0xbf4   : > { %4437 = vmatpush.bf16.msra.mxu3 %v10349_v21  ;;  %v3781_v21 = vadd.f32 %v10070_v44, %v14277_v10  ;;  %v11643_v10 = vld [vmem:[%s17317_s3 + $0xe0] sm:$0xf0] }
 0xbf5   : > { %v3766_v45 = vadd.f32 %v3765_v38, %v3764_v8  ;;  %v3836_v13 = vunpack.c.l.b16 %v3788_v42  ;;  %v10329_v8 = vor.u32 %v11647_v17, %v10328_v36  ;;  %v10288_v42 = vld [vmem:[%s17317_s3 + $0xa0] sm:$0xf]  ;;  %v11637_v38 = vld [vmem:[%s17317_s3 + $0xb0] sm:$0xf0]  ;;  %v10249_v36 = vor.u32 %v11627_v25, %v10248_v56  ;;  %v11640_v17 = vld [vmem:[%s17317_s3 + $0xcc] sm:$0xf] }
 0xbf6   : > { %v10289_v48 = vor.u32 %v11637_v38, %v10288_v42  ;;  %v11641_v42 = vld [vmem:[%s17317_s3 + $0xd4] sm:$0xf]  ;;  %v10318_v38 = vld [vmem:[%s17317_s3 + $0xe4] sm:$0xf0]  ;;  %v11635_v44 = vld [vmem:[%s17317_s3 + $0xa4] sm:$0xf] }
 0xbf7   : > { %v3767_v5 = vrot.slane %v3766_v45, 1  ;;  %v3843_v55 = vsel %vm1039_vm3, %v3836_v13, %v3842_v3  ;;  %v10358_v13 = vld [vmem:[%s17317_s3 + $0x134] sm:$0xf0]  ;;  %v10321_v46 = vor.u32 %v11641_v42, %v10318_v38 }
 0xbf8   : > { %v3844_v60 = vsel %vm1041_vm4, %v3837_v33, %v3843_v55  ;;  %4438 = vmatpush.bf16.msra.mxu3 %v10329_v8  ;;  %v10361_v51 = vor.u32 %v11651_v49, %v10358_v13  ;;  %v10330_v55 = vld [vmem:[%s17317_s3 + $0x104] sm:$0xf0]  ;;  %v10336_v33 = vld [vmem:[%s17317_s3 + $0xf8] sm:$0xf]  ;;  %v10310_v8 = vld [vmem:[%s17317_s3 + $0xdc] sm:$0xf0] }
 0xbf9   : > { %v3768_v34 = vadd.f32 %v3767_v5, %v3766_v45  ;;  %v10356_v45 = vld [vmem:[%s17317_s3 + $0x120] sm:$0xf]  ;;  %v10228_v49 = vld [vmem:[%s17317_s3 + $0x28] sm:$0xf]  ;;  %v11622_v13 = vld [vmem:[%s17317_s3 + $0x38] sm:$0xf0] }
 0xbfa   : > { %v10357_v5 = vor.u32 %v11653_v23, %v10356_v45  ;;  %4476 = vmatpush.bf16.msrb.mxu2 %v10361_v51  ;;  %v10317_v45 = vor.u32 %v11643_v10, %v10316_v47  ;;  %v10072_v23 = vld [vmem:[%s13397_s29 + $0x58] sm:$0xff]  ;;  %v10229_v51 = vor.u32 %v11622_v13, %v10228_v49  ;;  %v11631_v10 = vld [vmem:[%s17317_s3 + $0x84] sm:$0xf] }
 0xbfb   : > { %v3790_v63 = vpack.c.bf16 %v3768_v34, %v3768_v34  ;;  %v10268_v34 = vld [vmem:[%s17317_s3 + $0x78] sm:$0xf] }
 0xbfc   : > { %4439 = vmatpush.bf16.msra.mxu3 %v10309_v15  ;;  %4463 = vmatpush.bf16.msrb.mxu1 %v10357_v5  ;;  %v10269_v3 = vor.u32 %v11632_v16, %v10268_v34  ;;  %v10313_v15 = vor.u32 %v11640_v17, %v10310_v8  ;;  %v10290_v34 = vld [vmem:[%s17317_s3 + $0xb4] sm:$0xf0]  ;;  %v10276_v17 = vld [vmem:[%s17317_s3 + $0x80] sm:$0xf] }
 0xbfd   : > { %v3838_v30 = vunpack.c.l.b16 %v3790_v63  ;;  %v11645_v63 = vld [vmem:[%s17317_s3 + $0xf4] sm:$0xf]  ;;  %v10293_v16 = vor.u32 %v11635_v44, %v10290_v34  ;;  %v10278_v42 = vld [vmem:[%s17317_s3 + $0x94] sm:$0xf0] }
 0xbff   : > { %v3845_v29 = vsel %vm1043_vm5, %v3838_v30, %v3844_v60  ;;  %v10333_v30 = vor.u32 %v11645_v63, %v10330_v55  ;;  %v11646_v60 = vld [vmem:[%s17317_s3 + $0xfc] sm:$0xf]  ;;  %v11636_v55 = vld [vmem:[%s17317_s3 + $0xac] sm:$0xf] }
 0xc00   : > { %v3846_v53 = vsel %vm1045_vm6, %v3839_v7, %v3845_v29  ;;  %4440 = vmatpush.bf16.msra.mxu3 %v10289_v48  ;;  %v11648_v7 = vld [vmem:[%s17317_s3 + $0x108] sm:$0xf0]  ;;  %v10338_v29 = vld [vmem:[%s17317_s3 + $0x10c] sm:$0xf0]  ;;  %v10069_v48 = vld [vmem:[%s13397_s29 + $0x40] sm:$0xff] }
 0xc01   : > { %v3847_v4 = vpack.c.b16 %v3846_v53, %v3846_v53  ;;  %v10337_v53 = vor.u32 %v11648_v7, %v10336_v33  ;;  %4451 = vmatpush.bf16.msrb.mxu0 %v10333_v30  ;;  %v11638_v63 = vld [vmem:[%s17317_s3 + $0xb8] sm:$0xf0]  ;;  %v3780_v33 = vadd.f32 %v10069_v48, %v14283_v40  ;;  %v10298_v7 = vld [vmem:[%s17317_s3 + $0xbc] sm:$0xf0]  ;;  %v11617_v40 = vld [vmem:[%s17317_s3 + $0x10] sm:$0xf0] }
 0xc03   : > { %4017 = vmatmul.bf16.vlgmr.msrb.gmra.mxu3 %v3847_v4  ;;  %4030 = vmatmul.bf16.vlgmr.msra.gmra.mxu0 %v3847_v4 }
 0xc04   : > { %4043 = vmatmul.bf16.vlgmr.msra.gmra.mxu1 %v3847_v4  ;;  %4056 = vmatmul.bf16.vlgmr.msra.gmra.mxu2 %v3847_v4  ;;  %v10341_v4 = vor.u32 %v11646_v60, %v10338_v29  ;;  %v3783_v60 = vadd.f32 %v10072_v23, %v14293_v59  ;;  %v10270_v59 = vld [vmem:[%s17317_s3 + $0x8c] sm:$0xf0]  ;;  %v11654_v23 = vld [vmem:[%s17317_s3 + $0x138] sm:$0xf0] }
 0xc05   : > { %4441 = vmatpush.bf16.msra.mxu3 %v10269_v3  ;;  %4464 = vmatpush.bf16.msrb.mxu1 %v10337_v53  ;;  %v10296_v3 = vld [vmem:[%s17317_s3 + $0xa8] sm:$0xf]  ;;  %v10301_v53 = vor.u32 %v11636_v55, %v10298_v7  ;;  %v10344_v7 = vld [vmem:[%s17317_s3 + $0x100] sm:$0xf] }
 0xc06   : > { %4477 = vmatpush.bf16.msrb.mxu2 %v10341_v4  ;;  %4452 = vmatpush.bf16.msrb.mxu0 %v10313_v15  ;;  %v10297_v30 = vor.u32 %v11638_v63, %v10296_v3  ;;  %v10208_v4 = vld [vmem:[%s17317_s3] sm:$0xf]  ;;  %v11633_v15 = vld [vmem:[%s17317_s3 + $0x90] sm:$0xf0]  ;;  %v11628_v3 = vld [vmem:[%s17317_s3 + $0x68] sm:$0xf0] }
 0xc07   : > { %v11626_v63 = vld [vmem:[%s17317_s3 + $0x5c] sm:$0xf] }
 0xc09   : > { %4442 = vmatpush.bf16.msra.mxu3 %v10249_v36  ;;  %4465 = vmatpush.bf16.msrb.mxu1 %v10317_v45  ;;  %v11630_v36 = vld [vmem:[%s17317_s3 + $0x7c] sm:$0xf]  ;;  %v10281_v45 = vor.u32 %v11631_v10, %v10278_v42  ;;  %v11644_v10 = vld [vmem:[%s17317_s3 + $0xe8] sm:$0xf0] }
 0xc0a   : > { %4478 = vmatpush.bf16.msrb.mxu2 %v10321_v46  ;;  %4453 = vmatpush.bf16.msrb.mxu0 %v10293_v16  ;;  %v10364_v46 = vld [vmem:[%s17317_s3 + $0x128] sm:$0xf]  ;;  %v10256_v16 = vld [vmem:[%s17317_s3 + $0x58] sm:$0xf] }
 0xc0b   : > { %v10365_v13 = vor.u32 %v11654_v23, %v10364_v46 }
 0xc0d   : > { %4443 = vmatpush.bf16.msra.mxu3 %v10229_v51  ;;  %4466 = vmatpush.bf16.msrb.mxu1 %v10297_v30  ;;  %v10250_v51 = vld [vmem:[%s17317_s3 + $0x64] sm:$0xf0]  ;;  %v10258_v30 = vld [vmem:[%s17317_s3 + $0x6c] sm:$0xf0] }
 0xc0e   : > { %4479 = vmatpush.bf16.msrb.mxu2 %v10301_v53  ;;  %v11620_v53 = vld [vmem:[%s17317_s3 + $0x2c] sm:$0xf] }
 0xc12   : > { %4480 = vmatpush.bf16.msrb.mxu2 %v10281_v45  ;;  %v10216_v45 = vld [vmem:[%s17317_s3 + $0x8] sm:$0xf] }
 0xc80   : > { %v4031_v61 = vpop.f32.mrf.mxu0 }
 0xc81   : > { %v4062_v31 = vadd.f32 %v4031_v61, %v3781_v21  ;;  %v14700_v12 = vpop.f32.mrf.mxu1  ;;  %v10209_v21 = vor.u32 %v11617_v40, %v10208_v4  ;;  %v10273_v61 = vor.u32 %v11630_v36, %v10270_v59  ;;  %v10230_v4 = vld [vmem:[%s17317_s3 + $0x3c] sm:$0xf0]  ;;  %v11623_v59 = vld [vmem:[%s17317_s3 + $0x40] sm:$0xf0] }
 0xc82   : > { %v10233_v36 = vor.u32 %v11620_v53, %v10230_v4 }
 0xc83   : > { %v10202_v5 = vmul.f32 -1.442695, %v4062_v31  ;;  %4444 = vmatpush.bf16.msra.mxu3 %v10209_v21  ;;  %v10277_v31 = vor.u32 %v11633_v15, %v10276_v17  ;;  %4454 = vmatpush.bf16.msrb.mxu0 %v10273_v61  ;;  %v11621_v17 = vld [vmem:[%s17317_s3 + $0x34] sm:$0xf]  ;;  %v10324_v15 = vld [vmem:[%s17317_s3 + $0xd8] sm:$0xf] }
 0xc85   : > { %12336 = vpow2.f32 %v10202_v5  ;;  %v11625_v5 = vld [vmem:[%s17317_s3 + $0x54] sm:$0xf]  ;;  %4467 = vmatpush.bf16.msrb.mxu1 %v10277_v31  ;;  %v10210_v31 = vld [vmem:[%s17317_s3 + $0x14] sm:$0xf0] }
 0xc86   : > { %v4018_v29 = vpop.f32.mrf.mxu3  ;;  %v10253_v34 = vor.u32 %v11625_v5, %v10250_v51 }
 0xc87   : > { %v4061_v56 = vadd.f32 %v4018_v29, %v3780_v33  ;;  %v4057_v25 = vpop.f32.mrf.mxu2  ;;  %4489 = vmatpush.bf16.msrb.mxu3 %v10365_v13  ;;  %v10257_v33 = vor.u32 %v11628_v3, %v10256_v16  ;;  %v11649_v29 = vld [vmem:[%s17317_s3 + $0x110] sm:$0xf0]  ;;  %v11618_v13 = vld [vmem:[%s17317_s3 + $0x18] sm:$0xf0]  ;;  %v10218_v16 = vld [vmem:[%s17317_s3 + $0x1c] sm:$0xf0] }
 0xc88   : > { %v4064_v8 = vadd.f32 %v4057_v25, %v3783_v60  ;;  %v4033_v47 = vpop.f32.mrf.mxu0  ;;  %v10261_v60 = vor.u32 %v11626_v63, %v10258_v30  ;;  %4455 = vmatpush.bf16.msrb.mxu0 %v10253_v34  ;;  %v10345_v21 = vor.u32 %v11649_v29, %v10344_v7  ;;  %v10217_v51 = vor.u32 %v11618_v13, %v10216_v45  ;;  %v10304_v3 = vld [vmem:[%s17317_s3 + $0xb0] sm:$0xf]  ;;  %v11639_v63 = vld [vmem:[%s17317_s3 + $0xc0] sm:$0xf0]  ;;  %v10284_v7 = vld [vmem:[%s17317_s3 + $0x88] sm:$0xf] }
 0xc89   : > { %v10201_v38 = vmul.f32 -1.442695, %v4061_v56  ;;  %v4046_v48 = vpop.f32.mrf.mxu1  ;;  %v10236_v56 = vld [vmem:[%s17317_s3 + $0x30] sm:$0xf]  ;;  %4468 = vmatpush.bf16.msrb.mxu1 %v10257_v33  ;;  %v10305_v4 = vor.u32 %v11639_v63, %v10304_v3  ;;  %v11624_v45 = vld [vmem:[%s17317_s3 + $0x48] sm:$0xf0] }
 0xc8a   : > { %v10203_v49 = vmul.f32 -1.442695, %v4064_v8  ;;  %v10238_v8 = vld [vmem:[%s17317_s3 + $0x44] sm:$0xf0]  ;;  %4481 = vmatpush.bf16.msrb.mxu2 %v10261_v60  ;;  %v10237_v47 = vor.u32 %v11623_v59, %v10236_v56  ;;  %v11615_v48 = vld [vmem:[%s17317_s3 + $0x4] sm:$0xf] }
 0xc8b   : > { %v12337_v44 = vpop.eup %12336  ;;  %12338 = vpow2.f32 %v10201_v38  ;;  %v10241_v61 = vor.u32 %v11621_v17, %v10238_v8  ;;  %4490 = vmatpush.bf16.msrb.mxu3 %v10345_v21  ;;  %v10325_v38 = vor.u32 %v11644_v10, %v10324_v15  ;;  %v10071_v33 = vld [vmem:[%s13397_s29 + $0x50] sm:$0xff]  ;;  %v11634_v60 = vld [vmem:[%s17317_s3 + $0x98] sm:$0xf0]  ;;  %v10264_v59 = vld [vmem:[%s17317_s3 + $0x60] sm:$0xf] }
 0xc8c   : > { %v14774_v55 = vadd.f32 1.0, %v12337_v44  ;;  %12340 = vpow2.f32 %v10203_v49  ;;  %4456 = vmatpush.bf16.msrb.mxu0 %v10233_v36  ;;  %v10213_v49 = vor.u32 %v11615_v48, %v10210_v31  ;;  %v11616_v44 = vld [vmem:[%s17317_s3 + $0xc] sm:$0xf]  ;;  %v11629_v17 = vld [vmem:[%s17317_s3 + $0x70] sm:$0xf0] }
 0xc8d   : > { %4469 = vmatpush.bf16.msrb.mxu1 %v10237_v47  ;;  %v10221_v53 = vor.u32 %v11616_v44, %v10218_v16  ;;  %v10244_v31 = vld [vmem:[%s17317_s3 + $0x38] sm:$0xf] }
 0xc8e   : > { %12342 = vrcp.f32 %v14774_v55  ;;  %v4020_v40 = vpop.f32.mrf.mxu3  ;;  %4482 = vmatpush.bf16.msrb.mxu2 %v10241_v61  ;;  %v4099_v61 = vand.u32 2147483648, %v14774_v55  ;;  %vm4093_vm9 = vweird.f32 %v14774_v55  ;;  %v10245_v16 = vor.u32 %v11624_v45, %v10244_v31 }
 0xc8f   : > { %v4059_v25 = vpop.f32.mrf.mxu2  ;;  %4491 = vmatpush.bf16.msrb.mxu3 %v10325_v38  ;;  %v3782_v40 = vadd.f32 %v10071_v33, %v14279_v52  ;;  %v10224_v33 = vld [vmem:[%s17317_s3 + $0x10] sm:$0xf] }
 0xc90   : > { %4457 = vmatpush.bf16.msrb.mxu0 %v10213_v49  ;;  %v10285_v25 = vor.u32 %v11634_v60, %v10284_v7  ;;  %v4100_v13 = vor.u32 1.1754944e-38, %v4099_v61 }
 0xc91   : > { %v12339_v42 = vpop.eup %12338  ;;  %4470 = vmatpush.bf16.msrb.mxu1 %v10217_v51  ;;  %v4063_v36 = vadd.f32 %v14700_v12, %v3782_v40  ;;  %v4097_v12 = vand.u32 2147483647, %v14774_v55 }
 0xc92   : > { %v12341_v46 = vpop.eup %12340  ;;  %v14819_v23 = vadd.f32 1.0, %v12339_v42  ;;  %4483 = vmatpush.bf16.msrb.mxu2 %v10221_v53  ;;  %v10265_v42 = vor.u32 %v11629_v17, %v10264_v59 }
 0xc93   : > { %v14824_v5 = vadd.f32 1.0, %v12341_v46  ;;  %4492 = vmatpush.bf16.msrb.mxu3 %v10305_v4  ;;  %vm4098_vm12 = vcmp.eq.f32.partialorder %v4097_v12, 8.507059e+37 }
 0xc94   : > { %v12343_v34 = vpop.eup %12342  ;;  %12344 = vrcp.f32 %v14819_v23  ;;  %v4080_v48 = vand.u32 2147483648, %v14819_v23  ;;  %v4078_v49 = vand.u32 2147483647, %v14819_v23  ;;  %vm4074_vm13 = vweird.f32 %v14819_v23 }
 0xc95   : > { %v4089_v30 = vmul.f32 %v12343_v34, %v14774_v55  ;;  %12346 = vrcp.f32 %v14824_v5  ;;  %vm4094_vm8 = vweird.f32 %v12343_v34 }
 0xc96   : > { %vm14861_vm10 = vmor %vm4093_vm9, %vm4094_vm8  ;;  %12348 = vtanh.f32 %v4063_v36  ;;  %v4081_v63 = vor.u32 1.1754944e-38, %v4080_v48  ;;  %vm4079_vm15 = vcmp.eq.f32.partialorder %v4078_v49, 8.507059e+37  ;;  %vm4113_vm9 = vweird.f32 %v14824_v5 }
 0xc97   : > { %v4090_v29 = vsub.f32 1.0, %v4089_v30  ;;  %4493 = vmatpush.bf16.msrb.mxu3 %v10285_v25  ;;  %v4119_v25 = vand.u32 2147483648, %v14824_v5 }
 0xc99   : > { %v4091_v56 = vmul.f32 %v12343_v34, %v4090_v29  ;;  %v4120_v36 = vor.u32 1.1754944e-38, %v4119_v25 }
 0xc9a   : > { %v12345_v21 = vpop.eup %12344 }
 0xc9b   : > { %v12347_v8 = vpop.eup %12346  ;;  %v4092_v47 = vadd.f32 %v12343_v34, %v4091_v56  ;;  %v4070_v52 = vmul.f32 %v12345_v21, %v14819_v23  ;;  %vm4075_vm11 = vweird.f32 %v12345_v21  ;;  %4494 = vmatpush.bf16.msrb.mxu3 %v10265_v42 }
 0xc9c   : > { %v4109_v15 = vmul.f32 %v12347_v8, %v14824_v5  ;;  %vm4076_vm14 = vmor %vm4074_vm13, %vm4075_vm11  ;;  %v12349_v7 = vpop.eup %12348  ;;  %vm4114_vm8 = vweird.f32 %v12347_v8 }
 0xc9d   : > { %v4071_v10 = vsub.f32 1.0, %v4070_v52  ;;  %v4096_v55 = vsel %vm14861_vm10, %v12343_v34, %v4092_v47  ;;  %v11619_v34 = vld [vmem:[%s17317_s3 + $0x20] sm:$0xf0]  ;;  %vm4115_vm10 = vmor %vm4113_vm9, %vm4114_vm8 }
 0xc9e   : > { %v4110_v51 = vsub.f32 1.0, %v4109_v15  ;;  %v4101_v3 = vsel %vm4098_vm12, %v4100_v13, %v4096_v55  ;;  %v10225_v4 = vor.u32 %v11619_v34, %v10224_v33  ;;  %v12000_v15 = vld [vmem:[%s12816_s11] sm:$0xff]  }
 0xc9f   : > { %v4072_v46 = vmul.f32 %v12345_v21, %v4071_v10  ;;  %v4123_v23 = vmul.f32 %v4101_v3, %v14267_v41  ;;  %4495 = vmatpush.bf16.msrb.mxu3 %v10245_v16  ;;  %v12554_v10 = vld [vmem:[%s17318_s4] ss:$0 sm:$0xff]  ;;  %v12001_v31 = vunpack.c.l.bf16 %v12000_v15  ;;  %v12002_v16 = vunpack.c.h.bf16 %v12000_v15 }
 0xca0   : > { %v4111_v29 = vmul.f32 %v12347_v8, %v4110_v51  ;;  %v14902_v51 = vld [vmem:[%s12816_s11 + $0x18] sm:$0xff]  }
 0xca1   : > { %v4073_v44 = vadd.f32 %v12345_v21, %v4072_v46 }
 0xca2   : > { %v4112_v56 = vadd.f32 %v12347_v8, %v4111_v29  ;;  %v12014_v29 = vunpack.c.h.bf16 %v14902_v51 }
 0xca3   : > { %v4077_v30 = vsel %vm4076_vm14, %v12345_v21, %v4073_v44  ;;  %4496 = vmatpush.bf16.msrb.mxu3 %v10225_v4  ;;  %v4117_v21 = vand.u32 2147483647, %v14824_v5 }
 0xca4   : > { %v4082_v60 = vsel %vm4079_vm15, %v4081_v63, %v4077_v30  ;;  %v4116_v41 = vsel %vm4115_vm10, %v12347_v8, %v4112_v56  ;;  %v12145_v8 = vld [vmem:[%s12816_s11 + $0x8] sm:$0xff]  }
 0xca5   : > { %v4124_v53 = vmul.f32 %v12349_v7, %v4082_v60  ;;  %vm4118_vm11 = vcmp.eq.f32.partialorder %v4117_v21, 8.507059e+37  ;;  %v12005_v45 = vunpack.c.l.bf16 %v12145_v8 }
 0xca6   : > { %v4121_v17 = vsel %vm4118_vm11, %v4120_v36, %v4116_v41  ;;  %v12146_v36 = vld [vmem:[%s12816_s11 + $0x10] sm:$0xff]  }
 0xca7   : > { %v14883_v40 = vadd.f32 %v4124_v53, %v4123_v23 }
 0xca9   : > { %12350 = vtanh.f32 %v14883_v40 }
 0xcaf   : > { %v12351_v59 = vpop.eup %12350 }
 0xcb0   : > { %v4127_v47 = vmul.f32 %v12351_v59, %v4121_v17 }
 0xcb2   : > { %10204 = vst [vmem:[%s13653_s23 + $0x10] sm:$0xff] %v4127_v47  ;;  %v4180_v52 = vpack.c.bf16 %v4127_v47, %v4127_v47 }
 0xcb4   : > { %4445 = vmatmul.bf16.vlgmr.msra.gmra.mxu3 %v4180_v52  ;;  %4458 = vmatmul.bf16.vlgmr.msrb.gmra.mxu0 %v4180_v52 }
 0xcb5   : > { %4471 = vmatmul.bf16.vlgmr.msrb.gmra.mxu1 %v4180_v52  ;;  %4484 = vmatmul.bf16.vlgmr.msrb.gmra.mxu2 %v4180_v52 }
 0xcc4   : > { %4497 = vmatmul.bf16.vlgmr.msrb.gmra.mxu3 %v4180_v52 }
 0xd31   : > { %v14890_v61 = vpop.f32.mrf.mxu0 }
 0xd32   : > { %v14892_v5 = vpop.f32.mrf.mxu1 }
 0xd37   : > { %v4446_v12 = vpop.f32.mrf.mxu3 }
 0xd38   : > { %v4502_v42 = vadd.f32 %v12554_v10, %v4446_v12  ;;  %v14899_v38 = vpop.f32.mrf.mxu2 }
 0xd39   : > { %v4461_v48 = vpop.f32.mrf.mxu0 }
 0xd3a   : > { %v4474_v55 = vpop.f32.mrf.mxu1  ;;  %v4526_v46 = vpack.c.bf16 %v4502_v42, %v4502_v42  ;;  %v4513_v49 = vrot.slane %v4502_v42, 2  ;;  %v4512_v13 = vrot.slane %v4502_v42, 1  ;;  %v4518_v44 = vrot.slane %v4502_v42, 7 }
 0xd3b   : > { %v4514_v3 = vrot.slane %v4502_v42, 3  ;;  %v4515_v63 = vrot.slane %v4502_v42, 4  ;;  %v4516_v33 = vrot.slane %v4502_v42, 5  ;;  %v4517_v15 = vrot.slane %v4502_v42, 6 }
 0xd3c   : > { %v4535_v34 = vpack.i.b16 %v4526_v46, %v4526_v46  ;;  %v4528_v30 = vpack.c.bf16 %v4513_v49, %v4513_v49  ;;  %v4527_v7 = vpack.c.bf16 %v4512_v13, %v4512_v13  ;;  %v4533_v60 = vpack.c.bf16 %v4518_v44, %v4518_v44 }
 0xd3d   : > { %v4529_v23 = vpack.c.bf16 %v4514_v3, %v4514_v3  ;;  %v4530_v53 = vpack.c.bf16 %v4515_v63, %v4515_v63  ;;  %v4531_v4 = vpack.c.bf16 %v4516_v33, %v4516_v33  ;;  %v12006_v49 = vunpack.c.h.bf16 %v12145_v8 }
 0xd3e   : > { %v4537_v56 = vperm.slane %v4535_v34, 0  ;;  %v4543_v25 = vpack.i.b16 %v4528_v30, %v4528_v30  ;;  %v4539_v21 = vpack.i.b16 %v4527_v7, %v4527_v7  ;;  %v4563_v41 = vpack.i.b16 %v4533_v60, %v4533_v60 }
 0xd3f   : > { %v4448_v59 = vpop.f32.mrf.mxu3  ;;  %v4547_v17 = vpack.i.b16 %v4529_v23, %v4529_v23  ;;  %v4551_v47 = vpack.i.b16 %v4530_v53, %v4530_v53  ;;  %v4555_v52 = vpack.i.b16 %v4531_v4, %v4531_v4  ;;  %v12009_v44 = vunpack.c.l.bf16 %v12146_v36 }
 0xd40   : > { %v4487_v12 = vpop.f32.mrf.mxu2  ;;  %v4574_v10 = vunpack.c.l.bf16 %v4537_v56  ;;  %v4545_v48 = vperm.slane %v4543_v25, 0  ;;  %v4541_v55 = vperm.slane %v4539_v21, 0  ;;  %v4565_v46 = vperm.slane %v4563_v41, 0 }
 0xd41   : > { %v4549_v13 = vperm.slane %v4547_v17, 0  ;;  %v4553_v3 = vperm.slane %v4551_v47, 0  ;;  %v4557_v59 = vperm.slane %v4555_v52, 0  ;;  %v4532_v23 = vpack.c.bf16 %v4517_v15, %v4517_v15 }
 0xd42   : > { %v4582_v63 = vadd.f32 %v12001_v31, %v4574_v10  ;;  %v4576_v33 = vunpack.c.l.bf16 %v4545_v48  ;;  %v4575_v34 = vunpack.c.l.bf16 %v4541_v55  ;;  %v4581_v30 = vunpack.c.l.bf16 %v4565_v46 }
 0xd43   : > { %v4577_v7 = vunpack.c.l.bf16 %v4549_v13  ;;  %v4578_v60 = vunpack.c.l.bf16 %v4553_v3  ;;  %v12010_v47 = vunpack.c.h.bf16 %v12146_v36  ;;  %v4579_v10 = vunpack.c.l.bf16 %v4557_v59 }
 0xd44   : > { %v4590_v53 = vpack.c.bf16 %v4582_v63, %v4582_v63  ;;  %v4584_v4 = vadd.f32 %v12005_v45, %v4576_v33  ;;  %v4583_v42 = vadd.f32 %v12002_v16, %v4575_v34  ;;  %v4589_v12 = vadd.f32 %v12014_v29, %v4581_v30 }
 0xd45   : > { %v4585_v56 = vadd.f32 %v12006_v49, %v4577_v7  ;;  %v4586_v25 = vadd.f32 %v12009_v44, %v4578_v60  ;;  %v4559_v48 = vpack.i.b16 %v4532_v23, %v4532_v23  ;;  %v4587_v29 = vadd.f32 %v12010_v47, %v4579_v10 }
 0xd46   : > { %v4598_v21 = vunpack.c.l.bf16 %v4590_v53  ;;  %v4592_v41 = vpack.c.bf16 %v4584_v4, %v4584_v4  ;;  %v4591_v8 = vpack.c.bf16 %v4583_v42, %v4583_v42  ;;  %v4597_v17 = vpack.c.bf16 %v4589_v12, %v4589_v12 }
 0xd47   : > { %v14906_v20 = vpop.f32.mrf.mxu3  ;;  %v4593_v31 = vpack.c.bf16 %v4585_v56, %v4585_v56  ;;  %v4594_v15 = vpack.c.bf16 %v4586_v25, %v4586_v25  ;;  %v4561_v49 = vperm.slane %v4559_v48, 0  ;;  %v4595_v36 = vpack.c.bf16 %v4587_v29, %v4587_v29 }
 0xd48   : > { %12352 = vtanh.f32 %v4598_v21  ;;  %v4600_v55 = vunpack.c.l.bf16 %v4592_v41  ;;  %v4599_v52 = vunpack.c.l.bf16 %v4591_v8  ;;  %v4605_v46 = vunpack.c.l.bf16 %v4597_v17 }
 0xd49   : > { %v4601_v45 = vunpack.c.l.bf16 %v4593_v31  ;;  %v4602_v16 = vunpack.c.l.bf16 %v4594_v15  ;;  %v12013_v33 = vunpack.c.l.bf16 %v14902_v51  ;;  %v4580_v34 = vunpack.c.l.bf16 %v4561_v49 }
 0xd4a   : > { %12354 = vtanh.f32 %v4600_v55  ;;  %v4603_v21 = vunpack.c.l.bf16 %v4595_v36 }
 0xd4b   : > { %12356 = vtanh.f32 %v4599_v52  ;;  %v4588_v41 = vadd.f32 %v12013_v33, %v4580_v34 }
 0xd4c   : > { %12358 = vtanh.f32 %v4605_v46 }
 0xd4d   : > { %12360 = vtanh.f32 %v4601_v45  ;;  %v4596_v46 = vpack.c.bf16 %v4588_v41, %v4588_v41 }
 0xd4e   : > { %v12353_v13 = vpop.eup %12352  ;;  %12362 = vtanh.f32 %v4602_v16 }
 0xd4f   : > { %v4500_v44 = vpop.f32.mrf.mxu3  ;;  %v4614_v3 = vpack.c.bf16 %v12353_v13, %v12353_v13  ;;  %12364 = vtanh.f32 %v4603_v21 }
 0xd50   : > { %v12355_v63 = vpop.eup %12354  ;;  %v4604_v44 = vunpack.c.l.bf16 %v4596_v46 }
 0xd51   : > { %v12357_v30 = vpop.eup %12356  ;;  %v4622_v7 = vunpack.c.l.bf16 %v4614_v3  ;;  %v4616_v60 = vpack.c.bf16 %v12355_v63, %v12355_v63 }
 0xd52   : > { %v12359_v59 = vpop.eup %12358  ;;  %v4615_v23 = vpack.c.bf16 %v12357_v30, %v12357_v30  ;;  %12366 = vtanh.f32 %v4604_v44 }
 0xd53   : > { %v12361_v53 = vpop.eup %12360  ;;  %v4630_v4 = vmul.f32 %v4622_v7, %v12828_v11  ;;  %v4624_v42 = vunpack.c.l.bf16 %v4616_v60  ;;  %v4621_v12 = vpack.c.bf16 %v12359_v59, %v12359_v59 }
 0xd54   : > { %v4623_v56 = vunpack.c.l.bf16 %v4615_v23  ;;  %v4617_v25 = vpack.c.bf16 %v12361_v53, %v12361_v53  ;;  %v12363_v51 = vpop.eup %12362 }
 0xd55   : > { %v4638_v8 = vpack.c.bf16 %v4630_v4, %v4630_v4  ;;  %v4632_v17 = vmul.f32 %v4624_v42, %v12828_v11  ;;  %v4629_v31 = vunpack.c.l.bf16 %v4621_v12  ;;  %v4618_v29 = vpack.c.bf16 %v12363_v51, %v12363_v51  ;;  %v12365_v36 = vpop.eup %12364 }
 0xd56   : > { %v4631_v47 = vmul.f32 %v4623_v56, %v12828_v11  ;;  %v4625_v10 = vunpack.c.l.bf16 %v4617_v25  ;;  %v4619_v7 = vpack.c.bf16 %v12365_v36, %v12365_v36 }
 0xd57   : > { %v4646_v48 = vunpack.c.l.bf16 %v4638_v8  ;;  %v4640_v55 = vpack.c.bf16 %v4632_v17, %v4632_v17  ;;  %v4637_v52 = vmul.f32 %v4629_v31, %v12828_v11  ;;  %v4626_v63 = vunpack.c.l.bf16 %v4618_v29 }
 0xd58   : > { %v4639_v15 = vpack.c.bf16 %v4631_v47, %v4631_v47  ;;  %v4633_v16 = vmul.f32 %v4625_v10, %v12828_v11  ;;  %v4627_v59 = vunpack.c.l.bf16 %v4619_v7  ;;  %v12367_v23 = vpop.eup %12366 }
 0xd59   : > { %4654 = vadd.xlane.f32.xlu1 %v4646_v48  ;;  %v4648_v45 = vunpack.c.l.bf16 %v4640_v55  ;;  %v4645_v13 = vpack.c.bf16 %v4637_v52, %v4637_v52  ;;  %v4634_v30 = vmul.f32 %v4626_v63, %v12828_v11  ;;  %v4620_v42 = vpack.c.bf16 %v12367_v23, %v12367_v23 }
 0xd5a   : > { %v4647_v49 = vunpack.c.l.bf16 %v4639_v15  ;;  %v4641_v3 = vpack.c.bf16 %v4633_v16, %v4633_v16  ;;  %v4635_v4 = vmul.f32 %v4627_v59, %v12828_v11 }
 0xd5b   : > { %4658 = vadd.xlane.f32.xlu0 %v4648_v45  ;;  %v4653_v33 = vunpack.c.l.bf16 %v4645_v13  ;;  %v4642_v60 = vpack.c.bf16 %v4634_v30, %v4634_v30  ;;  %v4628_v56 = vunpack.c.l.bf16 %v4620_v42 }
 0xd5c   : > { %4656 = vadd.xlane.f32.xlu2 %v4647_v49  ;;  %v4649_v34 = vunpack.c.l.bf16 %v4641_v3  ;;  %v4643_v12 = vpack.c.bf16 %v4635_v4, %v4635_v4 }
 0xd5d   : > { %v4650_v53 = vunpack.c.l.bf16 %v4642_v60  ;;  %v4636_v21 = vmul.f32 %v4628_v56, %v12828_v11 }
 0xd5e   : > { %v4651_v25 = vunpack.c.l.bf16 %v4643_v12 }
 0xd5f   : > { %v4644_v41 = vpack.c.bf16 %v4636_v21, %v4636_v21 }
 0xd61   : > { %4668 = vadd.xlane.f32.xlu1 %v4653_v33  ;;  %v4652_v8 = vunpack.c.l.bf16 %v4644_v41 }
 0xd63   : > { %4660 = vadd.xlane.f32.xlu0 %v4649_v34 }
 0xd6b   : > { %4662 = vadd.xlane.f32.xlu0 %v4650_v53 }
 0xd73   : > { %4664 = vadd.xlane.f32.xlu0 %v4651_v25 }
 0xd7b   : > { %4666 = vadd.xlane.f32.xlu0 %v4652_v8 }
 0xdcc   : > { %v4655_v47 = vpop.xlane.xlu1 %4654 }
 0xdcd   : > { %v4678_v52 = vperm.slane %v4655_v47, %v12838_v6 }
 0xdce   : > { %v4659_v17 = vpop.xlane.xlu0 %4658 }
 0xdcf   : > { %v4657_v10 = vpop.xlane.xlu2 %4656  ;;  %v4680_v15 = vperm.slane %v4659_v17, %v12838_v6 }
 0xdd0   : > { %v4679_v48 = vperm.slane %v4657_v10, %v12838_v6 }
 0xdd2   : > { %v4686_v46 = vsel %vm1033_vm0, %v4679_v48, %v4678_v52 }
 0xdd3   : > { %v4687_v13 = vsel %vm1035_vm1, %v4680_v15, %v4686_v46 }
 0xdd4   : > { %v4669_v49 = vpop.xlane.xlu1 %4668 }
 0xdd5   : > { %v4685_v33 = vperm.slane %v4669_v49, %v12838_v6 }
 0xdd6   : > { %v4661_v31 = vpop.xlane.xlu0 %4660 }
 0xdd7   : > { %v4681_v45 = vperm.slane %v4661_v31, %v12838_v6 }
 0xdd9   : > { %v4688_v44 = vsel %vm1037_vm2, %v4681_v45, %v4687_v13 }
 0xdde   : > { %v4663_v51 = vpop.xlane.xlu0 %4662 }
 0xddf   : > { %v4682_v16 = vperm.slane %v4663_v51, %v12838_v6 }
 0xde1   : > { %v4689_v63 = vsel %vm1039_vm3, %v4682_v16, %v4688_v44 }
 0xde6   : > { %v4665_v55 = vpop.xlane.xlu0 %4664 }
 0xde7   : > { %v4683_v29 = vperm.slane %v4665_v55, %v12838_v6 }
 0xde9   : > { %v4690_v34 = vsel %vm1041_vm4, %v4683_v29, %v4689_v63 }
 0xdee   : > { %v4667_v3 = vpop.xlane.xlu0 %4666 }
 0xdef   : > { %v4684_v36 = vperm.slane %v4667_v3, %v12838_v6 }
 0xdf1   : > { %v4691_v30 = vsel %vm1043_vm5, %v4684_v36, %v4690_v34 }
 0xdf2   : > { %v4692_v7 = vsel %vm1045_vm6, %v4685_v33, %v4691_v30 }
 0xdf3   : > { %v4694_v60 = vsel %vm1048_vm7, %v4692_v7, -inf }
 0xdf4   : > { %4695 = vmax.xlane.f32.xlu2 %v4694_v60 }
 0xe67   : > { %v4696_v59 = vpop.xlane.xlu2 %4695 }
 0xe68   : > { %v4700_v23 = vperm.slane %v4696_v59, 2  ;;  %v4699_v53 = vperm.slane %v4696_v59, 1  ;;  %v4698_v4 = vperm.slane %v4696_v59, 0  ;;  %v4704_v25 = vperm.slane %v4696_v59, 6 }
 0xe69   : > { %v4703_v21 = vperm.slane %v4696_v59, 5  ;;  %v4701_v41 = vperm.slane %v4696_v59, 3 }
 0xe6a   : > { %v4716_v42 = vsub.f32 %v4659_v17, %v4700_v23  ;;  %v4715_v12 = vsub.f32 %v4657_v10, %v4699_v53  ;;  %v4714_v56 = vsub.f32 %v4655_v47, %v4698_v4  ;;  %v4720_v15 = vsub.f32 %v4667_v3, %v4704_v25 }
 0xe6b   : > { %v4719_v46 = vsub.f32 %v4665_v55, %v4703_v21  ;;  %v4717_v45 = vsub.f32 %v4661_v31, %v4701_v41  ;;  %v4702_v17 = vperm.slane %v4696_v59, 4  ;;  %v4705_v31 = vperm.slane %v4696_v59, 7 }
 0xe6c   : > { %v4726_v8 = vmul.f32 1.442695, %v4716_v42  ;;  %v4724_v48 = vmul.f32 1.442695, %v4715_v12  ;;  %v4722_v52 = vmul.f32 1.442695, %v4714_v56 }
 0xe6d   : > { %v4734_v16 = vmul.f32 1.442695, %v4720_v15  ;;  %v4732_v29 = vmul.f32 1.442695, %v4719_v46  ;;  %v4728_v44 = vmul.f32 1.442695, %v4717_v45  ;;  %v4718_v3 = vsub.f32 %v4663_v51, %v4702_v17 }
 0xe6e   : > { %12368 = vpow2.f32 %v4726_v8  ;;  %v4721_v34 = vsub.f32 %v4669_v49, %v4705_v31 }
 0xe6f   : > { %12370 = vpow2.f32 %v4724_v48  ;;  %v4730_v55 = vmul.f32 1.442695, %v4718_v3 }
 0xe70   : > { %12372 = vpow2.f32 %v4722_v52  ;;  %v4736_v30 = vmul.f32 1.442695, %v4721_v34 }
 0xe71   : > { %12374 = vpow2.f32 %v4734_v16 }
 0xe72   : > { %12376 = vpow2.f32 %v4732_v29 }
 0xe73   : > { %12378 = vpow2.f32 %v4728_v44 }
 0xe74   : > { %v14933_v13 = vpop.eup %12368  ;;  %12380 = vpow2.f32 %v4730_v55 }
 0xe75   : > { %v12371_v10 = vpop.eup %12370  ;;  %4753 = vperm.xlu2 %12200, %v14933_v13   ;;  %12382 = vpow2.f32 %v4736_v30 }
 0xe76   : > { %v12373_v47 = vpop.eup %12372  ;;  %4750 = vperm.xlu1 %12199, %v12371_v10  }
 0xe77   : > { %4747 = vperm.xlu0 %12198, %v12373_v47   ;;  %v14936_v63 = vpop.eup %12374 }
 0xe78   : > { %v12377_v36 = vpop.eup %12376 }
 0xe79   : > { %v12379_v33 = vpop.eup %12378 }
 0xe7a   : > { %v12381_v7 = vpop.eup %12380 }
 0xe7b   : > { %v12383_v60 = vpop.eup %12382 }
 0xe7d   : > { %4765 = vperm.xlu2 %12200, %v14936_v63  }
 0xe7e   : > { %4762 = vperm.xlu1 %12199, %v12377_v36  }
 0xe7f   : > { %4756 = vperm.xlu0 %12198, %v12379_v33  }
 0xe87   : > { %4759 = vperm.xlu0 %12198, %v12381_v7  }
 0xe8f   : > { %4768 = vperm.xlu0 %12198, %v12383_v60  }
 0xecf   : > { %v4754_v4 = vpop.permute.xlu2 %4753 }
 0xed0   : > { %v4772_v49 = vperm.slane %v4754_v4, %v12838_v6 }
 0xed7   : > { %v4766_v15 = vpop.permute.xlu2 %4765 }
 0xed8   : > { %v4776_v16 = vperm.slane %v4766_v15, %v12838_v6 }
 0xee8   : > { %v4751_v51 = vpop.permute.xlu1 %4750 }
 0xee9   : > { %v4748_v23 = vpop.permute.xlu0 %4747  ;;  %v4771_v59 = vperm.slane %v4751_v51, %v12838_v6 }
 0xeea   : > { %v4770_v42 = vperm.slane %v4748_v23, %v12838_v6 }
 0xeec   : > { %v4778_v12 = vsel %vm1033_vm0, %v4771_v59, %v4770_v42 }
 0xeed   : > { %v4779_v8 = vsel %vm1035_vm1, %v4772_v49, %v4778_v12 }
 0xef0   : > { %v4763_v41 = vpop.permute.xlu1 %4762 }
 0xef1   : > { %v4757_v53 = vpop.permute.xlu0 %4756  ;;  %v4775_v46 = vperm.slane %v4763_v41, %v12838_v6 }
 0xef2   : > { %v4773_v56 = vperm.slane %v4757_v53, %v12838_v6 }
 0xef4   : > { %v4780_v48 = vsel %vm1037_vm2, %v4773_v56, %v4779_v8 }
 0xef9   : > { %v4760_v25 = vpop.permute.xlu0 %4759 }
 0xefa   : > { %v4774_v21 = vperm.slane %v4760_v25, %v12838_v6 }
 0xefc   : > { %v4781_v52 = vsel %vm1039_vm3, %v4774_v21, %v4780_v48 }
 0xefd   : > { %v4782_v45 = vsel %vm1041_vm4, %v4775_v46, %v4781_v52 }
 0xefe   : > { %v4783_v17 = vsel %vm1043_vm5, %v4776_v16, %v4782_v45  ;;  %v14990_v45 = vld [vmem:[%s13101_s22] sm:$0xff]  }
 0xf01   : > { %v4769_v29 = vpop.permute.xlu0 %4768 }
 0xf02   : > { %v4777_v44 = vperm.slane %v4769_v29, %v12838_v6  ;;  %v12017_v29 = vunpack.c.l.bf16 %v14990_v45 }
 0xf04   : > { %v4784_v3 = vsel %vm1045_vm6, %v4777_v44, %v4783_v17 }
 0xf05   : > { %v4786_v55 = vsel %vm1048_vm7, %v4784_v3, 0.0 }
 0xf06   : > { %4787 = vadd.xlane.f32.xlu1 %v4786_v55 }
 0xf79   : > { %v4788_v31 = vpop.xlane.xlu1 %4787 }
 0xf7a   : > { %12384 = vrcp.f32 %v4788_v31 }
 0xf80   : > { %v12385_v34 = vpop.eup %12384 }
 0xf81   : > { %v4792_v30 = vperm.slane %v12385_v34, 1  ;;  %v4791_v23 = vperm.slane %v12385_v34, 0  ;;  %v4794_v42 = vperm.slane %v12385_v34, 3  ;;  %v4793_v12 = vperm.slane %v12385_v34, 2 }
 0xf82   : > { %v4796_v25 = vperm.slane %v12385_v34, 5  ;;  %v4795_v21 = vperm.slane %v12385_v34, 4  ;;  %v4798_v48 = vperm.slane %v12385_v34, 7  ;;  %v4797_v52 = vperm.slane %v12385_v34, 6  ;;  %v14996_v34 = vld [vmem:[%s13101_s22 + $0x8] sm:$0xff]  }
 0xf83   : > { %v14955_v51 = vmul.f32 %v12371_v10, %v4792_v30  ;;  %v14957_v53 = vmul.f32 %v12373_v47, %v4791_v23  ;;  %v14963_v56 = vmul.f32 %v12379_v33, %v4794_v42  ;;  %v14966_v49 = vmul.f32 %v14933_v13, %v4793_v12  ;;  %v10484_v42 = vld [vmem:[%s17320_s6 + $0xe0] sm:$0xf]  ;;  %v11685_v12 = vld [vmem:[%s17320_s6 + $0xec] sm:$0xf0] }
 0xf84   : > { %v14972_v41 = vmul.f32 %v12377_v36, %v4796_v25  ;;  %v14974_v8 = vmul.f32 %v12381_v7, %v4795_v21  ;;  %v14980_v15 = vmul.f32 %v12383_v60, %v4798_v48  ;;  %v14983_v46 = vmul.f32 %v14936_v63, %v4797_v52  ;;  %v10486_v25 = vld [vmem:[%s17320_s6 + $0xf0] sm:$0xf0]  ;;  %v10492_v21 = vld [vmem:[%s17320_s6 + $0xe8] sm:$0xf] }
 0xf85   : > { %17370 = vst [vmem:[#allocation10_spill] sm:$0xff] %v14955_v51  ;;  %v4816_v4 = vpack.c.bf16 %v14955_v51, %v14955_v51  ;;  %v4815_v59 = vpack.c.bf16 %v14957_v53, %v14957_v53  ;;  %v4818_v10 = vpack.c.bf16 %v14963_v56, %v14963_v56  ;;  %v4817_v47 = vpack.c.bf16 %v14966_v49, %v14966_v49 }
 0xf86   : > { %17371 = vst [vmem:[#allocation11_spill] sm:$0xff] %v14963_v56  ;;  %v4820_v33 = vpack.c.bf16 %v14972_v41, %v14972_v41  ;;  %v4819_v13 = vpack.c.bf16 %v14974_v8, %v14974_v8  ;;  %v4822_v36 = vpack.c.bf16 %v14980_v15, %v14980_v15  ;;  %v4821_v7 = vpack.c.bf16 %v14983_v46, %v14983_v46 }
 0xf87   : > { %4842 = vperm.xlu0 %12198, %v4816_v4   ;;  %4833 = vperm.xlu2 %12200, %v4815_v59   ;;  %17372 = vst [vmem:[#allocation12_spill] sm:$0xff] %v14966_v49  ;;  %v12021_v23 = vunpack.c.l.bf16 %v14996_v34 }
 0xf88   : > { %17373 = vst [vmem:[#allocation13_spill] sm:$0xff] %v14972_v41 }
 0xf89   : > { %17374 = vst [vmem:[#allocation14_spill] sm:$0xff] %v14974_v8 }
 0xf8a   : > { %17375 = vst [vmem:[#allocation15_spill] sm:$0xff] %v14980_v15 }
 0xf8b   : > { %17376 = vst [vmem:[#allocation16_spill] sm:$0xff] %v14983_v46 }
 0xf8f   : > { %4860 = vperm.xlu0 %12198, %v4818_v10   ;;  %4851 = vperm.xlu2 %12200, %v4817_v47   ;;  %v11683_v10 = vld [vmem:[%s17320_s6 + $0xe4] sm:$0xf]  ;;  %v10485_v47 = vor.u32 %v11685_v12, %v10484_v42  ;;  %v15046_v42 = vld [vmem:[%s13101_s22 + $0x18] sm:$0xff]  }
 0xf90   : > { %v10489_v52 = vor.u32 %v11683_v10, %v10486_v25  ;;  %v11680_v10 = vld [vmem:[%s17320_s6 + $0xcc] sm:$0xf] }
 0xf91   : > { %5225 = vmatpush.bf16.msra.mxu0 %v10485_v47  ;;  %v10478_v47 = vld [vmem:[%s17320_s6 + $0xd8] sm:$0xf0] }
 0xf92   : > { %5238 = vmatpush.bf16.msra.mxu1 %v10489_v52 }
 0xf97   : > { %4878 = vperm.xlu0 %12198, %v4820_v33   ;;  %4869 = vperm.xlu2 %12200, %v4819_v13   ;;  %v11686_v33 = vld [vmem:[%s17320_s6 + $0xf4] sm:$0xf0] }
 0xf9f   : > { %4896 = vperm.xlu0 %12198, %v4822_v36   ;;  %4887 = vperm.xlu2 %12200, %v4821_v7   ;;  %v11684_v36 = vld [vmem:[%s17320_s6 + $0xec] sm:$0xf]  ;;  %v10494_v7 = vld [vmem:[%s17320_s6 + $0xf8] sm:$0xf0] }
 0xfe1   : > { %v4834_v16 = vpop.permute.xlu2 %4833 }
 0xfe2   : > { %v4839_v60 = vperm.slane %v4834_v16, %v13131_v32  ;;  %v15024_v16 = vld [vmem:[%s13101_s22 + $0x10] sm:$0xff]  }
 0xfe3   : > { %v12025_v25 = vunpack.c.l.bf16 %v15024_v16 }
 0xfe4   : > { %v4903_v44 = vunpack.c.l.bf16 %v4839_v60  ;;  %v10493_v60 = vor.u32 %v11686_v33, %v10492_v21 }
 0xfe6   : > { %v4919_v17 = vmul.f32 %v12017_v29, %v4903_v44  ;;  %v10497_v44 = vor.u32 %v11684_v36, %v10494_v7  ;;  %5251 = vmatpush.bf16.msra.mxu2 %v10493_v60  ;;  %v10481_v7 = vor.u32 %v11680_v10, %v10478_v47 }
 0xfe8   : > { %v4927_v3 = vpack.c.bf16 %v4919_v17, %v4919_v17  ;;  %v10468_v17 = vld [vmem:[%s17320_s6 + $0xc0] sm:$0xf]  ;;  %5264 = vmatpush.bf16.msra.mxu3 %v10497_v44 }
 0xfe9   : > { %v4852_v63 = vpop.permute.xlu2 %4851  ;;  %v10452_v44 = vld [vmem:[%s17320_s6 + $0xa0] sm:$0xf] }
 0xfea   : > { %v4935_v55 = vunpack.c.l.bf16 %v4927_v3  ;;  %v4857_v31 = vperm.slane %v4852_v63, %v13131_v32  ;;  %v11681_v3 = vld [vmem:[%s17320_s6 + $0xcc] sm:$0xf0]  ;;  %v11679_v63 = vld [vmem:[%s17320_s6 + $0xc4] sm:$0xf] }
 0xfec   : > { %v4943_v30 = vrot.slane %v4935_v55, 4  ;;  %v4905_v4 = vunpack.c.l.bf16 %v4857_v31  ;;  %v10470_v31 = vld [vmem:[%s17320_s6 + $0xd0] sm:$0xf0]  ;;  %5265 = vmatpush.bf16.msra.mxu3 %v10481_v7 }
 0xfed   : > { %v10473_v12 = vor.u32 %v11679_v63, %v10470_v31  ;;  %v10460_v31 = vld [vmem:[%s17320_s6 + $0xa8] sm:$0xf] }
 0xfee   : > { %v4944_v13 = vadd.f32 %v4943_v30, %v4935_v55  ;;  %v4921_v48 = vmul.f32 %v12021_v23, %v4905_v4  ;;  %v10469_v55 = vor.u32 %v11681_v3, %v10468_v17  ;;  %v10476_v30 = vld [vmem:[%s17320_s6 + $0xc8] sm:$0xf]  ;;  %v11682_v23 = vld [vmem:[%s17320_s6 + $0xd4] sm:$0xf0]  ;;  %v11677_v17 = vld [vmem:[%s17320_s6 + $0xac] sm:$0xf0]  ;;  %v12029_v3 = vunpack.c.l.bf16 %v15046_v42 }
 0xfef   : > { %v10477_v36 = vor.u32 %v11682_v23, %v10476_v30  ;;  %5239 = vmatpush.bf16.msra.mxu1 %v10473_v12  ;;  %v11678_v30 = vld [vmem:[%s17320_s6 + $0xb4] sm:$0xf0] }
 0xff0   : > { %v4945_v4 = vrot.slane %v4944_v13, 2  ;;  %5226 = vmatpush.bf16.msra.mxu0 %v10469_v55  ;;  %v10454_v55 = vld [vmem:[%s17320_s6 + $0xb0] sm:$0xf0] }
 0xff1   : > { %v4870_v59 = vpop.permute.xlu2 %4869  ;;  %5252 = vmatpush.bf16.msra.mxu2 %v10477_v36 }
 0xff2   : > { %v4875_v29 = vperm.slane %v4870_v59, %v13131_v32  ;;  %v4929_v59 = vpack.c.bf16 %v4921_v48, %v4921_v48  ;;  %v12018_v48 = vunpack.c.h.bf16 %v14990_v45  ;;  %v10453_v45 = vor.u32 %v11677_v17, %v10452_v44 }
 0xff3   : > { %v15077_v23 = vadd.f32 %v4945_v4, %v4944_v13  ;;  %v10461_v44 = vor.u32 %v11678_v30, %v10460_v31  ;;  %v10436_v13 = vld [vmem:[%s17320_s6 + $0x80] sm:$0xf]  ;;  %v11673_v4 = vld [vmem:[%s17320_s6 + $0x8c] sm:$0xf0]  ;;  %v11672_v31 = vld [vmem:[%s17320_s6 + $0x8c] sm:$0xf] }
 0xff4   : > { %v4907_v21 = vunpack.c.l.bf16 %v4875_v29  ;;  %v11675_v29 = vld [vmem:[%s17320_s6 + $0xa4] sm:$0xf]  ;;  %v4937_v12 = vunpack.c.l.bf16 %v4929_v59  ;;  %5227 = vmatpush.bf16.msra.mxu0 %v10453_v45  ;;  %v10446_v30 = vld [vmem:[%s17320_s6 + $0x98] sm:$0xf0] }
 0xff5   : > { %v10457_v47 = vor.u32 %v11675_v29, %v10454_v55  ;;  %v11671_v59 = vld [vmem:[%s17320_s6 + $0x84] sm:$0xf]  ;;  %5253 = vmatpush.bf16.msra.mxu2 %v10461_v44  ;;  %v10449_v44 = vor.u32 %v11672_v31, %v10446_v30  ;;  %v10430_v31 = vld [vmem:[%s17320_s6 + $0x78] sm:$0xf0]  ;;  %v12030_v29 = vunpack.c.h.bf16 %v15046_v42 }
 0xff6   : > { %v4923_v36 = vmul.f32 %v12025_v25, %v4907_v21  ;;  %v10437_v25 = vor.u32 %v11673_v4, %v10436_v13  ;;  %v10438_v21 = vld [vmem:[%s17320_s6 + $0x90] sm:$0xf0]  ;;  %v12022_v13 = vunpack.c.h.bf16 %v14996_v34  ;;  %v10420_v4 = vld [vmem:[%s17320_s6 + $0x60] sm:$0xf] }
 0xff7   : > { %5240 = vmatpush.bf16.msra.mxu1 %v10457_v47  ;;  %v10441_v55 = vor.u32 %v11671_v59, %v10438_v21  ;;  %v11669_v59 = vld [vmem:[%s17320_s6 + $0x6c] sm:$0xf0]  ;;  %v10422_v34 = vld [vmem:[%s17320_s6 + $0x70] sm:$0xf0] }
 0xff8   : > { %5228 = vmatpush.bf16.msra.mxu0 %v10437_v25  ;;  %v11670_v25 = vld [vmem:[%s17320_s6 + $0x74] sm:$0xf0] }
 0xff9   : > { %v4843_v33 = vpop.permute.xlu0 %4842  ;;  %v4888_v52 = vpop.permute.xlu2 %4887 }
 0xffa   : > { %v4848_v60 = vperm.slane %v4843_v33, %v13131_v32  ;;  %v4893_v63 = vperm.slane %v4888_v52, %v13131_v32  ;;  %v11676_v33 = vld [vmem:[%s17320_s6 + $0xac] sm:$0xf]  ;;  %v10462_v52 = vld [vmem:[%s17320_s6 + $0xb8] sm:$0xf0] }
 0xffb   : > { %v10465_v17 = vor.u32 %v11676_v33, %v10462_v52  ;;  %5241 = vmatpush.bf16.msra.mxu1 %v10441_v55  ;;  %v11668_v55 = vld [vmem:[%s17320_s6 + $0x6c] sm:$0xf] }
 0xffc   : > { %v4904_v10 = vunpack.c.l.bf16 %v4848_v60  ;;  %v4909_v7 = vunpack.c.l.bf16 %v4893_v63  ;;  %v11674_v60 = vld [vmem:[%s17320_s6 + $0x94] sm:$0xf0]  ;;  %v4955_v63 = vrot.slane %v4937_v12, 4 }
 0xffd   : > { %5266 = vmatpush.bf16.msra.mxu3 %v10465_v17 }
 0xffe   : > { %v4920_v41 = vmul.f32 %v12018_v48, %v4904_v10  ;;  %v10444_v48 = vld [vmem:[%s17320_s6 + $0x88] sm:$0xf]  ;;  %v4931_v10 = vpack.c.bf16 %v4923_v36, %v4923_v36  ;;  %v4925_v47 = vmul.f32 %v12029_v3, %v4909_v7  ;;  %v11667_v3 = vld [vmem:[%s17320_s6 + $0x64] sm:$0xf]  ;;  %v10421_v36 = vor.u32 %v11669_v59, %v10420_v4 }
 0xfff   : > { %v10445_v52 = vor.u32 %v11674_v60, %v10444_v48  ;;  %v10428_v7 = vld [vmem:[%s17320_s6 + $0x68] sm:$0xf]  ;;  %v15130_v21 = vadd.f32 %v4955_v63, %v4937_v12  ;;  %v10404_v12 = vld [vmem:[%s17320_s6 + $0x40] sm:$0xf]  ;;  %v11665_v63 = vld [vmem:[%s17320_s6 + $0x4c] sm:$0xf0] }
0x1000   : > { %v4928_v45 = vpack.c.bf16 %v4920_v41, %v4920_v41  ;;  %v4939_v30 = vunpack.c.l.bf16 %v4931_v10  ;;  %5229 = vmatpush.bf16.msra.mxu0 %v10421_v36  ;;  %v10405_v10 = vor.u32 %v11665_v63, %v10404_v12  ;;  %v12026_v12 = vunpack.c.h.bf16 %v15024_v16  ;;  %v10388_v63 = vld [vmem:[%s17320_s6 + $0x20] sm:$0xf]  ;;  %v10390_v16 = vld [vmem:[%s17320_s6 + $0x30] sm:$0xf0] }
0x1001   : > { %v4861_v33 = vpop.permute.xlu0 %4860  ;;  %5254 = vmatpush.bf16.msra.mxu2 %v10445_v52  ;;  %5267 = vmatpush.bf16.msra.mxu3 %v10449_v44  ;;  %v10429_v52 = vor.u32 %v11670_v25, %v10428_v7  ;;  %v10433_v44 = vor.u32 %v11668_v55, %v10430_v31  ;;  %v11664_v25 = vld [vmem:[%s17320_s6 + $0x4c] sm:$0xf] }
0x1002   : > { %v4936_v17 = vunpack.c.l.bf16 %v4928_v45  ;;  %v4866_v41 = vperm.slane %v4861_v33, %v13131_v32  ;;  %v10425_v45 = vor.u32 %v11667_v3, %v10422_v34  ;;  %v4933_v33 = vpack.c.bf16 %v4925_v47, %v4925_v47  ;;  %v10406_v47 = vld [vmem:[%s17320_s6 + $0x50] sm:$0xf0] }
0x1003   : > { %v4957_v3 = vrot.slane %v15130_v21, 2 }
0x1004   : > { %v4949_v48 = vrot.slane %v4936_v17, 4  ;;  %v4906_v60 = vunpack.c.l.bf16 %v4866_v41  ;;  %5242 = vmatpush.bf16.msra.mxu1 %v10425_v45  ;;  %v11663_v41 = vld [vmem:[%s17320_s6 + $0x44] sm:$0xf]  ;;  %v4941_v45 = vunpack.c.l.bf16 %v4933_v33  ;;  %5230 = vmatpush.bf16.msra.mxu0 %v10405_v10 }
0x1005   : > { %5255 = vmatpush.bf16.msra.mxu2 %v10429_v52  ;;  %5268 = vmatpush.bf16.msra.mxu3 %v10433_v44  ;;  %v10409_v7 = vor.u32 %v11663_v41, %v10406_v47  ;;  %v11661_v41 = vld [vmem:[%s17320_s6 + $0x2c] sm:$0xf0]  ;;  %v11659_v33 = vld [vmem:[%s17320_s6 + $0x24] sm:$0xf]  ;;  %v10396_v47 = vld [vmem:[%s17320_s6 + $0x28] sm:$0xf] }
0x1006   : > { %v4950_v4 = vadd.f32 %v4949_v48, %v4936_v17  ;;  %v4922_v59 = vmul.f32 %v12022_v13, %v4906_v60  ;;  %v10412_v17 = vld [vmem:[%s17320_s6 + $0x48] sm:$0xf]  ;;  %v11666_v13 = vld [vmem:[%s17320_s6 + $0x54] sm:$0xf0]  ;;  %v10414_v48 = vld [vmem:[%s17320_s6 + $0x58] sm:$0xf0]  ;;  %v10389_v10 = vor.u32 %v11661_v41, %v10388_v63 }
0x1007   : > { %v4967_v60 = vrot.slane %v4939_v30, 4  ;;  %v10413_v31 = vor.u32 %v11666_v13, %v10412_v17  ;;  %v10417_v52 = vor.u32 %v11664_v25, %v10414_v48  ;;  %v11662_v17 = vld [vmem:[%s17320_s6 + $0x34] sm:$0xf0]  ;;  %v10393_v25 = vor.u32 %v11659_v33, %v10390_v16  ;;  %v11660_v48 = vld [vmem:[%s17320_s6 + $0x2c] sm:$0xf] }
0x1008   : > { %v4951_v36 = vrot.slane %v4950_v4, 2  ;;  %v4930_v34 = vpack.c.bf16 %v4922_v59, %v4922_v59  ;;  %5243 = vmatpush.bf16.msra.mxu1 %v10409_v7  ;;  %5231 = vmatpush.bf16.msra.mxu0 %v10389_v10  ;;  %v10397_v63 = vor.u32 %v11662_v17, %v10396_v47  ;;  %v10380_v10 = vld [vmem:[%s17320_s6 + $0x8] sm:$0xf]  ;;  %v10382_v17 = vld [vmem:[%s17320_s6 + $0x18] sm:$0xf0] }
0x1009   : > { %v4879_v55 = vpop.permute.xlu0 %4878  ;;  %5256 = vmatpush.bf16.msra.mxu2 %v10413_v31  ;;  %5269 = vmatpush.bf16.msra.mxu3 %v10417_v52  ;;  %v4968_v31 = vadd.f32 %v4967_v60, %v4939_v30  ;;  %v4979_v52 = vrot.slane %v4941_v45, 4  ;;  %v11655_v30 = vld [vmem:[%s17320_s6 + $0x4] sm:$0xf]  ;;  %v10374_v60 = vld [vmem:[%s17320_s6 + $0x10] sm:$0xf0] }
0x100a   : > { %v4938_v44 = vunpack.c.l.bf16 %v4930_v34  ;;  %v4884_v59 = vperm.slane %v4879_v55, %v13131_v32  ;;  %v4952_v13 = vadd.f32 %v4951_v36, %v4950_v4  ;;  %v10398_v55 = vld [vmem:[%s17320_s6 + $0x38] sm:$0xf0]  ;;  %v10372_v4 = vld [vmem:[%s17320_s6] sm:$0xf]  ;;  %v11657_v36 = vld [vmem:[%s17320_s6 + $0xc] sm:$0xf0]  ;;  %v10377_v47 = vor.u32 %v11655_v30, %v10374_v60 }
0x100b   : > { %v10401_v41 = vor.u32 %v11660_v48, %v10398_v55  ;;  %v10373_v16 = vor.u32 %v11657_v36, %v10372_v4  ;;  %v4958_v55 = vadd.f32 %v4957_v3, %v15130_v21 }
0x100c   : > { %v4961_v34 = vrot.slane %v4938_v44, 4  ;;  %v4908_v7 = vunpack.c.l.bf16 %v4884_v59  ;;  %5244 = vmatpush.bf16.msra.mxu1 %v10393_v25 }
0x100d   : > { %5257 = vmatpush.bf16.msra.mxu2 %v10397_v63  ;;  %5270 = vmatpush.bf16.msra.mxu3 %v10401_v41  ;;  %v4969_v63 = vrot.slane %v4968_v31, 2  ;;  %v4980_v41 = vadd.f32 %v4979_v52, %v4941_v45  ;;  %v17377_v45 = vrot.slane %v15077_v23, 1 }
0x100e   : > { %v4962_v59 = vadd.f32 %v4961_v34, %v4938_v44  ;;  %v4924_v33 = vmul.f32 %v12026_v12, %v4908_v7  ;;  %v11658_v44 = vld [vmem:[%s17320_s6 + $0x14] sm:$0xf0]  ;;  %v11656_v12 = vld [vmem:[%s17320_s6 + $0xc] sm:$0xf]  ;;  %v4953_v34 = vrot.slane %v4952_v13, 1  ;;  %5232 = vmatpush.bf16.msra.mxu0 %v10373_v16 }
0x100f   : > { %v10381_v48 = vor.u32 %v11658_v44, %v10380_v10  ;;  %v10385_v36 = vor.u32 %v11656_v12, %v10382_v17  ;;  %v4959_v44 = vrot.slane %v4958_v55, 1  ;;  %v4970_v21 = vadd.f32 %v4969_v63, %v4968_v31 }
0x1010   : > { %v4963_v7 = vrot.slane %v4962_v59, 2  ;;  %v4932_v25 = vpack.c.bf16 %v4924_v33, %v4924_v33  ;;  %5245 = vmatpush.bf16.msra.mxu1 %v10377_v47  ;;  %v4954_v49 = vadd.f32 %v4953_v34, %v4952_v13  ;;  %v4981_v3 = vrot.slane %v4980_v41, 2 }
0x1011   : > { %v4897_v4 = vpop.permute.xlu0 %4896  ;;  %5258 = vmatpush.bf16.msra.mxu2 %v10381_v48  ;;  %5271 = vmatpush.bf16.msra.mxu3 %v10385_v36  ;;  %v4948_v52 = vadd.f32 %v17377_v45, %v15077_v23  ;;  %v4960_v47 = vadd.f32 %v4959_v44, %v4958_v55 }
0x1012   : > { %v4964_v30 = vadd.f32 %v4963_v7, %v4962_v59  ;;  %v4940_v60 = vunpack.c.l.bf16 %v4932_v25  ;;  %v4902_v15 = vperm.slane %v4897_v4, %v13131_v32  ;;  %v5001_v12 = vpack.c.bf16 %v4954_v49, %v4954_v49 }
0x1013   : > { %v4971_v25 = vrot.slane %v4970_v21, 1  ;;  %v4982_v48 = vadd.f32 %v4981_v3, %v4980_v41  ;;  %v5000_v13 = vpack.c.bf16 %v4948_v52, %v4948_v52  ;;  %v5002_v51 = vpack.c.bf16 %v4960_v47, %v4960_v47 }
0x1014   : > { %v4965_v8 = vrot.slane %v4964_v30, 1  ;;  %v4973_v33 = vrot.slane %v4940_v60, 4  ;;  %v4910_v10 = vunpack.c.l.bf16 %v4902_v15  ;;  %v5049_v15 = vunpack.c.l.b16 %v5001_v12 }
0x1015   : > { %v4972_v14 = vadd.f32 %v4971_v25, %v4970_v21  ;;  %v4983_v46 = vrot.slane %v4982_v48, 1  ;;  %v5048_v23 = vunpack.c.l.b16 %v5000_v13  ;;  %v11724_v13 = vld [vmem:[%s17317_s3 + $0x128] sm:$0xf0] }
0x1016   : > { %v4974_v59 = vadd.f32 %v4973_v33, %v4940_v60  ;;  %v4926_v16 = vmul.f32 %v12030_v29, %v4910_v10  ;;  %v4966_v42 = vadd.f32 %v4965_v8, %v4964_v30  ;;  %v5050_v33 = vunpack.c.l.b16 %v5002_v51 }
0x1017   : > { %v5056_v49 = vsel %vm1033_vm0, %v5049_v15, %v5048_v23  ;;  %v5004_v41 = vpack.c.bf16 %v4972_v14, %v4972_v14  ;;  %v4984_v10 = vadd.f32 %v4983_v46, %v4982_v48  ;;  %v10645_v48 = vld [vmem:[%s17317_s3 + $0x118] sm:$0xf]  ;;  %v11719_v15 = vld [vmem:[%s17317_s3 + $0x100] sm:$0xf0] }
0x1018   : > { %v4975_v17 = vrot.slane %v4974_v59, 2  ;;  %v4934_v7 = vpack.c.bf16 %v4926_v16, %v4926_v16  ;;  %v5003_v36 = vpack.c.bf16 %v4966_v42, %v4966_v42  ;;  %v5057_v3 = vsel %vm1035_vm1, %v5050_v33, %v5056_v49 }
0x1019   : > { %v5052_v21 = vunpack.c.l.b16 %v5004_v41  ;;  %v5006_v16 = vpack.c.bf16 %v4984_v10, %v4984_v10  ;;  %v11725_v41 = vld [vmem:[%s17317_s3 + $0x130] sm:$0xf0]  ;;  %v11723_v10 = vld [vmem:[%s17317_s3 + $0x124] sm:$0xf] }
0x101a   : > { %v4976_v34 = vadd.f32 %v4975_v17, %v4974_v59  ;;  %v4942_v4 = vunpack.c.l.bf16 %v4934_v7  ;;  %v5051_v8 = vunpack.c.l.b16 %v5003_v36 }
0x101b   : > { %v5054_v47 = vunpack.c.l.b16 %v5006_v16  ;;  %v11717_v16 = vld [vmem:[%s17317_s3 + $0xf4] sm:$0xf] }
0x101c   : > { %v4977_v31 = vrot.slane %v4976_v34, 1  ;;  %v4985_v63 = vrot.slane %v4942_v4, 4  ;;  %v5058_v45 = vsel %vm1037_vm2, %v5051_v8, %v5057_v3  ;;  %v11722_v8 = vld [vmem:[%s17317_s3 + $0x11c] sm:$0xf] }
0x101d   : > { %v5059_v42 = vsel %vm1039_vm3, %v5052_v21, %v5058_v45 }
0x101e   : > { %v4978_v60 = vadd.f32 %v4977_v31, %v4976_v34  ;;  %v4986_v29 = vadd.f32 %v4985_v63, %v4942_v4  ;;  %v10646_v34 = vor.u32 %v11724_v13, %v10645_v48  ;;  %v10625_v4 = vld [vmem:[%s17317_s3 + $0xf0] sm:$0xf]  ;;  %v10605_v31 = vld [vmem:[%s17317_s3 + $0xc8] sm:$0xf]  ;;  %v11714_v63 = vld [vmem:[%s17317_s3 + $0xd8] sm:$0xf0] }
0x101f   : > { %v10626_v36 = vor.u32 %v11719_v15, %v10625_v4  ;;  %v10606_v23 = vor.u32 %v11714_v63, %v10605_v31  ;;  %v11699_v48 = vld [vmem:[%s17317_s3 + $0x60] sm:$0xf0]  ;;  %v10607_v4 = vld [vmem:[%s17317_s3 + $0xdc] sm:$0xf0]  ;;  %v10613_v15 = vld [vmem:[%s17317_s3 + $0xd0] sm:$0xf] }
0x1020   : > { %v5005_v30 = vpack.c.bf16 %v4978_v60, %v4978_v60  ;;  %v4987_v55 = vrot.slane %v4986_v29, 2  ;;  %5653 = vmatpush.bf16.msrb.mxu0 %v10646_v34  ;;  %v10585_v60 = vld [vmem:[%s17317_s3 + $0xa0] sm:$0xf]  ;;  %v11712_v34 = vld [vmem:[%s17317_s3 + $0xcc] sm:$0xf] }
0x1021   : > { %v11715_v31 = vld [vmem:[%s17317_s3 + $0xe0] sm:$0xf0]  ;;  %v11713_v63 = vld [vmem:[%s17317_s3 + $0xd4] sm:$0xf] }
0x1022   : > { %v4988_v44 = vadd.f32 %v4987_v55, %v4986_v29  ;;  %v5053_v52 = vunpack.c.l.b16 %v5005_v30  ;;  %v11709_v29 = vld [vmem:[%s17317_s3 + $0xb0] sm:$0xf0]  ;;  %v10647_v30 = vld [vmem:[%s17317_s3 + $0x12c] sm:$0xf0]  ;;  %v10653_v55 = vld [vmem:[%s17317_s3 + $0x120] sm:$0xf] }
0x1023   : > { %v10586_v49 = vor.u32 %v11709_v29, %v10585_v60  ;;  %v10650_v33 = vor.u32 %v11722_v8, %v10647_v30  ;;  %v10654_v3 = vor.u32 %v11725_v41, %v10653_v55  ;;  %v10366_v60 = vld [vmem:[%s13397_s29 + $0x60] sm:$0xff]  ;;  %v10614_v29 = vor.u32 %v11715_v31, %v10613_v15  ;;  %v10367_v8 = vld [vmem:[%s13397_s29 + $0x68] sm:$0xff]  ;;  %v11694_v55 = vld [vmem:[%s17317_s3 + $0x38] sm:$0xf0] }
0x1024   : > { %v4989_v59 = vrot.slane %v4988_v44, 1  ;;  %v5060_v7 = vsel %vm1041_vm4, %v5053_v52, %v5059_v42  ;;  %5654 = vmatpush.bf16.msrb.mxu0 %v10626_v36  ;;  %v10565_v52 = vld [vmem:[%s17317_s3 + $0x78] sm:$0xf]  ;;  %v10610_v36 = vor.u32 %v11712_v34, %v10607_v4  ;;  %v10525_v30 = vld [vmem:[%s17317_s3 + $0x28] sm:$0xf] }
0x1025   : > { %v5061_v14 = vsel %vm1043_vm5, %v5054_v47, %v5060_v7  ;;  %5666 = vmatpush.bf16.msrb.mxu1 %v10650_v33  ;;  %5679 = vmatpush.bf16.msrb.mxu2 %v10654_v3  ;;  %v10633_v42 = vld [vmem:[%s17317_s3 + $0xf8] sm:$0xf]  ;;  %v11720_v7 = vld [vmem:[%s17317_s3 + $0x108] sm:$0xf0]  ;;  %v11718_v47 = vld [vmem:[%s17317_s3 + $0xfc] sm:$0xf]  ;;  %v10526_v33 = vor.u32 %v11694_v55, %v10525_v30 }
0x1026   : > { %v4990_v12 = vadd.f32 %v4989_v59, %v4988_v44  ;;  %v10655_v44 = vld [vmem:[%s17317_s3 + $0x134] sm:$0xf0]  ;;  %v11704_v59 = vld [vmem:[%s17317_s3 + $0x88] sm:$0xf0]  ;;  %v11707_v41 = vld [vmem:[%s17317_s3 + $0xa4] sm:$0xf] }
0x1027   : > { %v10658_v45 = vor.u32 %v11723_v10, %v10655_v44  ;;  %v10566_v21 = vor.u32 %v11704_v59, %v10565_v52  ;;  %v10587_v10 = vld [vmem:[%s17317_s3 + $0xb4] sm:$0xf0]  ;;  %v10593_v44 = vld [vmem:[%s17317_s3 + $0xa8] sm:$0xf]  ;;  %v11708_v52 = vld [vmem:[%s17317_s3 + $0xac] sm:$0xf] }
0x1028   : > { %v5007_v17 = vpack.c.bf16 %v4990_v12, %v4990_v12  ;;  %5655 = vmatpush.bf16.msrb.mxu0 %v10606_v23  ;;  %v10627_v12 = vld [vmem:[%s17317_s3 + $0x104] sm:$0xf0]  ;;  %v10590_v3 = vor.u32 %v11707_v41, %v10587_v10  ;;  %v10595_v59 = vld [vmem:[%s17317_s3 + $0xbc] sm:$0xf0]  ;;  %v11705_v4 = vld [vmem:[%s17317_s3 + $0x90] sm:$0xf0] }
0x1029   : > { %5692 = vmatpush.bf16.msrb.mxu3 %v10658_v45  ;;  %v10615_v23 = vld [vmem:[%s17317_s3 + $0xe4] sm:$0xf0]  ;;  %v11710_v45 = vld [vmem:[%s17317_s3 + $0xb8] sm:$0xf0]  ;;  %v11703_v15 = vld [vmem:[%s17317_s3 + $0x84] sm:$0xf] }
0x102a   : > { %v5055_v25 = vunpack.c.l.b16 %v5007_v17  ;;  %v10630_v17 = vor.u32 %v11717_v16, %v10627_v12  ;;  %v4997_v16 = vadd.f32 %v10367_v8, %v14892_v5  ;;  %v10594_v12 = vor.u32 %v11710_v45, %v10593_v44  ;;  %v11702_v5 = vld [vmem:[%s17317_s3 + $0x7c] sm:$0xf]  ;;  %v11697_v8 = vld [vmem:[%s17317_s3 + $0x54] sm:$0xf]  ;;  %v10547_v30 = vld [vmem:[%s17317_s3 + $0x64] sm:$0xf0] }
0x102b   : > { %v10553_v41 = vld [vmem:[%s17317_s3 + $0x58] sm:$0xf]  ;;  %v11700_v10 = vld [vmem:[%s17317_s3 + $0x68] sm:$0xf0]  ;;  %v11698_v44 = vld [vmem:[%s17317_s3 + $0x5c] sm:$0xf] }
0x102c   : > { %v5062_v51 = vsel %vm1045_vm6, %v5055_v25, %v5061_v14  ;;  %5656 = vmatpush.bf16.msrb.mxu0 %v10586_v49  ;;  %v10635_v25 = vld [vmem:[%s17317_s3 + $0x10c] sm:$0xf0]  ;;  %v10634_v14 = vor.u32 %v11720_v7, %v10633_v42  ;;  %5667 = vmatpush.bf16.msrb.mxu1 %v10630_v17  ;;  %v10618_v49 = vor.u32 %v11713_v63, %v10615_v23 }
0x102d   : > { %v5063_v46 = vpack.c.b16 %v5062_v51, %v5062_v51  ;;  %v10638_v51 = vor.u32 %v11718_v47, %v10635_v25  ;;  %v10598_v42 = vor.u32 %v11708_v52, %v10595_v59  ;;  %v10505_v47 = vld [vmem:[%s17317_s3] sm:$0xf]  ;;  %v11689_v25 = vld [vmem:[%s17317_s3 + $0x10] sm:$0xf0]  ;;  %v10554_v45 = vor.u32 %v11700_v10, %v10553_v41  ;;  %v10555_v52 = vld [vmem:[%s17317_s3 + $0x6c] sm:$0xf0] }
0x102e   : > { %5680 = vmatpush.bf16.msrb.mxu2 %v10634_v14  ;;  %v10369_v14 = vld [vmem:[%s13397_s29 + $0x78] sm:$0xff]  ;;  %v10641_v59 = vld [vmem:[%s17317_s3 + $0x100] sm:$0xf]  ;;  %v10601_v10 = vld [vmem:[%s17317_s3 + $0xb0] sm:$0xf] }
0x102f   : > { %5233 = vmatmul.bf16.vlgmr.msra.gmra.mxu0 %v5063_v46  ;;  %5246 = vmatmul.bf16.vlgmr.msra.gmra.mxu1 %v5063_v46 }
0x1030   : > { %5259 = vmatmul.bf16.vlgmr.msra.gmra.mxu2 %v5063_v46  ;;  %5272 = vmatmul.bf16.vlgmr.msra.gmra.mxu3 %v5063_v46  ;;  %v10545_v46 = vld [vmem:[%s17317_s3 + $0x50] sm:$0xf] }
0x1031   : > { %5657 = vmatpush.bf16.msrb.mxu0 %v10566_v21  ;;  %5693 = vmatpush.bf16.msrb.mxu3 %v10638_v51  ;;  %v10546_v13 = vor.u32 %v11699_v48, %v10545_v46  ;;  %v4996_v21 = vadd.f32 %v10366_v60, %v14890_v61  ;;  %v10506_v61 = vor.u32 %v11689_v25, %v10505_v47  ;;  %v10567_v48 = vld [vmem:[%s17317_s3 + $0x8c] sm:$0xf0] }
0x1032   : > { %5668 = vmatpush.bf16.msrb.mxu1 %v10610_v36  ;;  %5681 = vmatpush.bf16.msrb.mxu2 %v10614_v29  ;;  %v10570_v34 = vor.u32 %v11702_v5, %v10567_v48  ;;  %v10575_v36 = vld [vmem:[%s17317_s3 + $0x94] sm:$0xf0]  ;;  %v10661_v29 = vld [vmem:[%s17317_s3 + $0x128] sm:$0xf]  ;;  %v10533_v47 = vld [vmem:[%s17317_s3 + $0x30] sm:$0xf] }
0x1033   : > { %v10578_v60 = vor.u32 %v11703_v15, %v10575_v36  ;;  %v11693_v5 = vld [vmem:[%s17317_s3 + $0x34] sm:$0xf]  ;;  %v10535_v48 = vld [vmem:[%s17317_s3 + $0x44] sm:$0xf0]  ;;  %v11716_v15 = vld [vmem:[%s17317_s3 + $0xe8] sm:$0xf0] }
0x1034   : > { %v11687_v36 = vld [vmem:[%s17317_s3 + $0x4] sm:$0xf] }
0x1035   : > { %5658 = vmatpush.bf16.msrb.mxu0 %v10546_v13  ;;  %5694 = vmatpush.bf16.msrb.mxu3 %v10618_v49  ;;  %v10573_v13 = vld [vmem:[%s17317_s3 + $0x80] sm:$0xf]  ;;  %v11726_v49 = vld [vmem:[%s17317_s3 + $0x138] sm:$0xf0] }
0x1036   : > { %5669 = vmatpush.bf16.msrb.mxu1 %v10590_v3  ;;  %5682 = vmatpush.bf16.msrb.mxu2 %v10594_v12  ;;  %v10574_v23 = vor.u32 %v11705_v4, %v10573_v13  ;;  %v10662_v55 = vor.u32 %v11726_v49, %v10661_v29  ;;  %v4999_v3 = vadd.f32 %v10369_v14, %v14906_v20  ;;  %v11692_v20 = vld [vmem:[%s17317_s3 + $0x2c] sm:$0xf]  ;;  %v10621_v4 = vld [vmem:[%s17317_s3 + $0xd8] sm:$0xf]  ;;  %v11690_v49 = vld [vmem:[%s17317_s3 + $0x18] sm:$0xf0] }
0x1037   : > { %v10622_v29 = vor.u32 %v11716_v15, %v10621_v4 }
0x1039   : > { %5659 = vmatpush.bf16.msrb.mxu0 %v10526_v33  ;;  %5695 = vmatpush.bf16.msrb.mxu3 %v10598_v42  ;;  %v10550_v33 = vor.u32 %v11697_v8, %v10547_v30  ;;  %v10558_v42 = vor.u32 %v11698_v44, %v10555_v52  ;;  %v11688_v8 = vld [vmem:[%s17317_s3 + $0xc] sm:$0xf]  ;;  %v10515_v30 = vld [vmem:[%s17317_s3 + $0x1c] sm:$0xf0]  ;;  %v11711_v44 = vld [vmem:[%s17317_s3 + $0xc0] sm:$0xf0] }
0x103a   : > { %5670 = vmatpush.bf16.msrb.mxu1 %v10570_v34  ;;  %5683 = vmatpush.bf16.msrb.mxu2 %v10574_v23  ;;  %v10538_v34 = vor.u32 %v11693_v5, %v10535_v48  ;;  %v10513_v23 = vld [vmem:[%s17317_s3 + $0x8] sm:$0xf]  ;;  %v10518_v52 = vor.u32 %v11688_v8, %v10515_v30  ;;  %v11701_v5 = vld [vmem:[%s17317_s3 + $0x70] sm:$0xf0] }
0x103d   : > { %5660 = vmatpush.bf16.msrb.mxu0 %v10506_v61  ;;  %5696 = vmatpush.bf16.msrb.mxu3 %v10578_v60  ;;  %v11695_v61 = vld [vmem:[%s17317_s3 + $0x40] sm:$0xf0] }
0x103e   : > { %5671 = vmatpush.bf16.msrb.mxu1 %v10550_v33  ;;  %5684 = vmatpush.bf16.msrb.mxu2 %v10554_v45  ;;  %v10534_v13 = vor.u32 %v11695_v61, %v10533_v47  ;;  %v10514_v45 = vor.u32 %v11690_v49, %v10513_v23  ;;  %v10561_v61 = vld [vmem:[%s17317_s3 + $0x60] sm:$0xf] }
0x103f   : > { %v10562_v4 = vor.u32 %v11701_v5, %v10561_v61 }
0x1041   : > { %5705 = vmatpush.bf16.msra.mxu0 %v10662_v55  ;;  %5697 = vmatpush.bf16.msrb.mxu3 %v10558_v42  ;;  %v10602_v42 = vor.u32 %v11711_v44, %v10601_v10 }
0x1042   : > { %5685 = vmatpush.bf16.msrb.mxu2 %v10534_v13 }
0x1045   : > { %5698 = vmatpush.bf16.msrb.mxu3 %v10538_v34 }
0x1046   : > { %5686 = vmatpush.bf16.msrb.mxu2 %v10514_v45  ;;  %v10521_v45 = vld [vmem:[%s17317_s3 + $0x10] sm:$0xf] }
0x1049   : > { %5699 = vmatpush.bf16.msrb.mxu3 %v10518_v52  ;;  %v11691_v52 = vld [vmem:[%s17317_s3 + $0x20] sm:$0xf0] }
0x10ac   : > { %v5234_v17 = vpop.f32.mrf.mxu0  ;;  %v5247_v7 = vpop.f32.mrf.mxu1 }
0x10ad   : > { %v5277_v51 = vadd.f32 %v5234_v17, %v4996_v21  ;;  %v5278_v46 = vadd.f32 %v5247_v7, %v4997_v16  ;;  %v11721_v21 = vld [vmem:[%s17317_s3 + $0x110] sm:$0xf0]  ;;  %v10527_v7 = vld [vmem:[%s17317_s3 + $0x3c] sm:$0xf0] }
0x10ae   : > { %v10642_v17 = vor.u32 %v11721_v21, %v10641_v59  ;;  %v10368_v59 = vld [vmem:[%s13397_s29 + $0x70] sm:$0xff] }
0x10af   : > { %v10498_v31 = vmul.f32 -1.442695, %v5277_v51  ;;  %v10499_v63 = vmul.f32 -1.442695, %v5278_v46  ;;  %v10530_v46 = vor.u32 %v11692_v20, %v10527_v7  ;;  %v11706_v20 = vld [vmem:[%s17317_s3 + $0x98] sm:$0xf0]  ;;  %v4998_v47 = vadd.f32 %v10368_v59, %v14899_v38 }
0x10b0   : > { %5706 = vmatpush.bf16.msra.mxu0 %v10642_v17  ;;  %v10581_v17 = vld [vmem:[%s17317_s3 + $0x88] sm:$0xf] }
0x10b1   : > { %12386 = vpow2.f32 %v10498_v31  ;;  %5672 = vmatpush.bf16.msrb.mxu1 %v10530_v46 }
0x10b2   : > { %12388 = vpow2.f32 %v10499_v63  ;;  %v10507_v63 = vld [vmem:[%s17317_s3 + $0x14] sm:$0xf0] }
0x10b3   : > { %v5260_v16 = vpop.f32.mrf.mxu2  ;;  %v5273_v12 = vpop.f32.mrf.mxu3  ;;  %v10510_v41 = vor.u32 %v11687_v36, %v10507_v63  ;;  %v10541_v36 = vld [vmem:[%s17317_s3 + $0x38] sm:$0xf] }
0x10b4   : > { %v5280_v25 = vadd.f32 %v5273_v12, %v4999_v3  ;;  %v5236_v14 = vpop.f32.mrf.mxu0  ;;  %v5249_v51 = vpop.f32.mrf.mxu1  ;;  %5707 = vmatpush.bf16.msra.mxu0 %v10622_v29  ;;  %v5279_v46 = vadd.f32 %v5260_v16, %v4998_v47 }
0x10b5   : > { %5673 = vmatpush.bf16.msrb.mxu1 %v10510_v41  ;;  %v10582_v14 = vor.u32 %v11706_v20, %v10581_v17 }
0x10b6   : > { %v10500_v31 = vmul.f32 -1.442695, %v5280_v25 }
0x10b7   : > { %v12387_v60 = vpop.eup %12386 }
0x10b8   : > { %v12389_v55 = vpop.eup %12388  ;;  %v15442_v33 = vadd.f32 1.0, %v12387_v60  ;;  %12390 = vpow2.f32 %v10500_v31  ;;  %5708 = vmatpush.bf16.msra.mxu0 %v10602_v42  ;;  %v11696_v31 = vld [vmem:[%s17317_s3 + $0x48] sm:$0xf0] }
0x10b9   : > { %v15450_v3 = vadd.f32 1.0, %v12389_v55  ;;  %v10542_v55 = vor.u32 %v11696_v31, %v10541_v36  ;;  %v12555_v31 = vld [vmem:[%s17318_s4] ss:$0 sm:$0xff] }
0x10ba   : > { %12392 = vrcp.f32 %v15442_v33  ;;  %v5296_v16 = vand.u32 2147483648, %v15442_v33  ;;  %v5294_v60 = vand.u32 2147483647, %v15442_v33  ;;  %vm5290_vm14 = vweird.f32 %v15442_v33 }
0x10bb   : > { %12394 = vrcp.f32 %v15450_v3  ;;  %v5262_v21 = vpop.f32.mrf.mxu2  ;;  %v5275_v12 = vpop.f32.mrf.mxu3  ;;  %v5315_v63 = vand.u32 2147483648, %v15450_v3  ;;  %v5313_v49 = vand.u32 2147483647, %v15450_v3  ;;  %vm5309_vm15 = vweird.f32 %v15450_v3 }
0x10bc   : > { %5709 = vmatpush.bf16.msra.mxu0 %v10582_v14  ;;  %v5297_v41 = vor.u32 1.1754944e-38, %v5296_v16  ;;  %vm5295_vm10 = vcmp.eq.f32.partialorder %v5294_v60, 8.507059e+37  ;;  %v12151_v16 = vld [vmem:[%s12816_s11 + $0x8] sm:$0xff]  }
0x10bd   : > { %v5316_v59 = vor.u32 1.1754944e-38, %v5315_v63  ;;  %vm5314_vm11 = vcmp.eq.f32.partialorder %v5313_v49, 8.507059e+37  ;;  %v12037_v60 = vunpack.c.l.bf16 %v12151_v16 }
0x10be   : > { %v12391_v7 = vpop.eup %12390 }
0x10bf   : > { %v15462_v25 = vadd.f32 1.0, %v12391_v7  ;;  %v10522_v7 = vor.u32 %v11691_v52, %v10521_v45 }
0x10c0   : > { %v12393_v51 = vpop.eup %12392  ;;  %5710 = vmatpush.bf16.msra.mxu0 %v10562_v4 }
0x10c1   : > { %v12395_v48 = vpop.eup %12394  ;;  %v5286_v13 = vmul.f32 %v12393_v51, %v15442_v33  ;;  %12396 = vrcp.f32 %v15462_v25  ;;  %vm5291_vm12 = vweird.f32 %v12393_v51  ;;  %v5333_v5 = vand.u32 2147483647, %v15462_v25 }
0x10c2   : > { %v5305_v38 = vmul.f32 %v12395_v48, %v15450_v3  ;;  %12398 = vtanh.f32 %v5279_v46  ;;  %vm5310_vm13 = vweird.f32 %v12395_v48  ;;  %vm5292_vm8 = vmor %vm5290_vm14, %vm5291_vm12 }
0x10c3   : > { %v5287_v34 = vsub.f32 1.0, %v5286_v13  ;;  %vm5311_vm9 = vmor %vm5309_vm15, %vm5310_vm13  ;;  %vm5329_vm13 = vweird.f32 %v15462_v25  ;;  %vm5334_vm15 = vcmp.eq.f32.partialorder %v5333_v5, 8.507059e+37  ;;  %v12152_v5 = vld [vmem:[%s12816_s11 + $0x10] sm:$0xff]  }
0x10c4   : > { %v5306_v15 = vsub.f32 1.0, %v5305_v38  ;;  %5711 = vmatpush.bf16.msra.mxu0 %v10542_v55 }
0x10c5   : > { %v5288_v23 = vmul.f32 %v12393_v51, %v5287_v34 }
0x10c6   : > { %v5307_v29 = vmul.f32 %v12395_v48, %v5306_v15  ;;  %v12032_v15 = vld [vmem:[%s12816_s11] sm:$0xff]  }
0x10c7   : > { %v12397_v8 = vpop.eup %12396  ;;  %v5289_v30 = vadd.f32 %v12393_v51, %v5288_v23  ;;  %v12033_v23 = vunpack.c.l.bf16 %v12032_v15 }
0x10c8   : > { %v5308_v10 = vadd.f32 %v12395_v48, %v5307_v29  ;;  %v5325_v44 = vmul.f32 %v12397_v8, %v15462_v25  ;;  %v12399_v21 = vpop.eup %12398  ;;  %vm5330_vm12 = vweird.f32 %v12397_v8  ;;  %5712 = vmatpush.bf16.msra.mxu0 %v10522_v7 }
0x10c9   : > { %v5293_v33 = vsel %vm5292_vm8, %v12393_v51, %v5289_v30  ;;  %v5335_v51 = vand.u32 2147483648, %v15462_v25  ;;  %vm5331_vm14 = vmor %vm5329_vm13, %vm5330_vm12  ;;  %v15508_v30 = vld [vmem:[%s12816_s11 + $0x18] sm:$0xff]  }
0x10ca   : > { %v5298_v12 = vsel %vm5295_vm10, %v5297_v41, %v5293_v33  ;;  %v5312_v3 = vsel %vm5311_vm9, %v12395_v48, %v5308_v10  ;;  %v5326_v42 = vsub.f32 1.0, %v5325_v44  ;;  %v12034_v41 = vunpack.c.h.bf16 %v12032_v15 }
0x10cb   : > { %v5317_v17 = vsel %vm5314_vm11, %v5316_v59, %v5312_v3  ;;  %v5340_v20 = vmul.f32 %v12399_v21, %v5298_v12  ;;  %v12046_v12 = vunpack.c.h.bf16 %v15508_v30 }
0x10cc   : > { %v5339_v47 = vmul.f32 %v5317_v17, %v14883_v40  ;;  %v5327_v14 = vmul.f32 %v12397_v8, %v5326_v42  ;;  %v5336_v40 = vor.u32 1.1754944e-38, %v5335_v51 }
0x10ce   : > { %v15493_v46 = vadd.f32 %v5340_v20, %v5339_v47  ;;  %v5328_v61 = vadd.f32 %v12397_v8, %v5327_v14 }
0x10d0   : > { %12400 = vtanh.f32 %v15493_v46  ;;  %v5332_v48 = vsel %vm5331_vm14, %v12397_v8, %v5328_v61 }
0x10d1   : > { %v5337_v38 = vsel %vm5334_vm15, %v5336_v40, %v5332_v48 }
0x10d6   : > { %v12401_v13 = vpop.eup %12400 }
0x10d7   : > { %v5343_v34 = vmul.f32 %v12401_v13, %v5337_v38  ;;  %v12038_v13 = vunpack.c.h.bf16 %v12151_v16 }
0x10d9   : > { %10501 = vst [vmem:[%s13653_s23 + $0x18] sm:$0xff] %v5343_v34  ;;  %v5396_v4 = vpack.c.bf16 %v5343_v34, %v5343_v34 }
0x10db   : > { %5661 = vmatmul.bf16.vlgmr.msrb.gmra.mxu0 %v5396_v4  ;;  %5674 = vmatmul.bf16.vlgmr.msrb.gmra.mxu1 %v5396_v4 }
0x10dc   : > { %5687 = vmatmul.bf16.vlgmr.msrb.gmra.mxu2 %v5396_v4  ;;  %5700 = vmatmul.bf16.vlgmr.msrb.gmra.mxu3 %v5396_v4 }
0x10eb   : > { %5713 = vmatmul.bf16.vlgmr.msra.gmra.mxu0 %v5396_v4 }
0x1158   : > { %v5662_v36 = vpop.f32.mrf.mxu0  ;;  %v15502_v25 = vpop.f32.mrf.mxu1 }
0x1159   : > { %v5718_v63 = vadd.f32 %v12555_v31, %v5662_v36 }
0x115b   : > { %v5742_v29 = vpack.c.bf16 %v5718_v63, %v5718_v63  ;;  %v5729_v49 = vrot.slane %v5718_v63, 2  ;;  %v5728_v8 = vrot.slane %v5718_v63, 1  ;;  %v5734_v55 = vrot.slane %v5718_v63, 7 }
0x115c   : > { %v5730_v10 = vrot.slane %v5718_v63, 3  ;;  %v5731_v44 = vrot.slane %v5718_v63, 4  ;;  %v5732_v45 = vrot.slane %v5718_v63, 5  ;;  %v5733_v4 = vrot.slane %v5718_v63, 6 }
0x115d   : > { %v5751_v52 = vpack.i.b16 %v5742_v29, %v5742_v29  ;;  %v5744_v59 = vpack.c.bf16 %v5729_v49, %v5729_v49  ;;  %v5743_v33 = vpack.c.bf16 %v5728_v8, %v5728_v8  ;;  %v5749_v21 = vpack.c.bf16 %v5734_v55, %v5734_v55 }
0x115e   : > { %v5745_v3 = vpack.c.bf16 %v5730_v10, %v5730_v10  ;;  %v5746_v42 = vpack.c.bf16 %v5731_v44, %v5731_v44  ;;  %v5747_v17 = vpack.c.bf16 %v5732_v45, %v5732_v45  ;;  %v12041_v8 = vunpack.c.l.bf16 %v12152_v5 }
0x115f   : > { %v15511_v20 = vpop.f32.mrf.mxu2  ;;  %v15513_v7 = vpop.f32.mrf.mxu3  ;;  %v5753_v47 = vperm.slane %v5751_v52, 0  ;;  %v5759_v14 = vpack.i.b16 %v5744_v59, %v5744_v59  ;;  %v5755_v61 = vpack.i.b16 %v5743_v33, %v5743_v33  ;;  %v5779_v51 = vpack.i.b16 %v5749_v21, %v5749_v21 }
0x1160   : > { %v5664_v48 = vpop.f32.mrf.mxu0  ;;  %v5677_v40 = vpop.f32.mrf.mxu1  ;;  %v5763_v38 = vpack.i.b16 %v5745_v3, %v5745_v3  ;;  %v5767_v34 = vpack.i.b16 %v5746_v42, %v5746_v42  ;;  %v5771_v10 = vpack.i.b16 %v5747_v17, %v5747_v17 }
0x1161   : > { %v5790_v15 = vunpack.c.l.bf16 %v5753_v47  ;;  %v5761_v36 = vperm.slane %v5759_v14, 0  ;;  %v5757_v31 = vperm.slane %v5755_v61, 0  ;;  %v5781_v29 = vperm.slane %v5779_v51, 0 }
0x1162   : > { %v5765_v49 = vperm.slane %v5763_v38, 0  ;;  %v5769_v55 = vperm.slane %v5767_v34, 0  ;;  %v5773_v48 = vperm.slane %v5771_v10, 0  ;;  %v5748_v40 = vpack.c.bf16 %v5733_v4, %v5733_v4 }
0x1163   : > { %v5798_v44 = vadd.f32 %v12033_v23, %v5790_v15  ;;  %v5792_v45 = vunpack.c.l.bf16 %v5761_v36  ;;  %v5791_v52 = vunpack.c.l.bf16 %v5757_v31  ;;  %v5797_v59 = vunpack.c.l.bf16 %v5781_v29 }
0x1164   : > { %v5793_v33 = vunpack.c.l.bf16 %v5765_v49  ;;  %v5794_v21 = vunpack.c.l.bf16 %v5769_v55  ;;  %v12042_v36 = vunpack.c.h.bf16 %v12152_v5  ;;  %v5795_v31 = vunpack.c.l.bf16 %v5773_v48 }
0x1165   : > { %v5806_v16 = vpack.c.bf16 %v5798_v44, %v5798_v44  ;;  %v5800_v3 = vadd.f32 %v12037_v60, %v5792_v45  ;;  %v5799_v42 = vadd.f32 %v12034_v41, %v5791_v52  ;;  %v5805_v63 = vadd.f32 %v12046_v12, %v5797_v59 }
0x1166   : > { %v5801_v47 = vadd.f32 %v12038_v13, %v5793_v33  ;;  %v5802_v14 = vadd.f32 %v12041_v8, %v5794_v21  ;;  %v5775_v29 = vpack.i.b16 %v5748_v40, %v5748_v40  ;;  %v5803_v8 = vadd.f32 %v12042_v36, %v5795_v31 }
0x1167   : > { %v5690_v61 = vpop.f32.mrf.mxu2  ;;  %v5703_v51 = vpop.f32.mrf.mxu3  ;;  %v5814_v38 = vunpack.c.l.bf16 %v5806_v16  ;;  %v5808_v56 = vpack.c.bf16 %v5800_v3, %v5800_v3  ;;  %v5807_v34 = vpack.c.bf16 %v5799_v42, %v5799_v42  ;;  %v5813_v17 = vpack.c.bf16 %v5805_v63, %v5805_v63 }
0x1168   : > { %v15516_v23 = vpop.f32.mrf.mxu0  ;;  %v5809_v15 = vpack.c.bf16 %v5801_v47, %v5801_v47  ;;  %v5810_v60 = vpack.c.bf16 %v5802_v14, %v5802_v14  ;;  %v5777_v55 = vperm.slane %v5775_v29, 0  ;;  %v5811_v5 = vpack.c.bf16 %v5803_v8, %v5803_v8 }
0x1169   : > { %12402 = vtanh.f32 %v5814_v38  ;;  %v5816_v4 = vunpack.c.l.bf16 %v5808_v56  ;;  %v5815_v49 = vunpack.c.l.bf16 %v5807_v34  ;;  %v5821_v41 = vunpack.c.l.bf16 %v5813_v17 }
0x116a   : > { %v5817_v12 = vunpack.c.l.bf16 %v5809_v15  ;;  %v5818_v13 = vunpack.c.l.bf16 %v5810_v60  ;;  %v12045_v59 = vunpack.c.l.bf16 %v15508_v30  ;;  %v5796_v56 = vunpack.c.l.bf16 %v5777_v55 }
0x116b   : > { %12404 = vtanh.f32 %v5816_v4  ;;  %v5819_v51 = vunpack.c.l.bf16 %v5811_v5 }
0x116c   : > { %12406 = vtanh.f32 %v5815_v49  ;;  %v5804_v38 = vadd.f32 %v12045_v59, %v5796_v56 }
0x116d   : > { %12408 = vtanh.f32 %v5821_v41 }
0x116e   : > { %12410 = vtanh.f32 %v5817_v12  ;;  %v5812_v41 = vpack.c.bf16 %v5804_v38, %v5804_v38 }
0x116f   : > { %v12403_v10 = vpop.eup %12402  ;;  %12412 = vtanh.f32 %v5818_v13 }
0x1170   : > { %v5716_v44 = vpop.f32.mrf.mxu0  ;;  %v5830_v45 = vpack.c.bf16 %v12403_v10, %v12403_v10  ;;  %12414 = vtanh.f32 %v5819_v51 }
0x1171   : > { %v12405_v52 = vpop.eup %12404  ;;  %v5820_v44 = vunpack.c.l.bf16 %v5812_v41 }
0x1172   : > { %v12407_v33 = vpop.eup %12406  ;;  %v5838_v21 = vunpack.c.l.bf16 %v5830_v45  ;;  %v5832_v48 = vpack.c.bf16 %v12405_v52, %v12405_v52 }
0x1173   : > { %v12409_v40 = vpop.eup %12408  ;;  %v5831_v16 = vpack.c.bf16 %v12407_v33, %v12407_v33  ;;  %12416 = vtanh.f32 %v5820_v44 }
0x1174   : > { %v12411_v3 = vpop.eup %12410  ;;  %v5846_v42 = vmul.f32 %v5838_v21, %v12828_v11  ;;  %v5840_v63 = vunpack.c.l.bf16 %v5832_v48  ;;  %v5837_v47 = vpack.c.bf16 %v12409_v40, %v12409_v40 }
0x1175   : > { %v5839_v14 = vunpack.c.l.bf16 %v5831_v16  ;;  %v5833_v61 = vpack.c.bf16 %v12411_v3, %v12411_v3  ;;  %v12413_v30 = vpop.eup %12412 }
0x1176   : > { %v5854_v34 = vpack.c.bf16 %v5846_v42, %v5846_v42  ;;  %v5848_v17 = vmul.f32 %v5840_v63, %v12828_v11  ;;  %v5845_v15 = vunpack.c.l.bf16 %v5837_v47  ;;  %v5834_v8 = vpack.c.bf16 %v12413_v30, %v12413_v30  ;;  %v12415_v5 = vpop.eup %12414 }
0x1177   : > { %v5847_v36 = vmul.f32 %v5839_v14, %v12828_v11  ;;  %v5841_v31 = vunpack.c.l.bf16 %v5833_v61  ;;  %v5835_v21 = vpack.c.bf16 %v12415_v5, %v12415_v5 }
0x1178   : > { %v5862_v29 = vunpack.c.l.bf16 %v5854_v34  ;;  %v5856_v4 = vpack.c.bf16 %v5848_v17, %v5848_v17  ;;  %v5853_v49 = vmul.f32 %v5845_v15, %v12828_v11  ;;  %v5842_v52 = vunpack.c.l.bf16 %v5834_v8 }
0x1179   : > { %v5855_v60 = vpack.c.bf16 %v5847_v36, %v5847_v36  ;;  %v5849_v13 = vmul.f32 %v5841_v31, %v12828_v11  ;;  %v5843_v40 = vunpack.c.l.bf16 %v5835_v21  ;;  %v12417_v16 = vpop.eup %12416 }
0x117a   : > { %5870 = vadd.xlane.f32.xlu2 %v5862_v29  ;;  %v5864_v12 = vunpack.c.l.bf16 %v5856_v4  ;;  %v5861_v10 = vpack.c.bf16 %v5853_v49, %v5853_v49  ;;  %v5850_v33 = vmul.f32 %v5842_v52, %v12828_v11  ;;  %v5836_v63 = vpack.c.bf16 %v12417_v16, %v12417_v16 }
0x117b   : > { %v5863_v55 = vunpack.c.l.bf16 %v5855_v60  ;;  %v5857_v45 = vpack.c.bf16 %v5849_v13, %v5849_v13  ;;  %v5851_v42 = vmul.f32 %v5843_v40, %v12828_v11 }
0x117c   : > { %5874 = vadd.xlane.f32.xlu1 %v5864_v12  ;;  %v5869_v59 = vunpack.c.l.bf16 %v5861_v10  ;;  %v5858_v48 = vpack.c.bf16 %v5850_v33, %v5850_v33  ;;  %v5844_v14 = vunpack.c.l.bf16 %v5836_v63 }
0x117d   : > { %5872 = vadd.xlane.f32.xlu0 %v5863_v55  ;;  %v5865_v56 = vunpack.c.l.bf16 %v5857_v45  ;;  %v5859_v47 = vpack.c.bf16 %v5851_v42, %v5851_v42 }
0x117e   : > { %v5866_v3 = vunpack.c.l.bf16 %v5858_v48  ;;  %v5852_v51 = vmul.f32 %v5844_v14, %v12828_v11 }
0x117f   : > { %v5867_v61 = vunpack.c.l.bf16 %v5859_v47 }
0x1180   : > { %v5860_v38 = vpack.c.bf16 %v5852_v51, %v5852_v51 }
0x1182   : > { %5884 = vadd.xlane.f32.xlu2 %v5869_v59  ;;  %v5868_v34 = vunpack.c.l.bf16 %v5860_v38 }
0x1184   : > { %5876 = vadd.xlane.f32.xlu1 %v5865_v56 }
0x118c   : > { %5878 = vadd.xlane.f32.xlu1 %v5866_v3 }
0x1194   : > { %5880 = vadd.xlane.f32.xlu1 %v5867_v61 }
0x119c   : > { %5882 = vadd.xlane.f32.xlu1 %v5868_v34 }
0x11ed   : > { %v5871_v36 = vpop.xlane.xlu2 %5870 }
0x11ee   : > { %v5894_v49 = vperm.slane %v5871_v36, %v12838_v6 }
0x11ef   : > { %v5875_v17 = vpop.xlane.xlu1 %5874 }
0x11f0   : > { %v5873_v31 = vpop.xlane.xlu0 %5872  ;;  %v5896_v60 = vperm.slane %v5875_v17, %v12838_v6 }
0x11f1   : > { %v5895_v29 = vperm.slane %v5873_v31, %v12838_v6 }
0x11f3   : > { %v5902_v41 = vsel %vm1033_vm0, %v5895_v29, %v5894_v49 }
0x11f4   : > { %v5903_v10 = vsel %vm1035_vm1, %v5896_v60, %v5902_v41 }
0x11f5   : > { %v5885_v55 = vpop.xlane.xlu2 %5884 }
0x11f6   : > { %v5901_v59 = vperm.slane %v5885_v55, %v12838_v6 }
0x11f7   : > { %v5877_v15 = vpop.xlane.xlu1 %5876 }
0x11f8   : > { %v5897_v12 = vperm.slane %v5877_v15, %v12838_v6 }
0x11fa   : > { %v5904_v44 = vsel %vm1037_vm2, %v5897_v12, %v5903_v10 }
0x11ff   : > { %v5879_v30 = vpop.xlane.xlu1 %5878 }
0x1200   : > { %v5898_v13 = vperm.slane %v5879_v30, %v12838_v6 }
0x1202   : > { %v5905_v52 = vsel %vm1039_vm3, %v5898_v13, %v5904_v44 }
0x1207   : > { %v5881_v4 = vpop.xlane.xlu1 %5880 }
0x1208   : > { %v5899_v8 = vperm.slane %v5881_v4, %v12838_v6 }
0x120a   : > { %v5906_v56 = vsel %vm1041_vm4, %v5899_v8, %v5905_v52 }
0x120f   : > { %v5883_v45 = vpop.xlane.xlu1 %5882 }
0x1210   : > { %v5900_v5 = vperm.slane %v5883_v45, %v12838_v6 }
0x1212   : > { %v5907_v33 = vsel %vm1043_vm5, %v5900_v5, %v5906_v56 }
0x1213   : > { %v5908_v21 = vsel %vm1045_vm6, %v5901_v59, %v5907_v33 }
0x1214   : > { %v5910_v48 = vsel %vm1048_vm7, %v5908_v21, -inf }
0x1215   : > { %5911 = vmax.xlane.f32.xlu0 %v5910_v48 }
0x1288   : > { %v5912_v40 = vpop.xlane.xlu0 %5911 }
0x1289   : > { %v5916_v16 = vperm.slane %v5912_v40, 2  ;;  %v5915_v3 = vperm.slane %v5912_v40, 1  ;;  %v5914_v42 = vperm.slane %v5912_v40, 0  ;;  %v5919_v61 = vperm.slane %v5912_v40, 5 }
0x128a   : > { %v5917_v51 = vperm.slane %v5912_v40, 3  ;;  %v5918_v38 = vperm.slane %v5912_v40, 4  ;;  %v5920_v10 = vperm.slane %v5912_v40, 6 }
0x128b   : > { %v5932_v63 = vsub.f32 %v5875_v17, %v5916_v16  ;;  %v5931_v47 = vsub.f32 %v5873_v31, %v5915_v3  ;;  %v5930_v14 = vsub.f32 %v5871_v36, %v5914_v42  ;;  %v5935_v60 = vsub.f32 %v5881_v4, %v5919_v61 }
0x128c   : > { %v5933_v41 = vsub.f32 %v5877_v15, %v5917_v51  ;;  %v5934_v12 = vsub.f32 %v5879_v30, %v5918_v38  ;;  %v5921_v31 = vperm.slane %v5912_v40, 7  ;;  %v5936_v4 = vsub.f32 %v5883_v45, %v5920_v10 }
0x128d   : > { %v5942_v34 = vmul.f32 1.442695, %v5932_v63  ;;  %v5940_v29 = vmul.f32 1.442695, %v5931_v47  ;;  %v5938_v49 = vmul.f32 1.442695, %v5930_v14 }
0x128e   : > { %v5948_v13 = vmul.f32 1.442695, %v5935_v60  ;;  %v5944_v8 = vmul.f32 1.442695, %v5933_v41  ;;  %v5946_v17 = vmul.f32 1.442695, %v5934_v12  ;;  %v5937_v15 = vsub.f32 %v5885_v55, %v5921_v31 }
0x128f   : > { %12418 = vpow2.f32 %v5942_v34  ;;  %v5950_v5 = vmul.f32 1.442695, %v5936_v4 }
0x1290   : > { %12420 = vpow2.f32 %v5940_v29  ;;  %v5952_v59 = vmul.f32 1.442695, %v5937_v15 }
0x1291   : > { %12422 = vpow2.f32 %v5938_v49 }
0x1292   : > { %12424 = vpow2.f32 %v5948_v13 }
0x1293   : > { %12426 = vpow2.f32 %v5944_v8 }
0x1294   : > { %12428 = vpow2.f32 %v5946_v17 }
0x1295   : > { %v15543_v44 = vpop.eup %12418  ;;  %12430 = vpow2.f32 %v5950_v5 }
0x1296   : > { %v12421_v36 = vpop.eup %12420  ;;  %5969 = vperm.xlu0 %12198, %v15543_v44   ;;  %12432 = vpow2.f32 %v5952_v59 }
0x1297   : > { %v12423_v52 = vpop.eup %12422  ;;  %5966 = vperm.xlu2 %12200, %v12421_v36  }
0x1298   : > { %5963 = vperm.xlu1 %12199, %v12423_v52   ;;  %v12425_v30 = vpop.eup %12424 }
0x1299   : > { %v12427_v56 = vpop.eup %12426 }
0x129a   : > { %v12429_v33 = vpop.eup %12428 }
0x129b   : > { %v12431_v21 = vpop.eup %12430 }
0x129c   : > { %v12433_v48 = vpop.eup %12432 }
0x129e   : > { %5978 = vperm.xlu0 %12198, %v12425_v30  }
0x129f   : > { %5972 = vperm.xlu2 %12200, %v12427_v56  }
0x12a0   : > { %5975 = vperm.xlu1 %12199, %v12429_v33  }
0x12a7   : > { %5981 = vperm.xlu2 %12200, %v12431_v21  }
0x12a8   : > { %5984 = vperm.xlu1 %12199, %v12433_v48  }
0x12f1   : > { %v5967_v40 = vpop.permute.xlu2 %5966 }
0x12f2   : > { %v5987_v55 = vperm.slane %v5967_v40, %v12838_v6 }
0x12f9   : > { %v5973_v42 = vpop.permute.xlu2 %5972 }
0x12fa   : > { %v5989_v38 = vperm.slane %v5973_v42, %v12838_v6 }
0x1301   : > { %v5982_v41 = vpop.permute.xlu2 %5981 }
0x1302   : > { %v5992_v13 = vperm.slane %v5982_v41, %v12838_v6 }
0x1308   : > { %v5970_v16 = vpop.permute.xlu0 %5969 }
0x1309   : > { %v5988_v63 = vperm.slane %v5970_v16, %v12838_v6 }
0x130a   : > { %v5964_v3 = vpop.permute.xlu1 %5963 }
0x130b   : > { %v5986_v45 = vperm.slane %v5964_v3, %v12838_v6 }
0x130d   : > { %v5994_v47 = vsel %vm1033_vm0, %v5987_v55, %v5986_v45 }
0x130e   : > { %v5995_v14 = vsel %vm1035_vm1, %v5988_v63, %v5994_v47 }
0x130f   : > { %v5996_v49 = vsel %vm1037_vm2, %v5989_v38, %v5995_v14 }
0x1310   : > { %v5979_v61 = vpop.permute.xlu0 %5978 }
0x1311   : > { %v5991_v29 = vperm.slane %v5979_v61, %v12838_v6 }
0x1312   : > { %v5976_v51 = vpop.permute.xlu1 %5975 }
0x1313   : > { %v5990_v34 = vperm.slane %v5976_v51, %v12838_v6 }
0x1315   : > { %v5997_v60 = vsel %vm1039_vm3, %v5990_v34, %v5996_v49 }
0x1316   : > { %v5998_v12 = vsel %vm1041_vm4, %v5991_v29, %v5997_v60 }
0x1317   : > { %v5999_v17 = vsel %vm1043_vm5, %v5992_v13, %v5998_v12  ;;  %v15596_v12 = vld [vmem:[%s13101_s22] sm:$0xff]  }
0x131a   : > { %v5985_v8 = vpop.permute.xlu1 %5984 }
0x131b   : > { %v5993_v10 = vperm.slane %v5985_v8, %v12838_v6  ;;  %v12049_v8 = vunpack.c.l.bf16 %v15596_v12 }
0x131d   : > { %v6000_v31 = vsel %vm1045_vm6, %v5993_v10, %v5999_v17 }
0x131e   : > { %v6002_v4 = vsel %vm1048_vm7, %v6000_v31, 0.0 }
0x131f   : > { %6003 = vadd.xlane.f32.xlu0 %v6002_v4 }
0x1392   : > { %v6004_v15 = vpop.xlane.xlu0 %6003 }
0x1393   : > { %12434 = vrcp.f32 %v6004_v15 }
0x1399   : > { %v12435_v5 = vpop.eup %12434 }
0x139a   : > { %v6008_v59 = vperm.slane %v12435_v5, 1  ;;  %v6007_v40 = vperm.slane %v12435_v5, 0  ;;  %v6010_v42 = vperm.slane %v12435_v5, 3  ;;  %v6009_v63 = vperm.slane %v12435_v5, 2 }
0x139b   : > { %v6012_v61 = vperm.slane %v12435_v5, 5  ;;  %v6011_v51 = vperm.slane %v12435_v5, 4  ;;  %v6014_v29 = vperm.slane %v12435_v5, 7  ;;  %v6013_v49 = vperm.slane %v12435_v5, 6  ;;  %v15602_v5 = vld [vmem:[%s13101_s22 + $0x8] sm:$0xff]  }
0x139c   : > { %v15562_v16 = vmul.f32 %v12421_v36, %v6008_v59  ;;  %v15564_v3 = vmul.f32 %v12423_v52, %v6007_v40  ;;  %v15570_v47 = vmul.f32 %v12427_v56, %v6010_v42  ;;  %v15573_v14 = vmul.f32 %v15543_v44, %v6009_v63  ;;  %v10781_v42 = vld [vmem:[%s17320_s6 + $0xe0] sm:$0xf]  ;;  %v11757_v63 = vld [vmem:[%s17320_s6 + $0xec] sm:$0xf0] }
0x139d   : > { %v15579_v38 = vmul.f32 %v12425_v30, %v6012_v61  ;;  %v15581_v34 = vmul.f32 %v12429_v33, %v6011_v51  ;;  %v15587_v60 = vmul.f32 %v12433_v48, %v6014_v29  ;;  %v15589_v41 = vmul.f32 %v12431_v21, %v6013_v49  ;;  %v10783_v61 = vld [vmem:[%s17320_s6 + $0xf0] sm:$0xf0]  ;;  %v10789_v51 = vld [vmem:[%s17320_s6 + $0xe8] sm:$0xf] }
0x139e   : > { %17378 = vst [vmem:[#allocation17_spill] sm:$0xff] %v15562_v16  ;;  %v6032_v45 = vpack.c.bf16 %v15562_v16, %v15562_v16  ;;  %v6031_v55 = vpack.c.bf16 %v15564_v3, %v15564_v3  ;;  %v6034_v36 = vpack.c.bf16 %v15570_v47, %v15570_v47  ;;  %v6033_v52 = vpack.c.bf16 %v15573_v14, %v15573_v14 }
0x139f   : > { %17379 = vst [vmem:[#allocation18_spill] sm:$0xff] %v15564_v3  ;;  %v6036_v56 = vpack.c.bf16 %v15579_v38, %v15579_v38  ;;  %v6035_v44 = vpack.c.bf16 %v15581_v34, %v15581_v34  ;;  %v6038_v30 = vpack.c.bf16 %v15587_v60, %v15587_v60  ;;  %v6037_v33 = vpack.c.bf16 %v15589_v41, %v15589_v41 }
0x13a0   : > { %6058 = vperm.xlu1 %12199, %v6032_v45   ;;  %6049 = vperm.xlu2 %12200, %v6031_v55   ;;  %17380 = vst [vmem:[#allocation19_spill] sm:$0xff] %v15570_v47  ;;  %v12053_v40 = vunpack.c.l.bf16 %v15602_v5 }
0x13a1   : > { %17381 = vst [vmem:[#allocation20_spill] sm:$0xff] %v15573_v14 }
0x13a2   : > { %17382 = vst [vmem:[#allocation21_spill] sm:$0xff] %v15579_v38 }
0x13a3   : > { %17383 = vst [vmem:[#allocation22_spill] sm:$0xff] %v15581_v34 }
0x13a4   : > { %17384 = vst [vmem:[#allocation23_spill] sm:$0xff] %v15587_v60 }
0x13a5   : > { %17385 = vst [vmem:[#allocation24_spill] sm:$0xff] %v15589_v41 }
0x13a8   : > { %6076 = vperm.xlu1 %12199, %v6034_v36   ;;  %6067 = vperm.xlu2 %12200, %v6033_v52   ;;  %v11755_v36 = vld [vmem:[%s17320_s6 + $0xe4] sm:$0xf]  ;;  %v10782_v52 = vor.u32 %v11757_v63, %v10781_v42  ;;  %v15652_v42 = vld [vmem:[%s13101_s22 + $0x18] sm:$0xff]  }
0x13a9   : > { %v10786_v49 = vor.u32 %v11755_v36, %v10783_v61  ;;  %v11752_v36 = vld [vmem:[%s17320_s6 + $0xcc] sm:$0xf] }
0x13aa   : > { %6441 = vmatpush.bf16.msra.mxu1 %v10782_v52  ;;  %v10775_v52 = vld [vmem:[%s17320_s6 + $0xd8] sm:$0xf0] }
0x13ab   : > { %6454 = vmatpush.bf16.msra.mxu2 %v10786_v49 }
0x13b0   : > { %6094 = vperm.xlu1 %12199, %v6036_v56   ;;  %6085 = vperm.xlu2 %12200, %v6035_v44   ;;  %v11758_v56 = vld [vmem:[%s17320_s6 + $0xf4] sm:$0xf0] }
0x13b8   : > { %6112 = vperm.xlu1 %12199, %v6038_v30   ;;  %6103 = vperm.xlu2 %12200, %v6037_v33   ;;  %v11756_v30 = vld [vmem:[%s17320_s6 + $0xec] sm:$0xf]  ;;  %v10791_v33 = vld [vmem:[%s17320_s6 + $0xf8] sm:$0xf0] }
0x13fa   : > { %v6050_v13 = vpop.permute.xlu2 %6049 }
0x13fb   : > { %v6055_v10 = vperm.slane %v6050_v13, %v13131_v32  ;;  %v15630_v13 = vld [vmem:[%s13101_s22 + $0x10] sm:$0xff]  }
0x13fc   : > { %v12057_v61 = vunpack.c.l.bf16 %v15630_v13 }
0x13fd   : > { %v6119_v48 = vunpack.c.l.bf16 %v6055_v10  ;;  %v10790_v10 = vor.u32 %v11758_v56, %v10789_v51 }
0x13ff   : > { %v6135_v17 = vmul.f32 %v12049_v8, %v6119_v48  ;;  %v10794_v48 = vor.u32 %v11756_v30, %v10791_v33  ;;  %6467 = vmatpush.bf16.msra.mxu3 %v10790_v10  ;;  %v10778_v33 = vor.u32 %v11752_v36, %v10775_v52 }
0x1401   : > { %v6143_v31 = vpack.c.bf16 %v6135_v17, %v6135_v17  ;;  %v10765_v17 = vld [vmem:[%s17320_s6 + $0xc0] sm:$0xf]  ;;  %6480 = vmatpush.bf16.msrb.mxu0 %v10794_v48 }
0x1402   : > { %v6068_v21 = vpop.permute.xlu2 %6067  ;;  %v10749_v48 = vld [vmem:[%s17320_s6 + $0xa0] sm:$0xf] }
0x1403   : > { %v6151_v4 = vunpack.c.l.bf16 %v6143_v31  ;;  %v6073_v15 = vperm.slane %v6068_v21, %v13131_v32  ;;  %v11753_v31 = vld [vmem:[%s17320_s6 + $0xcc] sm:$0xf0]  ;;  %v11751_v21 = vld [vmem:[%s17320_s6 + $0xc4] sm:$0xf] }
0x1405   : > { %v6159_v59 = vrot.slane %v6151_v4, 4  ;;  %v6121_v45 = vunpack.c.l.bf16 %v6073_v15  ;;  %v10767_v15 = vld [vmem:[%s17320_s6 + $0xd0] sm:$0xf0]  ;;  %6481 = vmatpush.bf16.msrb.mxu0 %v10778_v33 }
0x1406   : > { %v10770_v63 = vor.u32 %v11751_v21, %v10767_v15  ;;  %v10757_v15 = vld [vmem:[%s17320_s6 + $0xa8] sm:$0xf] }
0x1407   : > { %v6160_v44 = vadd.f32 %v6159_v59, %v6151_v4  ;;  %v6137_v29 = vmul.f32 %v12053_v40, %v6121_v45  ;;  %v10766_v4 = vor.u32 %v11753_v31, %v10765_v17  ;;  %v10773_v59 = vld [vmem:[%s17320_s6 + $0xc8] sm:$0xf]  ;;  %v11754_v40 = vld [vmem:[%s17320_s6 + $0xd4] sm:$0xf0]  ;;  %v11749_v17 = vld [vmem:[%s17320_s6 + $0xac] sm:$0xf0]  ;;  %v12061_v31 = vunpack.c.l.bf16 %v15652_v42 }
0x1408   : > { %v10774_v30 = vor.u32 %v11754_v40, %v10773_v59  ;;  %6455 = vmatpush.bf16.msra.mxu2 %v10770_v63  ;;  %v11750_v59 = vld [vmem:[%s17320_s6 + $0xb4] sm:$0xf0] }
0x1409   : > { %v6161_v45 = vrot.slane %v6160_v44, 2  ;;  %6442 = vmatpush.bf16.msra.mxu1 %v10766_v4  ;;  %v10751_v4 = vld [vmem:[%s17320_s6 + $0xb0] sm:$0xf0] }
0x140a   : > { %v6086_v55 = vpop.permute.xlu2 %6085  ;;  %6468 = vmatpush.bf16.msra.mxu3 %v10774_v30 }
0x140b   : > { %v6091_v8 = vperm.slane %v6086_v55, %v13131_v32  ;;  %v6145_v55 = vpack.c.bf16 %v6137_v29, %v6137_v29  ;;  %v12050_v29 = vunpack.c.h.bf16 %v15596_v12  ;;  %v10750_v12 = vor.u32 %v11749_v17, %v10749_v48 }
0x140c   : > { %v15683_v40 = vadd.f32 %v6161_v45, %v6160_v44  ;;  %v10758_v48 = vor.u32 %v11750_v59, %v10757_v15  ;;  %v10733_v44 = vld [vmem:[%s17320_s6 + $0x80] sm:$0xf]  ;;  %v11745_v45 = vld [vmem:[%s17320_s6 + $0x8c] sm:$0xf0]  ;;  %v11744_v15 = vld [vmem:[%s17320_s6 + $0x8c] sm:$0xf] }
0x140d   : > { %v6123_v51 = vunpack.c.l.bf16 %v6091_v8  ;;  %v11747_v8 = vld [vmem:[%s17320_s6 + $0xa4] sm:$0xf]  ;;  %v6153_v63 = vunpack.c.l.bf16 %v6145_v55  ;;  %6443 = vmatpush.bf16.msra.mxu1 %v10750_v12  ;;  %v10743_v59 = vld [vmem:[%s17320_s6 + $0x98] sm:$0xf0] }
0x140e   : > { %v10754_v52 = vor.u32 %v11747_v8, %v10751_v4  ;;  %v11743_v55 = vld [vmem:[%s17320_s6 + $0x84] sm:$0xf]  ;;  %6469 = vmatpush.bf16.msra.mxu3 %v10758_v48  ;;  %v10746_v48 = vor.u32 %v11744_v15, %v10743_v59  ;;  %v10727_v15 = vld [vmem:[%s17320_s6 + $0x78] sm:$0xf0]  ;;  %v12062_v8 = vunpack.c.h.bf16 %v15652_v42 }
0x140f   : > { %v6139_v30 = vmul.f32 %v12057_v61, %v6123_v51  ;;  %v10734_v61 = vor.u32 %v11745_v45, %v10733_v44  ;;  %v10735_v51 = vld [vmem:[%s17320_s6 + $0x90] sm:$0xf0]  ;;  %v12054_v44 = vunpack.c.h.bf16 %v15602_v5  ;;  %v10717_v45 = vld [vmem:[%s17320_s6 + $0x60] sm:$0xf] }
0x1410   : > { %6456 = vmatpush.bf16.msra.mxu2 %v10754_v52  ;;  %v10738_v4 = vor.u32 %v11743_v55, %v10735_v51  ;;  %v11741_v55 = vld [vmem:[%s17320_s6 + $0x6c] sm:$0xf0]  ;;  %v10719_v5 = vld [vmem:[%s17320_s6 + $0x70] sm:$0xf0] }
0x1411   : > { %6444 = vmatpush.bf16.msra.mxu1 %v10734_v61  ;;  %v11742_v61 = vld [vmem:[%s17320_s6 + $0x74] sm:$0xf0] }
0x1412   : > { %v6059_v56 = vpop.permute.xlu1 %6058  ;;  %v6104_v49 = vpop.permute.xlu2 %6103 }
0x1413   : > { %v6064_v10 = vperm.slane %v6059_v56, %v13131_v32  ;;  %v6109_v21 = vperm.slane %v6104_v49, %v13131_v32  ;;  %v11748_v56 = vld [vmem:[%s17320_s6 + $0xac] sm:$0xf]  ;;  %v10759_v49 = vld [vmem:[%s17320_s6 + $0xb8] sm:$0xf0] }
0x1414   : > { %v10762_v17 = vor.u32 %v11748_v56, %v10759_v49  ;;  %6457 = vmatpush.bf16.msra.mxu2 %v10738_v4  ;;  %v11740_v4 = vld [vmem:[%s17320_s6 + $0x6c] sm:$0xf] }
0x1415   : > { %v6120_v36 = vunpack.c.l.bf16 %v6064_v10  ;;  %v6125_v33 = vunpack.c.l.bf16 %v6109_v21  ;;  %v11746_v10 = vld [vmem:[%s17320_s6 + $0x94] sm:$0xf0]  ;;  %v6171_v21 = vrot.slane %v6153_v63, 4 }
0x1416   : > { %6482 = vmatpush.bf16.msrb.mxu0 %v10762_v17 }
0x1417   : > { %v6136_v41 = vmul.f32 %v12050_v29, %v6120_v36  ;;  %v10741_v29 = vld [vmem:[%s17320_s6 + $0x88] sm:$0xf]  ;;  %v6147_v36 = vpack.c.bf16 %v6139_v30, %v6139_v30  ;;  %v6141_v52 = vmul.f32 %v12061_v31, %v6125_v33  ;;  %v11739_v31 = vld [vmem:[%s17320_s6 + $0x64] sm:$0xf]  ;;  %v10718_v30 = vor.u32 %v11741_v55, %v10717_v45 }
0x1418   : > { %v10742_v49 = vor.u32 %v11746_v10, %v10741_v29  ;;  %v10725_v33 = vld [vmem:[%s17320_s6 + $0x68] sm:$0xf]  ;;  %v15736_v51 = vadd.f32 %v6171_v21, %v6153_v63  ;;  %v10701_v63 = vld [vmem:[%s17320_s6 + $0x40] sm:$0xf]  ;;  %v11737_v21 = vld [vmem:[%s17320_s6 + $0x4c] sm:$0xf0] }
0x1419   : > { %v6144_v12 = vpack.c.bf16 %v6136_v41, %v6136_v41  ;;  %v6155_v59 = vunpack.c.l.bf16 %v6147_v36  ;;  %6445 = vmatpush.bf16.msra.mxu1 %v10718_v30  ;;  %v10702_v36 = vor.u32 %v11737_v21, %v10701_v63  ;;  %v12058_v63 = vunpack.c.h.bf16 %v15630_v13  ;;  %v10685_v21 = vld [vmem:[%s17320_s6 + $0x20] sm:$0xf]  ;;  %v10687_v13 = vld [vmem:[%s17320_s6 + $0x30] sm:$0xf0] }
0x141a   : > { %v6077_v56 = vpop.permute.xlu1 %6076  ;;  %6470 = vmatpush.bf16.msra.mxu3 %v10742_v49  ;;  %6483 = vmatpush.bf16.msrb.mxu0 %v10746_v48  ;;  %v10726_v49 = vor.u32 %v11742_v61, %v10725_v33  ;;  %v10730_v48 = vor.u32 %v11740_v4, %v10727_v15  ;;  %v11736_v61 = vld [vmem:[%s17320_s6 + $0x4c] sm:$0xf] }
0x141b   : > { %v6152_v17 = vunpack.c.l.bf16 %v6144_v12  ;;  %v6082_v41 = vperm.slane %v6077_v56, %v13131_v32  ;;  %v10722_v12 = vor.u32 %v11739_v31, %v10719_v5  ;;  %v6149_v56 = vpack.c.bf16 %v6141_v52, %v6141_v52  ;;  %v10703_v52 = vld [vmem:[%s17320_s6 + $0x50] sm:$0xf0] }
0x141c   : > { %v6173_v31 = vrot.slane %v15736_v51, 2 }
0x141d   : > { %v6165_v29 = vrot.slane %v6152_v17, 4  ;;  %v6122_v10 = vunpack.c.l.bf16 %v6082_v41  ;;  %6458 = vmatpush.bf16.msra.mxu2 %v10722_v12  ;;  %v11735_v41 = vld [vmem:[%s17320_s6 + $0x44] sm:$0xf]  ;;  %v6157_v12 = vunpack.c.l.bf16 %v6149_v56  ;;  %6446 = vmatpush.bf16.msra.mxu1 %v10702_v36 }
0x141e   : > { %6471 = vmatpush.bf16.msra.mxu3 %v10726_v49  ;;  %6484 = vmatpush.bf16.msrb.mxu0 %v10730_v48  ;;  %v10706_v33 = vor.u32 %v11735_v41, %v10703_v52  ;;  %v11733_v41 = vld [vmem:[%s17320_s6 + $0x2c] sm:$0xf0]  ;;  %v11731_v56 = vld [vmem:[%s17320_s6 + $0x24] sm:$0xf]  ;;  %v10693_v52 = vld [vmem:[%s17320_s6 + $0x28] sm:$0xf] }
0x141f   : > { %v6166_v45 = vadd.f32 %v6165_v29, %v6152_v17  ;;  %v6138_v55 = vmul.f32 %v12054_v44, %v6122_v10  ;;  %v10709_v17 = vld [vmem:[%s17320_s6 + $0x48] sm:$0xf]  ;;  %v11738_v44 = vld [vmem:[%s17320_s6 + $0x54] sm:$0xf0]  ;;  %v10711_v29 = vld [vmem:[%s17320_s6 + $0x58] sm:$0xf0]  ;;  %v10686_v36 = vor.u32 %v11733_v41, %v10685_v21 }
0x1420   : > { %v6183_v10 = vrot.slane %v6155_v59, 4  ;;  %v10710_v15 = vor.u32 %v11738_v44, %v10709_v17  ;;  %v10714_v49 = vor.u32 %v11736_v61, %v10711_v29  ;;  %v11734_v17 = vld [vmem:[%s17320_s6 + $0x34] sm:$0xf0]  ;;  %v10690_v61 = vor.u32 %v11731_v56, %v10687_v13  ;;  %v11732_v29 = vld [vmem:[%s17320_s6 + $0x2c] sm:$0xf] }
0x1421   : > { %v6167_v30 = vrot.slane %v6166_v45, 2  ;;  %v6146_v5 = vpack.c.bf16 %v6138_v55, %v6138_v55  ;;  %6459 = vmatpush.bf16.msra.mxu2 %v10706_v33  ;;  %6447 = vmatpush.bf16.msra.mxu1 %v10686_v36  ;;  %v10694_v21 = vor.u32 %v11734_v17, %v10693_v52  ;;  %v10677_v36 = vld [vmem:[%s17320_s6 + $0x8] sm:$0xf]  ;;  %v10679_v17 = vld [vmem:[%s17320_s6 + $0x18] sm:$0xf0] }
0x1422   : > { %v6095_v4 = vpop.permute.xlu1 %6094  ;;  %6472 = vmatpush.bf16.msra.mxu3 %v10710_v15  ;;  %6485 = vmatpush.bf16.msrb.mxu0 %v10714_v49  ;;  %v6184_v15 = vadd.f32 %v6183_v10, %v6155_v59  ;;  %v6195_v49 = vrot.slane %v6157_v12, 4  ;;  %v11727_v59 = vld [vmem:[%s17320_s6 + $0x4] sm:$0xf]  ;;  %v10671_v10 = vld [vmem:[%s17320_s6 + $0x10] sm:$0xf0] }
0x1423   : > { %v6154_v48 = vunpack.c.l.bf16 %v6146_v5  ;;  %v6100_v55 = vperm.slane %v6095_v4, %v13131_v32  ;;  %v6168_v44 = vadd.f32 %v6167_v30, %v6166_v45  ;;  %v10695_v4 = vld [vmem:[%s17320_s6 + $0x38] sm:$0xf0]  ;;  %v10669_v45 = vld [vmem:[%s17320_s6] sm:$0xf]  ;;  %v11729_v30 = vld [vmem:[%s17320_s6 + $0xc] sm:$0xf0]  ;;  %v10674_v52 = vor.u32 %v11727_v59, %v10671_v10 }
0x1424   : > { %v10698_v41 = vor.u32 %v11732_v29, %v10695_v4  ;;  %v10670_v13 = vor.u32 %v11729_v30, %v10669_v45  ;;  %v6174_v4 = vadd.f32 %v6173_v31, %v15736_v51 }
0x1425   : > { %v6177_v5 = vrot.slane %v6154_v48, 4  ;;  %v6124_v33 = vunpack.c.l.bf16 %v6100_v55  ;;  %6460 = vmatpush.bf16.msra.mxu2 %v10690_v61 }
0x1426   : > { %6473 = vmatpush.bf16.msra.mxu3 %v10694_v21  ;;  %6486 = vmatpush.bf16.msrb.mxu0 %v10698_v41  ;;  %v6185_v21 = vrot.slane %v6184_v15, 2  ;;  %v6196_v41 = vadd.f32 %v6195_v49, %v6157_v12  ;;  %v17386_v12 = vrot.slane %v15683_v40, 1 }
0x1427   : > { %v6178_v55 = vadd.f32 %v6177_v5, %v6154_v48  ;;  %v6140_v56 = vmul.f32 %v12058_v63, %v6124_v33  ;;  %v11730_v48 = vld [vmem:[%s17320_s6 + $0x14] sm:$0xf0]  ;;  %v11728_v63 = vld [vmem:[%s17320_s6 + $0xc] sm:$0xf]  ;;  %v6169_v5 = vrot.slane %v6168_v44, 1  ;;  %6448 = vmatpush.bf16.msra.mxu1 %v10670_v13 }
0x1428   : > { %v10678_v29 = vor.u32 %v11730_v48, %v10677_v36  ;;  %v10682_v30 = vor.u32 %v11728_v63, %v10679_v17  ;;  %v6175_v48 = vrot.slane %v6174_v4, 1  ;;  %v6186_v51 = vadd.f32 %v6185_v21, %v6184_v15 }
0x1429   : > { %v6179_v33 = vrot.slane %v6178_v55, 2  ;;  %v6148_v61 = vpack.c.bf16 %v6140_v56, %v6140_v56  ;;  %6461 = vmatpush.bf16.msra.mxu2 %v10674_v52  ;;  %v6170_v38 = vadd.f32 %v6169_v5, %v6168_v44  ;;  %v6197_v31 = vrot.slane %v6196_v41, 2 }
0x142a   : > { %v6113_v45 = vpop.permute.xlu1 %6112  ;;  %6474 = vmatpush.bf16.msra.mxu3 %v10678_v29  ;;  %6487 = vmatpush.bf16.msrb.mxu0 %v10682_v30  ;;  %v6164_v49 = vadd.f32 %v17386_v12, %v15683_v40  ;;  %v6176_v52 = vadd.f32 %v6175_v48, %v6174_v4 }
0x142b   : > { %v6180_v59 = vadd.f32 %v6179_v33, %v6178_v55  ;;  %v6156_v10 = vunpack.c.l.bf16 %v6148_v61  ;;  %v6118_v47 = vperm.slane %v6113_v45, %v13131_v32  ;;  %v6217_v63 = vpack.c.bf16 %v6170_v38, %v6170_v38 }
0x142c   : > { %v6187_v61 = vrot.slane %v6186_v51, 1  ;;  %v6198_v29 = vadd.f32 %v6197_v31, %v6196_v41  ;;  %v6216_v44 = vpack.c.bf16 %v6164_v49, %v6164_v49  ;;  %v6218_v14 = vpack.c.bf16 %v6176_v52, %v6176_v52 }
0x142d   : > { %v6181_v3 = vrot.slane %v6180_v59, 1  ;;  %v6189_v56 = vrot.slane %v6156_v10, 4  ;;  %v6126_v36 = vunpack.c.l.bf16 %v6118_v47  ;;  %v6265_v47 = vunpack.c.l.b16 %v6217_v63 }
0x142e   : > { %v6188_v60 = vadd.f32 %v6187_v61, %v6186_v51  ;;  %v6199_v34 = vrot.slane %v6198_v29, 1  ;;  %v6264_v40 = vunpack.c.l.b16 %v6216_v44  ;;  %v11796_v44 = vld [vmem:[%s17317_s3 + $0x128] sm:$0xf0] }
0x142f   : > { %v6190_v55 = vadd.f32 %v6189_v56, %v6156_v10  ;;  %v6142_v13 = vmul.f32 %v12062_v8, %v6126_v36  ;;  %v6182_v42 = vadd.f32 %v6181_v3, %v6180_v59  ;;  %v6266_v56 = vunpack.c.l.b16 %v6218_v14 }
0x1430   : > { %v6272_v3 = vsel %vm1033_vm0, %v6265_v47, %v6264_v40  ;;  %v6220_v41 = vpack.c.bf16 %v6188_v60, %v6188_v60  ;;  %v6200_v36 = vadd.f32 %v6199_v34, %v6198_v29  ;;  %v10942_v29 = vld [vmem:[%s17317_s3 + $0x118] sm:$0xf]  ;;  %v11791_v47 = vld [vmem:[%s17317_s3 + $0x100] sm:$0xf0] }
0x1431   : > { %v6191_v17 = vrot.slane %v6190_v55, 2  ;;  %v6150_v33 = vpack.c.bf16 %v6142_v13, %v6142_v13  ;;  %v6219_v30 = vpack.c.bf16 %v6182_v42, %v6182_v42  ;;  %v6273_v31 = vsel %vm1035_vm1, %v6266_v56, %v6272_v3 }
0x1432   : > { %v6268_v51 = vunpack.c.l.b16 %v6220_v41  ;;  %v6222_v13 = vpack.c.bf16 %v6200_v36, %v6200_v36  ;;  %v11797_v41 = vld [vmem:[%s17317_s3 + $0x130] sm:$0xf0]  ;;  %v11795_v36 = vld [vmem:[%s17317_s3 + $0x124] sm:$0xf] }
0x1433   : > { %v6192_v5 = vadd.f32 %v6191_v17, %v6190_v55  ;;  %v6158_v45 = vunpack.c.l.bf16 %v6150_v33  ;;  %v6267_v38 = vunpack.c.l.b16 %v6219_v30 }
0x1434   : > { %v6270_v52 = vunpack.c.l.b16 %v6222_v13 }
0x1435   : > { %v6193_v15 = vrot.slane %v6192_v5, 1  ;;  %v6201_v21 = vrot.slane %v6158_v45, 4  ;;  %v6274_v12 = vsel %vm1037_vm2, %v6267_v38, %v6273_v31  ;;  %v11794_v38 = vld [vmem:[%s17317_s3 + $0x11c] sm:$0xf] }
0x1436   : > { %v6275_v42 = vsel %vm1039_vm3, %v6268_v51, %v6274_v12  ;;  %v11776_v51 = vld [vmem:[%s17317_s3 + $0x88] sm:$0xf0] }
0x1437   : > { %v6194_v10 = vadd.f32 %v6193_v15, %v6192_v5  ;;  %v6202_v8 = vadd.f32 %v6201_v21, %v6158_v45  ;;  %v10943_v5 = vor.u32 %v11796_v44, %v10942_v29  ;;  %v10922_v45 = vld [vmem:[%s17317_s3 + $0xf0] sm:$0xf]  ;;  %v10902_v15 = vld [vmem:[%s17317_s3 + $0xc8] sm:$0xf]  ;;  %v11786_v21 = vld [vmem:[%s17317_s3 + $0xd8] sm:$0xf0] }
0x1438   : > { %v10923_v30 = vor.u32 %v11791_v47, %v10922_v45  ;;  %v10903_v40 = vor.u32 %v11786_v21, %v10902_v15  ;;  %v10842_v44 = vld [vmem:[%s17317_s3 + $0x50] sm:$0xf]  ;;  %v10904_v15 = vld [vmem:[%s17317_s3 + $0xdc] sm:$0xf0] }
0x1439   : > { %v6221_v59 = vpack.c.bf16 %v6194_v10, %v6194_v10  ;;  %v6203_v4 = vrot.slane %v6202_v8, 2  ;;  %6869 = vmatpush.bf16.msrb.mxu1 %v10943_v5  ;;  %v10882_v10 = vld [vmem:[%s17317_s3 + $0xa0] sm:$0xf]  ;;  %v11771_v5 = vld [vmem:[%s17317_s3 + $0x60] sm:$0xf0] }
0x143a   : > { %v10843_v47 = vor.u32 %v11771_v5, %v10842_v44  ;;  %v10910_v21 = vld [vmem:[%s17317_s3 + $0xd0] sm:$0xf] }
0x143b   : > { %v6204_v48 = vadd.f32 %v6203_v4, %v6202_v8  ;;  %v6269_v49 = vunpack.c.l.b16 %v6221_v59  ;;  %v11781_v8 = vld [vmem:[%s17317_s3 + $0xb0] sm:$0xf0]  ;;  %v10944_v59 = vld [vmem:[%s17317_s3 + $0x12c] sm:$0xf0]  ;;  %v10950_v4 = vld [vmem:[%s17317_s3 + $0x120] sm:$0xf] }
0x143c   : > { %v10883_v3 = vor.u32 %v11781_v8, %v10882_v10  ;;  %v10947_v56 = vor.u32 %v11794_v38, %v10944_v59  ;;  %v10951_v31 = vor.u32 %v11797_v41, %v10950_v4  ;;  %v11787_v8 = vld [vmem:[%s17317_s3 + $0xe0] sm:$0xf0]  ;;  %v10912_v38 = vld [vmem:[%s17317_s3 + $0xe4] sm:$0xf0] }
0x143d   : > { %v6205_v55 = vrot.slane %v6204_v48, 1  ;;  %v6276_v33 = vsel %vm1041_vm4, %v6269_v49, %v6275_v42  ;;  %6870 = vmatpush.bf16.msrb.mxu1 %v10923_v30  ;;  %v10663_v49 = vld [vmem:[%s13397_s29 + $0x80] sm:$0xff]  ;;  %v10924_v42 = vld [vmem:[%s17317_s3 + $0x104] sm:$0xf0]  ;;  %v11784_v30 = vld [vmem:[%s17317_s3 + $0xcc] sm:$0xf] }
0x143e   : > { %v6277_v14 = vsel %vm1043_vm5, %v6270_v52, %v6276_v33  ;;  %6882 = vmatpush.bf16.msrb.mxu2 %v10947_v56  ;;  %6895 = vmatpush.bf16.msrb.mxu3 %v10951_v31  ;;  %v11792_v52 = vld [vmem:[%s17317_s3 + $0x108] sm:$0xf0]  ;;  %v6212_v45 = vadd.f32 %v10663_v49, %v15502_v25  ;;  %v10907_v25 = vor.u32 %v11784_v30, %v10904_v15  ;;  %v11766_v31 = vld [vmem:[%s17317_s3 + $0x38] sm:$0xf0]  ;;  %v10864_v30 = vld [vmem:[%s17317_s3 + $0x8c] sm:$0xf0] }
0x143f   : > { %v6206_v63 = vadd.f32 %v6205_v55, %v6204_v48  ;;  %v10952_v48 = vld [vmem:[%s17317_s3 + $0x134] sm:$0xf0]  ;;  %v10911_v56 = vor.u32 %v11787_v8, %v10910_v21  ;;  %v10870_v15 = vld [vmem:[%s17317_s3 + $0x80] sm:$0xf] }
0x1440   : > { %v10955_v12 = vor.u32 %v11795_v36, %v10952_v48  ;;  %v10862_v55 = vld [vmem:[%s17317_s3 + $0x78] sm:$0xf]  ;;  %v10822_v48 = vld [vmem:[%s17317_s3 + $0x28] sm:$0xf] }
0x1441   : > { %v6223_v17 = vpack.c.bf16 %v6206_v63, %v6206_v63  ;;  %6871 = vmatpush.bf16.msrb.mxu1 %v10903_v40  ;;  %v10863_v13 = vor.u32 %v11776_v51, %v10862_v55  ;;  %v11789_v63 = vld [vmem:[%s17317_s3 + $0xf4] sm:$0xf]  ;;  %v10823_v49 = vor.u32 %v11766_v31, %v10822_v48  ;;  %v11779_v55 = vld [vmem:[%s17317_s3 + $0xa4] sm:$0xf]  ;;  %v10884_v51 = vld [vmem:[%s17317_s3 + $0xb4] sm:$0xf0] }
0x1442   : > { %6908 = vmatpush.bf16.msra.mxu0 %v10955_v12  ;;  %v10927_v33 = vor.u32 %v11789_v63, %v10924_v42  ;;  %v10887_v63 = vor.u32 %v11779_v55, %v10884_v51  ;;  %v10890_v42 = vld [vmem:[%s17317_s3 + $0xa8] sm:$0xf]  ;;  %v10872_v8 = vld [vmem:[%s17317_s3 + $0x94] sm:$0xf0]  ;;  %v11772_v55 = vld [vmem:[%s17317_s3 + $0x68] sm:$0xf0] }
0x1443   : > { %v6271_v61 = vunpack.c.l.b16 %v6223_v17  ;;  %v10930_v17 = vld [vmem:[%s17317_s3 + $0xf8] sm:$0xf]  ;;  %v10844_v48 = vld [vmem:[%s17317_s3 + $0x64] sm:$0xf0]  ;;  %v11770_v51 = vld [vmem:[%s17317_s3 + $0x5c] sm:$0xf] }
0x1444   : > { %6883 = vmatpush.bf16.msrb.mxu2 %v10927_v33  ;;  %v10850_v31 = vld [vmem:[%s17317_s3 + $0x58] sm:$0xf] }
0x1445   : > { %v6278_v34 = vsel %vm1045_vm6, %v6271_v61, %v6277_v14  ;;  %6872 = vmatpush.bf16.msrb.mxu1 %v10883_v3  ;;  %v11790_v61 = vld [vmem:[%s17317_s3 + $0xfc] sm:$0xf]  ;;  %v10932_v14 = vld [vmem:[%s17317_s3 + $0x10c] sm:$0xf0]  ;;  %v11785_v3 = vld [vmem:[%s17317_s3 + $0xd4] sm:$0xf] }
0x1446   : > { %v6279_v60 = vpack.c.b16 %v6278_v34, %v6278_v34  ;;  %v10666_v34 = vld [vmem:[%s13397_s29 + $0x98] sm:$0xff]  ;;  %v10935_v29 = vor.u32 %v11790_v61, %v10932_v14  ;;  %v10915_v41 = vor.u32 %v11785_v3, %v10912_v38  ;;  %v11780_v61 = vld [vmem:[%s17317_s3 + $0xac] sm:$0xf]  ;;  %v10892_v14 = vld [vmem:[%s17317_s3 + $0xbc] sm:$0xf0] }
0x1447   : > { %v6215_v40 = vadd.f32 %v10666_v34, %v15516_v23  ;;  %v10664_v23 = vld [vmem:[%s13397_s29 + $0x88] sm:$0xff] }
0x1448   : > { %6449 = vmatmul.bf16.vlgmr.msra.gmra.mxu1 %v6279_v60  ;;  %6462 = vmatmul.bf16.vlgmr.msra.gmra.mxu2 %v6279_v60  ;;  %v6213_v33 = vadd.f32 %v10664_v23, %v15511_v20  ;;  %v11761_v20 = vld [vmem:[%s17317_s3 + $0x10] sm:$0xf0] }
0x1449   : > { %6475 = vmatmul.bf16.vlgmr.msra.gmra.mxu3 %v6279_v60  ;;  %6488 = vmatmul.bf16.vlgmr.msrb.gmra.mxu0 %v6279_v60  ;;  %v10931_v60 = vor.u32 %v11792_v52, %v10930_v17  ;;  %v11782_v17 = vld [vmem:[%s17317_s3 + $0xb8] sm:$0xf0] }
0x144a   : > { %6873 = vmatpush.bf16.msrb.mxu1 %v10863_v13  ;;  %6909 = vmatpush.bf16.msra.mxu0 %v10935_v29  ;;  %v10891_v52 = vor.u32 %v11782_v17, %v10890_v42  ;;  %v10802_v29 = vld [vmem:[%s17317_s3] sm:$0xf]  ;;  %v10851_v17 = vor.u32 %v11772_v55, %v10850_v31  ;;  %v11760_v31 = vld [vmem:[%s17317_s3 + $0xc] sm:$0xf] }
0x144b   : > { %6896 = vmatpush.bf16.msrb.mxu3 %v10931_v60  ;;  %6884 = vmatpush.bf16.msrb.mxu2 %v10907_v25  ;;  %v10895_v60 = vor.u32 %v11780_v61, %v10892_v14  ;;  %v11775_v25 = vld [vmem:[%s17317_s3 + $0x84] sm:$0xf]  ;;  %v11793_v61 = vld [vmem:[%s17317_s3 + $0x110] sm:$0xf0]  ;;  %v10812_v55 = vld [vmem:[%s17317_s3 + $0x1c] sm:$0xf0] }
0x144e   : > { %6874 = vmatpush.bf16.msrb.mxu1 %v10843_v47  ;;  %6910 = vmatpush.bf16.msra.mxu0 %v10915_v41  ;;  %v11774_v47 = vld [vmem:[%s17317_s3 + $0x7c] sm:$0xf] }
0x144f   : > { %6897 = vmatpush.bf16.msrb.mxu3 %v10911_v56  ;;  %6885 = vmatpush.bf16.msrb.mxu2 %v10887_v63  ;;  %v10958_v56 = vld [vmem:[%s17317_s3 + $0x128] sm:$0xf]  ;;  %v11798_v41 = vld [vmem:[%s17317_s3 + $0x138] sm:$0xf0] }
0x1450   : > { %v10959_v23 = vor.u32 %v11798_v41, %v10958_v56  ;;  %v11759_v41 = vld [vmem:[%s17317_s3 + $0x4] sm:$0xf] }
0x1452   : > { %6875 = vmatpush.bf16.msrb.mxu1 %v10823_v49  ;;  %6911 = vmatpush.bf16.msra.mxu0 %v10895_v60  ;;  %v10824_v60 = vld [vmem:[%s17317_s3 + $0x3c] sm:$0xf0] }
0x1453   : > { %6898 = vmatpush.bf16.msrb.mxu3 %v10891_v52  ;;  %v10938_v52 = vld [vmem:[%s17317_s3 + $0x100] sm:$0xf] }
0x1454   : > { %v10939_v14 = vor.u32 %v11793_v61, %v10938_v52  ;;  %v11778_v52 = vld [vmem:[%s17317_s3 + $0x98] sm:$0xf0] }
0x14c5   : > { %v6450_v10 = vpop.f32.mrf.mxu1 }
0x14c6   : > { %v6493_v59 = vadd.f32 %v6450_v10, %v6212_v45  ;;  %v6489_v4 = vpop.f32.mrf.mxu0  ;;  %v10803_v45 = vor.u32 %v11761_v20, %v10802_v29  ;;  %v11777_v10 = vld [vmem:[%s17317_s3 + $0x90] sm:$0xf0]  ;;  %v10830_v20 = vld [vmem:[%s17317_s3 + $0x30] sm:$0xf] }
0x14c7   : > { %v6496_v36 = vadd.f32 %v6489_v4, %v6215_v40  ;;  %v10867_v40 = vor.u32 %v11774_v47, %v10864_v30  ;;  %v10875_v4 = vor.u32 %v11775_v25, %v10872_v8  ;;  %v11767_v30 = vld [vmem:[%s17317_s3 + $0x40] sm:$0xf0] }
0x14c8   : > { %v10795_v12 = vmul.f32 -1.442695, %v6493_v59  ;;  %6876 = vmatpush.bf16.msrb.mxu1 %v10803_v45  ;;  %v10871_v59 = vor.u32 %v11777_v10, %v10870_v15  ;;  %v10832_v10 = vld [vmem:[%s17317_s3 + $0x44] sm:$0xf0] }
0x14c9   : > { %v10797_v13 = vmul.f32 -1.442695, %v6496_v36  ;;  %6886 = vmatpush.bf16.msrb.mxu2 %v10867_v40  ;;  %v11769_v36 = vld [vmem:[%s17317_s3 + $0x54] sm:$0xf]  ;;  %6912 = vmatpush.bf16.msra.mxu0 %v10875_v4 }
0x14ca   : > { %12436 = vpow2.f32 %v10795_v12  ;;  %6899 = vmatpush.bf16.msrb.mxu3 %v10871_v59  ;;  %v10847_v49 = vor.u32 %v11769_v36, %v10844_v48  ;;  %v11765_v40 = vld [vmem:[%s17317_s3 + $0x34] sm:$0xf]  ;;  %v11762_v48 = vld [vmem:[%s17317_s3 + $0x18] sm:$0xf0] }
0x14cb   : > { %12438 = vpow2.f32 %v10797_v13  ;;  %v6463_v34 = vpop.f32.mrf.mxu2  ;;  %v10852_v13 = vld [vmem:[%s17317_s3 + $0x6c] sm:$0xf0]  ;;  %v10835_v8 = vor.u32 %v11765_v40, %v10832_v10 }
0x14cc   : > { %v6494_v44 = vadd.f32 %v6463_v34, %v6213_v33  ;;  %v15958_v5 = vpop.f32.mrf.mxu3  ;;  %6921 = vmatpush.bf16.msra.mxu1 %v10959_v23  ;;  %v10855_v33 = vor.u32 %v11770_v51, %v10852_v13  ;;  %v11764_v34 = vld [vmem:[%s17317_s3 + $0x2c] sm:$0xf]  ;;  %v10804_v23 = vld [vmem:[%s17317_s3 + $0x14] sm:$0xf0] }
0x14cd   : > { %v6452_v21 = vpop.f32.mrf.mxu1  ;;  %6887 = vmatpush.bf16.msrb.mxu2 %v10847_v49  ;;  %v10827_v15 = vor.u32 %v11764_v34, %v10824_v60  ;;  %v10807_v36 = vor.u32 %v11759_v41, %v10804_v23  ;;  %v10838_v23 = vld [vmem:[%s17317_s3 + $0x38] sm:$0xf] }
0x14ce   : > { %v10796_v3 = vmul.f32 -1.442695, %v6494_v44  ;;  %v6491_v38 = vpop.f32.mrf.mxu0  ;;  %v10665_v44 = vld [vmem:[%s13397_s29 + $0x90] sm:$0xff]  ;;  %6900 = vmatpush.bf16.msrb.mxu3 %v10851_v17  ;;  %6913 = vmatpush.bf16.msra.mxu0 %v10855_v33  ;;  %v10831_v21 = vor.u32 %v11767_v30, %v10830_v20  ;;  %v11783_v33 = vld [vmem:[%s17317_s3 + $0xc0] sm:$0xf0] }
0x14cf   : > { %v11788_v38 = vld [vmem:[%s17317_s3 + $0xe8] sm:$0xf0]  ;;  %v6214_v59 = vadd.f32 %v10665_v44, %v15513_v7  ;;  %v10810_v7 = vld [vmem:[%s17317_s3 + $0x8] sm:$0xf]  ;;  %v10898_v17 = vld [vmem:[%s17317_s3 + $0xb0] sm:$0xf] }
0x14d0   : > { %v12437_v12 = vpop.eup %12436  ;;  %12440 = vpow2.f32 %v10796_v3  ;;  %6922 = vmatpush.bf16.msra.mxu1 %v10939_v14  ;;  %v10918_v3 = vld [vmem:[%s17317_s3 + $0xd8] sm:$0xf]  ;;  %v10811_v13 = vor.u32 %v11762_v48, %v10810_v7  ;;  %v10899_v14 = vor.u32 %v11783_v33, %v10898_v17  ;;  %v10858_v30 = vld [vmem:[%s17317_s3 + $0x60] sm:$0xf] }
0x14d1   : > { %v12439_v63 = vpop.eup %12438  ;;  %v16002_v42 = vadd.f32 1.0, %v12437_v12  ;;  %6888 = vmatpush.bf16.msrb.mxu2 %v10827_v15  ;;  %v10919_v56 = vor.u32 %v11788_v38, %v10918_v3  ;;  %v6495_v49 = vadd.f32 %v15958_v5, %v6214_v59  ;;  %v10878_v5 = vld [vmem:[%s17317_s3 + $0x88] sm:$0xf]  ;;  %v11773_v15 = vld [vmem:[%s17317_s3 + $0x70] sm:$0xf0] }
0x14d2   : > { %v16021_v45 = vadd.f32 1.0, %v12439_v63  ;;  %6901 = vmatpush.bf16.msrb.mxu3 %v10831_v21  ;;  %6914 = vmatpush.bf16.msra.mxu0 %v10835_v8  ;;  %v10815_v63 = vor.u32 %v11760_v31, %v10812_v55  ;;  %v10879_v44 = vor.u32 %v11778_v52, %v10878_v5  ;;  %v10859_v38 = vor.u32 %v11773_v15, %v10858_v30  ;;  %v12064_v15 = vld [vmem:[%s12816_s11] sm:$0xff]  }
0x14d3   : > { %12442 = vrcp.f32 %v16002_v42  ;;  %v6465_v29 = vpop.f32.mrf.mxu2  ;;  %v6512_v34 = vand.u32 2147483648, %v16002_v42  ;;  %v6510_v20 = vand.u32 2147483647, %v16002_v42  ;;  %vm6506_vm9 = vweird.f32 %v16002_v42 }
0x14d4   : > { %v6478_v47 = vpop.f32.mrf.mxu3  ;;  %12444 = vrcp.f32 %v16021_v45  ;;  %6923 = vmatpush.bf16.msra.mxu1 %v10919_v56 }
0x14d5   : > { %6889 = vmatpush.bf16.msrb.mxu2 %v10807_v36  ;;  %vm6511_vm11 = vcmp.eq.f32.partialorder %v6510_v20, 8.507059e+37 }
0x14d6   : > { %v12441_v25 = vpop.eup %12440  ;;  %6902 = vmatpush.bf16.msrb.mxu3 %v10811_v13  ;;  %6915 = vmatpush.bf16.msra.mxu0 %v10815_v63  ;;  %v11763_v13 = vld [vmem:[%s17317_s3 + $0x20] sm:$0xf0] }
0x14d7   : > { %v16039_v4 = vadd.f32 1.0, %v12441_v25  ;;  %v6513_v25 = vor.u32 1.1754944e-38, %v6512_v34  ;;  %v6549_v34 = vand.u32 2147483647, %v16021_v45 }
0x14d8   : > { %6924 = vmatpush.bf16.msra.mxu1 %v10899_v14  ;;  %v6551_v14 = vand.u32 2147483648, %v16021_v45 }
0x14d9   : > { %v12443_v12 = vpop.eup %12442  ;;  %12446 = vrcp.f32 %v16039_v4  ;;  %v6531_v56 = vand.u32 2147483648, %v16039_v4  ;;  %v6529_v7 = vand.u32 2147483647, %v16039_v4  ;;  %vm6525_vm13 = vweird.f32 %v16039_v4 }
0x14da   : > { %v6502_v51 = vmul.f32 %v12443_v12, %v16002_v42  ;;  %12448 = vtanh.f32 %v6495_v49  ;;  %v12445_v60 = vpop.eup %12444  ;;  %vm6507_vm8 = vweird.f32 %v12443_v12  ;;  %v11768_v42 = vld [vmem:[%s17317_s3 + $0x48] sm:$0xf0] }
0x14db   : > { %v6541_v10 = vmul.f32 %v12445_v60, %v16021_v45  ;;  %vm6508_vm10 = vmor %vm6506_vm9, %vm6507_vm8  ;;  %v10839_v49 = vor.u32 %v11768_v42, %v10838_v23  ;;  %v6532_v55 = vor.u32 1.1754944e-38, %v6531_v56  ;;  %vm6530_vm15 = vcmp.eq.f32.partialorder %v6529_v7, 8.507059e+37  ;;  %v16117_v56 = vld [vmem:[%s12816_s11 + $0x18] sm:$0xff]  }
0x14dc   : > { %v6503_v61 = vsub.f32 1.0, %v6502_v51  ;;  %6925 = vmatpush.bf16.msra.mxu1 %v10879_v44  ;;  %v10818_v51 = vld [vmem:[%s17317_s3 + $0x10] sm:$0xf]  ;;  %vm6546_vm8 = vweird.f32 %v12445_v60  ;;  %vm6545_vm9 = vweird.f32 %v16021_v45  ;;  %v12556_v45 = vld [vmem:[%s17318_s4] ss:$0 sm:$0xff]  ;;  %v12066_v23 = vunpack.c.h.bf16 %v12064_v15 }
0x14dd   : > { %v6542_v31 = vsub.f32 1.0, %v6541_v10 }
0x14de   : > { %v6504_v29 = vmul.f32 %v12443_v12, %v6503_v61 }
0x14df   : > { %v12447_v47 = vpop.eup %12446  ;;  %v6543_v17 = vmul.f32 %v12445_v60, %v6542_v31 }
0x14e0   : > { %v6521_v21 = vmul.f32 %v12447_v47, %v16039_v4  ;;  %v6505_v40 = vadd.f32 %v12443_v12, %v6504_v29  ;;  %v12449_v59 = vpop.eup %12448  ;;  %vm6526_vm12 = vweird.f32 %v12447_v47  ;;  %6926 = vmatpush.bf16.msra.mxu1 %v10859_v38  ;;  %v10819_v4 = vor.u32 %v11763_v13, %v10818_v51 }
0x14e1   : > { %vm6527_vm14 = vmor %vm6525_vm13, %vm6526_vm12  ;;  %v6544_v61 = vadd.f32 %v12445_v60, %v6543_v17  ;;  %v6552_v29 = vor.u32 1.1754944e-38, %v6551_v14  ;;  %v12078_v51 = vunpack.c.h.bf16 %v16117_v56  ;;  %v12158_v14 = vld [vmem:[%s12816_s11 + $0x10] sm:$0xff]  }
0x14e2   : > { %v6522_v8 = vsub.f32 1.0, %v6521_v21  ;;  %v6509_v3 = vsel %vm6508_vm10, %v12443_v12, %v6505_v40  ;;  %vm6547_vm10 = vmor %vm6545_vm9, %vm6546_vm8  ;;  %v12157_v21 = vld [vmem:[%s12816_s11 + $0x8] sm:$0xff]  }
0x14e3   : > { %v6514_v41 = vsel %vm6511_vm11, %v6513_v25, %v6509_v3  ;;  %vm6550_vm11 = vcmp.eq.f32.partialorder %v6549_v34, 8.507059e+37  ;;  %v12065_v25 = vunpack.c.l.bf16 %v12064_v15 }
0x14e4   : > { %v6523_v36 = vmul.f32 %v12447_v47, %v6522_v8  ;;  %v6556_v48 = vmul.f32 %v12449_v59, %v6514_v41  ;;  %6927 = vmatpush.bf16.msra.mxu1 %v10839_v49  ;;  %v12069_v8 = vunpack.c.l.bf16 %v12157_v21 }
0x14e6   : > { %v6524_v12 = vadd.f32 %v12447_v47, %v6523_v36 }
0x14e8   : > { %v6528_v63 = vsel %vm6527_vm14, %v12447_v47, %v6524_v12  ;;  %6928 = vmatpush.bf16.msra.mxu1 %v10819_v4 }
0x14e9   : > { %v6533_v33 = vsel %vm6530_vm15, %v6532_v55, %v6528_v63 }
0x14ea   : > { %v6555_v5 = vmul.f32 %v6533_v33, %v15493_v46  ;;  %v6548_v46 = vsel %vm6547_vm10, %v12445_v60, %v6544_v61 }
0x14eb   : > { %v6553_v44 = vsel %vm6550_vm11, %v6552_v29, %v6548_v46 }
0x14ec   : > { %v16102_v52 = vadd.f32 %v6556_v48, %v6555_v5 }
0x14ee   : > { %12450 = vtanh.f32 %v16102_v52 }
0x14f4   : > { %v12451_v20 = vpop.eup %12450 }
0x14f5   : > { %v6559_v47 = vmul.f32 %v12451_v20, %v6553_v44  ;;  %v12070_v20 = vunpack.c.h.bf16 %v12157_v21 }
0x14f7   : > { %10798 = vst [vmem:[%s13653_s23 + $0x20] sm:$0xff] %v6559_v47  ;;  %v6612_v30 = vpack.c.bf16 %v6559_v47, %v6559_v47 }
0x14f9   : > { %6877 = vmatmul.bf16.vlgmr.msrb.gmra.mxu1 %v6612_v30  ;;  %6890 = vmatmul.bf16.vlgmr.msrb.gmra.mxu2 %v6612_v30 }
0x14fa   : > { %6903 = vmatmul.bf16.vlgmr.msrb.gmra.mxu3 %v6612_v30  ;;  %6916 = vmatmul.bf16.vlgmr.msra.gmra.mxu0 %v6612_v30 }
0x1509   : > { %6929 = vmatmul.bf16.vlgmr.msra.gmra.mxu1 %v6612_v30 }
0x1576   : > { %v6878_v40 = vpop.f32.mrf.mxu1 }
0x1577   : > { %v6934_v60 = vadd.f32 %v12556_v45, %v6878_v40  ;;  %v16114_v10 = vpop.f32.mrf.mxu0 }
0x1579   : > { %v6958_v3 = vpack.c.bf16 %v6934_v60, %v6934_v60  ;;  %v6945_v38 = vrot.slane %v6934_v60, 2  ;;  %v6944_v59 = vrot.slane %v6934_v60, 1  ;;  %v6950_v41 = vrot.slane %v6934_v60, 7 }
0x157a   : > { %v6946_v42 = vrot.slane %v6934_v60, 3  ;;  %v6947_v36 = vrot.slane %v6934_v60, 4  ;;  %v6948_v7 = vrot.slane %v6934_v60, 5  ;;  %v6949_v34 = vrot.slane %v6934_v60, 6 }
0x157b   : > { %v6967_v48 = vpack.i.b16 %v6958_v3, %v6958_v3  ;;  %v6960_v31 = vpack.c.bf16 %v6945_v38, %v6945_v38  ;;  %v6959_v12 = vpack.c.bf16 %v6944_v59, %v6944_v59  ;;  %v6965_v49 = vpack.c.bf16 %v6950_v41, %v6950_v41 }
0x157c   : > { %v16119_v55 = vpop.f32.mrf.mxu2  ;;  %v6961_v13 = vpack.c.bf16 %v6946_v42, %v6946_v42  ;;  %v6962_v63 = vpack.c.bf16 %v6947_v36, %v6947_v36  ;;  %v6963_v17 = vpack.c.bf16 %v6948_v7, %v6948_v7  ;;  %v12073_v41 = vunpack.c.l.bf16 %v12158_v14 }
0x157d   : > { %v16122_v33 = vpop.f32.mrf.mxu3  ;;  %v6969_v5 = vperm.slane %v6967_v48, 0  ;;  %v6975_v4 = vpack.i.b16 %v6960_v31, %v6960_v31  ;;  %v6971_v61 = vpack.i.b16 %v6959_v12, %v6959_v12  ;;  %v6995_v29 = vpack.i.b16 %v6965_v49, %v6965_v49 }
0x157e   : > { %v6880_v46 = vpop.f32.mrf.mxu1  ;;  %v6979_v44 = vpack.i.b16 %v6961_v13, %v6961_v13  ;;  %v6983_v47 = vpack.i.b16 %v6962_v63, %v6962_v63  ;;  %v6987_v3 = vpack.i.b16 %v6963_v17, %v6963_v17  ;;  %v6964_v31 = vpack.c.bf16 %v6949_v34, %v6949_v34 }
0x157f   : > { %v6919_v30 = vpop.f32.mrf.mxu0  ;;  %v7006_v15 = vunpack.c.l.bf16 %v6969_v5  ;;  %v6977_v40 = vperm.slane %v6975_v4, 0  ;;  %v6973_v45 = vperm.slane %v6971_v61, 0  ;;  %v6997_v38 = vperm.slane %v6995_v29, 0 }
0x1580   : > { %v6981_v59 = vperm.slane %v6979_v44, 0  ;;  %v6985_v42 = vperm.slane %v6983_v47, 0  ;;  %v6989_v49 = vperm.slane %v6987_v3, 0  ;;  %v12074_v47 = vunpack.c.h.bf16 %v12158_v14 }
0x1581   : > { %v7014_v36 = vadd.f32 %v12065_v25, %v7006_v15  ;;  %v7008_v7 = vunpack.c.l.bf16 %v6977_v40  ;;  %v7007_v48 = vunpack.c.l.bf16 %v6973_v45  ;;  %v7013_v12 = vunpack.c.l.bf16 %v6997_v38 }
0x1582   : > { %v7009_v60 = vunpack.c.l.bf16 %v6981_v59  ;;  %v7010_v46 = vunpack.c.l.bf16 %v6985_v42  ;;  %v7011_v40 = vunpack.c.l.bf16 %v6989_v49  ;;  %v6991_v45 = vpack.i.b16 %v6964_v31, %v6964_v31 }
0x1583   : > { %v7022_v21 = vpack.c.bf16 %v7014_v36, %v7014_v36  ;;  %v7016_v13 = vadd.f32 %v12069_v8, %v7008_v7  ;;  %v7015_v63 = vadd.f32 %v12066_v23, %v7007_v48  ;;  %v7021_v5 = vadd.f32 %v12078_v51, %v7013_v12 }
0x1584   : > { %v6893_v30 = vpop.f32.mrf.mxu2  ;;  %v7017_v4 = vadd.f32 %v12070_v20, %v7009_v60  ;;  %v7018_v61 = vadd.f32 %v12073_v41, %v7010_v46  ;;  %v7019_v20 = vadd.f32 %v12074_v47, %v7011_v40  ;;  %v6993_v41 = vperm.slane %v6991_v45, 0 }
0x1585   : > { %v6906_v17 = vpop.f32.mrf.mxu3  ;;  %v7030_v29 = vunpack.c.l.bf16 %v7022_v21  ;;  %v7024_v44 = vpack.c.bf16 %v7016_v13, %v7016_v13  ;;  %v7023_v16 = vpack.c.bf16 %v7015_v63, %v7015_v63  ;;  %v7029_v15 = vpack.c.bf16 %v7021_v5, %v7021_v5 }
0x1586   : > { %v16125_v25 = vpop.f32.mrf.mxu1  ;;  %v7025_v34 = vpack.c.bf16 %v7017_v4, %v7017_v4  ;;  %v7026_v8 = vpack.c.bf16 %v7018_v61, %v7018_v61  ;;  %v7027_v48 = vpack.c.bf16 %v7019_v20, %v7019_v20  ;;  %v12077_v31 = vunpack.c.l.bf16 %v16117_v56 }
0x1587   : > { %12452 = vtanh.f32 %v7030_v29  ;;  %v7032_v3 = vunpack.c.l.bf16 %v7024_v44  ;;  %v7031_v38 = vunpack.c.l.bf16 %v7023_v16  ;;  %v7037_v23 = vunpack.c.l.bf16 %v7029_v15 }
0x1588   : > { %v7033_v59 = vunpack.c.l.bf16 %v7025_v34  ;;  %v7034_v51 = vunpack.c.l.bf16 %v7026_v8  ;;  %v7012_v12 = vunpack.c.l.bf16 %v6993_v41  ;;  %v7035_v17 = vunpack.c.l.bf16 %v7027_v48 }
0x1589   : > { %12454 = vtanh.f32 %v7032_v3 }
0x158a   : > { %12456 = vtanh.f32 %v7031_v38  ;;  %v7020_v29 = vadd.f32 %v12077_v31, %v7012_v12 }
0x158b   : > { %12458 = vtanh.f32 %v7037_v23 }
0x158c   : > { %12460 = vtanh.f32 %v7033_v59  ;;  %v7028_v23 = vpack.c.bf16 %v7020_v29, %v7020_v29 }
0x158d   : > { %v12453_v14 = vpop.eup %12452  ;;  %12462 = vtanh.f32 %v7034_v51 }
0x158e   : > { %v6932_v42 = vpop.f32.mrf.mxu1  ;;  %v7046_v36 = vpack.c.bf16 %v12453_v14, %v12453_v14  ;;  %12464 = vtanh.f32 %v7035_v17 }
0x158f   : > { %v12455_v7 = vpop.eup %12454  ;;  %v7036_v42 = vunpack.c.l.bf16 %v7028_v23 }
0x1590   : > { %v12457_v16 = vpop.eup %12456  ;;  %v7054_v60 = vunpack.c.l.bf16 %v7046_v36  ;;  %v7048_v46 = vpack.c.bf16 %v12455_v7, %v12455_v7 }
0x1591   : > { %v12459_v49 = vpop.eup %12458  ;;  %v7047_v21 = vpack.c.bf16 %v12457_v16, %v12457_v16  ;;  %12466 = vtanh.f32 %v7036_v42 }
0x1592   : > { %v12461_v13 = vpop.eup %12460  ;;  %v7062_v63 = vmul.f32 %v7054_v60, %v12828_v11  ;;  %v7056_v30 = vunpack.c.l.bf16 %v7048_v46  ;;  %v7053_v5 = vpack.c.bf16 %v12459_v49, %v12459_v49 }
0x1593   : > { %v7055_v4 = vunpack.c.l.bf16 %v7047_v21  ;;  %v7049_v61 = vpack.c.bf16 %v12461_v13, %v12461_v13  ;;  %v12463_v56 = vpop.eup %12462 }
0x1594   : > { %v7070_v44 = vpack.c.bf16 %v7062_v63, %v7062_v63  ;;  %v7064_v47 = vmul.f32 %v7056_v30, %v12828_v11  ;;  %v7061_v15 = vunpack.c.l.bf16 %v7053_v5  ;;  %v7050_v20 = vpack.c.bf16 %v12463_v56, %v12463_v56  ;;  %v12465_v48 = vpop.eup %12464 }
0x1595   : > { %v7063_v34 = vmul.f32 %v7055_v4, %v12828_v11  ;;  %v7057_v40 = vunpack.c.l.bf16 %v7049_v61  ;;  %v7051_v60 = vpack.c.bf16 %v12465_v48, %v12465_v48 }
0x1596   : > { %v7078_v45 = vunpack.c.l.bf16 %v7070_v44  ;;  %v7072_v3 = vpack.c.bf16 %v7064_v47, %v7064_v47  ;;  %v7069_v38 = vmul.f32 %v7061_v15, %v12828_v11  ;;  %v7058_v7 = vunpack.c.l.bf16 %v7050_v20 }
0x1597   : > { %v7071_v8 = vpack.c.bf16 %v7063_v34, %v7063_v34  ;;  %v7065_v51 = vmul.f32 %v7057_v40, %v12828_v11  ;;  %v7059_v49 = vunpack.c.l.bf16 %v7051_v60  ;;  %v12467_v21 = vpop.eup %12466 }
0x1598   : > { %7086 = vadd.xlane.f32.xlu2 %v7078_v45  ;;  %v7080_v59 = vunpack.c.l.bf16 %v7072_v3  ;;  %v7077_v14 = vpack.c.bf16 %v7069_v38, %v7069_v38  ;;  %v7066_v16 = vmul.f32 %v7058_v7, %v12828_v11  ;;  %v7052_v30 = vpack.c.bf16 %v12467_v21, %v12467_v21 }
0x1599   : > { %v7079_v41 = vunpack.c.l.bf16 %v7071_v8  ;;  %v7073_v36 = vpack.c.bf16 %v7065_v51, %v7065_v51  ;;  %v7067_v63 = vmul.f32 %v7059_v49, %v12828_v11 }
0x159a   : > { %7090 = vadd.xlane.f32.xlu0 %v7080_v59  ;;  %v7085_v31 = vunpack.c.l.bf16 %v7077_v14  ;;  %v7074_v46 = vpack.c.bf16 %v7066_v16, %v7066_v16  ;;  %v7060_v4 = vunpack.c.l.bf16 %v7052_v30 }
0x159b   : > { %7088 = vadd.xlane.f32.xlu1 %v7079_v41  ;;  %v7081_v12 = vunpack.c.l.bf16 %v7073_v36  ;;  %v7075_v5 = vpack.c.bf16 %v7067_v63, %v7067_v63 }
0x159c   : > { %v7082_v13 = vunpack.c.l.bf16 %v7074_v46  ;;  %v7068_v17 = vmul.f32 %v7060_v4, %v12828_v11 }
0x159d   : > { %v7083_v61 = vunpack.c.l.bf16 %v7075_v5 }
0x159e   : > { %v7076_v29 = vpack.c.bf16 %v7068_v17, %v7068_v17 }
0x15a0   : > { %7100 = vadd.xlane.f32.xlu2 %v7085_v31  ;;  %v7084_v44 = vunpack.c.l.bf16 %v7076_v29 }
0x15a2   : > { %7092 = vadd.xlane.f32.xlu0 %v7081_v12 }
0x15aa   : > { %7094 = vadd.xlane.f32.xlu0 %v7082_v13 }
0x15b2   : > { %7096 = vadd.xlane.f32.xlu0 %v7083_v61 }
0x15ba   : > { %7098 = vadd.xlane.f32.xlu0 %v7084_v44 }
0x160b   : > { %v7087_v34 = vpop.xlane.xlu2 %7086 }
0x160c   : > { %v7110_v38 = vperm.slane %v7087_v34, %v12838_v6 }
0x160d   : > { %v7091_v47 = vpop.xlane.xlu0 %7090 }
0x160e   : > { %v7089_v40 = vpop.xlane.xlu1 %7088  ;;  %v7112_v8 = vperm.slane %v7091_v47, %v12838_v6 }
0x160f   : > { %v7111_v45 = vperm.slane %v7089_v40, %v12838_v6 }
0x1611   : > { %v7118_v23 = vsel %vm1033_vm0, %v7111_v45, %v7110_v38 }
0x1612   : > { %v7119_v14 = vsel %vm1035_vm1, %v7112_v8, %v7118_v23 }
0x1613   : > { %v7101_v41 = vpop.xlane.xlu2 %7100 }
0x1614   : > { %v7117_v31 = vperm.slane %v7101_v41, %v12838_v6 }
0x1615   : > { %v7093_v15 = vpop.xlane.xlu0 %7092 }
0x1616   : > { %v7113_v59 = vperm.slane %v7093_v15, %v12838_v6 }
0x1618   : > { %v7120_v42 = vsel %vm1037_vm2, %v7113_v59, %v7119_v14 }
0x161d   : > { %v7095_v56 = vpop.xlane.xlu0 %7094 }
0x161e   : > { %v7114_v51 = vperm.slane %v7095_v56, %v12838_v6 }
0x1620   : > { %v7121_v7 = vsel %vm1039_vm3, %v7114_v51, %v7120_v42 }
0x1625   : > { %v7097_v3 = vpop.xlane.xlu0 %7096 }
0x1626   : > { %v7115_v20 = vperm.slane %v7097_v3, %v12838_v6 }
0x1628   : > { %v7122_v12 = vsel %vm1041_vm4, %v7115_v20, %v7121_v7 }
0x162d   : > { %v7099_v36 = vpop.xlane.xlu0 %7098 }
0x162e   : > { %v7116_v48 = vperm.slane %v7099_v36, %v12838_v6 }
0x1630   : > { %v7123_v16 = vsel %vm1043_vm5, %v7116_v48, %v7122_v12 }
0x1631   : > { %v7124_v60 = vsel %vm1045_vm6, %v7117_v31, %v7123_v16 }
0x1632   : > { %v7126_v46 = vsel %vm1048_vm7, %v7124_v60, -inf }
0x1633   : > { %7127 = vmax.xlane.f32.xlu1 %v7126_v46 }
0x16a6   : > { %v7128_v49 = vpop.xlane.xlu1 %7127 }
0x16a7   : > { %v7132_v21 = vperm.slane %v7128_v49, 2  ;;  %v7131_v13 = vperm.slane %v7128_v49, 1  ;;  %v7130_v63 = vperm.slane %v7128_v49, 0  ;;  %v7136_v61 = vperm.slane %v7128_v49, 6 }
0x16a8   : > { %v7134_v44 = vperm.slane %v7128_v49, 4  ;;  %v7133_v38 = vperm.slane %v7128_v49, 3  ;;  %v7137_v20 = vperm.slane %v7128_v49, 7 }
0x16a9   : > { %v7148_v30 = vsub.f32 %v7091_v47, %v7132_v21  ;;  %v7147_v5 = vsub.f32 %v7089_v40, %v7131_v13  ;;  %v7146_v4 = vsub.f32 %v7087_v34, %v7130_v63  ;;  %v7152_v8 = vsub.f32 %v7099_v36, %v7136_v61 }
0x16aa   : > { %v7150_v23 = vsub.f32 %v7095_v56, %v7134_v44  ;;  %v7149_v59 = vsub.f32 %v7093_v15, %v7133_v38  ;;  %v7135_v40 = vperm.slane %v7128_v49, 5  ;;  %v7153_v48 = vsub.f32 %v7101_v41, %v7137_v20 }
0x16ab   : > { %v7158_v17 = vmul.f32 1.442695, %v7148_v30  ;;  %v7156_v29 = vmul.f32 1.442695, %v7147_v5  ;;  %v7154_v45 = vmul.f32 1.442695, %v7146_v4 }
0x16ac   : > { %v7166_v51 = vmul.f32 1.442695, %v7152_v8  ;;  %v7162_v14 = vmul.f32 1.442695, %v7150_v23  ;;  %v7160_v47 = vmul.f32 1.442695, %v7149_v59  ;;  %v7151_v56 = vsub.f32 %v7097_v3, %v7135_v40 }
0x16ad   : > { %12468 = vpow2.f32 %v7158_v17  ;;  %v7168_v36 = vmul.f32 1.442695, %v7153_v48 }
0x16ae   : > { %12470 = vpow2.f32 %v7156_v29  ;;  %v7164_v31 = vmul.f32 1.442695, %v7151_v56 }
0x16af   : > { %12472 = vpow2.f32 %v7154_v45 }
0x16b0   : > { %12474 = vpow2.f32 %v7166_v51 }
0x16b1   : > { %12476 = vpow2.f32 %v7162_v14 }
0x16b2   : > { %12478 = vpow2.f32 %v7160_v47 }
0x16b3   : > { %v16152_v42 = vpop.eup %12468  ;;  %12480 = vpow2.f32 %v7168_v36 }
0x16b4   : > { %v12471_v34 = vpop.eup %12470  ;;  %7185 = vperm.xlu1 %12199, %v16152_v42   ;;  %12482 = vpow2.f32 %v7164_v31 }
0x16b5   : > { %v12473_v7 = vpop.eup %12472  ;;  %7182 = vperm.xlu2 %12200, %v12471_v34  }
0x16b6   : > { %7179 = vperm.xlu0 %12198, %v12473_v7   ;;  %v16155_v15 = vpop.eup %12474 }
0x16b7   : > { %v12477_v12 = vpop.eup %12476 }
0x16b8   : > { %v12479_v16 = vpop.eup %12478 }
0x16b9   : > { %v12481_v60 = vpop.eup %12480 }
0x16ba   : > { %v12483_v46 = vpop.eup %12482 }
0x16bc   : > { %7197 = vperm.xlu1 %12199, %v16155_v15  }
0x16bd   : > { %7191 = vperm.xlu2 %12200, %v12477_v12  }
0x16be   : > { %7188 = vperm.xlu0 %12198, %v12479_v16  }
0x16c5   : > { %7200 = vperm.xlu2 %12200, %v12481_v60  }
0x16c6   : > { %7194 = vperm.xlu0 %12198, %v12483_v46  }
0x170f   : > { %v7183_v41 = vpop.permute.xlu2 %7182 }
0x1710   : > { %v7203_v30 = vperm.slane %v7183_v41, %v12838_v6 }
0x1717   : > { %v7192_v3 = vpop.permute.xlu2 %7191 }
0x1718   : > { %v7206_v45 = vperm.slane %v7192_v3, %v12838_v6 }
0x171f   : > { %v7201_v38 = vpop.permute.xlu2 %7200 }
0x1720   : > { %v7209_v20 = vperm.slane %v7201_v38, %v12838_v6 }
0x1726   : > { %v7186_v21 = vpop.permute.xlu1 %7185 }
0x1727   : > { %v7204_v5 = vperm.slane %v7186_v21, %v12838_v6 }
0x1728   : > { %v7180_v49 = vpop.permute.xlu0 %7179 }
0x1729   : > { %v7202_v13 = vperm.slane %v7180_v49, %v12838_v6 }
0x172b   : > { %v7210_v4 = vsel %vm1033_vm0, %v7203_v30, %v7202_v13 }
0x172c   : > { %v7211_v17 = vsel %vm1035_vm1, %v7204_v5, %v7210_v4 }
0x172e   : > { %v7198_v29 = vpop.permute.xlu1 %7197 }
0x172f   : > { %v7208_v59 = vperm.slane %v7198_v29, %v12838_v6 }
0x1730   : > { %v7189_v63 = vpop.permute.xlu0 %7188 }
0x1731   : > { %v7205_v61 = vperm.slane %v7189_v63, %v12838_v6 }
0x1733   : > { %v7212_v44 = vsel %vm1037_vm2, %v7205_v61, %v7211_v17 }
0x1734   : > { %v7213_v51 = vsel %vm1039_vm3, %v7206_v45, %v7212_v44 }
0x1738   : > { %v7195_v8 = vpop.permute.xlu0 %7194 }
0x1739   : > { %v7207_v23 = vperm.slane %v7195_v8, %v12838_v6 }
0x173b   : > { %v7214_v14 = vsel %vm1041_vm4, %v7207_v23, %v7213_v51  ;;  %v16211_v51 = vld [vmem:[%s13101_s22] sm:$0xff]  }
0x173c   : > { %v7215_v47 = vsel %vm1043_vm5, %v7208_v59, %v7214_v14 }
0x173d   : > { %v7216_v40 = vsel %vm1045_vm6, %v7209_v20, %v7215_v47  ;;  %v12082_v20 = vunpack.c.h.bf16 %v16211_v51 }
0x173e   : > { %v7218_v48 = vsel %vm1048_vm7, %v7216_v40, 0.0 }
0x173f   : > { %7219 = vadd.xlane.f32.xlu0 %v7218_v48  ;;  %v11078_v48 = vld [vmem:[%s17320_s6 + $0xe0] sm:$0xf] }
0x1753   : > { %1714 = vperm.xlu0 %12198, %v12950_v58  }
0x17b2   : > { %v7220_v56 = vpop.xlane.xlu0 %7219 }
0x17b3   : > { %12484 = vrcp.f32 %v7220_v56  ;;  %v11829_v56 = vld [vmem:[%s17320_s6 + $0xec] sm:$0xf0] }
0x17b9   : > { %v12485_v36 = vpop.eup %12484 }
0x17ba   : > { %v7224_v31 = vperm.slane %v12485_v36, 1  ;;  %v7223_v41 = vperm.slane %v12485_v36, 0  ;;  %v7226_v63 = vperm.slane %v12485_v36, 3  ;;  %v7225_v30 = vperm.slane %v12485_v36, 2 }
0x17bb   : > { %v7228_v4 = vperm.slane %v12485_v36, 5  ;;  %v7227_v61 = vperm.slane %v12485_v36, 4  ;;  %v7230_v44 = vperm.slane %v12485_v36, 7  ;;  %v7229_v45 = vperm.slane %v12485_v36, 6  ;;  %v11827_v36 = vld [vmem:[%s17320_s6 + $0xe4] sm:$0xf] }
0x17bc   : > { %v16175_v49 = vmul.f32 %v12471_v34, %v7224_v31  ;;  %v16177_v21 = vmul.f32 %v12473_v7, %v7223_v41  ;;  %v16183_v58 = vmul.f32 %v12479_v16, %v7226_v63  ;;  %v16186_v5 = vmul.f32 %v16152_v42, %v7225_v30  ;;  %v11080_v41 = vld [vmem:[%s17320_s6 + $0xf0] sm:$0xf0] }
0x17bd   : > { %v16192_v17 = vmul.f32 %v12483_v46, %v7228_v4  ;;  %v16194_v29 = vmul.f32 %v12477_v12, %v7227_v61  ;;  %v16200_v38 = vmul.f32 %v12481_v60, %v7230_v44  ;;  %v16203_v8 = vmul.f32 %v16155_v15, %v7229_v45  ;;  %v11088_v4 = vld [vmem:[%s17320_s6 + $0xf8] sm:$0xf0]  ;;  %v16240_v61 = vld [vmem:[%s13101_s22 + $0x8] sm:$0xff]   ;;  %v11062_v45 = vld [vmem:[%s17320_s6 + $0xc0] sm:$0xf] }
0x17be   : > { %17387 = vst [vmem:[#allocation25_spill] sm:$0xff] %v16175_v49  ;;  %v7248_v3 = vpack.c.bf16 %v16175_v49, %v16175_v49  ;;  %v7247_v13 = vpack.c.bf16 %v16177_v21, %v16177_v21  ;;  %v7250_v34 = vpack.c.bf16 %v16183_v58, %v16183_v58  ;;  %v7249_v7 = vpack.c.bf16 %v16186_v5, %v16186_v5 }
0x17bf   : > { %17388 = vst [vmem:[#allocation26_spill] sm:$0xff] %v16192_v17  ;;  %v7252_v16 = vpack.c.bf16 %v16192_v17, %v16192_v17  ;;  %v7251_v42 = vpack.c.bf16 %v16194_v29, %v16194_v29  ;;  %v7254_v46 = vpack.c.bf16 %v16200_v38, %v16200_v38  ;;  %v7253_v12 = vpack.c.bf16 %v16203_v8, %v16203_v8 }
0x17c0   : > { %7274 = vperm.xlu2 %12200, %v7248_v3   ;;  %7265 = vperm.xlu1 %12199, %v7247_v13   ;;  %17389 = vst [vmem:[#allocation27_spill] sm:$0xff] %v16194_v29  ;;  %v11079_v31 = vor.u32 %v11829_v56, %v11078_v48  ;;  %v11086_v3 = vld [vmem:[%s17320_s6 + $0xe8] sm:$0xf]  ;;  %v11830_v13 = vld [vmem:[%s17320_s6 + $0xf4] sm:$0xf0] }
0x17c1   : > { %17390 = vst [vmem:[#allocation28_spill] sm:$0xff] %v16200_v38  ;;  %v16266_v56 = vld [vmem:[%s13101_s22 + $0x18] sm:$0xff]  }
0x17c2   : > { %17391 = vst [vmem:[#allocation29_spill] sm:$0xff] %v16203_v8  ;;  %7657 = vmatpush.bf16.msra.mxu2 %v11079_v31  ;;  %v11072_v31 = vld [vmem:[%s17320_s6 + $0xd8] sm:$0xf0] }
0x17c8   : > { %7292 = vperm.xlu2 %12200, %v7250_v34   ;;  %7283 = vperm.xlu1 %12199, %v7249_v7   ;;  %v11083_v34 = vor.u32 %v11827_v36, %v11080_v41  ;;  %v11828_v7 = vld [vmem:[%s17320_s6 + $0xec] sm:$0xf] }
0x17c9   : > { %v11091_v44 = vor.u32 %v11828_v7, %v11088_v4  ;;  %v11824_v36 = vld [vmem:[%s17320_s6 + $0xcc] sm:$0xf]  ;;  %v11046_v4 = vld [vmem:[%s17320_s6 + $0xa0] sm:$0xf] }
0x17ca   : > { %7670 = vmatpush.bf16.msra.mxu3 %v11083_v34  ;;  %v11075_v7 = vor.u32 %v11824_v36, %v11072_v31 }
0x17cb   : > { %7696 = vmatpush.bf16.msrb.mxu1 %v11091_v44  ;;  %v11819_v44 = vld [vmem:[%s17320_s6 + $0xa4] sm:$0xf] }
0x17cf   : > { %7697 = vmatpush.bf16.msrb.mxu1 %v11075_v7  ;;  %v11032_v7 = vld [vmem:[%s17320_s6 + $0x90] sm:$0xf0] }
0x17d0   : > { %7310 = vperm.xlu2 %12200, %v7252_v16   ;;  %7301 = vperm.xlu1 %12199, %v7251_v42   ;;  %v16243_v16 = vld [vmem:[%s13101_s22 + $0x10] sm:$0xff]   ;;  %v11087_v42 = vor.u32 %v11830_v13, %v11086_v3 }
0x17d2   : > { %7683 = vmatpush.bf16.msrb.mxu0 %v11087_v42  ;;  %v11821_v42 = vld [vmem:[%s17320_s6 + $0xac] sm:$0xf0] }
0x17d8   : > { %7328 = vperm.xlu2 %12200, %v7254_v46   ;;  %7319 = vperm.xlu1 %12199, %v7253_v12   ;;  %v11825_v46 = vld [vmem:[%s17320_s6 + $0xcc] sm:$0xf0]  ;;  %v11823_v12 = vld [vmem:[%s17320_s6 + $0xc4] sm:$0xf] }
0x181a   : > { %v7275_v23 = vpop.permute.xlu2 %7274 }
0x181b   : > { %v7280_v59 = vperm.slane %v7275_v23, %v13131_v32  ;;  %v11063_v23 = vor.u32 %v11825_v46, %v11062_v45  ;;  %v12094_v45 = vunpack.c.h.bf16 %v16266_v56  ;;  %v12081_v46 = vunpack.c.l.bf16 %v16211_v51 }
0x181d   : > { %v7336_v60 = vunpack.c.l.bf16 %v7280_v59  ;;  %v11064_v59 = vld [vmem:[%s17320_s6 + $0xd0] sm:$0xf0]  ;;  %7658 = vmatpush.bf16.msra.mxu2 %v11063_v23  ;;  %v11047_v23 = vor.u32 %v11821_v42, %v11046_v4 }
0x181e   : > { %v11067_v13 = vor.u32 %v11823_v12, %v11064_v59  ;;  %v11048_v59 = vld [vmem:[%s17320_s6 + $0xb0] sm:$0xf0] }
0x181f   : > { %v7352_v15 = vmul.f32 %v12082_v20, %v7336_v60  ;;  %v11070_v20 = vld [vmem:[%s17320_s6 + $0xc8] sm:$0xf]  ;;  %v11826_v60 = vld [vmem:[%s17320_s6 + $0xd4] sm:$0xf0] }
0x1820   : > { %v11071_v34 = vor.u32 %v11826_v60, %v11070_v20  ;;  %7671 = vmatpush.bf16.msra.mxu3 %v11067_v13  ;;  %v11054_v20 = vld [vmem:[%s17320_s6 + $0xa8] sm:$0xf]  ;;  %v11822_v60 = vld [vmem:[%s17320_s6 + $0xb4] sm:$0xf0]  ;;  %v11056_v13 = vld [vmem:[%s17320_s6 + $0xb8] sm:$0xf0] }
0x1821   : > { %v7360_v47 = vpack.c.bf16 %v7352_v15, %v7352_v15  ;;  %v12086_v15 = vunpack.c.h.bf16 %v16240_v61  ;;  %7659 = vmatpush.bf16.msra.mxu2 %v11047_v23  ;;  %v11055_v42 = vor.u32 %v11822_v60, %v11054_v20  ;;  %v11816_v20 = vld [vmem:[%s17320_s6 + $0x8c] sm:$0xf]  ;;  %v11040_v60 = vld [vmem:[%s17320_s6 + $0x98] sm:$0xf0] }
0x1822   : > { %v7293_v14 = vpop.permute.xlu2 %7292  ;;  %7684 = vmatpush.bf16.msrb.mxu0 %v11071_v34 }
0x1823   : > { %v7368_v63 = vunpack.c.l.bf16 %v7360_v47  ;;  %v7298_v30 = vperm.slane %v7293_v14, %v13131_v32 }
0x1825   : > { %v7381_v14 = vrot.slane %v7368_v63, 4  ;;  %v7338_v47 = vunpack.c.l.bf16 %v7298_v30  ;;  %v12090_v30 = vunpack.c.h.bf16 %v16243_v16 }
0x1826   : > { %7685 = vmatpush.bf16.msrb.mxu0 %v11055_v42  ;;  %v11043_v42 = vor.u32 %v11816_v20, %v11040_v60 }
0x1827   : > { %v16297_v36 = vadd.f32 %v7381_v14, %v7368_v63  ;;  %v7354_v51 = vmul.f32 %v12086_v15, %v7338_v47  ;;  %v11030_v63 = vld [vmem:[%s17320_s6 + $0x80] sm:$0xf]  ;;  %v11817_v14 = vld [vmem:[%s17320_s6 + $0x8c] sm:$0xf0]  ;;  %v11815_v15 = vld [vmem:[%s17320_s6 + $0x84] sm:$0xf] }
0x1829   : > { %v7362_v23 = vpack.c.bf16 %v7354_v51, %v7354_v51  ;;  %v11813_v51 = vld [vmem:[%s17320_s6 + $0x6c] sm:$0xf0] }
0x182a   : > { %v7311_v40 = vpop.permute.xlu2 %7310 }
0x182b   : > { %v7316_v48 = vperm.slane %v7311_v40, %v13131_v32 }
0x182d   : > { %v7340_v31 = vunpack.c.l.bf16 %v7316_v48  ;;  %v11031_v48 = vor.u32 %v11817_v14, %v11030_v63  ;;  %v12085_v63 = vunpack.c.l.bf16 %v16240_v61  ;;  %v11016_v61 = vld [vmem:[%s17320_s6 + $0x70] sm:$0xf0]  ;;  %v11022_v14 = vld [vmem:[%s17320_s6 + $0x68] sm:$0xf] }
0x182f   : > { %7660 = vmatpush.bf16.msra.mxu2 %v11031_v48 }
0x1832   : > { %v7329_v41 = vpop.permute.xlu2 %7328  ;;  %v7266_v3 = vpop.permute.xlu1 %7265 }
0x1833   : > { %v7334_v40 = vperm.slane %v7329_v41, %v13131_v32  ;;  %v7271_v12 = vperm.slane %v7266_v3, %v13131_v32  ;;  %v11051_v41 = vor.u32 %v11819_v44, %v11048_v59  ;;  %v11820_v3 = vld [vmem:[%s17320_s6 + $0xac] sm:$0xf]  ;;  %v11818_v44 = vld [vmem:[%s17320_s6 + $0x94] sm:$0xf0]  ;;  %v7356_v59 = vmul.f32 %v12090_v30, %v7340_v31 }
0x1834   : > { %v11059_v17 = vor.u32 %v11820_v3, %v11056_v13 }
0x1835   : > { %v7342_v34 = vunpack.c.l.bf16 %v7334_v40  ;;  %v7335_v4 = vunpack.c.l.bf16 %v7271_v12  ;;  %7672 = vmatpush.bf16.msra.mxu3 %v11051_v41  ;;  %v11038_v40 = vld [vmem:[%s17320_s6 + $0x88] sm:$0xf]  ;;  %v7383_v12 = vrot.slane %v16297_v36, 2  ;;  %v7364_v48 = vpack.c.bf16 %v7356_v59, %v7356_v59  ;;  %v11809_v59 = vld [vmem:[%s17320_s6 + $0x4c] sm:$0xf0] }
0x1836   : > { %7698 = vmatpush.bf16.msrb.mxu1 %v11059_v17  ;;  %v11014_v17 = vld [vmem:[%s17320_s6 + $0x60] sm:$0xf] }
0x1837   : > { %v7351_v47 = vmul.f32 %v12081_v46, %v7335_v4  ;;  %v11035_v46 = vor.u32 %v11815_v15, %v11032_v7  ;;  %v7358_v41 = vmul.f32 %v12094_v45, %v7342_v34  ;;  %v11039_v4 = vor.u32 %v11818_v44, %v11038_v40  ;;  %v11811_v45 = vld [vmem:[%s17320_s6 + $0x64] sm:$0xf]  ;;  %v11814_v15 = vld [vmem:[%s17320_s6 + $0x74] sm:$0xf0]  ;;  %v11812_v44 = vld [vmem:[%s17320_s6 + $0x6c] sm:$0xf] }
0x1838   : > { %v11015_v34 = vor.u32 %v11813_v51, %v11014_v17  ;;  %v11019_v40 = vor.u32 %v11811_v45, %v11016_v61  ;;  %v11006_v17 = vld [vmem:[%s17320_s6 + $0x48] sm:$0xf]  ;;  %v11810_v51 = vld [vmem:[%s17320_s6 + $0x54] sm:$0xf0] }
0x1839   : > { %v7359_v3 = vpack.c.bf16 %v7351_v47, %v7351_v47  ;;  %7673 = vmatpush.bf16.msra.mxu3 %v11035_v46  ;;  %7686 = vmatpush.bf16.msrb.mxu0 %v11039_v4  ;;  %v7370_v47 = vunpack.c.l.bf16 %v7362_v23  ;;  %v11024_v46 = vld [vmem:[%s17320_s6 + $0x78] sm:$0xf0]  ;;  %v7366_v20 = vpack.c.bf16 %v7358_v41, %v7358_v41  ;;  %v10998_v23 = vld [vmem:[%s17320_s6 + $0x40] sm:$0xf] }
0x183a   : > { %v7284_v13 = vpop.permute.xlu1 %7283  ;;  %7699 = vmatpush.bf16.msrb.mxu1 %v11043_v42  ;;  %7661 = vmatpush.bf16.msra.mxu2 %v11015_v34  ;;  %v11807_v42 = vld [vmem:[%s17320_s6 + $0x44] sm:$0xf]  ;;  %v10999_v41 = vor.u32 %v11809_v59, %v10998_v23  ;;  %v7372_v34 = vunpack.c.l.bf16 %v7364_v48  ;;  %v12089_v48 = vunpack.c.l.bf16 %v16243_v16  ;;  %v11805_v23 = vld [vmem:[%s17320_s6 + $0x2c] sm:$0xf0]  ;;  %v10984_v16 = vld [vmem:[%s17320_s6 + $0x30] sm:$0xf0] }
0x183b   : > { %v7289_v30 = vperm.slane %v7284_v13, %v13131_v32  ;;  %v7367_v31 = vunpack.c.l.bf16 %v7359_v3  ;;  %v11023_v3 = vor.u32 %v11814_v15, %v11022_v14  ;;  %v11027_v13 = vor.u32 %v11812_v44, %v11024_v46  ;;  %v11808_v14 = vld [vmem:[%s17320_s6 + $0x4c] sm:$0xf]  ;;  %v11008_v15 = vld [vmem:[%s17320_s6 + $0x58] sm:$0xf0] }
0x183c   : > { %v7393_v45 = vrot.slane %v7370_v47, 4  ;;  %v11007_v46 = vor.u32 %v11810_v51, %v11006_v17 }
0x183d   : > { %v7337_v7 = vunpack.c.l.bf16 %v7289_v30  ;;  %v7375_v60 = vrot.slane %v7367_v31, 4  ;;  %7674 = vmatpush.bf16.msra.mxu3 %v11019_v40  ;;  %7687 = vmatpush.bf16.msrb.mxu0 %v11023_v3 }
0x183e   : > { %7700 = vmatpush.bf16.msrb.mxu1 %v11027_v13  ;;  %7662 = vmatpush.bf16.msra.mxu2 %v10999_v41  ;;  %v11806_v41 = vld [vmem:[%s17320_s6 + $0x34] sm:$0xf0] }
0x183f   : > { %v7353_v4 = vmul.f32 %v12085_v63, %v7337_v7  ;;  %v7376_v30 = vadd.f32 %v7375_v60, %v7367_v31  ;;  %v11000_v63 = vld [vmem:[%s17320_s6 + $0x50] sm:$0xf0]  ;;  %v7374_v7 = vunpack.c.l.bf16 %v7366_v20  ;;  %v11011_v60 = vor.u32 %v11808_v14, %v11008_v15  ;;  %v11803_v20 = vld [vmem:[%s17320_s6 + $0x24] sm:$0xf]  ;;  %v10992_v14 = vld [vmem:[%s17320_s6 + $0x38] sm:$0xf0] }
0x1840   : > { %v11003_v31 = vor.u32 %v11807_v42, %v11000_v63  ;;  %v10990_v42 = vld [vmem:[%s17320_s6 + $0x28] sm:$0xf]  ;;  %v7394_v63 = vadd.f32 %v7393_v45, %v7370_v47  ;;  %v7405_v15 = vrot.slane %v7372_v34, 4  ;;  %v10966_v47 = vld [vmem:[%s17320_s6] sm:$0xf] }
0x1841   : > { %v7361_v61 = vpack.c.bf16 %v7353_v4, %v7353_v4  ;;  %v7377_v40 = vrot.slane %v7376_v30, 2  ;;  %v10982_v4 = vld [vmem:[%s17320_s6 + $0x20] sm:$0xf]  ;;  %7688 = vmatpush.bf16.msrb.mxu0 %v11007_v46  ;;  %v10991_v46 = vor.u32 %v11806_v41, %v10990_v42  ;;  %v11801_v45 = vld [vmem:[%s17320_s6 + $0xc] sm:$0xf0] }
0x1842   : > { %v7302_v44 = vpop.permute.xlu1 %7301  ;;  %7675 = vmatpush.bf16.msra.mxu3 %v11003_v31  ;;  %v10983_v59 = vor.u32 %v11805_v23, %v10982_v4  ;;  %7701 = vmatpush.bf16.msrb.mxu1 %v11011_v60  ;;  %v11804_v31 = vld [vmem:[%s17320_s6 + $0x2c] sm:$0xf]  ;;  %v10967_v23 = vor.u32 %v11801_v45, %v10966_v47 }
0x1843   : > { %v7369_v3 = vunpack.c.l.bf16 %v7361_v61  ;;  %v7307_v13 = vperm.slane %v7302_v44, %v13131_v32  ;;  %v10987_v61 = vor.u32 %v11803_v20, %v10984_v16  ;;  %v7417_v44 = vrot.slane %v7374_v7, 4  ;;  %v11799_v20 = vld [vmem:[%s17320_s6 + $0x4] sm:$0xf]  ;;  %v10974_v16 = vld [vmem:[%s17320_s6 + $0x8] sm:$0xf] }
0x1844   : > { %7663 = vmatpush.bf16.msra.mxu2 %v10983_v59  ;;  %v10995_v4 = vor.u32 %v11804_v31, %v10992_v14  ;;  %v10968_v59 = vld [vmem:[%s17320_s6 + $0x10] sm:$0xf0]  ;;  %v7378_v42 = vadd.f32 %v7377_v40, %v7376_v30  ;;  %v7384_v30 = vadd.f32 %v7383_v12, %v16297_v36  ;;  %v7395_v40 = vrot.slane %v7394_v63, 2 }
0x1845   : > { %v7387_v17 = vrot.slane %v7369_v3, 4  ;;  %v7339_v51 = vunpack.c.l.bf16 %v7307_v13  ;;  %7689 = vmatpush.bf16.msrb.mxu0 %v10991_v46  ;;  %v10971_v41 = vor.u32 %v11799_v20, %v10968_v59  ;;  %v12093_v59 = vunpack.c.l.bf16 %v16266_v56 }
0x1846   : > { %7676 = vmatpush.bf16.msra.mxu3 %v10987_v61  ;;  %7702 = vmatpush.bf16.msrb.mxu1 %v10995_v4  ;;  %v7406_v61 = vadd.f32 %v7405_v15, %v7372_v34  ;;  %v7418_v29 = vadd.f32 %v7417_v44, %v7374_v7  ;;  %v7379_v49 = vrot.slane %v7378_v42, 1  ;;  %v7385_v36 = vrot.slane %v7384_v30, 1 }
0x1847   : > { %v7388_v60 = vadd.f32 %v7387_v17, %v7369_v3  ;;  %v7355_v13 = vmul.f32 %v12089_v48, %v7339_v51  ;;  %v11802_v3 = vld [vmem:[%s17320_s6 + $0x14] sm:$0xf0]  ;;  %v11800_v48 = vld [vmem:[%s17320_s6 + $0xc] sm:$0xf]  ;;  %v10976_v17 = vld [vmem:[%s17320_s6 + $0x18] sm:$0xf0]  ;;  %v7396_v12 = vadd.f32 %v7395_v40, %v7394_v63 }
0x1848   : > { %v10975_v14 = vor.u32 %v11802_v3, %v10974_v16  ;;  %7664 = vmatpush.bf16.msra.mxu2 %v10967_v23  ;;  %v10979_v47 = vor.u32 %v11800_v48, %v10976_v17  ;;  %v7407_v34 = vrot.slane %v7406_v61, 2  ;;  %v7419_v3 = vrot.slane %v7418_v29, 2 }
0x1849   : > { %v7389_v51 = vrot.slane %v7388_v60, 2  ;;  %v7363_v31 = vpack.c.bf16 %v7355_v13, %v7355_v13 }
0x184a   : > { %v7320_v46 = vpop.permute.xlu1 %7319  ;;  %7677 = vmatpush.bf16.msra.mxu3 %v10971_v41  ;;  %7690 = vmatpush.bf16.msrb.mxu0 %v10975_v14  ;;  %v7408_v7 = vadd.f32 %v7407_v34, %v7406_v61  ;;  %v7420_v14 = vadd.f32 %v7419_v3, %v7418_v29 }
0x184b   : > { %v7390_v45 = vadd.f32 %v7389_v51, %v7388_v60  ;;  %v7371_v20 = vunpack.c.l.bf16 %v7363_v31  ;;  %v7325_v8 = vperm.slane %v7320_v46, %v13131_v32  ;;  %7703 = vmatpush.bf16.msrb.mxu1 %v10979_v47  ;;  %v7380_v60 = vadd.f32 %v7379_v49, %v7378_v42 }
0x184c   : > { %v7386_v51 = vadd.f32 %v7385_v36, %v7384_v30  ;;  %v7397_v31 = vrot.slane %v7396_v12, 1  ;;  %v7409_v40 = vrot.slane %v7408_v7, 1 }
0x184d   : > { %v7391_v4 = vrot.slane %v7390_v45, 1  ;;  %v7399_v13 = vrot.slane %v7371_v20, 4  ;;  %v7341_v16 = vunpack.c.l.bf16 %v7325_v8  ;;  %v7432_v46 = vpack.c.bf16 %v7380_v60, %v7380_v60 }
0x184e   : > { %v7433_v38 = vpack.c.bf16 %v7386_v51, %v7386_v51  ;;  %v7398_v63 = vadd.f32 %v7397_v31, %v7396_v12  ;;  %v7410_v61 = vadd.f32 %v7409_v40, %v7408_v7  ;;  %v11219_v40 = vld [vmem:[%s17317_s3 + $0xf0] sm:$0xf] }
0x184f   : > { %v7400_v15 = vadd.f32 %v7399_v13, %v7371_v20  ;;  %v7357_v23 = vmul.f32 %v12093_v59, %v7341_v16  ;;  %v7392_v48 = vadd.f32 %v7391_v4, %v7390_v45  ;;  %v7421_v13 = vrot.slane %v7420_v14, 1 }
0x1850   : > { %v7480_v49 = vunpack.c.l.b16 %v7432_v46  ;;  %v7481_v30 = vunpack.c.l.b16 %v7433_v38  ;;  %v7435_v16 = vpack.c.bf16 %v7398_v63, %v7398_v63  ;;  %v7437_v60 = vpack.c.bf16 %v7410_v61, %v7410_v61  ;;  %v11241_v61 = vld [vmem:[%s17317_s3 + $0x12c] sm:$0xf0] }
0x1851   : > { %v7401_v17 = vrot.slane %v7400_v15, 2  ;;  %v7365_v56 = vpack.c.bf16 %v7357_v23, %v7357_v23  ;;  %v7434_v32 = vpack.c.bf16 %v7392_v48, %v7392_v48  ;;  %v7422_v34 = vadd.f32 %v7421_v13, %v7420_v14  ;;  %v11199_v13 = vld [vmem:[%s17317_s3 + $0xc8] sm:$0xf] }
0x1852   : > { %v7488_v29 = vsel %vm1033_vm0, %v7481_v30, %v7480_v49  ;;  %v7483_v12 = vunpack.c.l.b16 %v7435_v16  ;;  %v7485_v38 = vunpack.c.l.b16 %v7437_v60  ;;  %v11858_v49 = vld [vmem:[%s17317_s3 + $0xd8] sm:$0xf0]  ;;  %v11159_v60 = vld [vmem:[%s17317_s3 + $0x78] sm:$0xf] }
0x1853   : > { %v7402_v44 = vadd.f32 %v7401_v17, %v7400_v15  ;;  %v7373_v41 = vunpack.c.l.bf16 %v7365_v56  ;;  %v7482_v42 = vunpack.c.l.b16 %v7434_v32  ;;  %v7439_v17 = vpack.c.bf16 %v7422_v34, %v7422_v34  ;;  %v11866_v16 = vld [vmem:[%s17317_s3 + $0x11c] sm:$0xf] }
0x1854   : > { %v11244_v34 = vor.u32 %v11866_v16, %v11241_v61 }
0x1855   : > { %v7403_v8 = vrot.slane %v7402_v44, 1  ;;  %v7411_v47 = vrot.slane %v7373_v41, 4  ;;  %v7489_v15 = vsel %vm1035_vm1, %v7482_v42, %v7488_v29  ;;  %v7487_v7 = vunpack.c.l.b16 %v7439_v17  ;;  %v11869_v29 = vld [vmem:[%s17317_s3 + $0x130] sm:$0xf0] }
0x1856   : > { %v7490_v56 = vsel %vm1037_vm2, %v7483_v12, %v7489_v15  ;;  %v11200_v42 = vor.u32 %v11858_v49, %v11199_v13  ;;  %v11867_v15 = vld [vmem:[%s17317_s3 + $0x124] sm:$0xf]  ;;  %8098 = vmatpush.bf16.msrb.mxu3 %v11244_v34 }
0x1857   : > { %v7404_v20 = vadd.f32 %v7403_v8, %v7402_v44  ;;  %v7412_v59 = vadd.f32 %v7411_v47, %v7373_v41  ;;  %v11239_v8 = vld [vmem:[%s17317_s3 + $0x118] sm:$0xf]  ;;  %v11868_v47 = vld [vmem:[%s17317_s3 + $0x128] sm:$0xf0]  ;;  %v11859_v49 = vld [vmem:[%s17317_s3 + $0xe0] sm:$0xf0] }
0x1858   : > { %v11240_v63 = vor.u32 %v11868_v47, %v11239_v8  ;;  %v11139_v8 = vld [vmem:[%s17317_s3 + $0x50] sm:$0xf]  ;;  %v11843_v47 = vld [vmem:[%s17317_s3 + $0x60] sm:$0xf0] }
0x1859   : > { %v7436_v45 = vpack.c.bf16 %v7404_v20, %v7404_v20  ;;  %v7413_v4 = vrot.slane %v7412_v59, 2  ;;  %v11863_v20 = vld [vmem:[%s17317_s3 + $0x100] sm:$0xf0] }
0x185a   : > { %8085 = vmatpush.bf16.msrb.mxu2 %v11240_v63  ;;  %v11140_v63 = vor.u32 %v11843_v47, %v11139_v8 }
0x185b   : > { %v7414_v36 = vadd.f32 %v7413_v4, %v7412_v59  ;;  %v7484_v23 = vunpack.c.l.b16 %v7436_v45  ;;  %v11220_v59 = vor.u32 %v11863_v20, %v11219_v40  ;;  %v11179_v45 = vld [vmem:[%s17317_s3 + $0xa0] sm:$0xf]  ;;  %v11853_v4 = vld [vmem:[%s17317_s3 + $0xb0] sm:$0xf0]  ;;  %v11856_v40 = vld [vmem:[%s17317_s3 + $0xcc] sm:$0xf] }
0x185c   : > { %v11180_v30 = vor.u32 %v11853_v4, %v11179_v45  ;;  %v11201_v20 = vld [vmem:[%s17317_s3 + $0xdc] sm:$0xf0]  ;;  %v11209_v45 = vld [vmem:[%s17317_s3 + $0xe4] sm:$0xf0] }
0x185d   : > { %v7415_v3 = vrot.slane %v7414_v36, 1  ;;  %v7491_v32 = vsel %vm1039_vm3, %v7484_v23, %v7490_v56  ;;  %v11249_v23 = vld [vmem:[%s17317_s3 + $0x134] sm:$0xf0]  ;;  %v11861_v56 = vld [vmem:[%s17317_s3 + $0xf4] sm:$0xf]  ;;  %v11204_v13 = vor.u32 %v11856_v40, %v11201_v20  ;;  %v10960_v4 = vld [vmem:[%s13397_s29 + $0xa0] sm:$0xff] }
0x185e   : > { %v7492_v44 = vsel %vm1041_vm4, %v7485_v38, %v7491_v32  ;;  %8086 = vmatpush.bf16.msrb.mxu2 %v11220_v59  ;;  %v11252_v12 = vor.u32 %v11867_v15, %v11249_v23  ;;  %v11221_v32 = vld [vmem:[%s17317_s3 + $0x104] sm:$0xf0]  ;;  %v11207_v59 = vld [vmem:[%s17317_s3 + $0xd0] sm:$0xf]  ;;  %v11838_v23 = vld [vmem:[%s17317_s3 + $0x38] sm:$0xf0] }
0x185f   : > { %v7416_v48 = vadd.f32 %v7415_v3, %v7414_v36  ;;  %v11247_v36 = vld [vmem:[%s17317_s3 + $0x120] sm:$0xf]  ;;  %v11224_v38 = vor.u32 %v11861_v56, %v11221_v32  ;;  %v11208_v16 = vor.u32 %v11859_v49, %v11207_v59  ;;  %v11119_v15 = vld [vmem:[%s17317_s3 + $0x28] sm:$0xf]  ;;  %v11854_v56 = vld [vmem:[%s17317_s3 + $0xb8] sm:$0xf0] }
0x1860   : > { %v11248_v3 = vor.u32 %v11869_v29, %v11247_v36  ;;  %8124 = vmatpush.bf16.msra.mxu1 %v11252_v12  ;;  %v10961_v36 = vld [vmem:[%s13397_s29 + $0xa8] sm:$0xff]  ;;  %v11851_v12 = vld [vmem:[%s17317_s3 + $0xa4] sm:$0xf]  ;;  %v11167_v40 = vld [vmem:[%s17317_s3 + $0x80] sm:$0xf] }
0x1861   : > { %v7438_v51 = vpack.c.bf16 %v7416_v48, %v7416_v48  ;;  %v11848_v48 = vld [vmem:[%s17317_s3 + $0x88] sm:$0xf0]  ;;  %8099 = vmatpush.bf16.msrb.mxu3 %v11224_v38  ;;  %v11849_v49 = vld [vmem:[%s17317_s3 + $0x90] sm:$0xf0] }
0x1862   : > { %8087 = vmatpush.bf16.msrb.mxu2 %v11200_v42  ;;  %8111 = vmatpush.bf16.msra.mxu0 %v11248_v3  ;;  %v11160_v17 = vor.u32 %v11848_v48, %v11159_v60  ;;  %v11857_v42 = vld [vmem:[%s17317_s3 + $0xd4] sm:$0xf]  ;;  %v11181_v60 = vld [vmem:[%s17317_s3 + $0xb4] sm:$0xf0]  ;;  %v11187_v48 = vld [vmem:[%s17317_s3 + $0xa8] sm:$0xf] }
0x1863   : > { %v7486_v31 = vunpack.c.l.b16 %v7438_v51  ;;  %v11227_v51 = vld [vmem:[%s17317_s3 + $0xf8] sm:$0xf]  ;;  %v11212_v61 = vor.u32 %v11857_v42, %v11209_v45  ;;  %v11852_v32 = vld [vmem:[%s17317_s3 + $0xac] sm:$0xf]  ;;  %v11847_v42 = vld [vmem:[%s17317_s3 + $0x84] sm:$0xf] }
0x1864   : > { %v11169_v45 = vld [vmem:[%s17317_s3 + $0x94] sm:$0xf0] }
0x1865   : > { %v7493_v41 = vsel %vm1043_vm5, %v7486_v31, %v7492_v44  ;;  %v11864_v31 = vld [vmem:[%s17317_s3 + $0x108] sm:$0xf0]  ;;  %v11229_v44 = vld [vmem:[%s17317_s3 + $0x10c] sm:$0xf0]  ;;  %8100 = vmatpush.bf16.msrb.mxu3 %v11204_v13 }
0x1866   : > { %v7494_v14 = vsel %vm1045_vm6, %v7487_v7, %v7493_v41  ;;  %8088 = vmatpush.bf16.msrb.mxu2 %v11180_v30  ;;  %v11862_v7 = vld [vmem:[%s17317_s3 + $0xfc] sm:$0xf]  ;;  %v11228_v41 = vor.u32 %v11864_v31, %v11227_v51  ;;  %v11189_v51 = vld [vmem:[%s17317_s3 + $0xbc] sm:$0xf0]  ;;  %v11188_v31 = vor.u32 %v11854_v56, %v11187_v48  ;;  %v11147_v48 = vld [vmem:[%s17317_s3 + $0x58] sm:$0xf] }
0x1867   : > { %v7495_v46 = vpack.c.b16 %v7494_v14, %v7494_v14  ;;  %v11232_v14 = vor.u32 %v11862_v7, %v11229_v44  ;;  %v11192_v7 = vor.u32 %v11852_v32, %v11189_v51  ;;  %v7428_v44 = vadd.f32 %v10960_v4, %v16119_v55  ;;  %v11846_v55 = vld [vmem:[%s17317_s3 + $0x7c] sm:$0xf]  ;;  %v11149_v51 = vld [vmem:[%s17317_s3 + $0x6c] sm:$0xf0] }
0x1868   : > { %8112 = vmatpush.bf16.msra.mxu0 %v11228_v41  ;;  %v7429_v41 = vadd.f32 %v10961_v36, %v16122_v33  ;;  %v11161_v33 = vld [vmem:[%s17317_s3 + $0x8c] sm:$0xf0]  ;;  %v11168_v4 = vor.u32 %v11849_v49, %v11167_v40  ;;  %v11841_v36 = vld [vmem:[%s17317_s3 + $0x54] sm:$0xf]  ;;  %v11842_v56 = vld [vmem:[%s17317_s3 + $0x5c] sm:$0xf] }
0x1869   : > { %7665 = vmatmul.bf16.vlgmr.msra.gmra.mxu2 %v7495_v46  ;;  %7678 = vmatmul.bf16.vlgmr.msra.gmra.mxu3 %v7495_v46  ;;  %v11164_v13 = vor.u32 %v11846_v55, %v11161_v33  ;;  %v11837_v55 = vld [vmem:[%s17317_s3 + $0x34] sm:$0xf]  ;;  %v11860_v49 = vld [vmem:[%s17317_s3 + $0xe8] sm:$0xf0] }
0x186a   : > { %7691 = vmatmul.bf16.vlgmr.msrb.gmra.mxu0 %v7495_v46  ;;  %7704 = vmatmul.bf16.vlgmr.msrb.gmra.mxu1 %v7495_v46  ;;  %v10963_v46 = vld [vmem:[%s13397_s29 + $0xb8] sm:$0xff] }
0x186b   : > { %8089 = vmatpush.bf16.msrb.mxu2 %v11160_v17  ;;  %8125 = vmatpush.bf16.msra.mxu1 %v11232_v14  ;;  %v7431_v30 = vadd.f32 %v10963_v46, %v16125_v25  ;;  %v11120_v25 = vor.u32 %v11838_v23, %v11119_v15  ;;  %v11184_v17 = vor.u32 %v11851_v12, %v11181_v60  ;;  %v11099_v14 = vld [vmem:[%s17317_s3] sm:$0xf]  ;;  %v11833_v46 = vld [vmem:[%s17317_s3 + $0x10] sm:$0xf0]  ;;  %v11141_v12 = vld [vmem:[%s17317_s3 + $0x64] sm:$0xf0] }
0x186c   : > { %8113 = vmatpush.bf16.msra.mxu0 %v11208_v16  ;;  %v11255_v16 = vld [vmem:[%s17317_s3 + $0x128] sm:$0xf]  ;;  %v11144_v60 = vor.u32 %v11841_v36, %v11141_v12  ;;  %v11834_v36 = vld [vmem:[%s17317_s3 + $0x18] sm:$0xf0] }
0x186d   : > { %8101 = vmatpush.bf16.msrb.mxu3 %v11184_v17  ;;  %v11844_v17 = vld [vmem:[%s17317_s3 + $0x68] sm:$0xf0] }
0x186e   : > { %v11148_v32 = vor.u32 %v11844_v17, %v11147_v48  ;;  %v11195_v17 = vld [vmem:[%s17317_s3 + $0xb0] sm:$0xf] }
0x186f   : > { %8090 = vmatpush.bf16.msrb.mxu2 %v11140_v63  ;;  %8126 = vmatpush.bf16.msra.mxu1 %v11212_v61  ;;  %v11100_v63 = vor.u32 %v11833_v46, %v11099_v14  ;;  %v11870_v61 = vld [vmem:[%s17317_s3 + $0x138] sm:$0xf0]  ;;  %v11836_v14 = vld [vmem:[%s17317_s3 + $0x2c] sm:$0xf]  ;;  %v11121_v46 = vld [vmem:[%s17317_s3 + $0x3c] sm:$0xf0] }
0x1870   : > { %8114 = vmatpush.bf16.msra.mxu0 %v11188_v31  ;;  %v11865_v31 = vld [vmem:[%s17317_s3 + $0x110] sm:$0xf0] }
0x1871   : > { %8102 = vmatpush.bf16.msrb.mxu3 %v11164_v13  ;;  %v11215_v13 = vld [vmem:[%s17317_s3 + $0xd8] sm:$0xf] }
0x1873   : > { %8091 = vmatpush.bf16.msrb.mxu2 %v11120_v25  ;;  %8127 = vmatpush.bf16.msra.mxu1 %v11192_v7  ;;  %v11256_v25 = vor.u32 %v11870_v61, %v11255_v16  ;;  %v11101_v16 = vld [vmem:[%s17317_s3 + $0x14] sm:$0xf0]  ;;  %v11107_v61 = vld [vmem:[%s17317_s3 + $0x8] sm:$0xf] }
0x1874   : > { %8115 = vmatpush.bf16.msra.mxu0 %v11168_v4 }
0x1875   : > { %8103 = vmatpush.bf16.msrb.mxu3 %v11144_v60  ;;  %v11108_v60 = vor.u32 %v11834_v36, %v11107_v61 }
0x1877   : > { %8092 = vmatpush.bf16.msrb.mxu2 %v11100_v63  ;;  %v11839_v63 = vld [vmem:[%s17317_s3 + $0x40] sm:$0xf0] }
0x1878   : > { %8116 = vmatpush.bf16.msra.mxu0 %v11148_v32 }
0x187b   : > { %8137 = vmatpush.bf16.msra.mxu2 %v11256_v25 }
0x18e7   : > { %v16536_v34 = vpop.f32.mrf.mxu0  ;;  %v7705_v29 = vpop.f32.mrf.mxu1 }
0x18e8   : > { %v7712_v3 = vadd.f32 %v7705_v29, %v7431_v30  ;;  %v11172_v30 = vor.u32 %v11847_v42, %v11169_v45  ;;  %v11831_v45 = vld [vmem:[%s17317_s3 + $0x4] sm:$0xf] }
0x18ea   : > { %v11094_v38 = vmul.f32 -1.442695, %v7712_v3  ;;  %8128 = vmatpush.bf16.msra.mxu1 %v11172_v30  ;;  %v11216_v30 = vor.u32 %v11860_v49, %v11215_v13 }
0x18ec   : > { %12486 = vpow2.f32 %v11094_v38  ;;  %v7666_v8 = vpop.f32.mrf.mxu2  ;;  %v7679_v47 = vpop.f32.mrf.mxu3  ;;  %v11235_v38 = vld [vmem:[%s17317_s3 + $0x100] sm:$0xf] }
0x18ed   : > { %v7709_v20 = vadd.f32 %v7666_v8, %v7428_v44  ;;  %v7710_v59 = vadd.f32 %v7679_v47, %v7429_v41  ;;  %v11152_v44 = vor.u32 %v11842_v56, %v11149_v51  ;;  %v11236_v41 = vor.u32 %v11865_v31, %v11235_v38  ;;  %v11127_v8 = vld [vmem:[%s17317_s3 + $0x30] sm:$0xf]  ;;  %v11855_v56 = vld [vmem:[%s17317_s3 + $0xc0] sm:$0xf0]  ;;  %v11175_v31 = vld [vmem:[%s17317_s3 + $0x88] sm:$0xf] }
0x18ee   : > { %v11124_v47 = vor.u32 %v11836_v14, %v11121_v46  ;;  %v11196_v51 = vor.u32 %v11855_v56, %v11195_v17  ;;  %v10962_v38 = vld [vmem:[%s13397_s29 + $0xb0] sm:$0xff]  ;;  %v11155_v14 = vld [vmem:[%s17317_s3 + $0x60] sm:$0xf] }
0x18ef   : > { %v11092_v29 = vmul.f32 -1.442695, %v7709_v20  ;;  %v11093_v15 = vmul.f32 -1.442695, %v7710_v59  ;;  %v7694_v23 = vpop.f32.mrf.mxu0  ;;  %v7707_v3 = vpop.f32.mrf.mxu1  ;;  %8129 = vmatpush.bf16.msra.mxu1 %v11152_v44  ;;  %v11128_v20 = vor.u32 %v11839_v63, %v11127_v8  ;;  %v11129_v59 = vld [vmem:[%s17317_s3 + $0x44] sm:$0xf0]  ;;  %8138 = vmatpush.bf16.msra.mxu2 %v11236_v41  ;;  %v7430_v41 = vadd.f32 %v10962_v38, %v16114_v10 }
0x18f0   : > { %v11132_v4 = vor.u32 %v11837_v55, %v11129_v59  ;;  %8104 = vmatpush.bf16.msrb.mxu3 %v11124_v47  ;;  %v11832_v23 = vld [vmem:[%s17317_s3 + $0xc] sm:$0xf]  ;;  %v11109_v3 = vld [vmem:[%s17317_s3 + $0x1c] sm:$0xf0]  ;;  %v11845_v46 = vld [vmem:[%s17317_s3 + $0x70] sm:$0xf0] }
0x18f1   : > { %12488 = vpow2.f32 %v11092_v29  ;;  %8117 = vmatpush.bf16.msra.mxu0 %v11128_v20  ;;  %v11112_v48 = vor.u32 %v11832_v23, %v11109_v3  ;;  %v7711_v63 = vadd.f32 %v16536_v34, %v7430_v41  ;;  %v11135_v10 = vld [vmem:[%s17317_s3 + $0x38] sm:$0xf]  ;;  %v11840_v59 = vld [vmem:[%s17317_s3 + $0x48] sm:$0xf0]  ;;  %v11835_v23 = vld [vmem:[%s17317_s3 + $0x20] sm:$0xf0] }
0x18f2   : > { %v12487_v7 = vpop.eup %12486  ;;  %12490 = vpow2.f32 %v11093_v15  ;;  %v11104_v15 = vor.u32 %v11831_v45, %v11101_v16  ;;  %v11136_v61 = vor.u32 %v11840_v59, %v11135_v10 }
0x18f3   : > { %v16642_v42 = vadd.f32 1.0, %v12487_v7  ;;  %8130 = vmatpush.bf16.msra.mxu1 %v11132_v4  ;;  %8139 = vmatpush.bf16.msra.mxu2 %v11216_v30  ;;  %v11850_v7 = vld [vmem:[%s17317_s3 + $0x98] sm:$0xf0] }
0x18f4   : > { %v7668_v33 = vpop.f32.mrf.mxu2  ;;  %v7681_v40 = vpop.f32.mrf.mxu3  ;;  %8105 = vmatpush.bf16.msrb.mxu3 %v11104_v15  ;;  %v11176_v44 = vor.u32 %v11850_v7, %v11175_v31  ;;  %v11115_v15 = vld [vmem:[%s17317_s3 + $0x10] sm:$0xf] }
0x18f5   : > { %12492 = vrcp.f32 %v16642_v42  ;;  %8118 = vmatpush.bf16.msra.mxu0 %v11108_v60  ;;  %v11156_v40 = vor.u32 %v11845_v46, %v11155_v14 }
0x18f7   : > { %v12489_v29 = vpop.eup %12488  ;;  %8131 = vmatpush.bf16.msra.mxu1 %v11112_v48  ;;  %8140 = vmatpush.bf16.msra.mxu2 %v11196_v51  ;;  %v11116_v51 = vor.u32 %v11835_v23, %v11115_v15 }
0x18f8   : > { %v12491_v25 = vpop.eup %12490  ;;  %v7716_v12 = vadd.f32 1.0, %v12489_v29 }
0x18f9   : > { %v7735_v32 = vadd.f32 1.0, %v12491_v25 }
0x18fa   : > { %12494 = vrcp.f32 %v7716_v12  ;;  %v7726_v45 = vand.u32 2147483647, %v7716_v12  ;;  %v7728_v4 = vand.u32 2147483648, %v7716_v12  ;;  %vm7722_vm14 = vweird.f32 %v7716_v12 }
0x18fb   : > { %12496 = vrcp.f32 %v7735_v32  ;;  %v12493_v8 = vpop.eup %12492  ;;  %8141 = vmatpush.bf16.msra.mxu2 %v11176_v44  ;;  %v7747_v16 = vand.u32 2147483648, %v7735_v32  ;;  %v7745_v29 = vand.u32 2147483647, %v7735_v32  ;;  %vm7741_vm8 = vweird.f32 %v7735_v32 }
0x18fc   : > { %v7757_v13 = vmul.f32 %v12493_v8, %v16642_v42  ;;  %12498 = vtanh.f32 %v7711_v63  ;;  %v7729_v60 = vor.u32 1.1754944e-38, %v7728_v4  ;;  %vm7727_vm9 = vcmp.eq.f32.partialorder %v7726_v45, 8.507059e+37  ;;  %v16719_v45 = vld [vmem:[%s12816_s11 + $0x18] sm:$0xff]  }
0x18fd   : > { %v7748_v56 = vor.u32 1.1754944e-38, %v7747_v16  ;;  %vm7746_vm11 = vcmp.eq.f32.partialorder %v7745_v29, 8.507059e+37  ;;  %v7765_v63 = vand.u32 2147483647, %v16642_v42  ;;  %v12557_v16 = vld [vmem:[%s17318_s4] ss:$0 sm:$0xff] }
0x18fe   : > { %v7758_v3 = vsub.f32 1.0, %v7757_v13  ;;  %v16713_v13 = vld [vmem:[%s12816_s11 + $0x8] sm:$0xff]  }
0x18ff   : > { %8142 = vmatpush.bf16.msra.mxu2 %v11156_v40  ;;  %v12102_v15 = vunpack.c.h.bf16 %v16713_v13 }
0x1900   : > { %v12495_v47 = vpop.eup %12494  ;;  %v7759_v44 = vmul.f32 %v12493_v8, %v7758_v3 }
0x1901   : > { %v12497_v55 = vpop.eup %12496  ;;  %v7718_v33 = vmul.f32 %v12495_v47, %v7716_v12  ;;  %vm7723_vm12 = vweird.f32 %v12495_v47 }
0x1902   : > { %v7737_v20 = vmul.f32 %v12497_v55, %v7735_v32  ;;  %vm7742_vm13 = vweird.f32 %v12497_v55  ;;  %vm7724_vm15 = vmor %vm7722_vm14, %vm7723_vm12  ;;  %v12499_v38 = vpop.eup %12498  ;;  %v7760_v32 = vadd.f32 %v12493_v8, %v7759_v44  ;;  %vm7762_vm12 = vweird.f32 %v12493_v8 }
0x1903   : > { %v7719_v49 = vsub.f32 1.0, %v7718_v33  ;;  %vm7743_vm10 = vmor %vm7741_vm8, %vm7742_vm13  ;;  %8143 = vmatpush.bf16.msra.mxu2 %v11136_v61  ;;  %vm7761_vm13 = vweird.f32 %v16642_v42 }
0x1904   : > { %v7738_v34 = vsub.f32 1.0, %v7737_v20  ;;  %vm7763_vm14 = vmor %vm7761_vm13, %vm7762_vm12 }
0x1905   : > { %v7720_v30 = vmul.f32 %v12495_v47, %v7719_v49  ;;  %v16716_v49 = vld [vmem:[%s12816_s11 + $0x10] sm:$0xff]  }
0x1906   : > { %v7739_v36 = vmul.f32 %v12497_v55, %v7738_v34  ;;  %v12106_v23 = vunpack.c.h.bf16 %v16716_v49  ;;  %v12105_v3 = vunpack.c.l.bf16 %v16716_v49 }
0x1907   : > { %v7721_v25 = vadd.f32 %v12495_v47, %v7720_v30  ;;  %8144 = vmatpush.bf16.msra.mxu2 %v11116_v51 }
0x1908   : > { %v7740_v48 = vadd.f32 %v12497_v55, %v7739_v36  ;;  %v12101_v36 = vunpack.c.l.bf16 %v16713_v13 }
0x1909   : > { %v7725_v17 = vsel %vm7724_vm15, %v12495_v47, %v7721_v25  ;;  %v7767_v47 = vand.u32 2147483648, %v16642_v42  ;;  %vm7766_vm15 = vcmp.eq.f32.partialorder %v7765_v63, 8.507059e+37  ;;  %v12109_v25 = vunpack.c.l.bf16 %v16719_v45 }
0x190a   : > { %v7730_v31 = vsel %vm7727_vm9, %v7729_v60, %v7725_v17  ;;  %v7744_v7 = vsel %vm7743_vm10, %v12497_v55, %v7740_v48  ;;  %v7764_v55 = vsel %vm7763_vm14, %v12493_v8, %v7760_v32  ;;  %v16710_v8 = vld [vmem:[%s12816_s11] sm:$0xff]   ;;  %v12110_v60 = vunpack.c.h.bf16 %v16719_v45  ;;  %s16795_s11 = scalar_lea.vmem [#allocation4], %s13649_s12  ;;  %s9056_s12 = scalar_lea.vmem (%p12670_p5), %s17323_s9, %s12804_s24 }
0x190b   : > { %v7772_v41 = vmul.f32 %v12499_v38, %v7730_v31  ;;  %v7749_v14 = vsel %vm7746_vm11, %v7748_v56, %v7744_v7  ;;  %v7768_v33 = vor.u32 1.1754944e-38, %v7767_v47  ;;  %v12097_v30 = vunpack.c.l.bf16 %v16710_v8 }
0x190c   : > { %v7771_v46 = vmul.f32 %v7749_v14, %v16102_v52  ;;  %v12098_v29 = vunpack.c.h.bf16 %v16710_v8 }
0x190d   : > { %v7769_v40 = vsel %vm7766_vm15, %v7768_v33, %v7764_v55 }
0x190e   : > { %v16698_v12 = vadd.f32 %v7772_v41, %v7771_v46 }
0x1910   : > { %17392 = vst [vmem:[#allocation30_spill] sm:$0xff] %v16698_v12  ;;  %12500 = vtanh.f32 %v16698_v12 }
0x1916   : > { %v12501_v52 = vpop.eup %12500 }
0x1917   : > { %v7775_v20 = vmul.f32 %v12501_v52, %v7769_v40 }
0x1919   : > { %11095 = vst [vmem:[%s13653_s23 + $0x28] sm:$0xff] %v7775_v20  ;;  %v7828_v10 = vpack.c.bf16 %v7775_v20, %v7775_v20 }
0x191b   : > { %8093 = vmatmul.bf16.vlgmr.msrb.gmra.mxu2 %v7828_v10  ;;  %8106 = vmatmul.bf16.vlgmr.msrb.gmra.mxu3 %v7828_v10 }
0x191c   : > { %8119 = vmatmul.bf16.vlgmr.msra.gmra.mxu0 %v7828_v10  ;;  %8132 = vmatmul.bf16.vlgmr.msra.gmra.mxu1 %v7828_v10 }
0x192b   : > { %8145 = vmatmul.bf16.vlgmr.msra.gmra.mxu2 %v7828_v10 }
0x1999   : > { %v16705_v59 = vpop.f32.mrf.mxu0  ;;  %v16707_v42 = vpop.f32.mrf.mxu1 }
0x199e   : > { %v8094_v4 = vpop.f32.mrf.mxu2  ;;  %v16721_v34 = vpop.f32.mrf.mxu3 }
0x199f   : > { %v8150_v61 = vadd.f32 %v12557_v16, %v8094_v4 }
0x19a1   : > { %v8122_v48 = vpop.f32.mrf.mxu0  ;;  %v8135_v17 = vpop.f32.mrf.mxu1  ;;  %v8174_v56 = vpack.c.bf16 %v8150_v61, %v8150_v61  ;;  %v8161_v51 = vrot.slane %v8150_v61, 2  ;;  %v8160_v38 = vrot.slane %v8150_v61, 1  ;;  %v8162_v31 = vrot.slane %v8150_v61, 3 }
0x19a2   : > { %v8164_v7 = vrot.slane %v8150_v61, 5  ;;  %v8163_v44 = vrot.slane %v8150_v61, 4  ;;  %v8165_v41 = vrot.slane %v8150_v61, 6  ;;  %v8166_v14 = vrot.slane %v8150_v61, 7 }
0x19a3   : > { %v8183_v46 = vpack.i.b16 %v8174_v56, %v8174_v56  ;;  %v8176_v32 = vpack.c.bf16 %v8161_v51, %v8161_v51  ;;  %v8175_v47 = vpack.c.bf16 %v8160_v38, %v8160_v38  ;;  %v8177_v63 = vpack.c.bf16 %v8162_v31, %v8162_v31 }
0x19a4   : > { %v8179_v55 = vpack.c.bf16 %v8164_v7, %v8164_v7  ;;  %v8178_v33 = vpack.c.bf16 %v8163_v44, %v8163_v44  ;;  %v8180_v52 = vpack.c.bf16 %v8165_v41, %v8165_v41  ;;  %v8181_v40 = vpack.c.bf16 %v8166_v14, %v8166_v14 }
0x19a5   : > { %v8185_v20 = vperm.slane %v8183_v46, 0  ;;  %v8191_v10 = vpack.i.b16 %v8176_v32, %v8176_v32  ;;  %v8187_v8 = vpack.i.b16 %v8175_v47, %v8175_v47  ;;  %v8195_v13 = vpack.i.b16 %v8177_v63, %v8177_v63 }
0x19a6   : > { %v8096_v49 = vpop.f32.mrf.mxu2  ;;  %v8109_v45 = vpop.f32.mrf.mxu3  ;;  %v8203_v4 = vpack.i.b16 %v8179_v55, %v8179_v55  ;;  %v8199_v16 = vpack.i.b16 %v8178_v33, %v8178_v33  ;;  %v8207_v48 = vpack.i.b16 %v8180_v52, %v8180_v52  ;;  %v8211_v17 = vpack.i.b16 %v8181_v40, %v8181_v40 }
0x19a7   : > { %v8222_v12 = vunpack.c.l.bf16 %v8185_v20  ;;  %v8193_v61 = vperm.slane %v8191_v10, 0  ;;  %v8189_v56 = vperm.slane %v8187_v8, 0  ;;  %v8197_v51 = vperm.slane %v8195_v13, 0 }
0x19a8   : > { %v8205_v38 = vperm.slane %v8203_v4, 0  ;;  %v8201_v31 = vperm.slane %v8199_v16, 0  ;;  %v8209_v7 = vperm.slane %v8207_v48, 0  ;;  %v8213_v44 = vperm.slane %v8211_v17, 0 }
0x19a9   : > { %v8230_v41 = vadd.f32 %v12097_v30, %v8222_v12  ;;  %v8224_v14 = vunpack.c.l.bf16 %v8193_v61  ;;  %v8223_v46 = vunpack.c.l.bf16 %v8189_v56  ;;  %v8225_v32 = vunpack.c.l.bf16 %v8197_v51 }
0x19aa   : > { %v8227_v47 = vunpack.c.l.bf16 %v8205_v38  ;;  %v8226_v63 = vunpack.c.l.bf16 %v8201_v31  ;;  %v8228_v49 = vunpack.c.l.bf16 %v8209_v7  ;;  %v8229_v45 = vunpack.c.l.bf16 %v8213_v44 }
0x19ab   : > { %v8238_v55 = vpack.c.bf16 %v8230_v41, %v8230_v41  ;;  %v8232_v33 = vadd.f32 %v12101_v36, %v8224_v14  ;;  %v8231_v52 = vadd.f32 %v12098_v29, %v8223_v46  ;;  %v8233_v40 = vadd.f32 %v12102_v15, %v8225_v32 }
0x19ac   : > { %v8235_v20 = vadd.f32 %v12106_v23, %v8227_v47  ;;  %v8234_v10 = vadd.f32 %v12105_v3, %v8226_v63  ;;  %v8236_v8 = vadd.f32 %v12109_v25, %v8228_v49  ;;  %v8237_v13 = vadd.f32 %v12110_v60, %v8229_v45 }
0x19ad   : > { %v8246_v4 = vunpack.c.l.bf16 %v8238_v55  ;;  %v8240_v16 = vpack.c.bf16 %v8232_v33, %v8232_v33  ;;  %v8239_v48 = vpack.c.bf16 %v8231_v52, %v8231_v52  ;;  %v8241_v17 = vpack.c.bf16 %v8233_v40, %v8233_v40 }
0x19ae   : > { %v16734_v12 = vpop.f32.mrf.mxu2  ;;  %v8243_v30 = vpack.c.bf16 %v8235_v20, %v8235_v20  ;;  %v8242_v61 = vpack.c.bf16 %v8234_v10, %v8234_v10  ;;  %v8244_v56 = vpack.c.bf16 %v8236_v8, %v8236_v8  ;;  %v8245_v29 = vpack.c.bf16 %v8237_v13, %v8237_v13 }
0x19af   : > { %12502 = vtanh.f32 %v8246_v4  ;;  %v8248_v51 = vunpack.c.l.bf16 %v8240_v16  ;;  %v8247_v38 = vunpack.c.l.bf16 %v8239_v48  ;;  %v8249_v31 = vunpack.c.l.bf16 %v8241_v17 }
0x19b0   : > { %v8251_v36 = vunpack.c.l.bf16 %v8243_v30  ;;  %v8250_v15 = vunpack.c.l.bf16 %v8242_v61  ;;  %v8252_v23 = vunpack.c.l.bf16 %v8244_v56  ;;  %v8253_v3 = vunpack.c.l.bf16 %v8245_v29 }
0x19b1   : > { %12504 = vtanh.f32 %v8248_v51 }
0x19b2   : > { %12506 = vtanh.f32 %v8247_v38 }
0x19b3   : > { %12508 = vtanh.f32 %v8249_v31 }
0x19b4   : > { %12510 = vtanh.f32 %v8251_v36 }
0x19b5   : > { %v12503_v25 = vpop.eup %12502  ;;  %12512 = vtanh.f32 %v8250_v15 }
0x19b6   : > { %v8148_v60 = vpop.f32.mrf.mxu2  ;;  %v8262_v7 = vpack.c.bf16 %v12503_v25, %v12503_v25  ;;  %12514 = vtanh.f32 %v8252_v23 }
0x19b7   : > { %v12505_v44 = vpop.eup %12504  ;;  %12516 = vtanh.f32 %v8253_v3 }
0x19b8   : > { %v12507_v41 = vpop.eup %12506  ;;  %v8270_v14 = vunpack.c.l.bf16 %v8262_v7  ;;  %v8264_v46 = vpack.c.bf16 %v12505_v44, %v12505_v44 }
0x19b9   : > { %v12509_v32 = vpop.eup %12508  ;;  %v8263_v47 = vpack.c.bf16 %v12507_v41, %v12507_v41 }
0x19ba   : > { %v12511_v63 = vpop.eup %12510  ;;  %v8278_v49 = vmul.f32 %v8270_v14, %v12828_v11  ;;  %v8272_v45 = vunpack.c.l.bf16 %v8264_v46  ;;  %v8265_v55 = vpack.c.bf16 %v12509_v32, %v12509_v32 }
0x19bb   : > { %v12513_v33 = vpop.eup %12512  ;;  %v8271_v52 = vunpack.c.l.bf16 %v8263_v47  ;;  %v8267_v40 = vpack.c.bf16 %v12511_v63, %v12511_v63 }
0x19bc   : > { %v12515_v20 = vpop.eup %12514  ;;  %v8286_v10 = vpack.c.bf16 %v8278_v49, %v8278_v49  ;;  %v8280_v8 = vmul.f32 %v8272_v45, %v12828_v11  ;;  %v8273_v13 = vunpack.c.l.bf16 %v8265_v55  ;;  %v8266_v4 = vpack.c.bf16 %v12513_v33, %v12513_v33 }
0x19bd   : > { %v8279_v16 = vmul.f32 %v8271_v52, %v12828_v11  ;;  %v8275_v48 = vunpack.c.l.bf16 %v8267_v40  ;;  %v8268_v17 = vpack.c.bf16 %v12515_v20, %v12515_v20  ;;  %v12517_v30 = vpop.eup %12516 }
0x19be   : > { %v8294_v61 = vunpack.c.l.bf16 %v8286_v10  ;;  %v8288_v56 = vpack.c.bf16 %v8280_v8, %v8280_v8  ;;  %v8281_v51 = vmul.f32 %v8273_v13, %v12828_v11  ;;  %v8274_v38 = vunpack.c.l.bf16 %v8266_v4 }
0x19bf   : > { %v8287_v31 = vpack.c.bf16 %v8279_v16, %v8279_v16  ;;  %v8283_v29 = vmul.f32 %v8275_v48, %v12828_v11  ;;  %v8269_v3 = vpack.c.bf16 %v12517_v30, %v12517_v30  ;;  %v8276_v60 = vunpack.c.l.bf16 %v8268_v17 }
0x19c0   : > { %8302 = vadd.xlane.f32.xlu0 %v8294_v61  ;;  %v8296_v36 = vunpack.c.l.bf16 %v8288_v56  ;;  %v8282_v23 = vmul.f32 %v8274_v38, %v12828_v11  ;;  %v8289_v25 = vpack.c.bf16 %v8281_v51, %v8281_v51 }
0x19c1   : > { %v8295_v15 = vunpack.c.l.bf16 %v8287_v31  ;;  %v8291_v7 = vpack.c.bf16 %v8283_v29, %v8283_v29  ;;  %v8277_v41 = vunpack.c.l.bf16 %v8269_v3  ;;  %v8284_v46 = vmul.f32 %v8276_v60, %v12828_v11 }
0x19c2   : > { %8306 = vadd.xlane.f32.xlu1 %v8296_v36  ;;  %v8290_v44 = vpack.c.bf16 %v8282_v23, %v8282_v23  ;;  %v8297_v14 = vunpack.c.l.bf16 %v8289_v25 }
0x19c3   : > { %8304 = vadd.xlane.f32.xlu2 %v8295_v15  ;;  %v8299_v32 = vunpack.c.l.bf16 %v8291_v7  ;;  %v8285_v63 = vmul.f32 %v8277_v41, %v12828_v11  ;;  %v8292_v49 = vpack.c.bf16 %v8284_v46, %v8284_v46  ;;  %v1715_v11 = vpop.permute.xlu0 %1714 }
0x19c4   : > { %v8298_v47 = vunpack.c.l.bf16 %v8290_v44  ;;  %v1733_v3 = vperm.slane %v1715_v11, %v12838_v6 }
0x19c5   : > { %v8293_v45 = vpack.c.bf16 %v8285_v63, %v8285_v63  ;;  %v8300_v55 = vunpack.c.l.bf16 %v8292_v49 }
0x19c7   : > { %v8301_v33 = vunpack.c.l.bf16 %v8293_v45 }
0x19c8   : > { %8308 = vadd.xlane.f32.xlu0 %v8297_v14 }
0x19ca   : > { %8312 = vadd.xlane.f32.xlu1 %v8299_v32 }
0x19cb   : > { %8310 = vadd.xlane.f32.xlu2 %v8298_v47 }
0x19d0   : > { %8314 = vadd.xlane.f32.xlu0 %v8300_v55 }
0x19d3   : > { %8316 = vadd.xlane.f32.xlu2 %v8301_v33 }
0x19e3   : > { %1708 = vperm.xlu1 %12199, %v12901_v28  }
0x19e4   : > { %2929 = vperm.xlu0 %12198, %v13732_v19  }
0x19eb   : > { %1711 = vperm.xlu2 %12200, %v12899_v27   ;;  %1717 = vperm.xlu1 %12199, %v12947_v50  }
0x19f3   : > { %1720 = vperm.xlu2 %12200, %v12960_v9   ;;  %1723 = vperm.xlu1 %12199, %v12957_v43  }
0x19fb   : > { %1726 = vperm.xlu2 %12200, %v12970_v2   ;;  %1729 = vperm.xlu1 %12199, %v12967_v1  }
0x1a03   : > { %2926 = vperm.xlu2 %12200, %v13721_v62   ;;  %2923 = vperm.xlu1 %12199, %v13723_v54  }
0x1a0b   : > { %2935 = vperm.xlu2 %12200, %v13740_v24   ;;  %2932 = vperm.xlu1 %12199, %v13729_v18  }
0x1a33   : > { %v8303_v27 = vpop.xlane.xlu0 %8302 }
0x1a34   : > { %v8326_v43 = vperm.slane %v8303_v27, %v12838_v6 }
0x1a35   : > { %v8307_v28 = vpop.xlane.xlu1 %8306 }
0x1a36   : > { %v8305_v50 = vpop.xlane.xlu2 %8304  ;;  %v8328_v2 = vperm.slane %v8307_v28, %v12838_v6 }
0x1a37   : > { %v8327_v9 = vperm.slane %v8305_v50, %v12838_v6 }
0x1a39   : > { %v8334_v1 = vsel %vm1033_vm0, %v8327_v9, %v8326_v43 }
0x1a3a   : > { %v8335_v54 = vsel %vm1035_vm1, %v8328_v2, %v8334_v1 }
0x1a3b   : > { %v8309_v19 = vpop.xlane.xlu0 %8308 }
0x1a3c   : > { %v8329_v62 = vperm.slane %v8309_v19, %v12838_v6 }
0x1a3d   : > { %v8313_v24 = vpop.xlane.xlu1 %8312 }
0x1a3e   : > { %v8311_v52 = vpop.xlane.xlu2 %8310  ;;  %v8336_v18 = vsel %vm1037_vm2, %v8329_v62, %v8335_v54  ;;  %v8331_v20 = vperm.slane %v8313_v24, %v12838_v6 }
0x1a3f   : > { %v8330_v40 = vperm.slane %v8311_v52, %v12838_v6 }
0x1a41   : > { %v8337_v10 = vsel %vm1039_vm3, %v8330_v40, %v8336_v18 }
0x1a42   : > { %v8338_v4 = vsel %vm1041_vm4, %v8331_v20, %v8337_v10 }
0x1a43   : > { %v16766_v8 = vpop.xlane.xlu0 %8314 }
0x1a44   : > { %v8332_v13 = vperm.slane %v16766_v8, %v12838_v6 }
0x1a46   : > { %v16771_v16 = vpop.xlane.xlu2 %8316  ;;  %v8339_v48 = vsel %vm1043_vm5, %v8332_v13, %v8338_v4 }
0x1a47   : > { %v8333_v17 = vperm.slane %v16771_v16, %v12838_v6 }
0x1a49   : > { %v8340_v30 = vsel %vm1045_vm6, %v8333_v17, %v8339_v48 }
0x1a4a   : > { %v8342_v61 = vsel %vm1048_vm7, %v8340_v30, -inf }
0x1a4b   : > { %8343 = vmax.xlane.f32.xlu0 %v8342_v61 }
0x1a4e   : > { %v1712_v51 = vpop.permute.xlu2 %1711 }
0x1a4f   : > { %v1732_v29 = vperm.slane %v1712_v51, %v12838_v6 }
0x1a55   : > { %v1709_v56 = vpop.permute.xlu1 %1708 }
0x1a56   : > { %v1731_v31 = vperm.slane %v1709_v56, %v12838_v6  ;;  %v1721_v36 = vpop.permute.xlu2 %1720  ;;  %v16799_v55 = vpop.permute.xlu0 %2929 }
0x1a58   : > { %v1739_v15 = vsel %vm1033_vm0, %v1732_v29, %v1731_v31 }
0x1a59   : > { %v1740_v60 = vsel %vm1035_vm1, %v1733_v3, %v1739_v15 }
0x1a5d   : > { %v1718_v38 = vpop.permute.xlu1 %1717 }
0x1a5e   : > { %v1734_v23 = vperm.slane %v1718_v38, %v12838_v6  ;;  %v1727_v41 = vpop.permute.xlu2 %1726 }
0x1a5f   : > { %2938 = vperm.xlu0 %12198, %v13738_v22   ;;  %v1735_v22 = vperm.slane %v1721_v36, %v12838_v6  ;;  %v1737_v32 = vperm.slane %v1727_v41, %v12838_v6 }
0x1a60   : > { %v1741_v7 = vsel %vm1037_vm2, %v1734_v23, %v1740_v60 }
0x1a61   : > { %v1742_v14 = vsel %vm1039_vm3, %v1735_v22, %v1741_v7 }
0x1a65   : > { %v1724_v25 = vpop.permute.xlu1 %1723 }
0x1a66   : > { %v1736_v44 = vperm.slane %v1724_v25, %v12838_v6  ;;  %v2927_v23 = vpop.permute.xlu2 %2926 }
0x1a68   : > { %v1743_v46 = vsel %vm1041_vm4, %v1736_v44, %v1742_v14 }
0x1a69   : > { %v1744_v49 = vsel %vm1043_vm5, %v1737_v32, %v1743_v46 }
0x1a6d   : > { %v1730_v47 = vpop.permute.xlu1 %1729 }
0x1a6e   : > { %v1738_v63 = vperm.slane %v1730_v47, %v12838_v6  ;;  %v2936_v3 = vpop.permute.xlu2 %2935  ;;  %v2947_v47 = vperm.slane %v2927_v23, %v12838_v6 }
0x1a70   : > { %v1745_v45 = vsel %vm1045_vm6, %v1738_v63, %v1744_v49 }
0x1a71   : > { %1747 = vst.msk [vmem:[%s16795_s11] sm:$0xff] %vm1048_vm7, %v1745_v45 }
0x1a75   : > { %v2924_v25 = vpop.permute.xlu1 %2923 }
0x1a7d   : > { %v2933_v7 = vpop.permute.xlu1 %2932 }
0x1abe   : > { %v8344_v33 = vpop.xlane.xlu0 %8343 }
0x1abf   : > { %v8346_v11 = vperm.slane %v8344_v33, 0  ;;  %v8347_v9 = vperm.slane %v8344_v33, 1  ;;  %v8348_v43 = vperm.slane %v8344_v33, 2  ;;  %v8349_v2 = vperm.slane %v8344_v33, 3 }
0x1ac0   : > { %v8350_v18 = vperm.slane %v8344_v33, 4  ;;  %v8351_v40 = vperm.slane %v8344_v33, 5  ;;  %v8352_v30 = vperm.slane %v8344_v33, 6  ;;  %v8353_v56 = vperm.slane %v8344_v33, 7 }
0x1ac1   : > { %v8362_v1 = vsub.f32 %v8303_v27, %v8346_v11  ;;  %v8363_v62 = vsub.f32 %v8305_v50, %v8347_v9  ;;  %v8364_v54 = vsub.f32 %v8307_v28, %v8348_v43  ;;  %v8365_v4 = vsub.f32 %v8309_v19, %v8349_v2 }
0x1ac2   : > { %v8366_v48 = vsub.f32 %v8311_v52, %v8350_v18  ;;  %v8367_v17 = vsub.f32 %v8313_v24, %v8351_v40  ;;  %v8368_v19 = vsub.f32 %v16766_v8, %v8352_v30  ;;  %v8369_v24 = vsub.f32 %v16771_v16, %v8353_v56 }
0x1ac3   : > { %v8370_v20 = vmul.f32 1.442695, %v8362_v1  ;;  %v8372_v10 = vmul.f32 1.442695, %v8363_v62  ;;  %v8374_v13 = vmul.f32 1.442695, %v8364_v54  ;;  %v2949_v33 = vperm.slane %v2933_v7, %v12838_v6 }
0x1ac4   : > { %v8376_v61 = vmul.f32 1.442695, %v8365_v4  ;;  %v8378_v51 = vmul.f32 1.442695, %v8366_v48  ;;  %v8380_v27 = vmul.f32 1.442695, %v8367_v17  ;;  %v2948_v9 = vperm.slane %v16799_v55, %v12838_v6 }
0x1ac5   : > { %12518 = vpow2.f32 %v8370_v20  ;;  %v8382_v52 = vmul.f32 1.442695, %v8368_v19  ;;  %v8384_v31 = vmul.f32 1.442695, %v8369_v24  ;;  %v2950_v20 = vperm.slane %v2936_v3, %v12838_v6 }
0x1ac6   : > { %12520 = vpow2.f32 %v8372_v10 }
0x1ac7   : > { %12522 = vpow2.f32 %v8374_v13 }
0x1ac8   : > { %12524 = vpow2.f32 %v8376_v61 }
0x1ac9   : > { %12526 = vpow2.f32 %v8378_v51 }
0x1aca   : > { %12528 = vpow2.f32 %v8380_v27 }
0x1acb   : > { %v16801_v38 = vpop.eup %12518  ;;  %12530 = vpow2.f32 %v8382_v52 }
0x1acc   : > { %v16803_v50 = vpop.eup %12520  ;;  %8395 = vperm.xlu1 %12199, %v16801_v38   ;;  %12532 = vpow2.f32 %v8384_v31 }
0x1acd   : > { %v16806_v28 = vpop.eup %12522  ;;  %8398 = vperm.xlu2 %12200, %v16803_v50  }
0x1ace   : > { %8401 = vperm.xlu0 %12198, %v16806_v28   ;;  %v16812_v36 = vpop.eup %12524 }
0x1acf   : > { %v16814_v29 = vpop.eup %12526 }
0x1ad0   : > { %v16817_v15 = vpop.eup %12528 }
0x1ad1   : > { %v16821_v8 = vpop.eup %12530  ;;  %v2939_v44 = vpop.permute.xlu0 %2938 }
0x1ad2   : > { %v16823_v16 = vpop.eup %12532  ;;  %v2951_v54 = vperm.slane %v2939_v44, %v12838_v6 }
0x1ad4   : > { %8404 = vperm.xlu1 %12199, %v16812_v36  }
0x1ad5   : > { %8407 = vperm.xlu2 %12200, %v16814_v29  }
0x1ad6   : > { %8410 = vperm.xlu0 %12198, %v16817_v15  }
0x1adc   : > { %8413 = vperm.xlu1 %12199, %v16821_v8  }
0x1add   : > { %8416 = vperm.xlu2 %12200, %v16823_v16  }
0x1ade   : > { %2941 = vperm.xlu0 %12198, %v13749_v26  }
0x1ae5   : > { %2944 = vperm.xlu2 %12200, %v13746_v35  }
0x1ae6   : > { %4139 = vperm.xlu0 %12198, %v14344_v57  }
0x1aed   : > { %4142 = vperm.xlu2 %12200, %v14342_v39  }
0x1aee   : > { %4145 = vperm.xlu0 %12198, %v14353_v37   ;;  %v2946_v37 = vperm.slane %v2924_v25, %v12838_v6 }
0x1af0   : > { %v2954_v45 = vsel %vm1033_vm0, %v2947_v47, %v2946_v37 }
0x1af1   : > { %v2955_v2 = vsel %vm1035_vm1, %v2948_v9, %v2954_v45  ;;  %v17394_v45 = vld [vmem:[#allocation16_spill] sm:$0xff]  ;;  %v17399_v9 = vld [vmem:[#allocation22_spill] sm:$0xff] }
0x1af2   : > { %v2956_v62 = vsel %vm1037_vm2, %v2949_v33, %v2955_v2  ;;  %v17397_v33 = vld [vmem:[#allocation9_spill] sm:$0xff]  ;;  %v17402_v2 = vld [vmem:[#allocation23_spill] sm:$0xff] }
0x1af3   : > { %v2957_v17 = vsel %vm1039_vm3, %v2950_v20, %v2956_v62  ;;  %v17404_v62 = vld [vmem:[#allocation12_spill] sm:$0xff]  ;;  %v17408_v20 = vld [vmem:[#allocation18_spill] sm:$0xff] }
0x1af4   : > { %v2958_v56 = vsel %vm1041_vm4, %v2951_v54, %v2957_v17  ;;  %v17405_v54 = vld [vmem:[#allocation15_spill] sm:$0xff]  ;;  %v17413_v17 = vld [vmem:[#allocation25_spill] sm:$0xff] }
0x1af5   : > { %4148 = vperm.xlu2 %12200, %v14350_v0  }
0x1b27   : > { %v8399_v60 = vpop.permute.xlu2 %8398 }
0x1b28   : > { %v8419_v35 = vperm.slane %v8399_v60, %v12838_v6 }
0x1b2f   : > { %v8408_v22 = vpop.permute.xlu2 %8407 }
0x1b30   : > { %v8422_v43 = vperm.slane %v8408_v22, %v12838_v6 }
0x1b37   : > { %v8417_v57 = vpop.permute.xlu2 %8416 }
0x1b38   : > { %v8425_v55 = vperm.slane %v8417_v57, %v12838_v6 }
0x1b3e   : > { %v8396_v41 = vpop.permute.xlu1 %8395 }
0x1b3f   : > { %v8418_v26 = vperm.slane %v8396_v41, %v12838_v6  ;;  %v2945_v10 = vpop.permute.xlu2 %2944 }
0x1b40   : > { %v8402_v14 = vpop.permute.xlu0 %8401  ;;  %v2953_v51 = vperm.slane %v2945_v10, %v12838_v6 }
0x1b41   : > { %v8420_v39 = vperm.slane %v8402_v14, %v12838_v6  ;;  %v8426_v0 = vsel %vm1033_vm0, %v8419_v35, %v8418_v26 }
0x1b43   : > { %v8427_v49 = vsel %vm1035_vm1, %v8420_v39, %v8426_v0 }
0x1b46   : > { %v8405_v46 = vpop.permute.xlu1 %8404 }
0x1b47   : > { %v8421_v32 = vperm.slane %v8405_v46, %v12838_v6  ;;  %v16901_v10 = vpop.permute.xlu2 %4142 }
0x1b48   : > { %v8411_v63 = vpop.permute.xlu0 %8410 }
0x1b49   : > { %v8428_v11 = vsel %vm1037_vm2, %v8421_v32, %v8427_v49  ;;  %v8423_v18 = vperm.slane %v8411_v63, %v12838_v6  ;;  %v17393_v49 = vld [vmem:[#allocation11_spill] sm:$0xff] }
0x1b4a   : > { %v8429_v1 = vsel %vm1039_vm3, %v8422_v43, %v8428_v11  ;;  %v17398_v11 = vld [vmem:[#allocation6_spill] sm:$0xff] }
0x1b4b   : > { %v8430_v4 = vsel %vm1041_vm4, %v8423_v18, %v8429_v1  ;;  %v17400_v43 = vld [vmem:[#allocation10_spill] sm:$0xff]  ;;  %v17406_v18 = vld [vmem:[#allocation13_spill] sm:$0xff] }
0x1b4c   : > { %v17403_v1 = vld [vmem:[#allocation14_spill] sm:$0xff] }
0x1b4e   : > { %v8414_v40 = vpop.permute.xlu1 %8413 }
0x1b4f   : > { %v8424_v13 = vperm.slane %v8414_v40, %v12838_v6  ;;  %v17407_v40 = vld [vmem:[#allocation20_spill] sm:$0xff] }
0x1b50   : > { %v2942_v48 = vpop.permute.xlu0 %2941 }
0x1b51   : > { %v2952_v30 = vperm.slane %v2942_v48, %v12838_v6  ;;  %v8431_v61 = vsel %vm1043_vm5, %v8424_v13, %v8430_v4  ;;  %v17409_v13 = vld [vmem:[#allocation21_spill] sm:$0xff]  ;;  %v16907_v4 = vpop.permute.xlu2 %4148  ;;  %v17412_v48 = vld [vmem:[#allocation28_spill] sm:$0xff] }
0x1b52   : > { %v8432_v27 = vsel %vm1045_vm6, %v8425_v55, %v8431_v61  ;;  %v17410_v55 = vld [vmem:[#allocation19_spill] sm:$0xff]  ;;  %v17414_v61 = vld [vmem:[#allocation5_spill] sm:$0xff] }
0x1b53   : > { %v2959_v19 = vsel %vm1043_vm5, %v2952_v30, %v2958_v56  ;;  %v8434_v24 = vsel %vm1048_vm7, %v8432_v27, 0.0 }
0x1b54   : > { %v2960_v52 = vsel %vm1045_vm6, %v2953_v51, %v2959_v19  ;;  %8435 = vadd.xlane.f32.xlu1 %v8434_v24  ;;  %v16914_v51 = vld [vmem:[%s13101_s22] sm:$0xff]   ;;  %v17415_v24 = vld [vmem:[#allocation27_spill] sm:$0xff] }
0x1b55   : > { %9908 = vst.msk [vmem:[%s16795_s11 + $0x8] sm:$0xff] %vm1048_vm7, %v2960_v52  ;;  %v12114_v27 = vunpack.c.h.bf16 %v16914_v51 }
0x1b58   : > { %v16917_v19 = vpop.permute.xlu0 %4139 }
0x1bc7   : > { %v8436_v31 = vpop.xlane.xlu1 %8435 }
0x1bc8   : > { %12534 = vrcp.f32 %v8436_v31 }
0x1bce   : > { %v12535_v23 = vpop.eup %12534 }
0x1bcf   : > { %v8444_v3 = vperm.slane %v12535_v23, 5  ;;  %v8440_v25 = vperm.slane %v12535_v23, 1  ;;  %v8439_v60 = vperm.slane %v12535_v23, 0  ;;  %v8442_v35 = vperm.slane %v12535_v23, 3 }
0x1bd0   : > { %v8441_v57 = vperm.slane %v12535_v23, 2  ;;  %v8445_v46 = vperm.slane %v12535_v23, 6 }
0x1bd1   : > { %v8460_v7 = vmul.f32 %v16817_v15, %v8444_v3  ;;  %v8456_v44 = vmul.f32 %v16803_v50, %v8440_v25  ;;  %v8455_v22 = vmul.f32 %v16801_v38, %v8439_v60  ;;  %v8458_v39 = vmul.f32 %v16812_v36, %v8442_v35  ;;  %v16922_v3 = vld [vmem:[%s13101_s22 + $0x8] sm:$0xff]   ;;  %v16924_v60 = vpop.permute.xlu0 %4145  ;;  %v11899_v35 = vld [vmem:[%s17320_s6 + $0xe4] sm:$0xf] }
0x1bd2   : > { %v8457_v37 = vmul.f32 %v16806_v28, %v8441_v57  ;;  %v8443_v15 = vperm.slane %v12535_v23, 4  ;;  %v16874_v38 = vmul.f32 %v16821_v8, %v8445_v46  ;;  %v8446_v36 = vperm.slane %v12535_v23, 7  ;;  %v17395_v8 = vld [vmem:[#allocation7_spill] sm:$0xff]  ;;  %v11900_v46 = vld [vmem:[%s17320_s6 + $0xec] sm:$0xf] }
0x1bd3   : > { %v8468_v41 = vpack.c.bf16 %v8460_v7, %v8460_v7  ;;  %v8464_v14 = vpack.c.bf16 %v8456_v44, %v8456_v44  ;;  %v8463_v26 = vpack.c.bf16 %v8455_v22, %v8455_v22  ;;  %v8466_v0 = vpack.c.bf16 %v8458_v39, %v8458_v39  ;;  %v11377_v57 = vld [vmem:[%s17320_s6 + $0xf0] sm:$0xf0] }
0x1bd4   : > { %v8465_v32 = vpack.c.bf16 %v8457_v37, %v8457_v37  ;;  %v8459_v50 = vmul.f32 %v16814_v29, %v8443_v15  ;;  %v8469_v47 = vpack.c.bf16 %v16874_v38, %v16874_v38  ;;  %v16881_v28 = vmul.f32 %v16823_v16, %v8446_v36  ;;  %v17396_v29 = vld [vmem:[#allocation17_spill] sm:$0xff]  ;;  %v17401_v16 = vld [vmem:[#allocation8_spill] sm:$0xff] }
0x1bd5   : > { %8526 = vperm.xlu1 %12199, %v8468_v41   ;;  %8490 = vperm.xlu2 %12200, %v8464_v14   ;;  %v11375_v41 = vld [vmem:[%s17320_s6 + $0xe0] sm:$0xf]  ;;  %v11901_v14 = vld [vmem:[%s17320_s6 + $0xec] sm:$0xf0] }
0x1bd6   : > { %8481 = vperm.xlu0 %12198, %v8463_v26   ;;  %v8467_v63 = vpack.c.bf16 %v8459_v50, %v8459_v50  ;;  %v11376_v26 = vor.u32 %v11901_v14, %v11375_v41  ;;  %v11894_v14 = vld [vmem:[%s17320_s6 + $0xb4] sm:$0xf0] }
0x1bd8   : > { %8873 = vmatpush.bf16.msra.mxu3 %v11376_v26  ;;  %v11892_v26 = vld [vmem:[%s17320_s6 + $0xac] sm:$0xf] }
0x1bdd   : > { %5355 = vperm.xlu1 %12199, %v14957_v53   ;;  %8508 = vperm.xlu2 %12200, %v8466_v0   ;;  %v8470_v53 = vpack.c.bf16 %v16881_v28, %v16881_v28  ;;  %v11902_v0 = vld [vmem:[%s17320_s6 + $0xf4] sm:$0xf0] }
0x1bde   : > { %8499 = vperm.xlu0 %12198, %v8465_v32   ;;  %v11385_v32 = vld [vmem:[%s17320_s6 + $0xf8] sm:$0xf0] }
0x1be5   : > { %5364 = vperm.xlu1 %12199, %v17393_v49   ;;  %8535 = vperm.xlu2 %12200, %v8469_v47   ;;  %v17416_v47 = vld [vmem:[#allocation29_spill] sm:$0xff]  ;;  %v11388_v49 = vor.u32 %v11900_v46, %v11385_v32 }
0x1be6   : > { %8517 = vperm.xlu0 %12198, %v8467_v63   ;;  %v16956_v63 = vld [vmem:[%s13101_s22 + $0x10] sm:$0xff]  }
0x1be7   : > { %8912 = vmatpush.bf16.msrb.mxu2 %v11388_v49 }
0x1bed   : > { %5373 = vperm.xlu1 %12199, %v17394_v45   ;;  %4151 = vperm.xlu2 %12200, %v17395_v8   ;;  %v17417_v8 = vld [vmem:[#allocation26_spill] sm:$0xff] }
0x1bee   : > { %8544 = vperm.xlu0 %12198, %v8470_v53  }
0x1bf5   : > { %6574 = vperm.xlu1 %12199, %v17396_v29   ;;  %4157 = vperm.xlu2 %12200, %v17397_v33   ;;  %v11359_v29 = vld [vmem:[%s17320_s6 + $0xc0] sm:$0xf]  ;;  %v11897_v33 = vld [vmem:[%s17320_s6 + $0xcc] sm:$0xf0] }
0x1bf6   : > { %4154 = vperm.xlu0 %12198, %v17398_v11  }
0x1bfd   : > { %6583 = vperm.xlu1 %12199, %v17399_v9   ;;  %5358 = vperm.xlu2 %12200, %v17400_v43   ;;  %v11360_v43 = vor.u32 %v11897_v33, %v11359_v29  ;;  %v11890_v33 = vld [vmem:[%s17320_s6 + $0x94] sm:$0xf0] }
0x1bfe   : > { %4160 = vperm.xlu0 %12198, %v17401_v16   ;;  %v11895_v16 = vld [vmem:[%s17320_s6 + $0xc4] sm:$0xf] }
0x1bff   : > { %8874 = vmatpush.bf16.msra.mxu3 %v11360_v43  ;;  %v11337_v43 = vld [vmem:[%s17320_s6 + $0x98] sm:$0xf0] }
0x1c05   : > { %6592 = vperm.xlu1 %12199, %v17402_v2   ;;  %5367 = vperm.xlu2 %12200, %v17403_v1   ;;  %v11361_v2 = vld [vmem:[%s17320_s6 + $0xd0] sm:$0xf0]  ;;  %v11367_v1 = vld [vmem:[%s17320_s6 + $0xc8] sm:$0xf] }
0x1c06   : > { %5361 = vperm.xlu0 %12198, %v17404_v62  }
0x1c0d   : > { %7793 = vperm.xlu1 %12199, %v16186_v5   ;;  %5376 = vperm.xlu2 %12200, %v17405_v54   ;;  %v17411_v5 = vld [vmem:[#allocation24_spill] sm:$0xff]  ;;  %v12122_v54 = vunpack.c.h.bf16 %v16956_v63 }
0x1c0e   : > { %5370 = vperm.xlu0 %12198, %v17406_v18  }
0x1c15   : > { %6577 = vperm.xlu2 %12200, %v17407_v40   ;;  %9003 = vperm.xlu1 %12199, %v8455_v22  }
0x1c16   : > { %6571 = vperm.xlu0 %12198, %v17408_v20   ;;  %v11898_v20 = vld [vmem:[%s17320_s6 + $0xd4] sm:$0xf0] }
0x1c1d   : > { %6586 = vperm.xlu2 %12200, %v17409_v13   ;;  %9012 = vperm.xlu1 %12199, %v8458_v39   ;;  %v11383_v39 = vld [vmem:[%s17320_s6 + $0xe8] sm:$0xf]  ;;  %v11896_v13 = vld [vmem:[%s17320_s6 + $0xcc] sm:$0xf] }
0x1c1e   : > { %6580 = vperm.xlu0 %12198, %v17410_v55   ;;  %v11384_v36 = vor.u32 %v11902_v0, %v11383_v39  ;;  %v11369_v55 = vld [vmem:[%s17320_s6 + $0xd8] sm:$0xf0] }
0x1c20   : > { %8899 = vmatpush.bf16.msrb.mxu1 %v11384_v36 }
0x1c25   : > { %7787 = vperm.xlu2 %12200, %v16177_v21   ;;  %9018 = vperm.xlu1 %12199, %v8460_v7  }
0x1c26   : > { %6589 = vperm.xlu0 %12198, %v17411_v5  }
0x1c2d   : > { %7796 = vperm.xlu2 %12200, %v16183_v58   ;;  %7808 = vperm.xlu1 %12199, %v17412_v48   ;;  %v12113_v48 = vunpack.c.l.bf16 %v16914_v51 }
0x1c2e   : > { %7790 = vperm.xlu0 %12198, %v17413_v17  }
0x1c2f   : > { %v8491_v30 = vpop.permute.xlu2 %8490 }
0x1c30   : > { %v8496_v56 = vperm.slane %v8491_v30, %v17414_v61  ;;  %v11364_v30 = vor.u32 %v11895_v16, %v11361_v2 }
0x1c32   : > { %v8552_v21 = vunpack.c.l.bf16 %v8496_v56 }
0x1c34   : > { %v8568_v58 = vmul.f32 %v12114_v27, %v8552_v21 }
0x1c35   : > { %9006 = vperm.xlu2 %12200, %v8456_v44   ;;  %v12118_v44 = vunpack.c.h.bf16 %v16922_v3 }
0x1c36   : > { %7799 = vperm.xlu0 %12198, %v17415_v24   ;;  %v8576_v31 = vpack.c.bf16 %v8568_v58, %v8568_v58  ;;  %v11368_v24 = vor.u32 %v11898_v20, %v11367_v1  ;;  %v11893_v58 = vld [vmem:[%s17320_s6 + $0xac] sm:$0xf0] }
0x1c37   : > { %v8509_v52 = vpop.permute.xlu2 %8508 }
0x1c38   : > { %v8514_v23 = vperm.slane %v8509_v52, %v17414_v61  ;;  %v8584_v7 = vunpack.c.l.bf16 %v8576_v31  ;;  %v11343_v52 = vld [vmem:[%s17320_s6 + $0xa0] sm:$0xf]  ;;  %8900 = vmatpush.bf16.msrb.mxu1 %v11368_v24 }
0x1c39   : > { %v11344_v51 = vor.u32 %v11893_v58, %v11343_v52  ;;  %v11319_v52 = vld [vmem:[%s17320_s6 + $0x68] sm:$0xf]  ;;  %v11886_v58 = vld [vmem:[%s17320_s6 + $0x74] sm:$0xf0] }
0x1c3a   : > { %v8554_v22 = vunpack.c.l.bf16 %v8514_v23  ;;  %v8597_v15 = vrot.slane %v8584_v7, 4  ;;  %v11372_v23 = vor.u32 %v11896_v13, %v11369_v55  ;;  %v11311_v13 = vld [vmem:[%s17320_s6 + $0x60] sm:$0xf]  ;;  %v11885_v55 = vld [vmem:[%s17320_s6 + $0x6c] sm:$0xf0] }
0x1c3b   : > { %8875 = vmatpush.bf16.msra.mxu3 %v11344_v51 }
0x1c3c   : > { %v8570_v53 = vmul.f32 %v12118_v44, %v8554_v22  ;;  %v8598_v5 = vadd.f32 %v8597_v15, %v8584_v7  ;;  %v11345_v7 = vld [vmem:[%s17320_s6 + $0xb0] sm:$0xf0]  ;;  %v11351_v44 = vld [vmem:[%s17320_s6 + $0xa8] sm:$0xf]  ;;  %8913 = vmatpush.bf16.msrb.mxu2 %v11372_v23  ;;  %v11327_v15 = vld [vmem:[%s17320_s6 + $0x80] sm:$0xf] }
0x1c3d   : > { %9015 = vperm.xlu2 %12200, %v8459_v50   ;;  %v16952_v50 = vld [vmem:[%s13101_s22 + $0x18] sm:$0xff]  }
0x1c3e   : > { %9009 = vperm.xlu0 %12198, %v8457_v37   ;;  %v11380_v37 = vor.u32 %v11899_v35, %v11377_v57  ;;  %v12125_v62 = vunpack.c.l.bf16 %v16952_v50  ;;  %v8578_v56 = vpack.c.bf16 %v8570_v53, %v8570_v53  ;;  %v11353_v35 = vld [vmem:[%s17320_s6 + $0xb8] sm:$0xf0]  ;;  %v8599_v57 = vrot.slane %v8598_v5, 2  ;;  %v11887_v53 = vld [vmem:[%s17320_s6 + $0x84] sm:$0xf] }
0x1c3f   : > { %v8536_v25 = vpop.permute.xlu2 %8535  ;;  %v11356_v0 = vor.u32 %v11892_v26, %v11353_v35  ;;  %v11295_v26 = vld [vmem:[%s17320_s6 + $0x40] sm:$0xf]  ;;  %v11881_v35 = vld [vmem:[%s17320_s6 + $0x4c] sm:$0xf0] }
0x1c40   : > { %v8541_v45 = vperm.slane %v8536_v25, %v17414_v61  ;;  %8886 = vmatpush.bf16.msrb.mxu0 %v11380_v37  ;;  %v11891_v25 = vld [vmem:[%s17320_s6 + $0xa4] sm:$0xf]  ;;  %v11352_v37 = vor.u32 %v11894_v14, %v11351_v44  ;;  %v8586_v46 = vunpack.c.l.bf16 %v8578_v56  ;;  %v17042_v16 = vadd.f32 %v8599_v57, %v8598_v5 }
0x1c41   : > { %v11348_v41 = vor.u32 %v11891_v25, %v11345_v7  ;;  %8914 = vmatpush.bf16.msrb.mxu2 %v11356_v0  ;;  %v11883_v56 = vld [vmem:[%s17320_s6 + $0x64] sm:$0xf]  ;;  %v11320_v25 = vor.u32 %v11886_v58, %v11319_v52  ;;  %v11321_v7 = vld [vmem:[%s17320_s6 + $0x78] sm:$0xf0]  ;;  %v11296_v0 = vor.u32 %v11881_v35, %v11295_v26  ;;  %v11263_v52 = vld [vmem:[%s17320_s6] sm:$0xf] }
0x1c42   : > { %v8557_v27 = vunpack.c.l.bf16 %v8541_v45  ;;  %v11335_v45 = vld [vmem:[%s17320_s6 + $0x88] sm:$0xf]  ;;  %8901 = vmatpush.bf16.msrb.mxu1 %v11352_v37  ;;  %v8601_v44 = vrot.slane %v17042_v16, 1 }
0x1c43   : > { %v11271_v35 = vld [vmem:[%s17320_s6 + $0x8] sm:$0xf] }
0x1c44   : > { %8887 = vmatpush.bf16.msrb.mxu0 %v11364_v30  ;;  %v8573_v32 = vmul.f32 %v12125_v62, %v8557_v27  ;;  %v11312_v30 = vor.u32 %v11885_v55, %v11311_v13  ;;  %v11313_v27 = vld [vmem:[%s17320_s6 + $0x70] sm:$0xf0]  ;;  %v11287_v55 = vld [vmem:[%s17320_s6 + $0x28] sm:$0xf] }
0x1c45   : > { %7805 = vperm.xlu2 %12200, %v17416_v47   ;;  %v11889_v47 = vld [vmem:[%s17320_s6 + $0x8c] sm:$0xf0]  ;;  %v11316_v24 = vor.u32 %v11883_v56, %v11313_v27  ;;  %v11876_v27 = vld [vmem:[%s17320_s6 + $0x2c] sm:$0xf] }
0x1c46   : > { %7802 = vperm.xlu0 %12198, %v17417_v8   ;;  %v12117_v8 = vunpack.c.l.bf16 %v16922_v3 }
0x1c47   : > { %v8527_v11 = vpop.permute.xlu1 %8526  ;;  %v16966_v9 = vpop.permute.xlu2 %4151 }
0x1c48   : > { %v8532_v18 = vperm.slane %v8527_v11, %v17414_v61  ;;  %v8482_v40 = vpop.permute.xlu0 %8481  ;;  %8888 = vmatpush.bf16.msrb.mxu0 %v11348_v41  ;;  %v11888_v11 = vld [vmem:[%s17320_s6 + $0x8c] sm:$0xf] }
0x1c49   : > { %v8487_v17 = vperm.slane %v8482_v40, %v17414_v61  ;;  %v11336_v40 = vor.u32 %v11890_v33, %v11335_v45  ;;  %v11340_v20 = vor.u32 %v11888_v11, %v11337_v43  ;;  %v11877_v33 = vld [vmem:[%s17320_s6 + $0x2c] sm:$0xf0] }
0x1c4a   : > { %v8556_v21 = vunpack.c.l.bf16 %v8532_v18  ;;  %v8581_v18 = vpack.c.bf16 %v8573_v32, %v8573_v32  ;;  %v11297_v32 = vld [vmem:[%s17320_s6 + $0x50] sm:$0xf0] }
0x1c4b   : > { %v8551_v31 = vunpack.c.l.bf16 %v8487_v17  ;;  %8902 = vmatpush.bf16.msrb.mxu1 %v11336_v40  ;;  %8915 = vmatpush.bf16.msrb.mxu2 %v11340_v20 }
0x1c4c   : > { %v8572_v22 = vmul.f32 %v12122_v54, %v8556_v21  ;;  %v8609_v54 = vrot.slane %v8586_v46, 4  ;;  %v17074_v41 = vunpack.c.l.bf16 %v8581_v18 }
0x1c4d   : > { %v8567_v39 = vmul.f32 %v12113_v48, %v8551_v31  ;;  %9024 = vperm.xlu2 %12200, %v16881_v28   ;;  %v11328_v28 = vor.u32 %v11889_v47, %v11327_v15  ;;  %v11884_v31 = vld [vmem:[%s17320_s6 + $0x6c] sm:$0xf]  ;;  %v11303_v47 = vld [vmem:[%s17320_s6 + $0x48] sm:$0xf] }
0x1c4e   : > { %9021 = vperm.xlu0 %12198, %v16874_v38   ;;  %v8580_v36 = vpack.c.bf16 %v8572_v22, %v8572_v22  ;;  %v11329_v38 = vld [vmem:[%s17320_s6 + $0x90] sm:$0xf0]  ;;  %v8610_v22 = vadd.f32 %v8609_v54, %v8586_v46  ;;  %v11324_v14 = vor.u32 %v11884_v31, %v11321_v7  ;;  %v11879_v46 = vld [vmem:[%s17320_s6 + $0x44] sm:$0xf]  ;;  %v8627_v43 = vrot.slane %v17074_v41, 4 }
0x1c4f   : > { %v8575_v49 = vpack.c.bf16 %v8567_v39, %v8567_v39  ;;  %v17045_v3 = vpop.permute.xlu2 %4157  ;;  %v11332_v62 = vor.u32 %v11887_v53, %v11329_v38  ;;  %8876 = vmatpush.bf16.msra.mxu3 %v11328_v28  ;;  %v17059_v21 = vpop.permute.xlu1 %5355  ;;  %8903 = vmatpush.bf16.msrb.mxu1 %v11320_v25  ;;  %v12121_v53 = vunpack.c.l.bf16 %v16956_v63  ;;  %v11300_v45 = vor.u32 %v11879_v46, %v11297_v32  ;;  %v11265_v25 = vld [vmem:[%s17320_s6 + $0x10] sm:$0xf0]  ;;  %v11273_v32 = vld [vmem:[%s17320_s6 + $0x18] sm:$0xf0] }
0x1c50   : > { %v8500_v29 = vpop.permute.xlu0 %8499  ;;  %v8588_v5 = vunpack.c.l.bf16 %v8580_v36  ;;  %v11882_v36 = vld [vmem:[%s17320_s6 + $0x54] sm:$0xf0]  ;;  %8916 = vmatpush.bf16.msrb.mxu2 %v11324_v14  ;;  %v8611_v11 = vrot.slane %v8610_v22, 2 }
0x1c51   : > { %v8583_v2 = vunpack.c.l.bf16 %v8575_v49  ;;  %v8505_v1 = vperm.slane %v8500_v29, %v17414_v61  ;;  %8889 = vmatpush.bf16.msrb.mxu0 %v11332_v62  ;;  %v11880_v49 = vld [vmem:[%s17320_s6 + $0x4c] sm:$0xf]  ;;  %v11279_v29 = vld [vmem:[%s17320_s6 + $0x20] sm:$0xf]  ;;  %v11304_v63 = vor.u32 %v11882_v36, %v11303_v47  ;;  %v11281_v62 = vld [vmem:[%s17320_s6 + $0x30] sm:$0xf0]  ;;  %v12126_v36 = vunpack.c.h.bf16 %v16952_v50 }
0x1c52   : > { %v8621_v57 = vrot.slane %v8588_v5, 4  ;;  %v11280_v13 = vor.u32 %v11877_v33, %v11279_v29  ;;  %v8612_v7 = vadd.f32 %v8611_v11, %v8610_v22  ;;  %v4163_v29 = vperm.slane %v16901_v10, %v12838_v6 }
0x1c53   : > { %v8591_v48 = vrot.slane %v8583_v2, 4  ;;  %v8553_v17 = vunpack.c.l.bf16 %v8505_v1  ;;  %8877 = vmatpush.bf16.msra.mxu3 %v11312_v30  ;;  %v11875_v1 = vld [vmem:[%s17320_s6 + $0x24] sm:$0xf]  ;;  %8904 = vmatpush.bf16.msrb.mxu1 %v11304_v63  ;;  %v4162_v33 = vperm.slane %v16917_v19, %v12838_v6  ;;  %v4164_v63 = vperm.slane %v16924_v60, %v12838_v6 }
0x1c54   : > { %v11284_v30 = vor.u32 %v11875_v1, %v11281_v62 }
0x1c55   : > { %v8592_v23 = vadd.f32 %v8591_v48, %v8583_v2  ;;  %v8569_v51 = vmul.f32 %v12117_v8, %v8553_v17  ;;  %8890 = vmatpush.bf16.msrb.mxu0 %v11316_v24  ;;  %v11305_v8 = vld [vmem:[%s17320_s6 + $0x58] sm:$0xf0]  ;;  %v11878_v48 = vld [vmem:[%s17320_s6 + $0x34] sm:$0xf0]  ;;  %v8622_v17 = vadd.f32 %v8621_v57, %v8588_v5  ;;  %v11873_v5 = vld [vmem:[%s17320_s6 + $0xc] sm:$0xf0] }
0x1c56   : > { %v11308_v2 = vor.u32 %v11880_v49, %v11305_v8  ;;  %v11288_v56 = vor.u32 %v11878_v48, %v11287_v55  ;;  %v11289_v24 = vld [vmem:[%s17320_s6 + $0x38] sm:$0xf0]  ;;  %v11264_v26 = vor.u32 %v11873_v5, %v11263_v52  ;;  %v11874_v57 = vld [vmem:[%s17320_s6 + $0x14] sm:$0xf0] }
0x1c57   : > { %v8593_v39 = vrot.slane %v8592_v23, 2  ;;  %v8577_v37 = vpack.c.bf16 %v8569_v51, %v8569_v51  ;;  %8878 = vmatpush.bf16.msra.mxu3 %v11296_v0  ;;  %v17115_v20 = vpop.permute.xlu2 %5358  ;;  %v11871_v51 = vld [vmem:[%s17320_s6 + $0x4] sm:$0xf]  ;;  %v17141_v14 = vpop.permute.xlu1 %5364  ;;  %v8623_v47 = vrot.slane %v8622_v17, 2 }
0x1c58   : > { %v8518_v15 = vpop.permute.xlu0 %8517  ;;  %8917 = vmatpush.bf16.msrb.mxu2 %v11308_v2  ;;  %v11268_v22 = vor.u32 %v11871_v51, %v11265_v25  ;;  %8905 = vmatpush.bf16.msrb.mxu1 %v11288_v56  ;;  %v8613_v2 = vrot.slane %v8612_v7, 1 }
0x1c59   : > { %v8585_v28 = vunpack.c.l.bf16 %v8577_v37  ;;  %v8523_v38 = vperm.slane %v8518_v15, %v17414_v61  ;;  %v8594_v54 = vadd.f32 %v8593_v39, %v8592_v23  ;;  %8891 = vmatpush.bf16.msrb.mxu0 %v11300_v45  ;;  %v11292_v23 = vor.u32 %v11876_v27, %v11289_v24  ;;  %v11872_v39 = vld [vmem:[%s17320_s6 + $0xc] sm:$0xf] }
0x1c5a   : > { %v8628_v15 = vadd.f32 %v8627_v43, %v17074_v41  ;;  %v11276_v8 = vor.u32 %v11872_v39, %v11273_v32  ;;  %v8624_v10 = vadd.f32 %v8623_v47, %v8622_v17 }
0x1c5b   : > { %v8603_v18 = vrot.slane %v8585_v28, 4  ;;  %v8555_v40 = vunpack.c.l.bf16 %v8523_v38  ;;  %8879 = vmatpush.bf16.msra.mxu3 %v11280_v13  ;;  %v8595_v37 = vrot.slane %v8594_v54, 1 }
0x1c5c   : > { %8918 = vmatpush.bf16.msrb.mxu2 %v11292_v23  ;;  %v8629_v1 = vrot.slane %v8628_v15, 2  ;;  %v8625_v24 = vrot.slane %v8624_v10, 1  ;;  %v4166_v23 = vperm.slane %v16966_v9, %v12838_v6 }
0x1c5d   : > { %v8604_v58 = vadd.f32 %v8603_v18, %v8585_v28  ;;  %v8571_v31 = vmul.f32 %v12121_v53, %v8555_v40  ;;  %8892 = vmatpush.bf16.msrb.mxu0 %v11284_v30  ;;  %v11272_v28 = vor.u32 %v11874_v57, %v11271_v35  ;;  %v8596_v41 = vadd.f32 %v8595_v37, %v8594_v54 }
0x1c5e   : > { %v4170_v54 = vsel %vm1033_vm0, %v4163_v29, %v4162_v33  ;;  %v8614_v30 = vadd.f32 %v8613_v2, %v8612_v7  ;;  %v8630_v56 = vadd.f32 %v8629_v1, %v8628_v15 }
0x1c5f   : > { %v8605_v0 = vrot.slane %v8604_v58, 2  ;;  %v8579_v46 = vpack.c.bf16 %v8571_v31, %v8571_v31  ;;  %8880 = vmatpush.bf16.msra.mxu3 %v11264_v26  ;;  %8906 = vmatpush.bf16.msrb.mxu1 %v11272_v28  ;;  %v17167_v40 = vpop.permute.xlu2 %5367  ;;  %v8648_v13 = vpack.c.bf16 %v8596_v41, %v8596_v41  ;;  %v4171_v60 = vsel %vm1035_vm1, %v4164_v63, %v4170_v54 }
0x1c60   : > { %v8545_v49 = vpop.permute.xlu0 %8544  ;;  %8919 = vmatpush.bf16.msrb.mxu2 %v11276_v8  ;;  %v4165_v31 = vperm.slane %v16907_v4, %v12838_v6  ;;  %v8651_v26 = vpack.c.bf16 %v8614_v30, %v8614_v30  ;;  %v8631_v35 = vrot.slane %v8630_v56, 1 }
0x1c61   : > { %v8606_v53 = vadd.f32 %v8605_v0, %v8604_v58  ;;  %v8587_v38 = vunpack.c.l.bf16 %v8579_v46  ;;  %v8550_v45 = vperm.slane %v8545_v49, %v17414_v61  ;;  %8893 = vmatpush.bf16.msrb.mxu0 %v11268_v22  ;;  %v8602_v61 = vadd.f32 %v8601_v44, %v17042_v16  ;;  %v17171_v44 = vpop.permute.xlu1 %5373 }
0x1c62   : > { %v8696_v5 = vunpack.c.l.b16 %v8648_v13  ;;  %v4172_v57 = vsel %vm1037_vm2, %v4165_v31, %v4171_v60  ;;  %v8626_v0 = vadd.f32 %v8625_v24, %v8624_v10  ;;  %v8699_v49 = vunpack.c.l.b16 %v8651_v26 }
0x1c63   : > { %v8607_v11 = vrot.slane %v8606_v53, 1  ;;  %v8615_v43 = vrot.slane %v8587_v38, 4  ;;  %v8558_v50 = vunpack.c.l.bf16 %v8550_v45  ;;  %v8649_v17 = vpack.c.bf16 %v8602_v61, %v8602_v61 }
0x1c64   : > { %v4173_v32 = vsel %vm1039_vm3, %v4166_v23, %v4172_v57  ;;  %v8632_v28 = vadd.f32 %v8631_v35, %v8630_v56  ;;  %v8653_v8 = vpack.c.bf16 %v8626_v0, %v8626_v0 }
0x1c65   : > { %v8608_v62 = vadd.f32 %v8607_v11, %v8606_v53  ;;  %v8616_v18 = vadd.f32 %v8615_v43, %v8587_v38  ;;  %v8574_v19 = vmul.f32 %v12126_v36, %v8558_v50  ;;  %v8697_v37 = vunpack.c.l.b16 %v8649_v17 }
0x1c66   : > { %v4168_v38 = vperm.slane %v17045_v3, %v12838_v6  ;;  %v8654_v2 = vpack.c.bf16 %v8632_v28, %v8632_v28  ;;  %v8701_v3 = vunpack.c.l.b16 %v8653_v8 }
0x1c67   : > { %v8617_v55 = vrot.slane %v8616_v18, 2  ;;  %v8582_v48 = vpack.c.bf16 %v8574_v19, %v8574_v19  ;;  %v8650_v16 = vpack.c.bf16 %v8608_v62, %v8608_v62  ;;  %v8704_v4 = vsel %vm1033_vm0, %v8697_v37, %v8696_v5  ;;  %v5377_v36 = vpop.permute.xlu2 %5376 }
0x1c68   : > { %v4155_v27 = vpop.permute.xlu0 %4154  ;;  %v5379_v62 = vperm.slane %v17115_v20, %v12838_v6  ;;  %v8702_v54 = vunpack.c.l.b16 %v8654_v2  ;;  %v5384_v5 = vperm.slane %v17171_v44, %v12838_v6 }
0x1c69   : > { %v8618_v52 = vadd.f32 %v8617_v55, %v8616_v18  ;;  %v8590_v58 = vunpack.c.l.bf16 %v8582_v48  ;;  %v4167_v7 = vperm.slane %v4155_v27, %v12838_v6  ;;  %v8698_v39 = vunpack.c.l.b16 %v8650_v16  ;;  %v6575_v11 = vpop.permute.xlu1 %6574 }
0x1c6a   : > { %v5378_v55 = vperm.slane %v17059_v21, %v12838_v6  ;;  %v6595_v44 = vperm.slane %v6575_v11, %v12838_v6 }
0x1c6b   : > { %v8619_v51 = vrot.slane %v8618_v52, 1  ;;  %v8633_v25 = vrot.slane %v8590_v58, 4  ;;  %v4174_v47 = vsel %vm1041_vm4, %v4167_v7, %v4173_v32  ;;  %v8705_v53 = vsel %vm1035_vm1, %v8698_v39, %v8704_v4 }
0x1c6c   : > { %v4175_v43 = vsel %vm1043_vm5, %v4168_v38, %v4174_v47  ;;  %v8706_v50 = vsel %vm1037_vm2, %v8699_v49, %v8705_v53  ;;  %v5386_v16 = vsel %vm1033_vm0, %v5379_v62, %v5378_v55 }
0x1c6d   : > { %v8620_v46 = vadd.f32 %v8619_v51, %v8618_v52  ;;  %v8634_v22 = vadd.f32 %v8633_v25, %v8590_v58  ;;  %v5381_v52 = vperm.slane %v17141_v14, %v12838_v6  ;;  %v5382_v58 = vperm.slane %v17167_v40, %v12838_v6 }
0x1c6e   : > { %v5385_v14 = vperm.slane %v5377_v36, %v12838_v6 }
0x1c6f   : > { %v8652_v15 = vpack.c.bf16 %v8620_v46, %v8620_v46  ;;  %v8635_v9 = vrot.slane %v8634_v22, 2  ;;  %v6578_v60 = vpop.permute.xlu2 %6577 }
0x1c70   : > { %v4161_v45 = vpop.permute.xlu0 %4160  ;;  %v6596_v32 = vperm.slane %v6578_v60, %v12838_v6 }
0x1c71   : > { %v8700_v29 = vunpack.c.l.b16 %v8652_v15  ;;  %v8636_v33 = vadd.f32 %v8635_v9, %v8634_v22  ;;  %v4169_v41 = vperm.slane %v4161_v45, %v12838_v6  ;;  %v6584_v17 = vpop.permute.xlu1 %6583 }
0x1c72   : > { %v6598_v47 = vperm.slane %v6584_v17, %v12838_v6 }
0x1c73   : > { %v8637_v63 = vrot.slane %v8636_v33, 1  ;;  %v4176_v61 = vsel %vm1045_vm6, %v4169_v41, %v4175_v43  ;;  %v8707_v1 = vsel %vm1039_vm3, %v8700_v29, %v8706_v50 }
0x1c74   : > { %10205 = vst.msk [vmem:[%s16795_s11 + $0x10] sm:$0xff] %vm1048_vm7, %v4176_v61  ;;  %v8708_v19 = vsel %vm1041_vm4, %v8701_v3, %v8707_v1 }
0x1c75   : > { %v8638_v10 = vadd.f32 %v8637_v63, %v8636_v33  ;;  %v8709_v56 = vsel %vm1043_vm5, %v8702_v54, %v8708_v19 }
0x1c77   : > { %v8655_v18 = vpack.c.bf16 %v8638_v10, %v8638_v10  ;;  %v6587_v25 = vpop.permute.xlu2 %6586 }
0x1c78   : > { %v5362_v13 = vpop.permute.xlu0 %5361  ;;  %v6599_v28 = vperm.slane %v6587_v25, %v12838_v6 }
0x1c79   : > { %v8703_v48 = vunpack.c.l.b16 %v8655_v18  ;;  %v5380_v30 = vperm.slane %v5362_v13, %v12838_v6  ;;  %v6593_v57 = vpop.permute.xlu1 %6592 }
0x1c7a   : > { %v6601_v45 = vperm.slane %v6593_v57, %v12838_v6 }
0x1c7b   : > { %v8710_v27 = vsel %vm1045_vm6, %v8703_v48, %v8709_v56  ;;  %v5387_v20 = vsel %vm1035_vm1, %v5380_v30, %v5386_v16 }
0x1c7c   : > { %v8711_v24 = vpack.c.b16 %v8710_v27, %v8710_v27  ;;  %v5388_v21 = vsel %vm1037_vm2, %v5381_v52, %v5387_v20 }
0x1c7d   : > { %v5389_v51 = vsel %vm1039_vm3, %v5382_v58, %v5388_v21 }
0x1c7e   : > { %8881 = vmatmul.bf16.vlgmr.msra.gmra.mxu3 %v8711_v24  ;;  %8894 = vmatmul.bf16.vlgmr.msrb.gmra.mxu0 %v8711_v24 }
0x1c7f   : > { %8907 = vmatmul.bf16.vlgmr.msrb.gmra.mxu1 %v8711_v24  ;;  %8920 = vmatmul.bf16.vlgmr.msrb.gmra.mxu2 %v8711_v24  ;;  %v7788_v37 = vpop.permute.xlu2 %7787 }
0x1c80   : > { %v5371_v31 = vpop.permute.xlu0 %5370  ;;  %v7810_v10 = vperm.slane %v7788_v37, %v12838_v6 }
0x1c81   : > { %v5383_v23 = vperm.slane %v5371_v31, %v12838_v6  ;;  %v7794_v0 = vpop.permute.xlu1 %7793 }
0x1c82   : > { %v7812_v18 = vperm.slane %v7794_v0, %v12838_v6 }
0x1c83   : > { %v5390_v7 = vsel %vm1041_vm4, %v5383_v23, %v5389_v51 }
0x1c84   : > { %v5391_v26 = vsel %vm1043_vm5, %v5384_v5, %v5390_v7 }
0x1c85   : > { %v5392_v35 = vsel %vm1045_vm6, %v5385_v14, %v5391_v26 }
0x1c86   : > { %10502 = vst.msk [vmem:[%s16795_s11 + $0x18] sm:$0xff] %vm1048_vm7, %v5392_v35 }
0x1c87   : > { %v7797_v36 = vpop.permute.xlu2 %7796 }
0x1c88   : > { %v6572_v40 = vpop.permute.xlu0 %6571  ;;  %v7813_v30 = vperm.slane %v7797_v36, %v12838_v6 }
0x1c89   : > { %v6594_v39 = vperm.slane %v6572_v40, %v12838_v6  ;;  %v9004_v8 = vpop.permute.xlu1 %9003 }
0x1c8a   : > { %v9026_v55 = vperm.slane %v9004_v8, %v12838_v6 }
0x1c8b   : > { %v6602_v46 = vsel %vm1033_vm0, %v6595_v44, %v6594_v39 }
0x1c8c   : > { %v6603_v15 = vsel %vm1035_vm1, %v6596_v32, %v6602_v46  ;;  %v11258_v46 = vld [vmem:[%s13397_s29 + $0xc8] sm:$0xff] }
0x1c8f   : > { %v9007_v43 = vpop.permute.xlu2 %9006 }
0x1c90   : > { %v6581_v22 = vpop.permute.xlu0 %6580  ;;  %v9027_v19 = vperm.slane %v9007_v43, %v12838_v6 }
0x1c91   : > { %v6597_v4 = vperm.slane %v6581_v22, %v12838_v6  ;;  %v9013_v50 = vpop.permute.xlu1 %9012  ;;  %v8645_v22 = vadd.f32 %v11258_v46, %v16705_v59 }
0x1c92   : > { %v9034_v56 = vsel %vm1033_vm0, %v9027_v19, %v9026_v55  ;;  %v9029_v52 = vperm.slane %v9013_v50, %v12838_v6 }
0x1c93   : > { %v6604_v9 = vsel %vm1037_vm2, %v6597_v4, %v6603_v15 }
0x1c94   : > { %v6605_v49 = vsel %vm1039_vm3, %v6598_v47, %v6604_v9  ;;  %v11257_v9 = vld [vmem:[%s13397_s29 + $0xc0] sm:$0xff]  ;;  %v11260_v47 = vld [vmem:[%s13397_s29 + $0xd8] sm:$0xff] }
0x1c95   : > { %v6606_v29 = vsel %vm1041_vm4, %v6599_v28, %v6605_v49  ;;  %v8644_v49 = vadd.f32 %v11257_v9, %v16721_v34  ;;  %v9103_v9 = vld [vmem:[%s13653_s23 + $0x18] sm:$0xff] (%p12670_p5) }
0x1c96   : > { %9104 = vst [vmem:[%s9056_s12 + $0x30] sm:$0xff] (%p12670_p5), %v9103_v9 }
0x1c97   : > { %v9016_v61 = vpop.permute.xlu2 %9015 }
0x1c98   : > { %v6590_v53 = vpop.permute.xlu0 %6589  ;;  %v9030_v14 = vperm.slane %v9016_v61, %v12838_v6 }
0x1c99   : > { %v6600_v38 = vperm.slane %v6590_v53, %v12838_v6  ;;  %v9019_v2 = vpop.permute.xlu1 %9018 }
0x1c9a   : > { %v9031_v35 = vperm.slane %v9019_v2, %v12838_v6 }
0x1c9b   : > { %v6607_v33 = vsel %vm1043_vm5, %v6600_v38, %v6606_v29 }
0x1c9c   : > { %v6608_v41 = vsel %vm1045_vm6, %v6601_v45, %v6607_v33 }
0x1c9d   : > { %10799 = vst.msk [vmem:[%s16795_s11 + $0x20] sm:$0xff] %vm1048_vm7, %v6608_v41 }
0x1c9f   : > { %v7806_v54 = vpop.permute.xlu2 %7805 }
0x1ca0   : > { %v7791_v11 = vpop.permute.xlu0 %7790  ;;  %v7816_v21 = vperm.slane %v7806_v54, %v12838_v6 }
0x1ca1   : > { %v7811_v1 = vperm.slane %v7791_v11, %v12838_v6  ;;  %v7809_v16 = vpop.permute.xlu1 %7808 }
0x1ca2   : > { %v7817_v31 = vperm.slane %v7809_v16, %v12838_v6 }
0x1ca3   : > { %v7818_v62 = vsel %vm1033_vm0, %v7811_v1, %v7810_v10  ;;  %v11259_v1 = vld [vmem:[%s13397_s29 + $0xd0] sm:$0xff] }
0x1ca4   : > { %v7819_v48 = vsel %vm1035_vm1, %v7812_v18, %v7818_v62  ;;  %v8646_v62 = vadd.f32 %v11259_v1, %v16707_v42 }
0x1ca5   : > { %v7820_v17 = vsel %vm1037_vm2, %v7813_v30, %v7819_v48 }
0x1ca7   : > { %v9025_v7 = vpop.permute.xlu2 %9024 }
0x1ca8   : > { %v7800_v63 = vpop.permute.xlu0 %7799  ;;  %v9033_v39 = vperm.slane %v9025_v7, %v12838_v6 }
0x1ca9   : > { %v7814_v60 = vperm.slane %v7800_v63, %v12838_v6 }
0x1cab   : > { %v7821_v58 = vsel %vm1039_vm3, %v7814_v60, %v7820_v17 }
0x1cb0   : > { %v9010_v3 = vpop.permute.xlu0 %9009 }
0x1cb1   : > { %v9028_v13 = vperm.slane %v9010_v3, %v12838_v6 }
0x1cb3   : > { %v9035_v20 = vsel %vm1035_vm1, %v9028_v13, %v9034_v56 }
0x1cb4   : > { %v9036_v5 = vsel %vm1037_vm2, %v9029_v52, %v9035_v20 }
0x1cb5   : > { %v9037_v26 = vsel %vm1039_vm3, %v9030_v14, %v9036_v5 }
0x1cb6   : > { %v9038_v37 = vsel %vm1041_vm4, %v9031_v35, %v9037_v26 }
0x1cb8   : > { %v7803_v27 = vpop.permute.xlu0 %7802 }
0x1cb9   : > { %v7815_v24 = vperm.slane %v7803_v27, %v12838_v6 }
0x1cbb   : > { %v7822_v23 = vsel %vm1041_vm4, %v7815_v24, %v7821_v58 }
0x1cbc   : > { %v7823_v51 = vsel %vm1043_vm5, %v7816_v21, %v7822_v23 }
0x1cbd   : > { %v7824_v25 = vsel %vm1045_vm6, %v7817_v31, %v7823_v51 }
0x1cbe   : > { %11096 = vst.msk [vmem:[%s16795_s11 + $0x28] sm:$0xff] %vm1048_vm7, %v7824_v25  ;;  %v17418_v25 = vld [vmem:[#allocation30_spill] sm:$0xff] }
0x1cc0   : > { %v9022_v57 = vpop.permute.xlu0 %9021 }
0x1cc1   : > { %v9032_v40 = vperm.slane %v9022_v57, %v12838_v6  ;;  %v8647_v6 = vadd.f32 %v11260_v47, %v16734_v12  ;;  %v9105_v47 = vld [vmem:[%s13653_s23 + $0x20] sm:$0xff] (%p12670_p5) }
0x1cc2   : > { %9106 = vst [vmem:[%s9056_s12 + $0x40] sm:$0xff] (%p12670_p5), %v9105_v47 }
0x1cc3   : > { %v9039_v44 = vsel %vm1043_vm5, %v9032_v40, %v9038_v37 }
0x1cc4   : > { %v9040_v0 = vsel %vm1045_vm6, %v9033_v39, %v9039_v44 }
0x1cc5   : > { %11393 = vst.msk [vmem:[%s16795_s11 + $0x30] sm:$0xff] %vm1048_vm7, %v9040_v0 }
0x1cfb   : > { %v8895_v32 = vpop.f32.mrf.mxu0 }
0x1cfc   : > { %v8926_v4 = vadd.f32 %v8895_v32, %v8645_v22  ;;  %v8908_v15 = vpop.f32.mrf.mxu1  ;;  %v9097_v32 = vld [vmem:[%s13653_s23] sm:$0xff] (%p12670_p5) }
0x1cfd   : > { %v8927_v54 = vadd.f32 %v8908_v15, %v8646_v62  ;;  %v9101_v15 = vld [vmem:[%s13653_s23 + $0x10] sm:$0xff] (%p12670_p5)  ;;  %9098 = vst [vmem:[%s9056_s12] sm:$0xff] (%p12670_p5), %v9097_v32 }
0x1cfe   : > { %v11390_v36 = vmul.f32 -1.442695, %v8926_v4  ;;  %v9099_v4 = vld [vmem:[%s13653_s23 + $0x8] sm:$0xff] (%p12670_p5)  ;;  %9102 = vst [vmem:[%s9056_s12 + $0x20] sm:$0xff] (%p12670_p5), %v9101_v15 }
0x1cff   : > { %9100 = vst [vmem:[%s9056_s12 + $0x10] sm:$0xff] (%p12670_p5), %v9099_v4 }
0x1d00   : > { %12536 = vpow2.f32 %v11390_v36  ;;  %v9107_v36 = vld [vmem:[%s13653_s23 + $0x28] sm:$0xff] (%p12670_p5) }
0x1d01   : > { %v8882_v28 = vpop.f32.mrf.mxu3  ;;  %9108 = vst [vmem:[%s9056_s12 + $0x50] sm:$0xff] (%p12670_p5), %v9107_v36 }
0x1d02   : > { %v8925_v53 = vadd.f32 %v8882_v28, %v8644_v49  ;;  %v8921_v38 = vpop.f32.mrf.mxu2 }
0x1d03   : > { %v8928_v45 = vadd.f32 %v8921_v38, %v8647_v6  ;;  %v8897_v8 = vpop.f32.mrf.mxu0 }
0x1d04   : > { %v11389_v29 = vmul.f32 -1.442695, %v8925_v53  ;;  %v8910_v33 = vpop.f32.mrf.mxu1 }
0x1d05   : > { %v11391_v59 = vmul.f32 -1.442695, %v8928_v45 }
0x1d06   : > { %v12537_v41 = vpop.eup %12536  ;;  %12538 = vpow2.f32 %v11389_v29 }
0x1d07   : > { %v8951_v11 = vadd.f32 1.0, %v12537_v41  ;;  %12540 = vpow2.f32 %v11391_v59 }
0x1d09   : > { %12542 = vrcp.f32 %v8951_v11  ;;  %v8884_v43 = vpop.f32.mrf.mxu3  ;;  %v8963_v60 = vand.u32 2147483648, %v8951_v11  ;;  %vm8957_vm1 = vweird.f32 %v8951_v11  ;;  %v8961_v56 = vand.u32 2147483647, %v8951_v11 }
0x1d0a   : > { %v8923_v50 = vpop.f32.mrf.mxu2 }
0x1d0b   : > { %v8964_v42 = vor.u32 1.1754944e-38, %v8963_v60  ;;  %vm8962_vm4 = vcmp.eq.f32.partialorder %v8961_v56, 8.507059e+37 }
0x1d0c   : > { %v12539_v34 = vpop.eup %12538 }
0x1d0d   : > { %v12541_v63 = vpop.eup %12540  ;;  %v8932_v61 = vadd.f32 1.0, %v12539_v34 }
0x1d0e   : > { %v8971_v12 = vadd.f32 1.0, %v12541_v63 }
0x1d0f   : > { %v12543_v2 = vpop.eup %12542  ;;  %12544 = vrcp.f32 %v8932_v61  ;;  %v8944_v27 = vand.u32 2147483648, %v8932_v61  ;;  %v8942_v24 = vand.u32 2147483647, %v8932_v61  ;;  %vm8938_vm5 = vweird.f32 %v8932_v61 }
0x1d10   : > { %v8953_v3 = vmul.f32 %v12543_v2, %v8951_v11  ;;  %12546 = vrcp.f32 %v8971_v12  ;;  %vm8958_vm0 = vweird.f32 %v12543_v2  ;;  %v8983_v40 = vand.u32 2147483648, %v8971_v12 }
0x1d11   : > { %vm8959_vm2 = vmor %vm8957_vm1, %vm8958_vm0  ;;  %12548 = vtanh.f32 %v8927_v54  ;;  %v8945_v31 = vor.u32 1.1754944e-38, %v8944_v27  ;;  %vm8943_vm7 = vcmp.eq.f32.partialorder %v8942_v24, 8.507059e+37  ;;  %vm8977_vm9 = vweird.f32 %v8971_v12 }
0x1d12   : > { %v8954_v10 = vsub.f32 1.0, %v8953_v3  ;;  %v8981_v39 = vand.u32 2147483647, %v8971_v12  ;;  %v8984_v44 = vor.u32 1.1754944e-38, %v8983_v40 }
0x1d14   : > { %v8955_v18 = vmul.f32 %v12543_v2, %v8954_v10  ;;  %vm8982_vm11 = vcmp.eq.f32.partialorder %v8981_v39, 8.507059e+37 }
0x1d15   : > { %v12545_v19 = vpop.eup %12544 }
0x1d16   : > { %v12547_v13 = vpop.eup %12546  ;;  %v8956_v55 = vadd.f32 %v12543_v2, %v8955_v18  ;;  %v8934_v48 = vmul.f32 %v12545_v19, %v8932_v61  ;;  %vm8939_vm3 = vweird.f32 %v12545_v19 }
0x1d17   : > { %v8973_v30 = vmul.f32 %v12547_v13, %v8971_v12  ;;  %vm8940_vm6 = vmor %vm8938_vm5, %vm8939_vm3  ;;  %v12549_v5 = vpop.eup %12548  ;;  %vm8978_vm8 = vweird.f32 %v12547_v13 }
0x1d18   : > { %v8935_v16 = vsub.f32 1.0, %v8934_v48  ;;  %v8960_v17 = vsel %vm8959_vm2, %v12543_v2, %v8956_v55  ;;  %vm8979_vm10 = vmor %vm8977_vm9, %vm8978_vm8 }
0x1d19   : > { %v8974_v52 = vsub.f32 1.0, %v8973_v30  ;;  %v8965_v58 = vsel %vm8962_vm4, %v8964_v42, %v8960_v17 }
0x1d1a   : > { %v8936_v20 = vmul.f32 %v12545_v19, %v8935_v16  ;;  %v8987_v7 = vmul.f32 %v8965_v58, %v17418_v25 }
0x1d1b   : > { %v8975_v14 = vmul.f32 %v12547_v13, %v8974_v52 }
0x1d1c   : > { %v8937_v21 = vadd.f32 %v12545_v19, %v8936_v20 }
0x1d1d   : > { %v8976_v57 = vadd.f32 %v12547_v13, %v8975_v14 }
0x1d1e   : > { %v8941_v23 = vsel %vm8940_vm6, %v12545_v19, %v8937_v21 }
0x1d1f   : > { %v8946_v51 = vsel %vm8943_vm7, %v8945_v31, %v8941_v23  ;;  %v8980_v37 = vsel %vm8979_vm10, %v12547_v13, %v8976_v57 }
0x1d20   : > { %v8988_v26 = vmul.f32 %v12549_v5, %v8946_v51  ;;  %v8985_v46 = vsel %vm8982_vm11, %v8984_v44, %v8980_v37 }
0x1d22   : > { %v8989_v35 = vadd.f32 %v8988_v26, %v8987_v7 }
0x1d24   : > { %12550 = vtanh.f32 %v8989_v35 }
0x1d29   : > { %9054 = sbr.rel (!%p12670_p5) target bundleno = 7478 (0x1d36), region = 83 }
0x1d2a   : > { %v12551_v0 = vpop.eup %12550 }
0x1d2b   : > { %v8991_v22 = vmul.f32 %v12551_v0, %v8985_v46 }
0x1d2d   : > { %11392 = vst [vmem:[%s13653_s23 + $0x30] sm:$0xff] %v8991_v22 }
0x1d34   : > { %v9109_v49 = vld [vmem:[%s13653_s23 + $0x30] sm:$0xff] }
0x1d35   : > { %9110 = vst [vmem:[%s9056_s12 + $0x60] sm:$0xff] %v9109_v49 }
0x1d36 PF: > { %9116 = sbr.rel (!%p12670_p5) target bundleno = 7486 (0x1d3e), region = 121  ;;  %s9118_s15 = scalar_lea.vmem (%p12670_p5), %s17324_s10, %s12804_s24  ;;  %v9159_v6 = vld [vmem:[%s16795_s11] sm:$0xff] (%p12670_p5)  ;;  %v9161_v28 = vld [vmem:[%s16795_s11 + $0x8] sm:$0xff] (%p12670_p5)  ;;  %v9163_v53 = vld [vmem:[%s16795_s11 + $0x10] sm:$0xff] (%p12670_p5) }
0x1d37   : > { %9160 = vst [vmem:[%s9118_s15] sm:$0xff] (%p12670_p5), %v9159_v6  ;;  %v9165_v38 = vld [vmem:[%s16795_s11 + $0x18] sm:$0xff] (%p12670_p5)  ;;  %v9167_v45 = vld [vmem:[%s16795_s11 + $0x20] sm:$0xff] (%p12670_p5)  ;;  %v9169_v8 = vld [vmem:[%s16795_s11 + $0x28] sm:$0xff] (%p12670_p5) }
0x1d38   : > { %9162 = vst [vmem:[%s9118_s15 + $0x10] sm:$0xff] (%p12670_p5), %v9161_v28  ;;  %v9171_v29 = vld [vmem:[%s16795_s11 + $0x30] sm:$0xff] (%p12670_p5) }
0x1d39   : > { %9164 = vst [vmem:[%s9118_s15 + $0x20] sm:$0xff] (%p12670_p5), %v9163_v53 }
0x1d3a   : > { %9166 = vst [vmem:[%s9118_s15 + $0x30] sm:$0xff] (%p12670_p5), %v9165_v38 }
0x1d3b   : > { %9168 = vst [vmem:[%s9118_s15 + $0x40] sm:$0xff] %v9167_v45 }
0x1d3c   : > { %9170 = vst [vmem:[%s9118_s15 + $0x50] sm:$0xff] %v9169_v8 }
0x1d3d   : > { %9172 = vst [vmem:[%s9118_s15 + $0x60] sm:$0xff] %v9171_v29 }
0x1d3e PF: > { %p18_p12 = scmp.ge.s32.totalorder %s12658_s17, 4   ;;  %s17419_s13 = smov %s12576_s14 }
0x1d3f   : > { %s17420_s14 = smov %s12668_s20  ;;  %s17421_s15 = smov %s12658_s17 }
0x1d40   :  { %20 = sbr.rel (!%p18_p12) target bundleno = 4 (0x4), region = 232 }

</bundles_post_ra>
